<compile_context>
chip_gen: v6e
topology: v6e:2x2x1
jax: 0.10.0
libtpu: 0.0.40
codegen_flags: <defaults>
</compile_context>

<pallas_src>
import functools

import jax
import jax.numpy as jnp
from jax.experimental import pallas as pl
from jax.experimental.pallas import tpu as pltpu


_VMEM_SOFT_BUDGET = 20 * 1024 * 1024    # keep the tile working set well inside v7x's 64 MiB/TC
_VMEM_LIMIT_CAP = 48 * 1024 * 1024      # explicit scoped-VMEM limit ceiling


def fingerprint_mlp_kernel(
    fp1_ref, fp2_ref, fp3_ref,
    w1a_ref, b1a_ref, w1b_ref, b1b_ref,          # fp_to_hidden
    w2a_ref, b2a_ref, w2b_ref, b2b_ref,          # singleton_to_doubleton
    w3a_ref, b3a_ref, w3b_ref, b3b_ref,          # sing_and_doub_to_tripleton
    w4a_ref, b4a_ref, w4b_ref, b4b_ref,          # sing_and_doub_and_trip_to_target
    out_ref,
    slab_ref,                                    # VMEM scratch [bt, 6*H]
    *, hidden, cdt,
):
    H = hidden

    def dot(x, w):
        # MXU matmul in compute dtype, f32 accumulation.
        return jnp.dot(x.astype(cdt), w, preferred_element_type=jnp.float32)

    # ---- Stage 1: shared fp_to_hidden on each fingerprint.  No [3*bt, FPSIZE]
    # sublane-concat copy; w1a/w1b stay resident as the MXU RHS across the
    # three matmuls.  Results land in the persistent activation slab:
    #   slab = [ h1 | h2 | h3 | h12 | h23 | h13 ]   (each H wide).
    for idx, fp_ref in enumerate((fp1_ref, fp2_ref, fp3_ref)):
        s = jnp.maximum(dot(fp_ref[...], w1a_ref[...]) + b1a_ref[...], 0.0)
        h = dot(s, w1b_ref[...]) + b1b_ref[...]
        slab_ref[:, idx * H:(idx + 1) * H] = h.astype(cdt)

    # ---- Stage 2: shared singleton_to_doubleton.  (h1,h2) and (h2,h3) are
    # contiguous in the slab -> full K = 2H matmuls; only (h1,h3) needs the
    # row-split of w2a (cat([a,b],1) @ w2a == a @ w2a[:H] + b @ w2a[H:]).
    d12 = dot(slab_ref[:, 0:2 * H], w2a_ref[...])
    d23 = dot(slab_ref[:, H:3 * H], w2a_ref[...])
    d13 = (dot(slab_ref[:, 0:H], w2a_ref[:H, :])
           + dot(slab_ref[:, 2 * H:3 * H], w2a_ref[H:, :]))
    for idx, dpre in enumerate((d12, d23, d13)):
        d = jnp.maximum(dpre + b2a_ref[...], 0.0)
        hd = dot(d, w2b_ref[...]) + b2b_ref[...]
        slab_ref[:, (3 + idx) * H:(4 + idx) * H] = hd.astype(cdt)

    # ---- Stage 3: tripleton MLP on cat6 (whole slab, K = 6H = 384).
    t = jnp.maximum(dot(slab_ref[...], w3a_ref[...]) + b3a_ref[...], 0.0)
    h123 = dot(t, w3b_ref[...]) + b3b_ref[...]          # stays live in vregs

    # ---- Stage 4: target head on cat7 = [slab | h123].  w4a is row-split so
    # h123 never round-trips through VMEM.  Output is a lane-dense 128-wide
    # padded slab (sliced back to target_size in the wrapper).
    f = jnp.maximum(
        dot(slab_ref[...], w4a_ref[:6 * H, :]) + dot(h123, w4a_ref[6 * H:, :])
        + b4a_ref[...], 0.0)
    out_ref[...] = (dot(f, w4b_ref[...]) + b4b_ref[...]).astype(out_ref.dtype)


def _round_up(x, m):
    return ((x + m - 1) // m) * m


def fingerprint_mlp(fp1, fp2, fp3, params, *, batch_tile=512,
                    compute_dtype=jnp.bfloat16):
    """Fused FingerprintMLP forward.

    `params` is the 16-element list produced by `make_params` (weights are
    [in, out], biases [1, out]).  bf16 MXU operands (with f32 accumulation,
    bias-add and ReLU) are the default on all TPU generations; pass
    compute_dtype=jnp.float32 for a full-precision reference path.
    """
    (w1a, b1a, w1b, b1b,
     w2a, b2a, w2b, b2b,
     w3a, b3a, w3b, b3b,
     w4a, b4a, w4b, b4b) = params

    B, fpsize = fp1.shape
    hidden = w1a.shape[1]
    target = w4b.shape[1]
    cdt = jnp.dtype(compute_dtype)

    # Lane-dense output: pad the final head to a multiple of 128 columns and
    # slice the real targets back out after the kernel.
    t_pad = _round_up(max(target, 128), 128)
    w4b_p = jnp.pad(w4b, ((0, 0), (0, t_pad - target)))
    b4b_p = jnp.pad(b4b, ((0, 0), (0, t_pad - target)))

    # MXU operands in the compute dtype; biases stay f32.
    ordered_params = [
        w1a.astype(cdt), b1a, w1b.astype(cdt), b1b,
        w2a.astype(cdt), b2a, w2b.astype(cdt), b2b,
        w3a.astype(cdt), b3a, w3b.astype(cdt), b3b,
        w4a.astype(cdt), b4a, w4b_p.astype(cdt), b4b_p,
    ]
    # x2: covers the fallback path where weights are double-buffered.
    param_bytes = 2 * sum(int(p.size) * p.dtype.itemsize for p in ordered_params)

    # Halve the dominant HBM read by storing the fingerprints in compute dtype
    # (fingerprints are typically 0/1, so bf16 is exact for real inputs).
    fp1c, fp2c, fp3c = (x.astype(cdt) for x in (fp1, fp2, fp3))
    in_item = cdt.itemsize

    def vmem_bytes(bt):
        fp_in = 3 * 2 * bt * fpsize * in_item     # double-buffered fp tiles
        out_b = 2 * bt * t_pad * 4                # double-buffered f32 out tile
        slab = bt * 6 * hidden * in_item          # persistent activation slab
        return fp_in + out_b + slab + param_bytes

    # --- batch tile: a multiple of 8 (or the full batch); keep >= 2 grid
    # steps when possible (v7x megacore); shrink until the working set fits
    # comfortably inside v7x's 64 MiB/TC VMEM.
    if B % 8 != 0:
        bt = B                       # full-dim block -> (8,128) rule satisfied
    else:
        bt = max(8, min((batch_tile // 8) * 8, B))
        if bt == B and B >= 16:
            bt = min(bt, _round_up((B + 1) // 2, 8))
        while bt >= 16 and bt % 16 == 0 and vmem_bytes(bt) > _VMEM_SOFT_BUDGET:
            bt //= 2
    grid = (pl.cdiv(B, bt),)

    vmem_limit = int(min(_VMEM_LIMIT_CAP,
                         max(16 << 20, 2 * vmem_bytes(bt) + (8 << 20))))

    kernel = functools.partial(fingerprint_mlp_kernel, hidden=hidden, cdt=cdt)

    def batch_spec(feat):
        return pl.BlockSpec((bt, feat), lambda i: (i, 0))

    def run(single_buffer_weights):
        if single_buffer_weights:
            # Constant index_map => VMEM-resident across batch tiles; one
            # buffer is enough (no refetch ever needed).
            def resident(p):
                return pl.BlockSpec(p.shape, lambda i: (0, 0),
                                    pipeline_mode=pl.Buffered(1))
        else:
            def resident(p):
                return pl.BlockSpec(p.shape, lambda i: (0, 0))

        in_specs = ([batch_spec(fpsize)] * 3
                    + [resident(p) for p in ordered_params])
        out_spec = pl.BlockSpec((bt, t_pad), lambda i: (i, 0))

        return pl.pallas_call(
            kernel,
            out_shape=jax.ShapeDtypeStruct((B, t_pad), jnp.float32),
            grid_spec=pltpu.PrefetchScalarGridSpec(
                num_scalar_prefetch=0,
                grid=grid,
                in_specs=in_specs,
                out_specs=out_spec,
                scratch_shapes=[pltpu.VMEM((bt, 6 * hidden), cdt)],
            ),
            compiler_params=pltpu.CompilerParams(
                dimension_semantics=("parallel",),
                vmem_limit_bytes=vmem_limit,
            ),
        )(fp1c, fp2c, fp3c, *ordered_params)

    try:
        out = run(True)
    except Exception:
        # pl.Buffered(1) not supported on this jax build -> default buffering.
        out = run(False)
    return out[:, :target]


def make_params(key, fpsize, hidden, target):
    """Deterministic synthetic parameters (same shapes as the PyTorch module)."""
    def linear(k, fan_in, fan_out):
        kw, kb = jax.random.split(k)
        bound = 1.0 / jnp.sqrt(jnp.float32(fan_in))
        w = jax.random.uniform(kw, (fan_in, fan_out), jnp.float32, -bound, bound)
        b = jax.random.uniform(kb, (1, fan_out), jnp.float32, -bound, bound)
        return w, b

    ks = jax.random.split(key, 8)
    params = []
    params += list(linear(ks[0], fpsize, hidden)) + list(linear(ks[1], hidden, hidden))
    params += list(linear(ks[2], 2 * hidden, hidden)) + list(linear(ks[3], hidden, hidden))
    params += list(linear(ks[4], 6 * hidden, hidden)) + list(linear(ks[5], hidden, hidden))
    params += list(linear(ks[6], 7 * hidden, hidden)) + list(linear(ks[7], hidden, target))
    return params


def reference_forward(fp1, fp2, fp3, params):
    """Pure-JAX reference mirroring the PyTorch forward."""
    (w1a, b1a, w1b, b1b,
     w2a, b2a, w2b, b2b,
     w3a, b3a, w3b, b3b,
     w4a, b4a, w4b, b4b) = params

    def mlp(x, wa, ba, wb, bb):
        return jnp.maximum(x @ wa + ba, 0.0) @ wb + bb

    h1 = mlp(fp1, w1a, b1a, w1b, b1b)
    h2 = mlp(fp2, w1a, b1a, w1b, b1b)
    h3 = mlp(fp3, w1a, b1a, w1b, b1b)
    h12 = mlp(jnp.concatenate([h1, h2], 1), w2a, b2a, w2b, b2b)
    h23 = mlp(jnp.concatenate([h2, h3], 1), w2a, b2a, w2b, b2b)
    h13 = mlp(jnp.concatenate([h1, h3], 1), w2a, b2a, w2b, b2b)
    cat6 = jnp.concatenate([h1, h2, h3, h12, h23, h13], 1)
    h123 = mlp(cat6, w3a, b3a, w3b, b3b)
    return mlp(jnp.concatenate([cat6, h123], 1), w4a, b4a, w4b, b4b)


if __name__ == "__main__":
    # Small demo shapes consistent with the module's forward.  The batch-tile
    # logic keeps the grid at 2 steps so the "parallel" axis exercises both
    # TensorCores on v7x.
    BATCH, FPSIZE, HIDDEN, TARGET = 256, 256, 64, 2

    key = jax.random.PRNGKey(0)
    k_fp1, k_fp2, k_fp3, k_params = jax.random.split(key, 4)

    fp1 = jax.random.uniform(k_fp1, (BATCH, FPSIZE), jnp.float32)
    fp2 = jax.random.uniform(k_fp2, (BATCH, FPSIZE), jnp.float32)
    fp3 = jax.random.uniform(k_fp3, (BATCH, FPSIZE), jnp.float32)

    params = make_params(k_params, FPSIZE, HIDDEN, TARGET)
    ref = reference_forward(fp1, fp2, fp3, params)

    # Default path: bf16 MXU operands + bf16 fp inputs, f32 accumulation /
    # bias-add / ReLU (good on v5e, v6e and v7x).  Loose tolerance covers the
    # bf16 operand, activation-slab and input quantization.
    out_bf16 = jax.block_until_ready(fingerprint_mlp(fp1, fp2, fp3, params))
    assert out_bf16.shape == (BATCH, TARGET), out_bf16.shape
    assert jnp.allclose(out_bf16, ref, atol=8e-2, rtol=8e-2), \
        float(jnp.max(jnp.abs(out_bf16 - ref)))

    # Full-f32 path for a tight numerical check against the reference.
    out_f32 = jax.block_until_ready(
        fingerprint_mlp(fp1, fp2, fp3, params, compute_dtype=jnp.float32))
    assert out_f32.shape == (BATCH, TARGET), out_f32.shape
    assert jnp.allclose(out_f32, ref, atol=1e-3, rtol=1e-3), \
        float(jnp.max(jnp.abs(out_f32 - ref)))

    print("KERNEL_OK")
</pallas_src>

<mosaic_0001>
module attributes {stable_mosaic.version = 11 : i64} {
  func.func @fingerprint_mlp_kernel(%arg0: i32, %arg1: memref<128x256xbf16, #tpu.memory_space<vmem>>, %arg2: memref<128x256xbf16, #tpu.memory_space<vmem>>, %arg3: memref<128x256xbf16, #tpu.memory_space<vmem>>, %arg4: memref<256x64xbf16, #tpu.memory_space<vmem>>, %arg5: memref<1x64xf32, #tpu.memory_space<vmem>>, %arg6: memref<64x64xbf16, #tpu.memory_space<vmem>>, %arg7: memref<1x64xf32, #tpu.memory_space<vmem>>, %arg8: memref<128x64xbf16, #tpu.memory_space<vmem>>, %arg9: memref<1x64xf32, #tpu.memory_space<vmem>>, %arg10: memref<64x64xbf16, #tpu.memory_space<vmem>>, %arg11: memref<1x64xf32, #tpu.memory_space<vmem>>, %arg12: memref<384x64xbf16, #tpu.memory_space<vmem>>, %arg13: memref<1x64xf32, #tpu.memory_space<vmem>>, %arg14: memref<64x64xbf16, #tpu.memory_space<vmem>>, %arg15: memref<1x64xf32, #tpu.memory_space<vmem>>, %arg16: memref<448x64xbf16, #tpu.memory_space<vmem>>, %arg17: memref<1x64xf32, #tpu.memory_space<vmem>>, %arg18: memref<64x128xbf16, #tpu.memory_space<vmem>>, %arg19: memref<1x128xf32, #tpu.memory_space<vmem>>, %arg20: memref<128x128xf32, #tpu.memory_space<vmem>>, %arg21: memref<128x384xbf16, #tpu.memory_space<vmem>>) attributes {dimension_semantics = [#tpu.dimension_semantics<parallel>], iteration_bounds = array<i64: 2>, scalar_prefetch = 0 : i64, scratch_operands = 1 : i64, tpu.core_type = #tpu.core_type<tc>, window_params = [{transform_indices = @transform_0, window_bounds = array<i64: 128, 256>}, {transform_indices = @transform_1, window_bounds = array<i64: 128, 256>}, {transform_indices = @transform_2, window_bounds = array<i64: 128, 256>}, {pipeline_mode = #tpu.pipeline_mode<synchronous>, transform_indices = @transform_3, window_bounds = array<i64: 256, 64>}, {pipeline_mode = #tpu.pipeline_mode<synchronous>, transform_indices = @transform_4, window_bounds = array<i64: 1, 64>}, {pipeline_mode = #tpu.pipeline_mode<synchronous>, transform_indices = @transform_5, window_bounds = array<i64: 64, 64>}, {pipeline_mode = #tpu.pipeline_mode<synchronous>, transform_indices = @transform_6, window_bounds = array<i64: 1, 64>}, {pipeline_mode = #tpu.pipeline_mode<synchronous>, transform_indices = @transform_7, window_bounds = array<i64: 128, 64>}, {pipeline_mode = #tpu.pipeline_mode<synchronous>, transform_indices = @transform_8, window_bounds = array<i64: 1, 64>}, {pipeline_mode = #tpu.pipeline_mode<synchronous>, transform_indices = @transform_9, window_bounds = array<i64: 64, 64>}, {pipeline_mode = #tpu.pipeline_mode<synchronous>, transform_indices = @transform_10, window_bounds = array<i64: 1, 64>}, {pipeline_mode = #tpu.pipeline_mode<synchronous>, transform_indices = @transform_11, window_bounds = array<i64: 384, 64>}, {pipeline_mode = #tpu.pipeline_mode<synchronous>, transform_indices = @transform_12, window_bounds = array<i64: 1, 64>}, {pipeline_mode = #tpu.pipeline_mode<synchronous>, transform_indices = @transform_13, window_bounds = array<i64: 64, 64>}, {pipeline_mode = #tpu.pipeline_mode<synchronous>, transform_indices = @transform_14, window_bounds = array<i64: 1, 64>}, {pipeline_mode = #tpu.pipeline_mode<synchronous>, transform_indices = @transform_15, window_bounds = array<i64: 448, 64>}, {pipeline_mode = #tpu.pipeline_mode<synchronous>, transform_indices = @transform_16, window_bounds = array<i64: 1, 64>}, {pipeline_mode = #tpu.pipeline_mode<synchronous>, transform_indices = @transform_17, window_bounds = array<i64: 64, 128>}, {pipeline_mode = #tpu.pipeline_mode<synchronous>, transform_indices = @transform_18, window_bounds = array<i64: 1, 128>}, {transform_indices = @transform_19, window_bounds = array<i64: 128, 128>}]} {
    %c0 = arith.constant 0 : index
    %c0_0 = arith.constant 0 : index
    %0 = vector.load %arg1[%c0, %c0_0] : memref<128x256xbf16, #tpu.memory_space<vmem>>, vector<128x256xbf16>
    %c0_1 = arith.constant 0 : index
    %c0_2 = arith.constant 0 : index
    %1 = vector.load %arg4[%c0_1, %c0_2] : memref<256x64xbf16, #tpu.memory_space<vmem>>, vector<256x64xbf16>
    %cst = arith.constant dense<0.000000e+00> : vector<128x64xf32>
    %2 = tpu.matmul %0, %1, %cst {dimension_numbers = #tpu.dot_dimension_numbers<[1], [0], [0], [1], [0, 0, 1, 1], [], []>} : vector<128x256xbf16>, vector<256x64xbf16>, vector<128x64xf32> -> vector<128x64xf32>
    %c0_3 = arith.constant 0 : index
    %c0_4 = arith.constant 0 : index
    %3 = vector.load %arg5[%c0_3, %c0_4] : memref<1x64xf32, #tpu.memory_space<vmem>>, vector<1x64xf32>
    %4 = vector.broadcast %3 : vector<1x64xf32> to vector<128x64xf32>
    %5 = arith.addf %2, %4 : vector<128x64xf32>
    %cst_5 = arith.constant 0.000000e+00 : f32
    %6 = vector.broadcast %cst_5 : f32 to vector<128x64xf32>
    %7 = arith.maximumf %5, %6 : vector<128x64xf32>
    %c0_6 = arith.constant 0 : index
    %c0_7 = arith.constant 0 : index
    %8 = vector.load %arg6[%c0_6, %c0_7] : memref<64x64xbf16, #tpu.memory_space<vmem>>, vector<64x64xbf16>
    %9 = arith.truncf %7 : vector<128x64xf32> to vector<128x64xbf16>
    %cst_8 = arith.constant dense<0.000000e+00> : vector<128x64xf32>
    %10 = tpu.matmul %9, %8, %cst_8 {dimension_numbers = #tpu.dot_dimension_numbers<[1], [0], [0], [1], [0, 0, 1, 1], [], []>} : vector<128x64xbf16>, vector<64x64xbf16>, vector<128x64xf32> -> vector<128x64xf32>
    %c0_9 = arith.constant 0 : index
    %c0_10 = arith.constant 0 : index
    %11 = vector.load %arg7[%c0_9, %c0_10] : memref<1x64xf32, #tpu.memory_space<vmem>>, vector<1x64xf32>
    %12 = vector.broadcast %11 : vector<1x64xf32> to vector<128x64xf32>
    %13 = arith.addf %10, %12 : vector<128x64xf32>
    %14 = arith.truncf %13 : vector<128x64xf32> to vector<128x64xbf16>
    %c0_11 = arith.constant 0 : index
    %c0_12 = arith.constant 0 : index
    %15 = vector.load %arg21[%c0_11, %c0_12] : memref<128x384xbf16, #tpu.memory_space<vmem>>, vector<128x64xbf16>
    tpu.vector_store %arg21[%c0_11, %c0_12], %14 {strides = array<i32>} : memref<128x384xbf16, #tpu.memory_space<vmem>>, vector<128x64xbf16>,
    %c0_13 = arith.constant 0 : index
    %c0_14 = arith.constant 0 : index
    %16 = vector.load %arg2[%c0_13, %c0_14] : memref<128x256xbf16, #tpu.memory_space<vmem>>, vector<128x256xbf16>
    %c0_15 = arith.constant 0 : index
    %c0_16 = arith.constant 0 : index
    %17 = vector.load %arg4[%c0_15, %c0_16] : memref<256x64xbf16, #tpu.memory_space<vmem>>, vector<256x64xbf16>
    %cst_17 = arith.constant dense<0.000000e+00> : vector<128x64xf32>
    %18 = tpu.matmul %16, %17, %cst_17 {dimension_numbers = #tpu.dot_dimension_numbers<[1], [0], [0], [1], [0, 0, 1, 1], [], []>} : vector<128x256xbf16>, vector<256x64xbf16>, vector<128x64xf32> -> vector<128x64xf32>
    %c0_18 = arith.constant 0 : index
    %c0_19 = arith.constant 0 : index
    %19 = vector.load %arg5[%c0_18, %c0_19] : memref<1x64xf32, #tpu.memory_space<vmem>>, vector<1x64xf32>
    %20 = vector.broadcast %19 : vector<1x64xf32> to vector<128x64xf32>
    %21 = arith.addf %18, %20 : vector<128x64xf32>
    %cst_20 = arith.constant 0.000000e+00 : f32
    %22 = vector.broadcast %cst_20 : f32 to vector<128x64xf32>
    %23 = arith.maximumf %21, %22 : vector<128x64xf32>
    %c0_21 = arith.constant 0 : index
    %c0_22 = arith.constant 0 : index
    %24 = vector.load %arg6[%c0_21, %c0_22] : memref<64x64xbf16, #tpu.memory_space<vmem>>, vector<64x64xbf16>
    %25 = arith.truncf %23 : vector<128x64xf32> to vector<128x64xbf16>
    %cst_23 = arith.constant dense<0.000000e+00> : vector<128x64xf32>
    %26 = tpu.matmul %25, %24, %cst_23 {dimension_numbers = #tpu.dot_dimension_numbers<[1], [0], [0], [1], [0, 0, 1, 1], [], []>} : vector<128x64xbf16>, vector<64x64xbf16>, vector<128x64xf32> -> vector<128x64xf32>
    %c0_24 = arith.constant 0 : index
    %c0_25 = arith.constant 0 : index
    %27 = vector.load %arg7[%c0_24, %c0_25] : memref<1x64xf32, #tpu.memory_space<vmem>>, vector<1x64xf32>
    %28 = vector.broadcast %27 : vector<1x64xf32> to vector<128x64xf32>
    %29 = arith.addf %26, %28 : vector<128x64xf32>
    %30 = arith.truncf %29 : vector<128x64xf32> to vector<128x64xbf16>
    %c0_26 = arith.constant 0 : index
    %c64 = arith.constant 64 : index
    %31 = vector.load %arg21[%c0_26, %c64] : memref<128x384xbf16, #tpu.memory_space<vmem>>, vector<128x64xbf16>
    tpu.vector_store %arg21[%c0_26, %c64], %30 {strides = array<i32>} : memref<128x384xbf16, #tpu.memory_space<vmem>>, vector<128x64xbf16>,
    %c0_27 = arith.constant 0 : index
    %c0_28 = arith.constant 0 : index
    %32 = vector.load %arg3[%c0_27, %c0_28] : memref<128x256xbf16, #tpu.memory_space<vmem>>, vector<128x256xbf16>
    %c0_29 = arith.constant 0 : index
    %c0_30 = arith.constant 0 : index
    %33 = vector.load %arg4[%c0_29, %c0_30] : memref<256x64xbf16, #tpu.memory_space<vmem>>, vector<256x64xbf16>
    %cst_31 = arith.constant dense<0.000000e+00> : vector<128x64xf32>
    %34 = tpu.matmul %32, %33, %cst_31 {dimension_numbers = #tpu.dot_dimension_numbers<[1], [0], [0], [1], [0, 0, 1, 1], [], []>} : vector<128x256xbf16>, vector<256x64xbf16>, vector<128x64xf32> -> vector<128x64xf32>
    %c0_32 = arith.constant 0 : index
    %c0_33 = arith.constant 0 : index
    %35 = vector.load %arg5[%c0_32, %c0_33] : memref<1x64xf32, #tpu.memory_space<vmem>>, vector<1x64xf32>
    %36 = vector.broadcast %35 : vector<1x64xf32> to vector<128x64xf32>
    %37 = arith.addf %34, %36 : vector<128x64xf32>
    %cst_34 = arith.constant 0.000000e+00 : f32
    %38 = vector.broadcast %cst_34 : f32 to vector<128x64xf32>
    %39 = arith.maximumf %37, %38 : vector<128x64xf32>
    %c0_35 = arith.constant 0 : index
    %c0_36 = arith.constant 0 : index
    %40 = vector.load %arg6[%c0_35, %c0_36] : memref<64x64xbf16, #tpu.memory_space<vmem>>, vector<64x64xbf16>
    %41 = arith.truncf %39 : vector<128x64xf32> to vector<128x64xbf16>
    %cst_37 = arith.constant dense<0.000000e+00> : vector<128x64xf32>
    %42 = tpu.matmul %41, %40, %cst_37 {dimension_numbers = #tpu.dot_dimension_numbers<[1], [0], [0], [1], [0, 0, 1, 1], [], []>} : vector<128x64xbf16>, vector<64x64xbf16>, vector<128x64xf32> -> vector<128x64xf32>
    %c0_38 = arith.constant 0 : index
    %c0_39 = arith.constant 0 : index
    %43 = vector.load %arg7[%c0_38, %c0_39] : memref<1x64xf32, #tpu.memory_space<vmem>>, vector<1x64xf32>
    %44 = vector.broadcast %43 : vector<1x64xf32> to vector<128x64xf32>
    %45 = arith.addf %42, %44 : vector<128x64xf32>
    %46 = arith.truncf %45 : vector<128x64xf32> to vector<128x64xbf16>
    %c0_40 = arith.constant 0 : index
    %c128 = arith.constant 128 : index
    %47 = vector.load %arg21[%c0_40, %c128] : memref<128x384xbf16, #tpu.memory_space<vmem>>, vector<128x64xbf16>
    tpu.vector_store %arg21[%c0_40, %c128], %46 {strides = array<i32>} : memref<128x384xbf16, #tpu.memory_space<vmem>>, vector<128x64xbf16>,
    %c0_41 = arith.constant 0 : index
    %c0_42 = arith.constant 0 : index
    %48 = vector.load %arg21[%c0_41, %c0_42] : memref<128x384xbf16, #tpu.memory_space<vmem>>, vector<128x128xbf16>
    %c0_43 = arith.constant 0 : index
    %c0_44 = arith.constant 0 : index
    %49 = vector.load %arg8[%c0_43, %c0_44] : memref<128x64xbf16, #tpu.memory_space<vmem>>, vector<128x64xbf16>
    %cst_45 = arith.constant dense<0.000000e+00> : vector<128x64xf32>
    %50 = tpu.matmul %48, %49, %cst_45 {dimension_numbers = #tpu.dot_dimension_numbers<[1], [0], [0], [1], [0, 0, 1, 1], [], []>} : vector<128x128xbf16>, vector<128x64xbf16>, vector<128x64xf32> -> vector<128x64xf32>
    %c0_46 = arith.constant 0 : index
    %c64_47 = arith.constant 64 : index
    %51 = vector.load %arg21[%c0_46, %c64_47] : memref<128x384xbf16, #tpu.memory_space<vmem>>, vector<128x128xbf16>
    %c0_48 = arith.constant 0 : index
    %c0_49 = arith.constant 0 : index
    %52 = vector.load %arg8[%c0_48, %c0_49] : memref<128x64xbf16, #tpu.memory_space<vmem>>, vector<128x64xbf16>
    %cst_50 = arith.constant dense<0.000000e+00> : vector<128x64xf32>
    %53 = tpu.matmul %51, %52, %cst_50 {dimension_numbers = #tpu.dot_dimension_numbers<[1], [0], [0], [1], [0, 0, 1, 1], [], []>} : vector<128x128xbf16>, vector<128x64xbf16>, vector<128x64xf32> -> vector<128x64xf32>
    %c0_51 = arith.constant 0 : index
    %c0_52 = arith.constant 0 : index
    %54 = vector.load %arg21[%c0_51, %c0_52] : memref<128x384xbf16, #tpu.memory_space<vmem>>, vector<128x64xbf16>
    %c0_53 = arith.constant 0 : index
    %c0_54 = arith.constant 0 : index
    %55 = vector.load %arg8[%c0_53, %c0_54] : memref<128x64xbf16, #tpu.memory_space<vmem>>, vector<64x64xbf16>
    %cst_55 = arith.constant dense<0.000000e+00> : vector<128x64xf32>
    %56 = tpu.matmul %54, %55, %cst_55 {dimension_numbers = #tpu.dot_dimension_numbers<[1], [0], [0], [1], [0, 0, 1, 1], [], []>} : vector<128x64xbf16>, vector<64x64xbf16>, vector<128x64xf32> -> vector<128x64xf32>
    %c0_56 = arith.constant 0 : index
    %c128_57 = arith.constant 128 : index
    %57 = vector.load %arg21[%c0_56, %c128_57] : memref<128x384xbf16, #tpu.memory_space<vmem>>, vector<128x64xbf16>
    %c64_58 = arith.constant 64 : index
    %c0_59 = arith.constant 0 : index
    %58 = vector.load %arg8[%c64_58, %c0_59] : memref<128x64xbf16, #tpu.memory_space<vmem>>, vector<64x64xbf16>
    %cst_60 = arith.constant dense<0.000000e+00> : vector<128x64xf32>
    %59 = tpu.matmul %57, %58, %cst_60 {dimension_numbers = #tpu.dot_dimension_numbers<[1], [0], [0], [1], [0, 0, 1, 1], [], []>} : vector<128x64xbf16>, vector<64x64xbf16>, vector<128x64xf32> -> vector<128x64xf32>
    %60 = arith.addf %56, %59 : vector<128x64xf32>
    %c0_61 = arith.constant 0 : index
    %c0_62 = arith.constant 0 : index
    %61 = vector.load %arg9[%c0_61, %c0_62] : memref<1x64xf32, #tpu.memory_space<vmem>>, vector<1x64xf32>
    %62 = vector.broadcast %61 : vector<1x64xf32> to vector<128x64xf32>
    %63 = arith.addf %50, %62 : vector<128x64xf32>
    %cst_63 = arith.constant 0.000000e+00 : f32
    %64 = vector.broadcast %cst_63 : f32 to vector<128x64xf32>
    %65 = arith.maximumf %63, %64 : vector<128x64xf32>
    %c0_64 = arith.constant 0 : index
    %c0_65 = arith.constant 0 : index
    %66 = vector.load %arg10[%c0_64, %c0_65] : memref<64x64xbf16, #tpu.memory_space<vmem>>, vector<64x64xbf16>
    %67 = arith.truncf %65 : vector<128x64xf32> to vector<128x64xbf16>
    %cst_66 = arith.constant dense<0.000000e+00> : vector<128x64xf32>
    %68 = tpu.matmul %67, %66, %cst_66 {dimension_numbers = #tpu.dot_dimension_numbers<[1], [0], [0], [1], [0, 0, 1, 1], [], []>} : vector<128x64xbf16>, vector<64x64xbf16>, vector<128x64xf32> -> vector<128x64xf32>
    %c0_67 = arith.constant 0 : index
    %c0_68 = arith.constant 0 : index
    %69 = vector.load %arg11[%c0_67, %c0_68] : memref<1x64xf32, #tpu.memory_space<vmem>>, vector<1x64xf32>
    %70 = vector.broadcast %69 : vector<1x64xf32> to vector<128x64xf32>
    %71 = arith.addf %68, %70 : vector<128x64xf32>
    %72 = arith.truncf %71 : vector<128x64xf32> to vector<128x64xbf16>
    %c0_69 = arith.constant 0 : index
    %c192 = arith.constant 192 : index
    %73 = vector.load %arg21[%c0_69, %c192] : memref<128x384xbf16, #tpu.memory_space<vmem>>, vector<128x64xbf16>
    tpu.vector_store %arg21[%c0_69, %c192], %72 {strides = array<i32>} : memref<128x384xbf16, #tpu.memory_space<vmem>>, vector<128x64xbf16>,
    %c0_70 = arith.constant 0 : index
    %c0_71 = arith.constant 0 : index
    %74 = vector.load %arg9[%c0_70, %c0_71] : memref<1x64xf32, #tpu.memory_space<vmem>>, vector<1x64xf32>
    %75 = vector.broadcast %74 : vector<1x64xf32> to vector<128x64xf32>
    %76 = arith.addf %53, %75 : vector<128x64xf32>
    %cst_72 = arith.constant 0.000000e+00 : f32
    %77 = vector.broadcast %cst_72 : f32 to vector<128x64xf32>
    %78 = arith.maximumf %76, %77 : vector<128x64xf32>
    %c0_73 = arith.constant 0 : index
    %c0_74 = arith.constant 0 : index
    %79 = vector.load %arg10[%c0_73, %c0_74] : memref<64x64xbf16, #tpu.memory_space<vmem>>, vector<64x64xbf16>
    %80 = arith.truncf %78 : vector<128x64xf32> to vector<128x64xbf16>
    %cst_75 = arith.constant dense<0.000000e+00> : vector<128x64xf32>
    %81 = tpu.matmul %80, %79, %cst_75 {dimension_numbers = #tpu.dot_dimension_numbers<[1], [0], [0], [1], [0, 0, 1, 1], [], []>} : vector<128x64xbf16>, vector<64x64xbf16>, vector<128x64xf32> -> vector<128x64xf32>
    %c0_76 = arith.constant 0 : index
    %c0_77 = arith.constant 0 : index
    %82 = vector.load %arg11[%c0_76, %c0_77] : memref<1x64xf32, #tpu.memory_space<vmem>>, vector<1x64xf32>
    %83 = vector.broadcast %82 : vector<1x64xf32> to vector<128x64xf32>
    %84 = arith.addf %81, %83 : vector<128x64xf32>
    %85 = arith.truncf %84 : vector<128x64xf32> to vector<128x64xbf16>
    %c0_78 = arith.constant 0 : index
    %c256 = arith.constant 256 : index
    %86 = vector.load %arg21[%c0_78, %c256] : memref<128x384xbf16, #tpu.memory_space<vmem>>, vector<128x64xbf16>
    tpu.vector_store %arg21[%c0_78, %c256], %85 {strides = array<i32>} : memref<128x384xbf16, #tpu.memory_space<vmem>>, vector<128x64xbf16>,
    %c0_79 = arith.constant 0 : index
    %c0_80 = arith.constant 0 : index
    %87 = vector.load %arg9[%c0_79, %c0_80] : memref<1x64xf32, #tpu.memory_space<vmem>>, vector<1x64xf32>
    %88 = vector.broadcast %87 : vector<1x64xf32> to vector<128x64xf32>
    %89 = arith.addf %60, %88 : vector<128x64xf32>
    %cst_81 = arith.constant 0.000000e+00 : f32
    %90 = vector.broadcast %cst_81 : f32 to vector<128x64xf32>
    %91 = arith.maximumf %89, %90 : vector<128x64xf32>
    %c0_82 = arith.constant 0 : index
    %c0_83 = arith.constant 0 : index
    %92 = vector.load %arg10[%c0_82, %c0_83] : memref<64x64xbf16, #tpu.memory_space<vmem>>, vector<64x64xbf16>
    %93 = arith.truncf %91 : vector<128x64xf32> to vector<128x64xbf16>
    %cst_84 = arith.constant dense<0.000000e+00> : vector<128x64xf32>
    %94 = tpu.matmul %93, %92, %cst_84 {dimension_numbers = #tpu.dot_dimension_numbers<[1], [0], [0], [1], [0, 0, 1, 1], [], []>} : vector<128x64xbf16>, vector<64x64xbf16>, vector<128x64xf32> -> vector<128x64xf32>
    %c0_85 = arith.constant 0 : index
    %c0_86 = arith.constant 0 : index
    %95 = vector.load %arg11[%c0_85, %c0_86] : memref<1x64xf32, #tpu.memory_space<vmem>>, vector<1x64xf32>
    %96 = vector.broadcast %95 : vector<1x64xf32> to vector<128x64xf32>
    %97 = arith.addf %94, %96 : vector<128x64xf32>
    %98 = arith.truncf %97 : vector<128x64xf32> to vector<128x64xbf16>
    %c0_87 = arith.constant 0 : index
    %c320 = arith.constant 320 : index
    %99 = vector.load %arg21[%c0_87, %c320] : memref<128x384xbf16, #tpu.memory_space<vmem>>, vector<128x64xbf16>
    tpu.vector_store %arg21[%c0_87, %c320], %98 {strides = array<i32>} : memref<128x384xbf16, #tpu.memory_space<vmem>>, vector<128x64xbf16>,
    %c0_88 = arith.constant 0 : index
    %c0_89 = arith.constant 0 : index
    %100 = vector.load %arg21[%c0_88, %c0_89] : memref<128x384xbf16, #tpu.memory_space<vmem>>, vector<128x384xbf16>
    %c0_90 = arith.constant 0 : index
    %c0_91 = arith.constant 0 : index
    %101 = vector.load %arg12[%c0_90, %c0_91] : memref<384x64xbf16, #tpu.memory_space<vmem>>, vector<384x64xbf16>
    %cst_92 = arith.constant dense<0.000000e+00> : vector<128x64xf32>
    %102 = tpu.matmul %100, %101, %cst_92 {dimension_numbers = #tpu.dot_dimension_numbers<[1], [0], [0], [1], [0, 0, 1, 1], [], []>} : vector<128x384xbf16>, vector<384x64xbf16>, vector<128x64xf32> -> vector<128x64xf32>
    %c0_93 = arith.constant 0 : index
    %c0_94 = arith.constant 0 : index
    %103 = vector.load %arg13[%c0_93, %c0_94] : memref<1x64xf32, #tpu.memory_space<vmem>>, vector<1x64xf32>
    %104 = vector.broadcast %103 : vector<1x64xf32> to vector<128x64xf32>
    %105 = arith.addf %102, %104 : vector<128x64xf32>
    %cst_95 = arith.constant 0.000000e+00 : f32
    %106 = vector.broadcast %cst_95 : f32 to vector<128x64xf32>
    %107 = arith.maximumf %105, %106 : vector<128x64xf32>
    %c0_96 = arith.constant 0 : index
    %c0_97 = arith.constant 0 : index
    %108 = vector.load %arg14[%c0_96, %c0_97] : memref<64x64xbf16, #tpu.memory_space<vmem>>, vector<64x64xbf16>
    %109 = arith.truncf %107 : vector<128x64xf32> to vector<128x64xbf16>
    %cst_98 = arith.constant dense<0.000000e+00> : vector<128x64xf32>
    %110 = tpu.matmul %109, %108, %cst_98 {dimension_numbers = #tpu.dot_dimension_numbers<[1], [0], [0], [1], [0, 0, 1, 1], [], []>} : vector<128x64xbf16>, vector<64x64xbf16>, vector<128x64xf32> -> vector<128x64xf32>
    %c0_99 = arith.constant 0 : index
    %c0_100 = arith.constant 0 : index
    %111 = vector.load %arg15[%c0_99, %c0_100] : memref<1x64xf32, #tpu.memory_space<vmem>>, vector<1x64xf32>
    %112 = vector.broadcast %111 : vector<1x64xf32> to vector<128x64xf32>
    %113 = arith.addf %110, %112 : vector<128x64xf32>
    %c0_101 = arith.constant 0 : index
    %c0_102 = arith.constant 0 : index
    %114 = vector.load %arg21[%c0_101, %c0_102] : memref<128x384xbf16, #tpu.memory_space<vmem>>, vector<128x384xbf16>
    %c0_103 = arith.constant 0 : index
    %c0_104 = arith.constant 0 : index
    %115 = vector.load %arg16[%c0_103, %c0_104] : memref<448x64xbf16, #tpu.memory_space<vmem>>, vector<384x64xbf16>
    %cst_105 = arith.constant dense<0.000000e+00> : vector<128x64xf32>
    %116 = tpu.matmul %114, %115, %cst_105 {dimension_numbers = #tpu.dot_dimension_numbers<[1], [0], [0], [1], [0, 0, 1, 1], [], []>} : vector<128x384xbf16>, vector<384x64xbf16>, vector<128x64xf32> -> vector<128x64xf32>
    %c384 = arith.constant 384 : index
    %c0_106 = arith.constant 0 : index
    %117 = vector.load %arg16[%c384, %c0_106] : memref<448x64xbf16, #tpu.memory_space<vmem>>, vector<64x64xbf16>
    %118 = arith.truncf %113 : vector<128x64xf32> to vector<128x64xbf16>
    %cst_107 = arith.constant dense<0.000000e+00> : vector<128x64xf32>
    %119 = tpu.matmul %118, %117, %cst_107 {dimension_numbers = #tpu.dot_dimension_numbers<[1], [0], [0], [1], [0, 0, 1, 1], [], []>} : vector<128x64xbf16>, vector<64x64xbf16>, vector<128x64xf32> -> vector<128x64xf32>
    %120 = arith.addf %116, %119 : vector<128x64xf32>
    %c0_108 = arith.constant 0 : index
    %c0_109 = arith.constant 0 : index
    %121 = vector.load %arg17[%c0_108, %c0_109] : memref<1x64xf32, #tpu.memory_space<vmem>>, vector<1x64xf32>
    %122 = vector.broadcast %121 : vector<1x64xf32> to vector<128x64xf32>
    %123 = arith.addf %120, %122 : vector<128x64xf32>
    %cst_110 = arith.constant 0.000000e+00 : f32
    %124 = vector.broadcast %cst_110 : f32 to vector<128x64xf32>
    %125 = arith.maximumf %123, %124 : vector<128x64xf32>
    %c0_111 = arith.constant 0 : index
    %c0_112 = arith.constant 0 : index
    %126 = vector.load %arg18[%c0_111, %c0_112] : memref<64x128xbf16, #tpu.memory_space<vmem>>, vector<64x128xbf16>
    %127 = arith.truncf %125 : vector<128x64xf32> to vector<128x64xbf16>
    %cst_113 = arith.constant dense<0.000000e+00> : vector<128x128xf32>
    %128 = tpu.matmul %127, %126, %cst_113 {dimension_numbers = #tpu.dot_dimension_numbers<[1], [0], [0], [1], [0, 0, 1, 1], [], []>} : vector<128x64xbf16>, vector<64x128xbf16>, vector<128x128xf32> -> vector<128x128xf32>
    %c0_114 = arith.constant 0 : index
    %c0_115 = arith.constant 0 : index
    %129 = vector.load %arg19[%c0_114, %c0_115] : memref<1x128xf32, #tpu.memory_space<vmem>>, vector<1x128xf32>
    %130 = vector.broadcast %129 : vector<1x128xf32> to vector<128x128xf32>
    %131 = arith.addf %128, %130 : vector<128x128xf32>
    %c0_116 = arith.constant 0 : index
    %c0_117 = arith.constant 0 : index
    %132 = vector.load %arg20[%c0_116, %c0_117] : memref<128x128xf32, #tpu.memory_space<vmem>>, vector<128x128xf32>
    tpu.vector_store %arg20[%c0_116, %c0_117], %131 {strides = array<i32>} : memref<128x128xf32, #tpu.memory_space<vmem>>, vector<128x128xf32>,
    return
  }
  func.func @transform_0(%arg0: i32) -> (i32, i32) {
    %c0_i32 = arith.constant 0 : i32
    %c0_i32_0 = arith.constant 0 : i32
    return %arg0, %c0_i32 : i32, i32
  }
  func.func @transform_1(%arg0: i32) -> (i32, i32) {
    %c0_i32 = arith.constant 0 : i32
    %c0_i32_0 = arith.constant 0 : i32
    return %arg0, %c0_i32 : i32, i32
  }
  func.func @transform_2(%arg0: i32) -> (i32, i32) {
    %c0_i32 = arith.constant 0 : i32
    %c0_i32_0 = arith.constant 0 : i32
    return %arg0, %c0_i32 : i32, i32
  }
  func.func @transform_3(%arg0: i32) -> (i32, i32) {
    %c0_i32 = arith.constant 0 : i32
    %c0_i32_0 = arith.constant 0 : i32
    %c0_i32_1 = arith.constant 0 : i32
    return %c0_i32, %c0_i32_0 : i32, i32
  }
  func.func @transform_4(%arg0: i32) -> (i32, i32) {
    %c0_i32 = arith.constant 0 : i32
    %c0_i32_0 = arith.constant 0 : i32
    %c0_i32_1 = arith.constant 0 : i32
    return %c0_i32, %c0_i32_0 : i32, i32
  }
  func.func @transform_5(%arg0: i32) -> (i32, i32) {
    %c0_i32 = arith.constant 0 : i32
    %c0_i32_0 = arith.constant 0 : i32
    %c0_i32_1 = arith.constant 0 : i32
    return %c0_i32, %c0_i32_0 : i32, i32
  }
  func.func @transform_6(%arg0: i32) -> (i32, i32) {
    %c0_i32 = arith.constant 0 : i32
    %c0_i32_0 = arith.constant 0 : i32
    %c0_i32_1 = arith.constant 0 : i32
    return %c0_i32, %c0_i32_0 : i32, i32
  }
  func.func @transform_7(%arg0: i32) -> (i32, i32) {
    %c0_i32 = arith.constant 0 : i32
    %c0_i32_0 = arith.constant 0 : i32
    %c0_i32_1 = arith.constant 0 : i32
    return %c0_i32, %c0_i32_0 : i32, i32
  }
  func.func @transform_8(%arg0: i32) -> (i32, i32) {
    %c0_i32 = arith.constant 0 : i32
    %c0_i32_0 = arith.constant 0 : i32
    %c0_i32_1 = arith.constant 0 : i32
    return %c0_i32, %c0_i32_0 : i32, i32
  }
  func.func @transform_9(%arg0: i32) -> (i32, i32) {
    %c0_i32 = arith.constant 0 : i32
    %c0_i32_0 = arith.constant 0 : i32
    %c0_i32_1 = arith.constant 0 : i32
    return %c0_i32, %c0_i32_0 : i32, i32
  }
  func.func @transform_10(%arg0: i32) -> (i32, i32) {
    %c0_i32 = arith.constant 0 : i32
    %c0_i32_0 = arith.constant 0 : i32
    %c0_i32_1 = arith.constant 0 : i32
    return %c0_i32, %c0_i32_0 : i32, i32
  }
  func.func @transform_11(%arg0: i32) -> (i32, i32) {
    %c0_i32 = arith.constant 0 : i32
    %c0_i32_0 = arith.constant 0 : i32
    %c0_i32_1 = arith.constant 0 : i32
    return %c0_i32, %c0_i32_0 : i32, i32
  }
  func.func @transform_12(%arg0: i32) -> (i32, i32) {
    %c0_i32 = arith.constant 0 : i32
    %c0_i32_0 = arith.constant 0 : i32
    %c0_i32_1 = arith.constant 0 : i32
    return %c0_i32, %c0_i32_0 : i32, i32
  }
  func.func @transform_13(%arg0: i32) -> (i32, i32) {
    %c0_i32 = arith.constant 0 : i32
    %c0_i32_0 = arith.constant 0 : i32
    %c0_i32_1 = arith.constant 0 : i32
    return %c0_i32, %c0_i32_0 : i32, i32
  }
  func.func @transform_14(%arg0: i32) -> (i32, i32) {
    %c0_i32 = arith.constant 0 : i32
    %c0_i32_0 = arith.constant 0 : i32
    %c0_i32_1 = arith.constant 0 : i32
    return %c0_i32, %c0_i32_0 : i32, i32
  }
  func.func @transform_15(%arg0: i32) -> (i32, i32) {
    %c0_i32 = arith.constant 0 : i32
    %c0_i32_0 = arith.constant 0 : i32
    %c0_i32_1 = arith.constant 0 : i32
    return %c0_i32, %c0_i32_0 : i32, i32
  }
  func.func @transform_16(%arg0: i32) -> (i32, i32) {
    %c0_i32 = arith.constant 0 : i32
    %c0_i32_0 = arith.constant 0 : i32
    %c0_i32_1 = arith.constant 0 : i32
    return %c0_i32, %c0_i32_0 : i32, i32
  }
  func.func @transform_17(%arg0: i32) -> (i32, i32) {
    %c0_i32 = arith.constant 0 : i32
    %c0_i32_0 = arith.constant 0 : i32
    %c0_i32_1 = arith.constant 0 : i32
    return %c0_i32, %c0_i32_0 : i32, i32
  }
  func.func @transform_18(%arg0: i32) -> (i32, i32) {
    %c0_i32 = arith.constant 0 : i32
    %c0_i32_0 = arith.constant 0 : i32
    %c0_i32_1 = arith.constant 0 : i32
    return %c0_i32, %c0_i32_0 : i32, i32
  }
  func.func @transform_19(%arg0: i32) -> (i32, i32) {
    %c0_i32 = arith.constant 0 : i32
    %c0_i32_0 = arith.constant 0 : i32
    return %arg0, %c0_i32 : i32, i32
  }
}

module attributes {stable_mosaic.version = 11 : i64} {
  func.func @fingerprint_mlp_kernel(%arg0: i32, %arg1: memref<128x256xbf16, #tpu.memory_space<vmem>>, %arg2: memref<128x256xbf16, #tpu.memory_space<vmem>>, %arg3: memref<128x256xbf16, #tpu.memory_space<vmem>>, %arg4: memref<256x64xbf16, #tpu.memory_space<vmem>>, %arg5: memref<1x64xf32, #tpu.memory_space<vmem>>, %arg6: memref<64x64xbf16, #tpu.memory_space<vmem>>, %arg7: memref<1x64xf32, #tpu.memory_space<vmem>>, %arg8: memref<128x64xbf16, #tpu.memory_space<vmem>>, %arg9: memref<1x64xf32, #tpu.memory_space<vmem>>, %arg10: memref<64x64xbf16, #tpu.memory_space<vmem>>, %arg11: memref<1x64xf32, #tpu.memory_space<vmem>>, %arg12: memref<384x64xbf16, #tpu.memory_space<vmem>>, %arg13: memref<1x64xf32, #tpu.memory_space<vmem>>, %arg14: memref<64x64xbf16, #tpu.memory_space<vmem>>, %arg15: memref<1x64xf32, #tpu.memory_space<vmem>>, %arg16: memref<448x64xbf16, #tpu.memory_space<vmem>>, %arg17: memref<1x64xf32, #tpu.memory_space<vmem>>, %arg18: memref<64x128xbf16, #tpu.memory_space<vmem>>, %arg19: memref<1x128xf32, #tpu.memory_space<vmem>>, %arg20: memref<128x128xf32, #tpu.memory_space<vmem>>, %arg21: memref<128x384xbf16, #tpu.memory_space<vmem>>) attributes {dimension_semantics = [#tpu.dimension_semantics<parallel>], iteration_bounds = array<i64: 2>, scalar_prefetch = 0 : i64, scratch_operands = 1 : i64, tpu.core_type = #tpu.core_type<tc>, window_params = [{transform_indices = @transform_0, window_bounds = array<i64: 128, 256>}, {transform_indices = @transform_1, window_bounds = array<i64: 128, 256>}, {transform_indices = @transform_2, window_bounds = array<i64: 128, 256>}, {pipeline_mode = #tpu.pipeline_mode<synchronous>, transform_indices = @transform_3, window_bounds = array<i64: 256, 64>}, {pipeline_mode = #tpu.pipeline_mode<synchronous>, transform_indices = @transform_4, window_bounds = array<i64: 1, 64>}, {pipeline_mode = #tpu.pipeline_mode<synchronous>, transform_indices = @transform_5, window_bounds = array<i64: 64, 64>}, {pipeline_mode = #tpu.pipeline_mode<synchronous>, transform_indices = @transform_6, window_bounds = array<i64: 1, 64>}, {pipeline_mode = #tpu.pipeline_mode<synchronous>, transform_indices = @transform_7, window_bounds = array<i64: 128, 64>}, {pipeline_mode = #tpu.pipeline_mode<synchronous>, transform_indices = @transform_8, window_bounds = array<i64: 1, 64>}, {pipeline_mode = #tpu.pipeline_mode<synchronous>, transform_indices = @transform_9, window_bounds = array<i64: 64, 64>}, {pipeline_mode = #tpu.pipeline_mode<synchronous>, transform_indices = @transform_10, window_bounds = array<i64: 1, 64>}, {pipeline_mode = #tpu.pipeline_mode<synchronous>, transform_indices = @transform_11, window_bounds = array<i64: 384, 64>}, {pipeline_mode = #tpu.pipeline_mode<synchronous>, transform_indices = @transform_12, window_bounds = array<i64: 1, 64>}, {pipeline_mode = #tpu.pipeline_mode<synchronous>, transform_indices = @transform_13, window_bounds = array<i64: 64, 64>}, {pipeline_mode = #tpu.pipeline_mode<synchronous>, transform_indices = @transform_14, window_bounds = array<i64: 1, 64>}, {pipeline_mode = #tpu.pipeline_mode<synchronous>, transform_indices = @transform_15, window_bounds = array<i64: 448, 64>}, {pipeline_mode = #tpu.pipeline_mode<synchronous>, transform_indices = @transform_16, window_bounds = array<i64: 1, 64>}, {pipeline_mode = #tpu.pipeline_mode<synchronous>, transform_indices = @transform_17, window_bounds = array<i64: 64, 128>}, {pipeline_mode = #tpu.pipeline_mode<synchronous>, transform_indices = @transform_18, window_bounds = array<i64: 1, 128>}, {transform_indices = @transform_19, window_bounds = array<i64: 128, 128>}]} {
    %c0 = arith.constant 0 : index
    %c0_0 = arith.constant 0 : index
    %0 = vector.load %arg1[%c0, %c0_0] : memref<128x256xbf16, #tpu.memory_space<vmem>>, vector<128x256xbf16>
    %c0_1 = arith.constant 0 : index
    %c0_2 = arith.constant 0 : index
    %1 = vector.load %arg4[%c0_1, %c0_2] : memref<256x64xbf16, #tpu.memory_space<vmem>>, vector<256x64xbf16>
    %cst = arith.constant dense<0.000000e+00> : vector<128x64xf32>
    %2 = tpu.matmul %0, %1, %cst {dimension_numbers = #tpu.dot_dimension_numbers<[1], [0], [0], [1], [0, 0, 1, 1], [], []>} : vector<128x256xbf16>, vector<256x64xbf16>, vector<128x64xf32> -> vector<128x64xf32>
    %c0_3 = arith.constant 0 : index
    %c0_4 = arith.constant 0 : index
    %3 = vector.load %arg5[%c0_3, %c0_4] : memref<1x64xf32, #tpu.memory_space<vmem>>, vector<1x64xf32>
    %4 = vector.broadcast %3 : vector<1x64xf32> to vector<128x64xf32>
    %5 = arith.addf %2, %4 : vector<128x64xf32>
    %cst_5 = arith.constant 0.000000e+00 : f32
    %6 = vector.broadcast %cst_5 : f32 to vector<128x64xf32>
    %7 = arith.maximumf %5, %6 : vector<128x64xf32>
    %c0_6 = arith.constant 0 : index
    %c0_7 = arith.constant 0 : index
    %8 = vector.load %arg6[%c0_6, %c0_7] : memref<64x64xbf16, #tpu.memory_space<vmem>>, vector<64x64xbf16>
    %9 = arith.truncf %7 : vector<128x64xf32> to vector<128x64xbf16>
    %cst_8 = arith.constant dense<0.000000e+00> : vector<128x64xf32>
    %10 = tpu.matmul %9, %8, %cst_8 {dimension_numbers = #tpu.dot_dimension_numbers<[1], [0], [0], [1], [0, 0, 1, 1], [], []>} : vector<128x64xbf16>, vector<64x64xbf16>, vector<128x64xf32> -> vector<128x64xf32>
    %c0_9 = arith.constant 0 : index
    %c0_10 = arith.constant 0 : index
    %11 = vector.load %arg7[%c0_9, %c0_10] : memref<1x64xf32, #tpu.memory_space<vmem>>, vector<1x64xf32>
    %12 = vector.broadcast %11 : vector<1x64xf32> to vector<128x64xf32>
    %13 = arith.addf %10, %12 : vector<128x64xf32>
    %14 = arith.truncf %13 : vector<128x64xf32> to vector<128x64xbf16>
    %c0_11 = arith.constant 0 : index
    %c0_12 = arith.constant 0 : index
    %15 = vector.load %arg21[%c0_11, %c0_12] : memref<128x384xbf16, #tpu.memory_space<vmem>>, vector<128x64xbf16>
    tpu.vector_store %arg21[%c0_11, %c0_12], %14 {strides = array<i32>} : memref<128x384xbf16, #tpu.memory_space<vmem>>, vector<128x64xbf16>,
    %c0_13 = arith.constant 0 : index
    %c0_14 = arith.constant 0 : index
    %16 = vector.load %arg2[%c0_13, %c0_14] : memref<128x256xbf16, #tpu.memory_space<vmem>>, vector<128x256xbf16>
    %c0_15 = arith.constant 0 : index
    %c0_16 = arith.constant 0 : index
    %17 = vector.load %arg4[%c0_15, %c0_16] : memref<256x64xbf16, #tpu.memory_space<vmem>>, vector<256x64xbf16>
    %cst_17 = arith.constant dense<0.000000e+00> : vector<128x64xf32>
    %18 = tpu.matmul %16, %17, %cst_17 {dimension_numbers = #tpu.dot_dimension_numbers<[1], [0], [0], [1], [0, 0, 1, 1], [], []>} : vector<128x256xbf16>, vector<256x64xbf16>, vector<128x64xf32> -> vector<128x64xf32>
    %c0_18 = arith.constant 0 : index
    %c0_19 = arith.constant 0 : index
    %19 = vector.load %arg5[%c0_18, %c0_19] : memref<1x64xf32, #tpu.memory_space<vmem>>, vector<1x64xf32>
    %20 = vector.broadcast %19 : vector<1x64xf32> to vector<128x64xf32>
    %21 = arith.addf %18, %20 : vector<128x64xf32>
    %cst_20 = arith.constant 0.000000e+00 : f32
    %22 = vector.broadcast %cst_20 : f32 to vector<128x64xf32>
    %23 = arith.maximumf %21, %22 : vector<128x64xf32>
    %c0_21 = arith.constant 0 : index
    %c0_22 = arith.constant 0 : index
    %24 = vector.load %arg6[%c0_21, %c0_22] : memref<64x64xbf16, #tpu.memory_space<vmem>>, vector<64x64xbf16>
    %25 = arith.truncf %23 : vector<128x64xf32> to vector<128x64xbf16>
    %cst_23 = arith.constant dense<0.000000e+00> : vector<128x64xf32>
    %26 = tpu.matmul %25, %24, %cst_23 {dimension_numbers = #tpu.dot_dimension_numbers<[1], [0], [0], [1], [0, 0, 1, 1], [], []>} : vector<128x64xbf16>, vector<64x64xbf16>, vector<128x64xf32> -> vector<128x64xf32>
    %c0_24 = arith.constant 0 : index
    %c0_25 = arith.constant 0 : index
    %27 = vector.load %arg7[%c0_24, %c0_25] : memref<1x64xf32, #tpu.memory_space<vmem>>, vector<1x64xf32>
    %28 = vector.broadcast %27 : vector<1x64xf32> to vector<128x64xf32>
    %29 = arith.addf %26, %28 : vector<128x64xf32>
    %30 = arith.truncf %29 : vector<128x64xf32> to vector<128x64xbf16>
    %c0_26 = arith.constant 0 : index
    %c64 = arith.constant 64 : index
    %31 = vector.load %arg21[%c0_26, %c64] : memref<128x384xbf16, #tpu.memory_space<vmem>>, vector<128x64xbf16>
    tpu.vector_store %arg21[%c0_26, %c64], %30 {strides = array<i32>} : memref<128x384xbf16, #tpu.memory_space<vmem>>, vector<128x64xbf16>,
    %c0_27 = arith.constant 0 : index
    %c0_28 = arith.constant 0 : index
    %32 = vector.load %arg3[%c0_27, %c0_28] : memref<128x256xbf16, #tpu.memory_space<vmem>>, vector<128x256xbf16>
    %c0_29 = arith.constant 0 : index
    %c0_30 = arith.constant 0 : index
    %33 = vector.load %arg4[%c0_29, %c0_30] : memref<256x64xbf16, #tpu.memory_space<vmem>>, vector<256x64xbf16>
    %cst_31 = arith.constant dense<0.000000e+00> : vector<128x64xf32>
    %34 = tpu.matmul %32, %33, %cst_31 {dimension_numbers = #tpu.dot_dimension_numbers<[1], [0], [0], [1], [0, 0, 1, 1], [], []>} : vector<128x256xbf16>, vector<256x64xbf16>, vector<128x64xf32> -> vector<128x64xf32>
    %c0_32 = arith.constant 0 : index
    %c0_33 = arith.constant 0 : index
    %35 = vector.load %arg5[%c0_32, %c0_33] : memref<1x64xf32, #tpu.memory_space<vmem>>, vector<1x64xf32>
    %36 = vector.broadcast %35 : vector<1x64xf32> to vector<128x64xf32>
    %37 = arith.addf %34, %36 : vector<128x64xf32>
    %cst_34 = arith.constant 0.000000e+00 : f32
    %38 = vector.broadcast %cst_34 : f32 to vector<128x64xf32>
    %39 = arith.maximumf %37, %38 : vector<128x64xf32>
    %c0_35 = arith.constant 0 : index
    %c0_36 = arith.constant 0 : index
    %40 = vector.load %arg6[%c0_35, %c0_36] : memref<64x64xbf16, #tpu.memory_space<vmem>>, vector<64x64xbf16>
    %41 = arith.truncf %39 : vector<128x64xf32> to vector<128x64xbf16>
    %cst_37 = arith.constant dense<0.000000e+00> : vector<128x64xf32>
    %42 = tpu.matmul %41, %40, %cst_37 {dimension_numbers = #tpu.dot_dimension_numbers<[1], [0], [0], [1], [0, 0, 1, 1], [], []>} : vector<128x64xbf16>, vector<64x64xbf16>, vector<128x64xf32> -> vector<128x64xf32>
    %c0_38 = arith.constant 0 : index
    %c0_39 = arith.constant 0 : index
    %43 = vector.load %arg7[%c0_38, %c0_39] : memref<1x64xf32, #tpu.memory_space<vmem>>, vector<1x64xf32>
    %44 = vector.broadcast %43 : vector<1x64xf32> to vector<128x64xf32>
    %45 = arith.addf %42, %44 : vector<128x64xf32>
    %46 = arith.truncf %45 : vector<128x64xf32> to vector<128x64xbf16>
    %c0_40 = arith.constant 0 : index
    %c128 = arith.constant 128 : index
    %47 = vector.load %arg21[%c0_40, %c128] : memref<128x384xbf16, #tpu.memory_space<vmem>>, vector<128x64xbf16>
    tpu.vector_store %arg21[%c0_40, %c128], %46 {strides = array<i32>} : memref<128x384xbf16, #tpu.memory_space<vmem>>, vector<128x64xbf16>,
    %c0_41 = arith.constant 0 : index
    %c0_42 = arith.constant 0 : index
    %48 = vector.load %arg21[%c0_41, %c0_42] : memref<128x384xbf16, #tpu.memory_space<vmem>>, vector<128x128xbf16>
    %c0_43 = arith.constant 0 : index
    %c0_44 = arith.constant 0 : index
    %49 = vector.load %arg8[%c0_43, %c0_44] : memref<128x64xbf16, #tpu.memory_space<vmem>>, vector<128x64xbf16>
    %cst_45 = arith.constant dense<0.000000e+00> : vector<128x64xf32>
    %50 = tpu.matmul %48, %49, %cst_45 {dimension_numbers = #tpu.dot_dimension_numbers<[1], [0], [0], [1], [0, 0, 1, 1], [], []>} : vector<128x128xbf16>, vector<128x64xbf16>, vector<128x64xf32> -> vector<128x64xf32>
    %c0_46 = arith.constant 0 : index
    %c64_47 = arith.constant 64 : index
    %51 = vector.load %arg21[%c0_46, %c64_47] : memref<128x384xbf16, #tpu.memory_space<vmem>>, vector<128x128xbf16>
    %c0_48 = arith.constant 0 : index
    %c0_49 = arith.constant 0 : index
    %52 = vector.load %arg8[%c0_48, %c0_49] : memref<128x64xbf16, #tpu.memory_space<vmem>>, vector<128x64xbf16>
    %cst_50 = arith.constant dense<0.000000e+00> : vector<128x64xf32>
    %53 = tpu.matmul %51, %52, %cst_50 {dimension_numbers = #tpu.dot_dimension_numbers<[1], [0], [0], [1], [0, 0, 1, 1], [], []>} : vector<128x128xbf16>, vector<128x64xbf16>, vector<128x64xf32> -> vector<128x64xf32>
    %c0_51 = arith.constant 0 : index
    %c0_52 = arith.constant 0 : index
    %54 = vector.load %arg21[%c0_51, %c0_52] : memref<128x384xbf16, #tpu.memory_space<vmem>>, vector<128x64xbf16>
    %c0_53 = arith.constant 0 : index
    %c0_54 = arith.constant 0 : index
    %55 = vector.load %arg8[%c0_53, %c0_54] : memref<128x64xbf16, #tpu.memory_space<vmem>>, vector<64x64xbf16>
    %cst_55 = arith.constant dense<0.000000e+00> : vector<128x64xf32>
    %56 = tpu.matmul %54, %55, %cst_55 {dimension_numbers = #tpu.dot_dimension_numbers<[1], [0], [0], [1], [0, 0, 1, 1], [], []>} : vector<128x64xbf16>, vector<64x64xbf16>, vector<128x64xf32> -> vector<128x64xf32>
    %c0_56 = arith.constant 0 : index
    %c128_57 = arith.constant 128 : index
    %57 = vector.load %arg21[%c0_56, %c128_57] : memref<128x384xbf16, #tpu.memory_space<vmem>>, vector<128x64xbf16>
    %c64_58 = arith.constant 64 : index
    %c0_59 = arith.constant 0 : index
    %58 = vector.load %arg8[%c64_58, %c0_59] : memref<128x64xbf16, #tpu.memory_space<vmem>>, vector<64x64xbf16>
    %cst_60 = arith.constant dense<0.000000e+00> : vector<128x64xf32>
    %59 = tpu.matmul %57, %58, %cst_60 {dimension_numbers = #tpu.dot_dimension_numbers<[1], [0], [0], [1], [0, 0, 1, 1], [], []>} : vector<128x64xbf16>, vector<64x64xbf16>, vector<128x64xf32> -> vector<128x64xf32>
    %60 = arith.addf %56, %59 : vector<128x64xf32>
    %c0_61 = arith.constant 0 : index
    %c0_62 = arith.constant 0 : index
    %61 = vector.load %arg9[%c0_61, %c0_62] : memref<1x64xf32, #tpu.memory_space<vmem>>, vector<1x64xf32>
    %62 = vector.broadcast %61 : vector<1x64xf32> to vector<128x64xf32>
    %63 = arith.addf %50, %62 : vector<128x64xf32>
    %cst_63 = arith.constant 0.000000e+00 : f32
    %64 = vector.broadcast %cst_63 : f32 to vector<128x64xf32>
    %65 = arith.maximumf %63, %64 : vector<128x64xf32>
    %c0_64 = arith.constant 0 : index
    %c0_65 = arith.constant 0 : index
    %66 = vector.load %arg10[%c0_64, %c0_65] : memref<64x64xbf16, #tpu.memory_space<vmem>>, vector<64x64xbf16>
    %67 = arith.truncf %65 : vector<128x64xf32> to vector<128x64xbf16>
    %cst_66 = arith.constant dense<0.000000e+00> : vector<128x64xf32>
    %68 = tpu.matmul %67, %66, %cst_66 {dimension_numbers = #tpu.dot_dimension_numbers<[1], [0], [0], [1], [0, 0, 1, 1], [], []>} : vector<128x64xbf16>, vector<64x64xbf16>, vector<128x64xf32> -> vector<128x64xf32>
    %c0_67 = arith.constant 0 : index
    %c0_68 = arith.constant 0 : index
    %69 = vector.load %arg11[%c0_67, %c0_68] : memref<1x64xf32, #tpu.memory_space<vmem>>, vector<1x64xf32>
    %70 = vector.broadcast %69 : vector<1x64xf32> to vector<128x64xf32>
    %71 = arith.addf %68, %70 : vector<128x64xf32>
    %72 = arith.truncf %71 : vector<128x64xf32> to vector<128x64xbf16>
    %c0_69 = arith.constant 0 : index
    %c192 = arith.constant 192 : index
    %73 = vector.load %arg21[%c0_69, %c192] : memref<128x384xbf16, #tpu.memory_space<vmem>>, vector<128x64xbf16>
    tpu.vector_store %arg21[%c0_69, %c192], %72 {strides = array<i32>} : memref<128x384xbf16, #tpu.memory_space<vmem>>, vector<128x64xbf16>,
    %c0_70 = arith.constant 0 : index
    %c0_71 = arith.constant 0 : index
    %74 = vector.load %arg9[%c0_70, %c0_71] : memref<1x64xf32, #tpu.memory_space<vmem>>, vector<1x64xf32>
    %75 = vector.broadcast %74 : vector<1x64xf32> to vector<128x64xf32>
    %76 = arith.addf %53, %75 : vector<128x64xf32>
    %cst_72 = arith.constant 0.000000e+00 : f32
    %77 = vector.broadcast %cst_72 : f32 to vector<128x64xf32>
    %78 = arith.maximumf %76, %77 : vector<128x64xf32>
    %c0_73 = arith.constant 0 : index
    %c0_74 = arith.constant 0 : index
    %79 = vector.load %arg10[%c0_73, %c0_74] : memref<64x64xbf16, #tpu.memory_space<vmem>>, vector<64x64xbf16>
    %80 = arith.truncf %78 : vector<128x64xf32> to vector<128x64xbf16>
    %cst_75 = arith.constant dense<0.000000e+00> : vector<128x64xf32>
    %81 = tpu.matmul %80, %79, %cst_75 {dimension_numbers = #tpu.dot_dimension_numbers<[1], [0], [0], [1], [0, 0, 1, 1], [], []>} : vector<128x64xbf16>, vector<64x64xbf16>, vector<128x64xf32> -> vector<128x64xf32>
    %c0_76 = arith.constant 0 : index
    %c0_77 = arith.constant 0 : index
    %82 = vector.load %arg11[%c0_76, %c0_77] : memref<1x64xf32, #tpu.memory_space<vmem>>, vector<1x64xf32>
    %83 = vector.broadcast %82 : vector<1x64xf32> to vector<128x64xf32>
    %84 = arith.addf %81, %83 : vector<128x64xf32>
    %85 = arith.truncf %84 : vector<128x64xf32> to vector<128x64xbf16>
    %c0_78 = arith.constant 0 : index
    %c256 = arith.constant 256 : index
    %86 = vector.load %arg21[%c0_78, %c256] : memref<128x384xbf16, #tpu.memory_space<vmem>>, vector<128x64xbf16>
    tpu.vector_store %arg21[%c0_78, %c256], %85 {strides = array<i32>} : memref<128x384xbf16, #tpu.memory_space<vmem>>, vector<128x64xbf16>,
    %c0_79 = arith.constant 0 : index
    %c0_80 = arith.constant 0 : index
    %87 = vector.load %arg9[%c0_79, %c0_80] : memref<1x64xf32, #tpu.memory_space<vmem>>, vector<1x64xf32>
    %88 = vector.broadcast %87 : vector<1x64xf32> to vector<128x64xf32>
    %89 = arith.addf %60, %88 : vector<128x64xf32>
    %cst_81 = arith.constant 0.000000e+00 : f32
    %90 = vector.broadcast %cst_81 : f32 to vector<128x64xf32>
    %91 = arith.maximumf %89, %90 : vector<128x64xf32>
    %c0_82 = arith.constant 0 : index
    %c0_83 = arith.constant 0 : index
    %92 = vector.load %arg10[%c0_82, %c0_83] : memref<64x64xbf16, #tpu.memory_space<vmem>>, vector<64x64xbf16>
    %93 = arith.truncf %91 : vector<128x64xf32> to vector<128x64xbf16>
    %cst_84 = arith.constant dense<0.000000e+00> : vector<128x64xf32>
    %94 = tpu.matmul %93, %92, %cst_84 {dimension_numbers = #tpu.dot_dimension_numbers<[1], [0], [0], [1], [0, 0, 1, 1], [], []>} : vector<128x64xbf16>, vector<64x64xbf16>, vector<128x64xf32> -> vector<128x64xf32>
    %c0_85 = arith.constant 0 : index
    %c0_86 = arith.constant 0 : index
    %95 = vector.load %arg11[%c0_85, %c0_86] : memref<1x64xf32, #tpu.memory_space<vmem>>, vector<1x64xf32>
    %96 = vector.broadcast %95 : vector<1x64xf32> to vector<128x64xf32>
    %97 = arith.addf %94, %96 : vector<128x64xf32>
    %98 = arith.truncf %97 : vector<128x64xf32> to vector<128x64xbf16>
    %c0_87 = arith.constant 0 : index
    %c320 = arith.constant 320 : index
    %99 = vector.load %arg21[%c0_87, %c320] : memref<128x384xbf16, #tpu.memory_space<vmem>>, vector<128x64xbf16>
    tpu.vector_store %arg21[%c0_87, %c320], %98 {strides = array<i32>} : memref<128x384xbf16, #tpu.memory_space<vmem>>, vector<128x64xbf16>,
    %c0_88 = arith.constant 0 : index
    %c0_89 = arith.constant 0 : index
    %100 = vector.load %arg21[%c0_88, %c0_89] : memref<128x384xbf16, #tpu.memory_space<vmem>>, vector<128x384xbf16>
    %c0_90 = arith.constant 0 : index
    %c0_91 = arith.constant 0 : index
    %101 = vector.load %arg12[%c0_90, %c0_91] : memref<384x64xbf16, #tpu.memory_space<vmem>>, vector<384x64xbf16>
    %cst_92 = arith.constant dense<0.000000e+00> : vector<128x64xf32>
    %102 = tpu.matmul %100, %101, %cst_92 {dimension_numbers = #tpu.dot_dimension_numbers<[1], [0], [0], [1], [0, 0, 1, 1], [], []>} : vector<128x384xbf16>, vector<384x64xbf16>, vector<128x64xf32> -> vector<128x64xf32>
    %c0_93 = arith.constant 0 : index
    %c0_94 = arith.constant 0 : index
    %103 = vector.load %arg13[%c0_93, %c0_94] : memref<1x64xf32, #tpu.memory_space<vmem>>, vector<1x64xf32>
    %104 = vector.broadcast %103 : vector<1x64xf32> to vector<128x64xf32>
    %105 = arith.addf %102, %104 : vector<128x64xf32>
    %cst_95 = arith.constant 0.000000e+00 : f32
    %106 = vector.broadcast %cst_95 : f32 to vector<128x64xf32>
    %107 = arith.maximumf %105, %106 : vector<128x64xf32>
    %c0_96 = arith.constant 0 : index
    %c0_97 = arith.constant 0 : index
    %108 = vector.load %arg14[%c0_96, %c0_97] : memref<64x64xbf16, #tpu.memory_space<vmem>>, vector<64x64xbf16>
    %109 = arith.truncf %107 : vector<128x64xf32> to vector<128x64xbf16>
    %cst_98 = arith.constant dense<0.000000e+00> : vector<128x64xf32>
    %110 = tpu.matmul %109, %108, %cst_98 {dimension_numbers = #tpu.dot_dimension_numbers<[1], [0], [0], [1], [0, 0, 1, 1], [], []>} : vector<128x64xbf16>, vector<64x64xbf16>, vector<128x64xf32> -> vector<128x64xf32>
    %c0_99 = arith.constant 0 : index
    %c0_100 = arith.constant 0 : index
    %111 = vector.load %arg15[%c0_99, %c0_100] : memref<1x64xf32, #tpu.memory_space<vmem>>, vector<1x64xf32>
    %112 = vector.broadcast %111 : vector<1x64xf32> to vector<128x64xf32>
    %113 = arith.addf %110, %112 : vector<128x64xf32>
    %c0_101 = arith.constant 0 : index
    %c0_102 = arith.constant 0 : index
    %114 = vector.load %arg21[%c0_101, %c0_102] : memref<128x384xbf16, #tpu.memory_space<vmem>>, vector<128x384xbf16>
    %c0_103 = arith.constant 0 : index
    %c0_104 = arith.constant 0 : index
    %115 = vector.load %arg16[%c0_103, %c0_104] : memref<448x64xbf16, #tpu.memory_space<vmem>>, vector<384x64xbf16>
    %cst_105 = arith.constant dense<0.000000e+00> : vector<128x64xf32>
    %116 = tpu.matmul %114, %115, %cst_105 {dimension_numbers = #tpu.dot_dimension_numbers<[1], [0], [0], [1], [0, 0, 1, 1], [], []>} : vector<128x384xbf16>, vector<384x64xbf16>, vector<128x64xf32> -> vector<128x64xf32>
    %c384 = arith.constant 384 : index
    %c0_106 = arith.constant 0 : index
    %117 = vector.load %arg16[%c384, %c0_106] : memref<448x64xbf16, #tpu.memory_space<vmem>>, vector<64x64xbf16>
    %118 = arith.truncf %113 : vector<128x64xf32> to vector<128x64xbf16>
    %cst_107 = arith.constant dense<0.000000e+00> : vector<128x64xf32>
    %119 = tpu.matmul %118, %117, %cst_107 {dimension_numbers = #tpu.dot_dimension_numbers<[1], [0], [0], [1], [0, 0, 1, 1], [], []>} : vector<128x64xbf16>, vector<64x64xbf16>, vector<128x64xf32> -> vector<128x64xf32>
    %120 = arith.addf %116, %119 : vector<128x64xf32>
    %c0_108 = arith.constant 0 : index
    %c0_109 = arith.constant 0 : index
    %121 = vector.load %arg17[%c0_108, %c0_109] : memref<1x64xf32, #tpu.memory_space<vmem>>, vector<1x64xf32>
    %122 = vector.broadcast %121 : vector<1x64xf32> to vector<128x64xf32>
    %123 = arith.addf %120, %122 : vector<128x64xf32>
    %cst_110 = arith.constant 0.000000e+00 : f32
    %124 = vector.broadcast %cst_110 : f32 to vector<128x64xf32>
    %125 = arith.maximumf %123, %124 : vector<128x64xf32>
    %c0_111 = arith.constant 0 : index
    %c0_112 = arith.constant 0 : index
    %126 = vector.load %arg18[%c0_111, %c0_112] : memref<64x128xbf16, #tpu.memory_space<vmem>>, vector<64x128xbf16>
    %127 = arith.truncf %125 : vector<128x64xf32> to vector<128x64xbf16>
    %cst_113 = arith.constant dense<0.000000e+00> : vector<128x128xf32>
    %128 = tpu.matmul %127, %126, %cst_113 {dimension_numbers = #tpu.dot_dimension_numbers<[1], [0], [0], [1], [0, 0, 1, 1], [], []>} : vector<128x64xbf16>, vector<64x128xbf16>, vector<128x128xf32> -> vector<128x128xf32>
    %c0_114 = arith.constant 0 : index
    %c0_115 = arith.constant 0 : index
    %129 = vector.load %arg19[%c0_114, %c0_115] : memref<1x128xf32, #tpu.memory_space<vmem>>, vector<1x128xf32>
    %130 = vector.broadcast %129 : vector<1x128xf32> to vector<128x128xf32>
    %131 = arith.addf %128, %130 : vector<128x128xf32>
    %c0_116 = arith.constant 0 : index
    %c0_117 = arith.constant 0 : index
    %132 = vector.load %arg20[%c0_116, %c0_117] : memref<128x128xf32, #tpu.memory_space<vmem>>, vector<128x128xf32>
    tpu.vector_store %arg20[%c0_116, %c0_117], %131 {strides = array<i32>} : memref<128x128xf32, #tpu.memory_space<vmem>>, vector<128x128xf32>,
    return
  }
  func.func @transform_0(%arg0: i32) -> (i32, i32) {
    %c0_i32 = arith.constant 0 : i32
    %c0_i32_0 = arith.constant 0 : i32
    return %arg0, %c0_i32 : i32, i32
  }
  func.func @transform_1(%arg0: i32) -> (i32, i32) {
    %c0_i32 = arith.constant 0 : i32
    %c0_i32_0 = arith.constant 0 : i32
    return %arg0, %c0_i32 : i32, i32
  }
  func.func @transform_2(%arg0: i32) -> (i32, i32) {
    %c0_i32 = arith.constant 0 : i32
    %c0_i32_0 = arith.constant 0 : i32
    return %arg0, %c0_i32 : i32, i32
  }
  func.func @transform_3(%arg0: i32) -> (i32, i32) {
    %c0_i32 = arith.constant 0 : i32
    %c0_i32_0 = arith.constant 0 : i32
    %c0_i32_1 = arith.constant 0 : i32
    return %c0_i32, %c0_i32_0 : i32, i32
  }
  func.func @transform_4(%arg0: i32) -> (i32, i32) {
    %c0_i32 = arith.constant 0 : i32
    %c0_i32_0 = arith.constant 0 : i32
    %c0_i32_1 = arith.constant 0 : i32
    return %c0_i32, %c0_i32_0 : i32, i32
  }
  func.func @transform_5(%arg0: i32) -> (i32, i32) {
    %c0_i32 = arith.constant 0 : i32
    %c0_i32_0 = arith.constant 0 : i32
    %c0_i32_1 = arith.constant 0 : i32
    return %c0_i32, %c0_i32_0 : i32, i32
  }
  func.func @transform_6(%arg0: i32) -> (i32, i32) {
    %c0_i32 = arith.constant 0 : i32
    %c0_i32_0 = arith.constant 0 : i32
    %c0_i32_1 = arith.constant 0 : i32
    return %c0_i32, %c0_i32_0 : i32, i32
  }
  func.func @transform_7(%arg0: i32) -> (i32, i32) {
    %c0_i32 = arith.constant 0 : i32
    %c0_i32_0 = arith.constant 0 : i32
    %c0_i32_1 = arith.constant 0 : i32
    return %c0_i32, %c0_i32_0 : i32, i32
  }
  func.func @transform_8(%arg0: i32) -> (i32, i32) {
    %c0_i32 = arith.constant 0 : i32
    %c0_i32_0 = arith.constant 0 : i32
    %c0_i32_1 = arith.constant 0 : i32
    return %c0_i32, %c0_i32_0 : i32, i32
  }
  func.func @transform_9(%arg0: i32) -> (i32, i32) {
    %c0_i32 = arith.constant 0 : i32
    %c0_i32_0 = arith.constant 0 : i32
    %c0_i32_1 = arith.constant 0 : i32
    return %c0_i32, %c0_i32_0 : i32, i32
  }
  func.func @transform_10(%arg0: i32) -> (i32, i32) {
    %c0_i32 = arith.constant 0 : i32
    %c0_i32_0 = arith.constant 0 : i32
    %c0_i32_1 = arith.constant 0 : i32
    return %c0_i32, %c0_i32_0 : i32, i32
  }
  func.func @transform_11(%arg0: i32) -> (i32, i32) {
    %c0_i32 = arith.constant 0 : i32
    %c0_i32_0 = arith.constant 0 : i32
    %c0_i32_1 = arith.constant 0 : i32
    return %c0_i32, %c0_i32_0 : i32, i32
  }
  func.func @transform_12(%arg0: i32) -> (i32, i32) {
    %c0_i32 = arith.constant 0 : i32
    %c0_i32_0 = arith.constant 0 : i32
    %c0_i32_1 = arith.constant 0 : i32
    return %c0_i32, %c0_i32_0 : i32, i32
  }
  func.func @transform_13(%arg0: i32) -> (i32, i32) {
    %c0_i32 = arith.constant 0 : i32
    %c0_i32_0 = arith.constant 0 : i32
    %c0_i32_1 = arith.constant 0 : i32
    return %c0_i32, %c0_i32_0 : i32, i32
  }
  func.func @transform_14(%arg0: i32) -> (i32, i32) {
    %c0_i32 = arith.constant 0 : i32
    %c0_i32_0 = arith.constant 0 : i32
    %c0_i32_1 = arith.constant 0 : i32
    return %c0_i32, %c0_i32_0 : i32, i32
  }
  func.func @transform_15(%arg0: i32) -> (i32, i32) {
    %c0_i32 = arith.constant 0 : i32
    %c0_i32_0 = arith.constant 0 : i32
    %c0_i32_1 = arith.constant 0 : i32
    return %c0_i32, %c0_i32_0 : i32, i32
  }
  func.func @transform_16(%arg0: i32) -> (i32, i32) {
    %c0_i32 = arith.constant 0 : i32
    %c0_i32_0 = arith.constant 0 : i32
    %c0_i32_1 = arith.constant 0 : i32
    return %c0_i32, %c0_i32_0 : i32, i32
  }
  func.func @transform_17(%arg0: i32) -> (i32, i32) {
    %c0_i32 = arith.constant 0 : i32
    %c0_i32_0 = arith.constant 0 : i32
    %c0_i32_1 = arith.constant 0 : i32
    return %c0_i32, %c0_i32_0 : i32, i32
  }
  func.func @transform_18(%arg0: i32) -> (i32, i32) {
    %c0_i32 = arith.constant 0 : i32
    %c0_i32_0 = arith.constant 0 : i32
    %c0_i32_1 = arith.constant 0 : i32
    return %c0_i32, %c0_i32_0 : i32, i32
  }
  func.func @transform_19(%arg0: i32) -> (i32, i32) {
    %c0_i32 = arith.constant 0 : i32
    %c0_i32_0 = arith.constant 0 : i32
    return %arg0, %c0_i32 : i32, i32
  }
}

</mosaic_0001>

<bundles_post_ra>
// kernel: tpu_custom_call.1
= control target key start
LH: loop header
LB: loop body
LE: loop exit
PB: predicated region body
PF: predicated region fallthrough
CT: control target
= control target key end

     0   :  { %s9384_s0 = inlined_call_operand.vmem [shape: bf16[256,256], index: 0, kind: input, shape index: {}]   ;;  %s9385_s1 = inlined_call_operand.vmem [shape: bf16[256,256], index: 1, kind: input, shape index: {}]   ;;  %s9386_s2 = inlined_call_operand.vmem [shape: bf16[256,256], index: 2, kind: input, shape index: {}]   ;;  %s9387_s3 = inlined_call_operand.vmem [shape: bf16[256,64], index: 3, kind: input, shape index: {}]   ;;  %s9388_s4 = inlined_call_operand.hbm [shape: f32[1,64], index: 4, kind: input, shape index: {}]   ;;  %s9389_s5 = inlined_call_operand.vmem [shape: bf16[64,64], index: 5, kind: input, shape index: {}]   ;;  %s9390_s6 = inlined_call_operand.vmem [shape: f32[1,64], index: 6, kind: input, shape index: {}]   ;;  %s9391_s7 = inlined_call_operand.vmem [shape: bf16[128,64], index: 7, kind: input, shape index: {}]   ;;  %s9392_s8 = inlined_call_operand.vmem [shape: f32[1,64], index: 8, kind: input, shape index: {}]   ;;  %s9393_s9 = inlined_call_operand.hbm [shape: bf16[64,64], index: 9, kind: input, shape index: {}]   ;;  %s9394_s10 = inlined_call_operand.vmem [shape: f32[1,64], index: 10, kind: input, shape index: {}]   ;;  %s9395_s11 = inlined_call_operand.vmem [shape: bf16[384,64], index: 11, kind: input, shape index: {}]   ;;  %s9396_s12 = inlined_call_operand.vmem [shape: f32[1,64], index: 12, kind: input, shape index: {}]   ;;  %s9397_s13 = inlined_call_operand.hbm [shape: bf16[64,64], index: 13, kind: input, shape index: {}]   ;;  %s9398_s14 = inlined_call_operand.vmem [shape: f32[1,64], index: 14, kind: input, shape index: {}]   ;;  %s9399_s15 = inlined_call_operand.vmem [shape: bf16[448,64], index: 15, kind: input, shape index: {}]   ;;  %s9400_s16 = inlined_call_operand.vmem [shape: f32[1,64], index: 16, kind: input, shape index: {}]   ;;  %s9401_s17 = inlined_call_operand.hbm [shape: bf16[64,128], index: 17, kind: input, shape index: {}]   ;;  %s9402_s18 = inlined_call_operand.vmem [shape: f32[1,128], index: 18, kind: input, shape index: {}]   ;;  %s9403_s19 = inlined_call_operand.hbm [shape: f32[256,128], index: 19, kind: output, shape index: {}]  }
   0x1   :  { %9414 = sst [smem:[#allocation22_spill]] %s9384_s0 }
   0x2   :  { %9415 = sst [smem:[#allocation23_spill]] %s9385_s1 }
   0x3   :  { %9416 = sst [smem:[#allocation24_spill]] %s9386_s2 }
   0x4   :  { %9417 = sst [smem:[#allocation25_spill]] %s9387_s3 }
   0x5   :  { %9418 = sst [smem:[#allocation26_spill]] %s9388_s4 }
   0x6   :  { %9419 = sst [smem:[#allocation27_spill]] %s9403_s19 }
   0x7   :  { %24 = vsyncpa [#allocation4], 0 }
   0x8   :  { %25 = vsyncpa [#allocation7], 0 }
   0x9   :  { %26 = vsyncpa [#allocation10], 0 }
   0xa   :  { %27 = vsyncpa [#allocation5], 0 }
   0xb   :  { %29 = vsyncpa [#allocation5 + $0x1], 0  ;;  %s7968_s0 = smov 0   ;;  %s7970_s30 = smov 0  }
   0xc   :  { %s7972_s20 = smov 0   ;;  %s7974_s21 = smov 0  }
   0xd LB: > { %9420 = sst [smem:[#allocation16_spill]] %s7844_s0  ;;  %s7989_s1 = sadd.s32 4294967295, %s7856_s21   ;;  %s7856_s21 = sphi %s7974_s21, %s9447_s21   ;;  %s7852_s20 = sphi %s7972_s20, %s9449_s20   ;;  %s7848_s30 = sphi %s7970_s30, %s9451_s30   ;;  %s7844_s0 = sphi %s7968_s0, %s9450_s0  }
   0xe   : > { %9421 = sst [smem:[#allocation17_spill]] %s7852_s20  ;;  %s5816_s22 = sadd.s32 4294967294, %s7856_s21  }
   0xf   : > { %9422 = sst [smem:[#allocation18_spill]] %s7856_s21  ;;  %s7993_s2 = sadd.s32 1, %s7856_s21  }
  0x10   : > { %9423 = sst [smem:[#allocation19_spill]] %s7993_s2  ;;  %s456_s23 = sadd.s32 1, %s7852_s20 }
  0x11   : > { %s453_s24 = ssub.s32 %s7856_s21, %s7993_s2  ;;  %p466_p0 = scmp.ne.s32.totalorder %s7852_s20, %s7848_s30 }
  0x12   : > { %p454_p1 = scmp.eq.s32.totalorder %s453_s24, 0  ;;  %p467_p2 = scmp.eq.s32.totalorder %s7989_s1, 1 }
  0x13   : > { %p472_p3 = scmp.ne.s32.totalorder %s7848_s30, %s7844_s0  ;;  %p473_p4 = scmp.eq.s32.totalorder %s5816_s22, 1 }
  0x14   : > { %s8004_s25 = scalar_select %p454_p1, %s7852_s20, %s456_s23  }
  0x15   : > { %p8006_p5 = por %p467_p2, %p466_p0  ;;  %p8010_p6 = por %p473_p4, %p472_p3 }
  0x16   : > { %9424 = sst [smem:[#allocation20_spill]] %s8004_s25  ;;  %p5817_p7 = scmp.ge.s32.totalorder %s7856_s21, 1 }
  0x17   : > { %s9425_s3 = scalar_select %p8006_p5, 1, 0 }
  0x18   : > { %s9426_s26 = scalar_select %p8010_p6, 1, 0 }
  0x19   : > { %p480_p8 = scmp.lt.s32.totalorder %s7856_s21, 3  ;;  %p9412_p9 = scmp.eq.s32.totalorder %s7989_s1, 0 }
  0x1a   : > { %9427 = sst [smem:[#allocation21_spill]] %s9426_s26  ;;  %s7858_s28 = smov [#allocation6]  }
  0x1b   : > { %p8017_p10 = pnand %p5817_p7, %p480_p8  ;;  %s518_s29 = sshll.u32 %s7858_s28, 4  ;;  %s519_s29 = int_to_ptr.vmem [resolvable:$true] %s518_s29 }
  0x1c   : > { %s7859_s23 = smov [#allocation3]   ;;  %s7860_s25 = smov [#allocation8]  }
  0x1d   : > { %p7329_p11 = pneg %p8017_p10  ;;  %s496_s24 = sshll.u32 %s7859_s23, 4  ;;  %s497_s24 = int_to_ptr.vmem [resolvable:$true] %s496_s24 }
  0x1e   : > { %s540_s20 = sshll.u32 %s7860_s25, 4  ;;  %s7691_s2 = scalar_lea.vmem %s519_s29, 512  ;;  %s541_s20 = int_to_ptr.vmem [resolvable:$true] %s540_s20 }
  0x1f   : > { %p8025_p12 = pnand %p9412_p9, %p7329_p11  ;;  %p7692_p0 = scmp.ne.s32.totalorder %s519_s29, %s7691_s2 }
  0x20   : > { %p7699_p3 = scmp.lt.s32.totalorder %s519_s29, %s519_s29  ;;  %p7700_p4 = scmp.lt.s32.totalorder %s7691_s2, %s7691_s2 }
  0x21   : > { %p7682_p13 = pneg %p8025_p12 }
  0x22   : > { %p7701_p7 = por %p7700_p4, %p7699_p3 }
  0x23   : > { %p7694_p1 = pnand %p7692_p0, %p7682_p13 }
  0x25   : > { %p7695_p2 = pneg %p7694_p1 }
  0x27   : > { %p7702_p8 = pnand %p7701_p7, %p7695_p2 }
  0x29   : > { %7705 = shalt.err (!%p7702_p8)
}
  0x2a   : > { %s7861_s28 = smov 64   ;;  %s7862_s23 = smov 4  }
  0x2b   : > { %7335 = dma.hbm_to_vmem [thread:$0]  (!%p8025_p12), %s9393_s9, 512, %s519_s29, [#allocation7], %s7861_s28, %s7861_s28, %s7862_s23  }
  0x2c   : > { %s7717_s0 = scalar_lea.vmem %s497_s24, 16  ;;  %s7724_s2 = scalar_lea.vmem %s497_s24, 32 }
  0x2d   : > { %p7718_p11 = scmp.ne.s32.totalorder %s497_s24, %s7717_s0  ;;  %p7725_p2 = scmp.lt.s32.totalorder %s497_s24, %s497_s24 }
  0x2e   : > { %p7726_p3 = scmp.lt.s32.totalorder %s7724_s2, %s7717_s0 }
  0x2f   : > { %p7720_p0 = pnand %p7718_p11, %p7682_p13 }
  0x30   : > { %p7727_p4 = por %p7726_p3, %p7725_p2 }
  0x31   : > { %p7721_p1 = pneg %p7720_p0 }
  0x33   : > { %p7728_p7 = pnand %p7727_p4, %p7721_p1 }
  0x35   : > { %7731 = shalt.err (!%p7728_p7)
}
  0x36   : > { %s9430_s4 = sld [smem:[#allocation26_spill]]  ;;  %s7743_s26 = scalar_lea.vmem %s541_s20, 512 }
  0x37   : > { %p7744_p8 = scmp.ne.s32.totalorder %s541_s20, %s7743_s26  ;;  %p7751_p9 = scmp.lt.s32.totalorder %s541_s20, %s541_s20 }
  0x38   : > { %p7752_p6 = scmp.lt.s32.totalorder %s7743_s26, %s7743_s26 }
  0x39   : > { %p7746_p11 = pnand %p7744_p8, %p7682_p13 }
  0x3a   : > { %p7753_p5 = por %p7752_p6, %p7751_p9 }
  0x3b   : > { %p7747_p0 = pneg %p7746_p11 }
  0x3c   : > { %7332 = dma.hbm_to_vmem [thread:$0]  (!%p8025_p12), %s9430_s4, 16, %s497_s24, [#allocation4]  }
  0x3d   : > { %p7754_p2 = pnand %p7753_p5, %p7747_p0 }
  0x3f   : > { %7757 = shalt.err (!%p7754_p2)
}
  0x40   : > { %7338 = dma.hbm_to_vmem [thread:$0]  (!%p8025_p12), %s9397_s13, 512, %s541_s20, [#allocation7], %s7861_s28, %s7861_s28, %s7862_s23  }
  0x41   : > { %s7863_s21 = smov [#allocation9]  }
  0x42   : > { %s562_s29 = sshll.u32 %s7863_s21, 4  ;;  %s563_s29 = int_to_ptr.vmem [resolvable:$true] %s562_s29 }
  0x43   : > { %s7769_s24 = scalar_lea.vmem %s563_s29, 512  ;;  %p7777_p9 = scmp.lt.s32.totalorder %s563_s29, %s563_s29 }
  0x44   : > { %p7770_p1 = scmp.ne.s32.totalorder %s563_s29, %s7769_s24  ;;  %p7778_p3 = scmp.lt.s32.totalorder %s7769_s24, %s7769_s24 }
  0x46   : > { %p7772_p6 = pnand %p7770_p1, %p7682_p13  ;;  %p7779_p4 = por %p7778_p3, %p7777_p9 }
  0x48   : > { %p7773_p5 = pneg %p7772_p6 }
  0x4a   : > { %p7780_p7 = pnand %p7779_p4, %p7773_p5 }
  0x4c   : > { %7783 = shalt.err (!%p7780_p7)
}
  0x4d   : > { %7341 = dma.hbm_to_vmem [thread:$0]  (!%p8025_p12), %s9401_s17, 512, %s563_s29, [#allocation10], %s7861_s28, %s7861_s28, %s7862_s23  }
  0x4e   : > { %611 = sbr.rel (%p8017_p10) target bundleno = 2398 (0x95e), region = 96  ;;  %p9431_p13 = scmp.eq.s32.totalorder (!%p8017_p10), %s7989_s1, 0 }
  0x53   : > { %7827 = dma.done.wait (%p9431_p13), [#allocation4], 16   ;;  %p9432_p8 = pmov %p9431_p13 }
  0x55   : > { %7829 = vsyncadd (%p9432_p8), [#allocation4], 4294967280  ;;  %p9433_p11 = pmov %p9432_p8 }
  0x56   : > { %p9434_p0 = pmov %p9432_p8 }
  0x57   : > { %7831 = dma.done.wait (%p9433_p11), [#allocation7], 1024  }
  0x58   : > { %7833 = vsyncadd (%p9434_p0), [#allocation7], 4294966272  ;;  %p9435_p2 = pmov %p9434_p0 }
  0x59   : > { %p9436_p12 = pmov %p9434_p0 }
  0x5a   : > { %7835 = dma.done.wait (%p9435_p2), [#allocation10], 512  }
  0x5b   : > { %7837 = vsyncadd (%p9436_p12), [#allocation10], 4294966784  ;;  %s9437_s28 = sld [smem:[#allocation25_spill]]  ;;  %s5829_s23 = sshll.u32 %s7989_s1, 4  ;;  %v7436_v32 = vld [vmem:[%s9389_s5 + $0x18] sm:$0xff]   ;;  %v7437_v33 = vld [vmem:[%s9389_s5 + $0x10] sm:$0xff]  }
  0x5c   : > { %p693_p10 = scmp.lt.s32.totalorder %s5829_s23, 31  ;;  %s9438_s25 = sld [smem:[#allocation22_spill]]  ;;  %6903 = vmatprep.subr.bf16.mxu1 %v7436_v32  ;;  %v7438_v34 = vld [vmem:[%s9389_s5 + $0x8] sm:$0xff]   ;;  %v7439_v35 = vld [vmem:[%s9389_s5] sm:$0xff]   ;;  %vm1106_vm0 = vcmask 523264   ;;  %vm1292_vm1 = vcmask 519168  }
  0x5d   : > { %6904 = vmatpush3.bf16.msra.mxu1 %v7436_v32  ;;  %s9439_s21 = sld [smem:[#allocation23_spill]]  ;;  %v8180_v40 = vld [vmem:[#allocation3] ss:$0 sm:$0xff]  ;;  %s7864_s22 = smov 64   ;;  %vm1917_vm2 = vcmask 1043968  }
  0x5e   : > { %s9453_s23 = smov (!%p693_p10, %s5829_s23), 31  ;;  %6905 = vmatprep.subr.bf16.mxu1 %v7437_v33  ;;  %s6386_s26 = sshll.u32 %s7989_s1, 11 }
  0x5f   : > { %s8111_s0 = sshll.u32 %s9453_s23, 3  ;;  %p9442_p6 = scmp.ne.s32.totalorder %s9425_s3, 0 }
  0x61   : > { %v7396_v0 = vld [vmem:[%s9437_s28 + $0x78] sm:$0xff]   ;;  %v7398_v2 = vld [vmem:[%s9437_s28 + $0x70] sm:$0xff]   ;;  %v7400_v4 = vld [vmem:[%s9437_s28 + $0x68] sm:$0xff]   ;;  %6906 = vmatpush3.bf16.msra.mxu1 %v7437_v33 }
  0x62   : > { %v7397_v1 = vld [vmem:[%s9437_s28 + $0x38] sm:$0xff]   ;;  %6387 = vmatprep.subr.bf16.mxu0 %v7396_v0  ;;  %v7399_v3 = vld [vmem:[%s9437_s28 + $0x30] sm:$0xff]   ;;  %v7401_v5 = vld [vmem:[%s9437_s28 + $0x28] sm:$0xff]   ;;  %s8120_s27 = scalar_lea.vmem %s9438_s25, %s8111_s0  ;;  %6907 = vmatprep.subr.bf16.mxu1 %v7438_v34  ;;  %s9440_s25 = sld [smem:[#allocation24_spill]] }
  0x63   : > { %6388 = vmatpush3.bf16.msra.mxu0 %v7397_v1  ;;  %v7402_v6 = vld [vmem:[%s9437_s28 + $0x60] sm:$0xff]   ;;  %v7404_v8 = vld [vmem:[%s9437_s28 + $0x58] sm:$0xff]   ;;  %v7406_v10 = vld [vmem:[%s9437_s28 + $0x50] sm:$0xff]   ;;  %s8178_s29 = scalar_lea.vmem %s9439_s21, %s8111_s0 }
  0x64   : > { %6389 = vmatprep.subr.bf16.mxu0 %v7398_v2  ;;  %v7403_v7 = vld [vmem:[%s9437_s28 + $0x20] sm:$0xff]   ;;  %v7405_v9 = vld [vmem:[%s9437_s28 + $0x18] sm:$0xff]   ;;  %v7407_v12 = vld [vmem:[%s9437_s28 + $0x10] sm:$0xff]  }
  0x65   : > { %v7414_v11 = vld [vmem:[%s8120_s27 + $0x4] ss:$8 sps:$4 sm:$0xff]   ;;  %v7412_v17 = vld [vmem:[%s8120_s27] ss:$8 sps:$4 sm:$0xff]   ;;  %v7415_v18 = vld [vmem:[%s8120_s27 + $0x14] ss:$8 sps:$4 sm:$0xff]   ;;  %6908 = vmatpush3.bf16.msra.mxu1 %v7438_v34 }
  0x66   : > { %978 = vmatprep.mubr.bf16.mxu0 %v7414_v11  ;;  %v7408_v13 = vld [vmem:[%s9437_s28 + $0x48] sm:$0xff]   ;;  %v7410_v15 = vld [vmem:[%s9437_s28 + $0x40] sm:$0xff]   ;;  %v7417_v19 = vld [vmem:[%s8120_s27 + $0x10] ss:$8 sps:$4 sm:$0xff]   ;;  %6909 = vmatprep.subr.bf16.mxu1 %v7439_v35 }
  0x67   : > { %6390 = vmatpush3.bf16.msra.mxu0 %v7399_v3  ;;  %v7409_v14 = vld [vmem:[%s9437_s28 + $0x8] sm:$0xff]   ;;  %v7411_v16 = vld [vmem:[%s9437_s28] sm:$0xff]   ;;  %v7421_v22 = vld [vmem:[%s8120_s27 + $0x34] ss:$8 sps:$4 sm:$0xff]  }
  0x68   : > { %6391 = vmatprep.subr.bf16.mxu0 %v7400_v4  ;;  %v7418_v20 = vld [vmem:[%s8120_s27 + $0x24] ss:$8 sps:$4 sm:$0xff]   ;;  %v7420_v21 = vld [vmem:[%s8120_s27 + $0x20] ss:$8 sps:$4 sm:$0xff]   ;;  %v7423_v23 = vld [vmem:[%s8120_s27 + $0x30] ss:$8 sps:$4 sm:$0xff]  }
  0x69   : > { %v7424_v24 = vld [vmem:[%s8120_s27 + $0x44] ss:$8 sps:$4 sm:$0xff]   ;;  %v7426_v25 = vld [vmem:[%s8120_s27 + $0x40] ss:$8 sps:$4 sm:$0xff]   ;;  %v7427_v26 = vld [vmem:[%s8120_s27 + $0x54] ss:$8 sps:$4 sm:$0xff]   ;;  %6910 = vmatpush3.bf16.msra.mxu1 %v7439_v35 }
  0x6a   : > { %v7429_v27 = vld [vmem:[%s8120_s27 + $0x50] ss:$8 sps:$4 sm:$0xff]   ;;  %v7430_v28 = vld [vmem:[%s8120_s27 + $0x64] ss:$8 sps:$4 sm:$0xff]   ;;  %v7432_v29 = vld [vmem:[%s8120_s27 + $0x60] ss:$8 sps:$4 sm:$0xff]  }
  0x6b   : > { %6392 = vmatpush3.bf16.msra.mxu0 %v7401_v5  ;;  %v7433_v30 = vld [vmem:[%s8120_s27 + $0x74] ss:$8 sps:$4 sm:$0xff]   ;;  %v7435_v31 = vld [vmem:[%s8120_s27 + $0x70] ss:$8 sps:$4 sm:$0xff]   ;;  %s8187_s27 = scalar_lea.vmem %s9440_s25, %s8111_s0  ;;  %s689_s25 = sand.u32 1, %s7848_s30  }
  0x6c   : > { %6393 = vmatprep.subr.bf16.mxu0 %v7402_v6  ;;  %v7440_v36 = vld [vmem:[%s9437_s28 + $0x78] sm:$0xff]   ;;  %v7442_v1 = vld [vmem:[%s9437_s28 + $0x70] sm:$0xff]   ;;  %s5828_s0 = sshll.u32 %s689_s25, 7  ;;  %s9344_s1 = scalar_lea.sflag [#allocation5], %s689_s25 }
  0x6d   : > { %6463 = vmatprep.subr.bf16.mxu1 %v7440_v36  ;;  %v7441_v63 = vld [vmem:[%s9437_s28 + $0x38] sm:$0xff]   ;;  %v7443_v6 = vld [vmem:[%s9437_s28 + $0x30] sm:$0xff]   ;;  %s9315_s23 = scalar_lea.vmem [#allocation11], %s5828_s0  ;;  %s7865_s0 = smov [#allocation11]  }
  0x6e   : > { %v7451_v36 = vld [vmem:[%s9437_s28 + $0x10] sm:$0xff]   ;;  %s5689_s19 = sshll.u32 %s9315_s23, 4  ;;  %s7788_s2 = sshll.u32 %s7865_s0, 4  ;;  %s9338_s19 = int_to_ptr.vmem [resolvable:$true] %s5689_s19  ;;  %s7789_s2 = int_to_ptr.vmem [resolvable:$false] %s7788_s2 }
  0x6f   : > { %6394 = vmatpush3.bf16.msra.mxu0 %v7403_v7  ;;  %s7784_s20 = scalar_lea.vmem %s9338_s19, 2048  ;;  %p7791_p3 = scmp.lt.s32.totalorder %s9338_s19, %s7789_s2 }
  0x70   : > { %6395 = vmatprep.subr.bf16.mxu0 %v7404_v8  ;;  %v7444_v8 = vld [vmem:[%s9437_s28 + $0x68] sm:$0xff]   ;;  %p7785_p1 = scmp.ne.s32.totalorder %s9338_s19, %s7784_s20 }
  0x72   : > { %p7786_p5 = pnand %p7785_p1, %p9442_p6 }
  0x73   : > { %6396 = vmatpush3.bf16.msra.mxu0 %v7405_v9 }
  0x74   : > { %6397 = vmatprep.subr.bf16.mxu0 %v7406_v10  ;;  %p7787_p9 = pneg %p7786_p5 }
  0x77   : > { %6398 = vmatpush3.bf16.msra.mxu0 %v7407_v12 }
  0x78   : > { %6399 = vmatprep.subr.bf16.mxu0 %v7408_v13 }
  0x7b   : > { %6400 = vmatpush3.bf16.msra.mxu0 %v7409_v14  ;;  %v7445_v14 = vld [vmem:[%s9437_s28 + $0x28] sm:$0xff]  }
  0x7c   : > { %6401 = vmatprep.subr.bf16.mxu0 %v7410_v15 }
  0x7f   : > { %6402 = vmatpush3.bf16.msra.mxu0 %v7411_v16  ;;  %v7446_v16 = vld [vmem:[%s9437_s28 + $0x60] sm:$0xff]  }
  0x82   : > { %979 = vmatmul.mubr.bf16.vlgmr.msra.gmra.mxu0 %v7412_v17 }
  0x83   : > { %986 = vmatprep.mubr.bf16.mxu0 %v7415_v18 }
  0x8a   : > { %987 = vmatmul.mubr.bf16.gmra.mxu0 %v7417_v19 }
  0x8b   : > { %994 = vmatprep.mubr.bf16.mxu0 %v7418_v20 }
  0x92   : > { %995 = vmatmul.mubr.bf16.gmra.mxu0 %v7420_v21  ;;  %v7447_v21 = vld [vmem:[%s9437_s28 + $0x20] sm:$0xff]  }
  0x93   : > { %1002 = vmatprep.mubr.bf16.mxu0 %v7421_v22 }
  0x9a   : > { %1003 = vmatmul.mubr.bf16.gmra.mxu0 %v7423_v23  ;;  %v7448_v23 = vld [vmem:[%s9437_s28 + $0x58] sm:$0xff]  }
  0x9b   : > { %1010 = vmatprep.mubr.bf16.mxu0 %v7424_v24 }
  0xa2   : > { %1011 = vmatmul.mubr.bf16.gmra.mxu0 %v7426_v25 }
  0xa3   : > { %1018 = vmatprep.mubr.bf16.mxu0 %v7427_v26 }
  0xaa   : > { %1019 = vmatmul.mubr.bf16.gmra.mxu0 %v7429_v27 }
  0xab   : > { %1026 = vmatprep.mubr.bf16.mxu0 %v7430_v28 }
  0xb2   : > { %1027 = vmatmul.mubr.bf16.gmra.mxu0 %v7432_v29  ;;  %v7449_v29 = vld [vmem:[%s9437_s28 + $0x18] sm:$0xff]  }
  0xb3   : > { %1034 = vmatprep.mubr.bf16.mxu0 %v7433_v30 }
  0xba   : > { %1035 = vmatmul.mubr.bf16.gmra.mxu0 %v7435_v31  ;;  %v7450_v31 = vld [vmem:[%s9437_s28 + $0x50] sm:$0xff]  }
 0x142   : > { %v6403_v37 = vpop.f32.mrf.mxu0 }
 0x144   : > { %v6404_v38 = vpop.f32.mrf.mxu0 }
 0x145   : > { %v6405_v39 = vadd.f32 %v6404_v38, %v6403_v37  ;;  %v7452_v38 = vld [vmem:[%s9437_s28 + $0x48] sm:$0xff]  }
 0x146   : > { %v6406_v41 = vpop.f32.mrf.mxu0 }
 0x147   : > { %v981_v43 = vadd.f32 %v6405_v39, %v8180_v40 }
 0x148   : > { %v6407_v42 = vpop.f32.mrf.mxu0 }
 0x149   : > { %v6408_v44 = vadd.f32 %v6407_v42, %v6406_v41  ;;  %v1043_v48 = vmax.f32 %v981_v43, 0.0 }
 0x14a   : > { %v6409_v45 = vpop.f32.mrf.mxu0 }
 0x14b   : > { %v984_v46 = vadd.f32 %v6408_v44, %v8180_v40 }
 0x14c   : > { %v6410_v47 = vpop.f32.mrf.mxu0 }
 0x14d   : > { %v6411_v49 = vadd.f32 %v6410_v47, %v6409_v45  ;;  %v1044_v50 = vmax.f32 %v984_v46, 0.0  ;;  %v7453_v45 = vld [vmem:[%s9437_s28 + $0x8] sm:$0xff]   ;;  %v7454_v47 = vld [vmem:[%s9437_s28 + $0x40] sm:$0xff]  }
 0x14e   : > { %v6412_v51 = vpop.f32.mrf.mxu0 }
 0x14f   : > { %v1067_v52 = vpack.c.bf16 %v1044_v50, %v1043_v48  ;;  %v989_v54 = vadd.f32 %v6411_v49, %v8180_v40 }
 0x150   : > { %v6413_v53 = vpop.f32.mrf.mxu0 }
 0x151   : > { %v6414_v55 = vadd.f32 %v6413_v53, %v6412_v51  ;;  %6911 = vmatprep.mubr.msk.bf16.mxu1 %vm1106_vm0, %v1067_v52  ;;  %v1045_v59 = vmax.f32 %v989_v54, 0.0  ;;  %v7455_v52 = vld [vmem:[%s9437_s28] sm:$0xff]   ;;  %v7459_v54 = vld [vmem:[%s9437_s28 + $0x78] sm:$0xff]  }
 0x152   : > { %v6415_v56 = vpop.f32.mrf.mxu0 }
 0x153   : > { %v992_v57 = vadd.f32 %v6414_v55, %v8180_v40 }
 0x154   : > { %v6416_v58 = vpop.f32.mrf.mxu0 }
 0x155   : > { %v1046_v60 = vmax.f32 %v992_v57, 0.0  ;;  %v6417_v61 = vadd.f32 %v6416_v58, %v6415_v56 }
 0x156   : > { %v6418_v62 = vpop.f32.mrf.mxu0 }
 0x157   : > { %v1068_v0 = vpack.c.bf16 %v1046_v60, %v1045_v59  ;;  %v997_v3 = vadd.f32 %v6417_v61, %v8180_v40 }
 0x158   : > { %v6419_v2 = vpop.f32.mrf.mxu0 }
 0x159   : > { %v6420_v4 = vadd.f32 %v6419_v2, %v6418_v62  ;;  %6912 = vmatmul.mubr.msk.bf16.vlgmr.msra.gmra.mxu1 %vm1106_vm0, %v1068_v0  ;;  %v1047_v10 = vmax.f32 %v997_v3, 0.0 }
 0x15a   : > { %v6421_v5 = vpop.f32.mrf.mxu0  ;;  %6464 = vmatpush3.bf16.msra.mxu1 %v7441_v63 }
 0x15b   : > { %v1000_v7 = vadd.f32 %v6420_v4, %v8180_v40  ;;  %6465 = vmatprep.subr.bf16.mxu1 %v7442_v1 }
 0x15c   : > { %v6422_v9 = vpop.f32.mrf.mxu0 }
 0x15d   : > { %v1048_v11 = vmax.f32 %v1000_v7, 0.0  ;;  %v6423_v12 = vadd.f32 %v6422_v9, %v6421_v5 }
 0x15e   : > { %v6424_v13 = vpop.f32.mrf.mxu0  ;;  %6466 = vmatpush3.bf16.msra.mxu1 %v7443_v6 }
 0x15f   : > { %v1069_v15 = vpack.c.bf16 %v1048_v11, %v1047_v10  ;;  %6467 = vmatprep.subr.bf16.mxu1 %v7444_v8  ;;  %v1005_v18 = vadd.f32 %v6423_v12, %v8180_v40 }
 0x160   : > { %v6425_v17 = vpop.f32.mrf.mxu0 }
 0x161   : > { %v6426_v19 = vadd.f32 %v6425_v17, %v6424_v13  ;;  %6915 = vmatprep.mubr.msk.bf16.mxu1 %vm1106_vm0, %v1069_v15  ;;  %v1049_v25 = vmax.f32 %v1005_v18, 0.0  ;;  %v7460_v17 = vld [vmem:[%s9437_s28 + $0x38] sm:$0xff]  }
 0x162   : > { %v6427_v20 = vpop.f32.mrf.mxu0  ;;  %6468 = vmatpush3.bf16.msra.mxu1 %v7445_v14  ;;  %v7458_v14 = vld [vmem:[%s8178_s29 + $0x4] ss:$8 sps:$4 sm:$0xff]   ;;  %v7461_v18 = vld [vmem:[%s8178_s29 + $0x14] ss:$8 sps:$4 sm:$0xff]  }
 0x163   : > { %v1008_v22 = vadd.f32 %v6426_v19, %v8180_v40  ;;  %6469 = vmatprep.subr.bf16.mxu1 %v7446_v16  ;;  %v7456_v16 = vld [vmem:[%s8178_s29] ss:$8 sps:$4 sm:$0xff]   ;;  %v7463_v19 = vld [vmem:[%s9437_s28 + $0x70] sm:$0xff]  }
 0x164   : > { %v6428_v24 = vpop.f32.mrf.mxu0 }
 0x165   : > { %v1050_v26 = vmax.f32 %v1008_v22, 0.0  ;;  %v6429_v27 = vadd.f32 %v6428_v24, %v6427_v20  ;;  %v7465_v20 = vld [vmem:[%s9437_s28 + $0x30] sm:$0xff]   ;;  %v7470_v24 = vld [vmem:[%s9437_s28 + $0x28] sm:$0xff]  }
 0x166   : > { %v6430_v28 = vpop.f32.mrf.mxu0  ;;  %6470 = vmatpush3.bf16.msra.mxu1 %v7447_v21  ;;  %v7468_v21 = vld [vmem:[%s9437_s28 + $0x68] sm:$0xff]   ;;  %v7464_v22 = vld [vmem:[%s8178_s29 + $0x10] ss:$8 sps:$4 sm:$0xff]  }
 0x167   : > { %v1070_v30 = vpack.c.bf16 %v1050_v26, %v1049_v25  ;;  %6471 = vmatprep.subr.bf16.mxu1 %v7448_v23  ;;  %v1013_v33 = vadd.f32 %v6429_v27, %v8180_v40  ;;  %v7466_v23 = vld [vmem:[%s8178_s29 + $0x24] ss:$8 sps:$4 sm:$0xff]   ;;  %v7478_v27 = vld [vmem:[%s9437_s28 + $0x58] sm:$0xff]  }
 0x168   : > { %v6431_v32 = vpop.f32.mrf.mxu0  ;;  %v7473_v25 = vld [vmem:[%s9437_s28 + $0x60] sm:$0xff]  }
 0x169   : > { %v6432_v34 = vadd.f32 %v6431_v32, %v6430_v28  ;;  %6916 = vmatmul.mubr.msk.bf16.gmra.mxu1 %vm1106_vm0, %v1070_v30  ;;  %v1051_v41 = vmax.f32 %v1013_v33, 0.0  ;;  %v7475_v26 = vld [vmem:[%s9437_s28 + $0x20] sm:$0xff]   ;;  %v7480_v30 = vld [vmem:[%s9437_s28 + $0x18] sm:$0xff]   ;;  %v7485_v32 = vld [vmem:[%s9437_s28 + $0x10] sm:$0xff]  }
 0x16a   : > { %v6433_v35 = vpop.f32.mrf.mxu0  ;;  %6472 = vmatpush3.bf16.msra.mxu1 %v7449_v29  ;;  %v7469_v28 = vld [vmem:[%s8178_s29 + $0x20] ss:$8 sps:$4 sm:$0xff]   ;;  %v7471_v29 = vld [vmem:[%s8178_s29 + $0x34] ss:$8 sps:$4 sm:$0xff]  }
 0x16b   : > { %v1016_v37 = vadd.f32 %v6432_v34, %v8180_v40  ;;  %6473 = vmatprep.subr.bf16.mxu1 %v7450_v31  ;;  %v7483_v31 = vld [vmem:[%s9437_s28 + $0x50] sm:$0xff]   ;;  %v7488_v33 = vld [vmem:[%s9437_s28 + $0x48] sm:$0xff]  }
 0x16c   : > { %v6434_v39 = vpop.f32.mrf.mxu0  ;;  %v7474_v34 = vld [vmem:[%s8178_s29 + $0x30] ss:$8 sps:$4 sm:$0xff]  }
 0x16d   : > { %v1052_v42 = vmax.f32 %v1016_v37, 0.0  ;;  %v6435_v43 = vadd.f32 %v6434_v39, %v6433_v35  ;;  %v7476_v35 = vld [vmem:[%s8178_s29 + $0x44] ss:$8 sps:$4 sm:$0xff]   ;;  %v7479_v39 = vld [vmem:[%s8178_s29 + $0x40] ss:$8 sps:$4 sm:$0xff]  }
 0x16e   : > { %v6436_v44 = vpop.f32.mrf.mxu0  ;;  %6474 = vmatpush3.bf16.msra.mxu1 %v7451_v36  ;;  %v7490_v36 = vld [vmem:[%s9437_s28 + $0x8] sm:$0xff]   ;;  %v7493_v37 = vld [vmem:[%s9437_s28 + $0x40] sm:$0xff]  }
 0x16f   : > { %v1071_v46 = vpack.c.bf16 %v1052_v42, %v1051_v41  ;;  %6475 = vmatprep.subr.bf16.mxu1 %v7452_v38  ;;  %v1021_v49 = vadd.f32 %v6435_v43, %v8180_v40  ;;  %v7495_v38 = vld [vmem:[%s9437_s28] sm:$0xff]   ;;  %v7481_v41 = vld [vmem:[%s8178_s29 + $0x54] ss:$8 sps:$4 sm:$0xff]   ;;  %v7484_v43 = vld [vmem:[%s8178_s29 + $0x50] ss:$8 sps:$4 sm:$0xff]  }
 0x170   : > { %v6437_v48 = vpop.f32.mrf.mxu0  ;;  %v7520_v42 = vld [vmem:[%s9389_s5 + $0x18] sm:$0xff]  }
 0x171   : > { %v6438_v50 = vadd.f32 %v6437_v48, %v6436_v44  ;;  %6919 = vmatprep.mubr.msk.bf16.mxu1 %vm1106_vm0, %v1071_v46  ;;  %v1053_v56 = vmax.f32 %v1021_v49, 0.0  ;;  %6927 = vmatprep.subr.bf16.mxu0 %v7520_v42  ;;  %v7486_v44 = vld [vmem:[%s8178_s29 + $0x64] ss:$8 sps:$4 sm:$0xff]   ;;  %v7491_v46 = vld [vmem:[%s8178_s29 + $0x74] ss:$8 sps:$4 sm:$0xff]  }
 0x172   : > { %v6439_v51 = vpop.f32.mrf.mxu0  ;;  %6476 = vmatpush3.bf16.msra.mxu1 %v7453_v45  ;;  %6928 = vmatpush3.bf16.msra.mxu0 %v7520_v42  ;;  %v7489_v45 = vld [vmem:[%s8178_s29 + $0x60] ss:$8 sps:$4 sm:$0xff]   ;;  %v7494_v48 = vld [vmem:[%s8178_s29 + $0x70] ss:$8 sps:$4 sm:$0xff]   ;;  %v7498_v49 = vld [vmem:[%s8187_s27 + $0x4] ss:$8 sps:$4 sm:$0xff]  }
 0x173   : > { %v1024_v53 = vadd.f32 %v6438_v50, %v8180_v40  ;;  %6477 = vmatprep.subr.bf16.mxu1 %v7454_v47  ;;  %v7521_v47 = vld [vmem:[%s9389_s5 + $0x10] sm:$0xff]   ;;  %v7496_v50 = vld [vmem:[%s8187_s27] ss:$8 sps:$4 sm:$0xff]   ;;  %s9441_s29 = sld [smem:[#allocation27_spill]] }
 0x174   : > { %v6440_v55 = vpop.f32.mrf.mxu0  ;;  %6929 = vmatprep.subr.bf16.mxu0 %v7521_v47 }
 0x175   : > { %v1054_v57 = vmax.f32 %v1024_v53, 0.0  ;;  %v6441_v58 = vadd.f32 %v6440_v55, %v6439_v51  ;;  %v7499_v51 = vld [vmem:[%s8187_s27 + $0x14] ss:$8 sps:$4 sm:$0xff]   ;;  %v7501_v53 = vld [vmem:[%s8187_s27 + $0x10] ss:$8 sps:$4 sm:$0xff]  }
 0x176   : > { %v6442_v59 = vpop.f32.mrf.mxu0  ;;  %6478 = vmatpush3.bf16.msra.mxu1 %v7455_v52  ;;  %6930 = vmatpush3.bf16.msra.mxu0 %v7521_v47  ;;  %v7522_v52 = vld [vmem:[%s9389_s5 + $0x8] sm:$0xff]  }
 0x177   : > { %v1072_v60 = vpack.c.bf16 %v1054_v57, %v1053_v56  ;;  %6539 = vmatprep.subr.bf16.mxu1 %v7459_v54  ;;  %v1029_v62 = vadd.f32 %v6441_v58, %v8180_v40  ;;  %6931 = vmatprep.subr.bf16.mxu0 %v7522_v52  ;;  %v7502_v54 = vld [vmem:[%s8187_s27 + $0x24] ss:$8 sps:$4 sm:$0xff]   ;;  %v7504_v55 = vld [vmem:[%s8187_s27 + $0x20] ss:$8 sps:$4 sm:$0xff]   ;;  %v7505_v56 = vld [vmem:[%s8187_s27 + $0x34] ss:$8 sps:$4 sm:$0xff]  }
 0x178   : > { %v6443_v61 = vpop.f32.mrf.mxu0  ;;  %v7523_v57 = vld [vmem:[%s9389_s5] sm:$0xff]   ;;  %v7507_v58 = vld [vmem:[%s8187_s27 + $0x30] ss:$8 sps:$4 sm:$0xff]  }
 0x179   : > { %v6444_v63 = vadd.f32 %v6443_v61, %v6442_v59  ;;  %6920 = vmatmul.mubr.msk.bf16.gmra.mxu1 %vm1106_vm0, %v1072_v60  ;;  %v1055_v3 = vmax.f32 %v1029_v62, 0.0  ;;  %v7508_v59 = vld [vmem:[%s8187_s27 + $0x44] ss:$8 sps:$4 sm:$0xff]   ;;  %v7510_v60 = vld [vmem:[%s8187_s27 + $0x40] ss:$8 sps:$4 sm:$0xff]  }
 0x17a   : > { %v6445_v0 = vpop.f32.mrf.mxu0  ;;  %6932 = vmatpush3.bf16.msra.mxu0 %v7522_v52  ;;  %v7511_v61 = vld [vmem:[%s8187_s27 + $0x54] ss:$8 sps:$4 sm:$0xff]   ;;  %v7513_v62 = vld [vmem:[%s8187_s27 + $0x50] ss:$8 sps:$4 sm:$0xff]  }
 0x17b   : > { %v1032_v1 = vadd.f32 %v6444_v63, %v8180_v40  ;;  %6933 = vmatprep.subr.bf16.mxu0 %v7523_v57  ;;  %v7514_v63 = vld [vmem:[%s8187_s27 + $0x64] ss:$8 sps:$4 sm:$0xff]  }
 0x17c   : > { %v6446_v2 = vpop.f32.mrf.mxu0 }
 0x17d   : > { %v1056_v4 = vmax.f32 %v1032_v1, 0.0  ;;  %v6447_v5 = vadd.f32 %v6446_v2, %v6445_v0  ;;  %v7516_v0 = vld [vmem:[%s8187_s27 + $0x60] ss:$8 sps:$4 sm:$0xff]   ;;  %v7517_v1 = vld [vmem:[%s8187_s27 + $0x74] ss:$8 sps:$4 sm:$0xff]  }
 0x17e   : > { %v6448_v6 = vpop.f32.mrf.mxu0  ;;  %6934 = vmatpush3.bf16.msra.mxu0 %v7523_v57  ;;  %v7519_v2 = vld [vmem:[%s8187_s27 + $0x70] ss:$8 sps:$4 sm:$0xff]   ;;  %s7790_s27 = scalar_lea.vmem %s7789_s2, 4096 }
 0x17f   : > { %v1073_v7 = vpack.c.bf16 %v1056_v4, %v1055_v3  ;;  %v1037_v9 = vadd.f32 %v6447_v5, %v8180_v40  ;;  %v8352_v3 = vld [vmem:[%s9389_s5 + $0x18] sm:$0xff]   ;;  %v8357_v4 = vld [vmem:[%s9390_s6] ss:$0 sm:$0xff]  ;;  %p7792_p4 = scmp.lt.s32.totalorder %s7790_s27, %s7784_s20 }
 0x180   : > { %v6449_v8 = vpop.f32.mrf.mxu0  ;;  %6951 = vmatprep.subr.bf16.mxu0 %v8352_v3 }
 0x181   : > { %v6450_v10 = vadd.f32 %v6449_v8, %v6448_v6  ;;  %6923 = vmatprep.mubr.msk.bf16.mxu1 %vm1106_vm0, %v1073_v7  ;;  %v1057_v12 = vmax.f32 %v1037_v9, 0.0  ;;  %p7793_p7 = por %p7792_p4, %p7791_p3 }
 0x183   : > { %v1040_v11 = vadd.f32 %v6450_v10, %v8180_v40  ;;  %p7794_p13 = pnand %p7793_p7, %p7787_p9 }
 0x185   : > { %v1058_v13 = vmax.f32 %v1040_v11, 0.0 }
 0x187   : > { %v1074_v15 = vpack.c.bf16 %v1058_v13, %v1057_v12 }
 0x189   : > { %6924 = vmatmul.mubr.msk.bf16.gmra.mxu1 %vm1106_vm0, %v1074_v15 }
 0x18a   : > { %1572 = vmatprep.mubr.bf16.mxu1 %v7458_v14 }
 0x191   : > { %1573 = vmatmul.mubr.bf16.vlgmr.msra.gmra.mxu1 %v7456_v16 }
 0x192   : > { %6540 = vmatpush3.bf16.msra.mxu1 %v7460_v17  ;;  %1580 = vmatprep.mubr.bf16.mxu1 %v7461_v18 }
 0x193   : > { %6541 = vmatprep.subr.bf16.mxu1 %v7463_v19 }
 0x196   : > { %6542 = vmatpush3.bf16.msra.mxu1 %v7465_v20 }
 0x197   : > { %6543 = vmatprep.subr.bf16.mxu1 %v7468_v21 }
 0x199   : > { %1581 = vmatmul.mubr.bf16.gmra.mxu1 %v7464_v22 }
 0x19a   : > { %1588 = vmatprep.mubr.bf16.mxu1 %v7466_v23  ;;  %6544 = vmatpush3.bf16.msra.mxu1 %v7470_v24 }
 0x19b   : > { %6545 = vmatprep.subr.bf16.mxu1 %v7473_v25 }
 0x19e   : > { %6546 = vmatpush3.bf16.msra.mxu1 %v7475_v26 }
 0x19f   : > { %6547 = vmatprep.subr.bf16.mxu1 %v7478_v27 }
 0x1a1   : > { %1589 = vmatmul.mubr.bf16.gmra.mxu1 %v7469_v28 }
 0x1a2   : > { %1596 = vmatprep.mubr.bf16.mxu1 %v7471_v29  ;;  %6548 = vmatpush3.bf16.msra.mxu1 %v7480_v30 }
 0x1a3   : > { %6549 = vmatprep.subr.bf16.mxu1 %v7483_v31 }
 0x1a6   : > { %6550 = vmatpush3.bf16.msra.mxu1 %v7485_v32 }
 0x1a7   : > { %6551 = vmatprep.subr.bf16.mxu1 %v7488_v33 }
 0x1a9   : > { %1597 = vmatmul.mubr.bf16.gmra.mxu1 %v7474_v34 }
 0x1aa   : > { %1604 = vmatprep.mubr.bf16.mxu1 %v7476_v35  ;;  %6552 = vmatpush3.bf16.msra.mxu1 %v7490_v36 }
 0x1ab   : > { %6553 = vmatprep.subr.bf16.mxu1 %v7493_v37 }
 0x1ae   : > { %6554 = vmatpush3.bf16.msra.mxu1 %v7495_v38 }
 0x1b1   : > { %1605 = vmatmul.mubr.bf16.gmra.mxu1 %v7479_v39 }
 0x1b2   : > { %1612 = vmatprep.mubr.bf16.mxu1 %v7481_v41 }
 0x1b9   : > { %1613 = vmatmul.mubr.bf16.gmra.mxu1 %v7484_v43 }
 0x1ba   : > { %1620 = vmatprep.mubr.bf16.mxu1 %v7486_v44 }
 0x1c1   : > { %1621 = vmatmul.mubr.bf16.gmra.mxu1 %v7489_v45 }
 0x1c2   : > { %1628 = vmatprep.mubr.bf16.mxu1 %v7491_v46 }
 0x1c9   : > { %1629 = vmatmul.mubr.bf16.gmra.mxu1 %v7494_v48 }
 0x1ca   : > { %2197 = vmatprep.mubr.bf16.mxu1 %v7498_v49 }
 0x1d1   : > { %2198 = vmatmul.mubr.bf16.vlgmr.msra.gmra.mxu1 %v7496_v50 }
 0x1d2   : > { %2205 = vmatprep.mubr.bf16.mxu1 %v7499_v51 }
 0x1d9   : > { %2206 = vmatmul.mubr.bf16.gmra.mxu1 %v7501_v53 }
 0x1da   : > { %2213 = vmatprep.mubr.bf16.mxu1 %v7502_v54 }
 0x1e1   : > { %2214 = vmatmul.mubr.bf16.gmra.mxu1 %v7504_v55 }
 0x1e2   : > { %2221 = vmatprep.mubr.bf16.mxu1 %v7505_v56 }
 0x1e9   : > { %2222 = vmatmul.mubr.bf16.gmra.mxu1 %v7507_v58 }
 0x1ea   : > { %2229 = vmatprep.mubr.bf16.mxu1 %v7508_v59 }
 0x1f1   : > { %2230 = vmatmul.mubr.bf16.gmra.mxu1 %v7510_v60 }
 0x1f2   : > { %2237 = vmatprep.mubr.bf16.mxu1 %v7511_v61 }
 0x1f9   : > { %2238 = vmatmul.mubr.bf16.gmra.mxu1 %v7513_v62 }
 0x1fa   : > { %2245 = vmatprep.mubr.bf16.mxu1 %v7514_v63 }
 0x201   : > { %2246 = vmatmul.mubr.bf16.gmra.mxu1 %v7516_v0 }
 0x202   : > { %2253 = vmatprep.mubr.bf16.mxu1 %v7517_v1 }
 0x209   : > { %2254 = vmatmul.mubr.bf16.gmra.mxu1 %v7519_v2 }
 0x219   : > { %v6913_v5 = vpop.f32.mrf.mxu1 }
 0x21a   : > { %v1174_v6 = vadd.f32 %v6913_v5, %v8357_v4 }
 0x21b   : > { %v1165_v7 = vpop.f32.mrf.mxu1 }
 0x21c   : > { %v6292_v8 = vpack.c.bf16 %v1174_v6, %v1174_v6  ;;  %v1166_v9 = vadd.f32 %v8357_v4, %v1165_v7 }
 0x21d   : > { %v6914_v10 = vpop.f32.mrf.mxu1 }
 0x21e   : > { %1295 = vst.msk [vmem:[#allocation2 + $0x18] sm:$0xf] %vm1292_vm1, %v6292_v8  ;;  %v6290_v11 = vpack.c.bf16 %v1166_v9, %v1166_v9  ;;  %v1177_v12 = vadd.f32 %v6914_v10, %v8357_v4 }
 0x21f   : > { %v1168_v13 = vpop.f32.mrf.mxu1 }
 0x220   : > { %1293 = vst.msk [vmem:[#allocation2] sm:$0xf] %vm1292_vm1, %v6290_v11  ;;  %v6293_v14 = vpack.c.bf16 %v1177_v12, %v1177_v12  ;;  %v1169_v15 = vadd.f32 %v8357_v4, %v1168_v13 }
 0x222   : > { %1296 = vst.msk [vmem:[#allocation2 + $0x24] sm:$0xf] %vm1292_vm1, %v6293_v14  ;;  %v6291_v16 = vpack.c.bf16 %v1169_v15, %v1169_v15 }
 0x224   : > { %1294 = vst.msk [vmem:[#allocation2 + $0xc] sm:$0xf] %vm1292_vm1, %v6291_v16 }
 0x229   : > { %v6917_v17 = vpop.f32.mrf.mxu1 }
 0x22a   : > { %v1190_v18 = vadd.f32 %v6917_v17, %v8357_v4 }
 0x22b   : > { %v1181_v19 = vpop.f32.mrf.mxu1 }
 0x22c   : > { %v6296_v20 = vpack.c.bf16 %v1190_v18, %v1190_v18  ;;  %v1182_v21 = vadd.f32 %v8357_v4, %v1181_v19  ;;  %v7525_v18 = vld [vmem:[%s9389_s5 + $0x10] sm:$0xff]  }
 0x22d   : > { %v6918_v22 = vpop.f32.mrf.mxu1 }
 0x22e   : > { %1299 = vst.msk [vmem:[#allocation2 + $0x48] sm:$0xf] %vm1292_vm1, %v6296_v20  ;;  %v6294_v23 = vpack.c.bf16 %v1182_v21, %v1182_v21  ;;  %v1193_v24 = vadd.f32 %v6918_v22, %v8357_v4 }
 0x22f   : > { %v1184_v25 = vpop.f32.mrf.mxu1 }
 0x230   : > { %1297 = vst.msk [vmem:[#allocation2 + $0x30] sm:$0xf] %vm1292_vm1, %v6294_v23  ;;  %v6297_v26 = vpack.c.bf16 %v1193_v24, %v1193_v24  ;;  %v1185_v27 = vadd.f32 %v8357_v4, %v1184_v25  ;;  %v7526_v24 = vld [vmem:[%s9389_s5 + $0x8] sm:$0xff]  }
 0x232   : > { %1300 = vst.msk [vmem:[#allocation2 + $0x54] sm:$0xf] %vm1292_vm1, %v6297_v26  ;;  %v6295_v28 = vpack.c.bf16 %v1185_v27, %v1185_v27 }
 0x234   : > { %1298 = vst.msk [vmem:[#allocation2 + $0x3c] sm:$0xf] %vm1292_vm1, %v6295_v28 }
 0x239   : > { %v6921_v29 = vpop.f32.mrf.mxu1 }
 0x23a   : > { %v1206_v30 = vadd.f32 %v6921_v29, %v8357_v4 }
 0x23b   : > { %v1197_v31 = vpop.f32.mrf.mxu1 }
 0x23c   : > { %v6300_v32 = vpack.c.bf16 %v1206_v30, %v1206_v30  ;;  %v1198_v33 = vadd.f32 %v8357_v4, %v1197_v31  ;;  %v7527_v31 = vld [vmem:[%s9389_s5] sm:$0xff]  }
 0x23d   : > { %v6922_v34 = vpop.f32.mrf.mxu1 }
 0x23e   : > { %1303 = vst.msk [vmem:[#allocation2 + $0x78] sm:$0xf] %vm1292_vm1, %v6300_v32  ;;  %v6298_v35 = vpack.c.bf16 %v1198_v33, %v1198_v33  ;;  %v1209_v36 = vadd.f32 %v6922_v34, %v8357_v4 }
 0x23f   : > { %v1200_v37 = vpop.f32.mrf.mxu1 }
 0x240   : > { %1301 = vst.msk [vmem:[#allocation2 + $0x60] sm:$0xf] %vm1292_vm1, %v6298_v35  ;;  %v6301_v38 = vpack.c.bf16 %v1209_v36, %v1209_v36  ;;  %v1201_v39 = vadd.f32 %v8357_v4, %v1200_v37 }
 0x242   : > { %1304 = vst.msk [vmem:[#allocation2 + $0x84] sm:$0xf] %vm1292_vm1, %v6301_v38  ;;  %v6299_v41 = vpack.c.bf16 %v1201_v39, %v1201_v39 }
 0x244   : > { %1302 = vst.msk [vmem:[#allocation2 + $0x6c] sm:$0xf] %vm1292_vm1, %v6299_v41 }
 0x249   : > { %v6925_v42 = vpop.f32.mrf.mxu1 }
 0x24a   : > { %v1222_v43 = vadd.f32 %v6925_v42, %v8357_v4 }
 0x24b   : > { %v1213_v44 = vpop.f32.mrf.mxu1 }
 0x24c   : > { %v6304_v45 = vpack.c.bf16 %v1222_v43, %v1222_v43  ;;  %v1214_v46 = vadd.f32 %v8357_v4, %v1213_v44 }
 0x24d   : > { %v6926_v47 = vpop.f32.mrf.mxu1 }
 0x24e   : > { %1307 = vst.msk [vmem:[#allocation2 + $0xa8] sm:$0xf] %vm1292_vm1, %v6304_v45  ;;  %v6302_v48 = vpack.c.bf16 %v1214_v46, %v1214_v46  ;;  %v1225_v49 = vadd.f32 %v6926_v47, %v8357_v4 }
 0x24f   : > { %v1216_v50 = vpop.f32.mrf.mxu1 }
 0x250   : > { %1305 = vst.msk [vmem:[#allocation2 + $0x90] sm:$0xf] %vm1292_vm1, %v6302_v48  ;;  %v6305_v51 = vpack.c.bf16 %v1225_v49, %v1225_v49  ;;  %v1217_v52 = vadd.f32 %v8357_v4, %v1216_v50 }
 0x251   : > { %v6479_v53 = vpop.f32.mrf.mxu1 }
 0x252   : > { %1308 = vst.msk [vmem:[#allocation2 + $0xb4] sm:$0xf] %vm1292_vm1, %v6305_v51  ;;  %v6303_v54 = vpack.c.bf16 %v1217_v52, %v1217_v52 }
 0x253   : > { %v6480_v55 = vpop.f32.mrf.mxu1 }
 0x254   : > { %1306 = vst.msk [vmem:[#allocation2 + $0x9c] sm:$0xf] %vm1292_vm1, %v6303_v54  ;;  %v6481_v56 = vadd.f32 %v6480_v55, %v6479_v53 }
 0x255   : > { %v6482_v57 = vpop.f32.mrf.mxu1 }
 0x256   : > { %v1575_v59 = vadd.f32 %v6481_v56, %v8180_v40 }
 0x257   : > { %v6483_v58 = vpop.f32.mrf.mxu1 }
 0x258   : > { %v6484_v60 = vadd.f32 %v6483_v58, %v6482_v57  ;;  %v1637_v0 = vmax.f32 %v1575_v59, 0.0 }
 0x259   : > { %v6485_v61 = vpop.f32.mrf.mxu1 }
 0x25a   : > { %v1578_v62 = vadd.f32 %v6484_v60, %v8180_v40 }
 0x25b   : > { %v6486_v63 = vpop.f32.mrf.mxu1 }
 0x25c   : > { %v1638_v1 = vmax.f32 %v1578_v62, 0.0  ;;  %v6487_v2 = vadd.f32 %v6486_v63, %v6485_v61 }
 0x25d   : > { %v6488_v5 = vpop.f32.mrf.mxu1 }
 0x25e   : > { %v1661_v6 = vpack.c.bf16 %v1638_v1, %v1637_v0  ;;  %v1583_v8 = vadd.f32 %v6487_v2, %v8180_v40 }
 0x25f   : > { %v6489_v7 = vpop.f32.mrf.mxu1 }
 0x260   : > { %v6490_v9 = vadd.f32 %v6489_v7, %v6488_v5  ;;  %6935 = vmatprep.mubr.msk.bf16.mxu0 %vm1106_vm0, %v1661_v6  ;;  %v1639_v13 = vmax.f32 %v1583_v8, 0.0 }
 0x261   : > { %v6491_v10 = vpop.f32.mrf.mxu1 }
 0x262   : > { %v1586_v11 = vadd.f32 %v6490_v9, %v8180_v40 }
 0x263   : > { %v6492_v12 = vpop.f32.mrf.mxu1 }
 0x264   : > { %v1640_v14 = vmax.f32 %v1586_v11, 0.0  ;;  %v6493_v15 = vadd.f32 %v6492_v12, %v6491_v10 }
 0x265   : > { %v6494_v16 = vpop.f32.mrf.mxu1 }
 0x266   : > { %v1662_v17 = vpack.c.bf16 %v1640_v14, %v1639_v13  ;;  %v1591_v20 = vadd.f32 %v6493_v15, %v8180_v40 }
 0x267   : > { %v6495_v19 = vpop.f32.mrf.mxu1 }
 0x268   : > { %v6496_v21 = vadd.f32 %v6495_v19, %v6494_v16  ;;  %6936 = vmatmul.mubr.msk.bf16.vlgmr.msra.gmra.mxu0 %vm1106_vm0, %v1662_v17  ;;  %v1641_v26 = vmax.f32 %v1591_v20, 0.0 }
 0x269   : > { %v6497_v22 = vpop.f32.mrf.mxu1  ;;  %6952 = vmatpush3.bf16.msra.mxu0 %v8352_v3 }
 0x26a   : > { %v1594_v23 = vadd.f32 %v6496_v21, %v8180_v40  ;;  %6953 = vmatprep.subr.bf16.mxu0 %v7525_v18 }
 0x26b   : > { %v6498_v25 = vpop.f32.mrf.mxu1 }
 0x26c   : > { %v1642_v27 = vmax.f32 %v1594_v23, 0.0  ;;  %v6499_v28 = vadd.f32 %v6498_v25, %v6497_v22  ;;  %v8425_v23 = vld [vmem:[#allocation3] ss:$0 sm:$0xff] }
 0x26d   : > { %v6500_v29 = vpop.f32.mrf.mxu1  ;;  %6954 = vmatpush3.bf16.msra.mxu0 %v7525_v18 }
 0x26e   : > { %v1663_v30 = vpack.c.bf16 %v1642_v27, %v1641_v26  ;;  %6955 = vmatprep.subr.bf16.mxu0 %v7526_v24  ;;  %v1599_v32 = vadd.f32 %v6499_v28, %v8180_v40 }
 0x26f   : > { %v6501_v3 = vpop.f32.mrf.mxu1 }
 0x270   : > { %v6502_v33 = vadd.f32 %v6501_v3, %v6500_v29  ;;  %6939 = vmatprep.mubr.msk.bf16.mxu0 %vm1106_vm0, %v1663_v30  ;;  %v1643_v37 = vmax.f32 %v1599_v32, 0.0 }
 0x271   : > { %v6503_v34 = vpop.f32.mrf.mxu1  ;;  %6956 = vmatpush3.bf16.msra.mxu0 %v7526_v24 }
 0x272   : > { %v1602_v35 = vadd.f32 %v6502_v33, %v8180_v40  ;;  %6957 = vmatprep.subr.bf16.mxu0 %v7527_v31 }
 0x273   : > { %v6504_v36 = vpop.f32.mrf.mxu1 }
 0x274   : > { %v1644_v38 = vmax.f32 %v1602_v35, 0.0  ;;  %v6505_v39 = vadd.f32 %v6504_v36, %v6503_v34 }
 0x275   : > { %v6506_v41 = vpop.f32.mrf.mxu1  ;;  %6958 = vmatpush3.bf16.msra.mxu0 %v7527_v31 }
 0x276   : > { %v1664_v42 = vpack.c.bf16 %v1644_v38, %v1643_v37  ;;  %v1607_v44 = vadd.f32 %v6505_v39, %v8180_v40 }
 0x277   : > { %v6507_v43 = vpop.f32.mrf.mxu1 }
 0x278   : > { %v6508_v45 = vadd.f32 %v6507_v43, %v6506_v41  ;;  %6940 = vmatmul.mubr.msk.bf16.gmra.mxu0 %vm1106_vm0, %v1664_v42  ;;  %v1645_v49 = vmax.f32 %v1607_v44, 0.0 }
 0x279   : > { %v6509_v46 = vpop.f32.mrf.mxu1 }
 0x27a   : > { %v1610_v47 = vadd.f32 %v6508_v45, %v8180_v40 }
 0x27b   : > { %v6510_v48 = vpop.f32.mrf.mxu1 }
 0x27c   : > { %v1646_v50 = vmax.f32 %v1610_v47, 0.0  ;;  %v6511_v51 = vadd.f32 %v6510_v48, %v6509_v46 }
 0x27d   : > { %v6512_v52 = vpop.f32.mrf.mxu1 }
 0x27e   : > { %v1665_v53 = vpack.c.bf16 %v1646_v50, %v1645_v49  ;;  %v1615_v55 = vadd.f32 %v6511_v51, %v8180_v40 }
 0x27f   : > { %v6513_v54 = vpop.f32.mrf.mxu1 }
 0x280   : > { %v6514_v56 = vadd.f32 %v6513_v54, %v6512_v52  ;;  %6943 = vmatprep.mubr.msk.bf16.mxu0 %vm1106_vm0, %v1665_v53  ;;  %v1647_v60 = vmax.f32 %v1615_v55, 0.0 }
 0x281   : > { %v6515_v57 = vpop.f32.mrf.mxu1 }
 0x282   : > { %v1618_v58 = vadd.f32 %v6514_v56, %v8180_v40 }
 0x283   : > { %v6516_v59 = vpop.f32.mrf.mxu1 }
 0x284   : > { %v1648_v61 = vmax.f32 %v1618_v58, 0.0  ;;  %v6517_v62 = vadd.f32 %v6516_v59, %v6515_v57 }
 0x285   : > { %v6518_v63 = vpop.f32.mrf.mxu1 }
 0x286   : > { %v1666_v0 = vpack.c.bf16 %v1648_v61, %v1647_v60  ;;  %v1623_v2 = vadd.f32 %v6517_v62, %v8180_v40 }
 0x287   : > { %v6519_v1 = vpop.f32.mrf.mxu1 }
 0x288   : > { %v6520_v5 = vadd.f32 %v6519_v1, %v6518_v63  ;;  %6944 = vmatmul.mubr.msk.bf16.gmra.mxu0 %vm1106_vm0, %v1666_v0  ;;  %v1649_v9 = vmax.f32 %v1623_v2, 0.0 }
 0x289   : > { %v6521_v6 = vpop.f32.mrf.mxu1 }
 0x28a   : > { %v1626_v7 = vadd.f32 %v6520_v5, %v8180_v40 }
 0x28b   : > { %v6522_v8 = vpop.f32.mrf.mxu1 }
 0x28c   : > { %v1650_v10 = vmax.f32 %v1626_v7, 0.0  ;;  %v6523_v11 = vadd.f32 %v6522_v8, %v6521_v6 }
 0x28d   : > { %v6524_v12 = vpop.f32.mrf.mxu1 }
 0x28e   : > { %v1667_v13 = vpack.c.bf16 %v1650_v10, %v1649_v9  ;;  %v1631_v15 = vadd.f32 %v6523_v11, %v8180_v40 }
 0x28f   : > { %v6525_v14 = vpop.f32.mrf.mxu1 }
 0x290   : > { %v6526_v16 = vadd.f32 %v6525_v14, %v6524_v12  ;;  %6947 = vmatprep.mubr.msk.bf16.mxu0 %vm1106_vm0, %v1667_v13  ;;  %v1651_v20 = vmax.f32 %v1631_v15, 0.0 }
 0x291   : > { %v6555_v17 = vpop.f32.mrf.mxu1 }
 0x292   : > { %v1634_v18 = vadd.f32 %v6526_v16, %v8180_v40 }
 0x293   : > { %v6556_v19 = vpop.f32.mrf.mxu1 }
 0x294   : > { %v1652_v21 = vmax.f32 %v1634_v18, 0.0  ;;  %v6557_v22 = vadd.f32 %v6556_v19, %v6555_v17 }
 0x295   : > { %v6558_v24 = vpop.f32.mrf.mxu1 }
 0x296   : > { %v1668_v25 = vpack.c.bf16 %v1652_v21, %v1651_v20  ;;  %v2200_v27 = vadd.f32 %v6557_v22, %v8425_v23 }
 0x297   : > { %v6559_v26 = vpop.f32.mrf.mxu1 }
 0x298   : > { %v6560_v28 = vadd.f32 %v6559_v26, %v6558_v24  ;;  %6948 = vmatmul.mubr.msk.bf16.gmra.mxu0 %vm1106_vm0, %v1668_v25  ;;  %v2262_v3 = vmax.f32 %v2200_v27, 0.0 }
 0x299   : > { %v6561_v29 = vpop.f32.mrf.mxu1 }
 0x29a   : > { %v2203_v30 = vadd.f32 %v6560_v28, %v8425_v23 }
 0x29b   : > { %v6562_v31 = vpop.f32.mrf.mxu1 }
 0x29c   : > { %v2263_v40 = vmax.f32 %v2203_v30, 0.0  ;;  %v6563_v32 = vadd.f32 %v6562_v31, %v6561_v29 }
 0x29d   : > { %v6564_v33 = vpop.f32.mrf.mxu1 }
 0x29e   : > { %v2286_v34 = vpack.c.bf16 %v2263_v40, %v2262_v3  ;;  %v2208_v36 = vadd.f32 %v6563_v32, %v8425_v23 }
 0x29f   : > { %v6565_v35 = vpop.f32.mrf.mxu1 }
 0x2a0   : > { %v6566_v37 = vadd.f32 %v6565_v35, %v6564_v33  ;;  %6959 = vmatprep.mubr.msk.bf16.mxu0 %vm1106_vm0, %v2286_v34  ;;  %v2264_v42 = vmax.f32 %v2208_v36, 0.0 }
 0x2a1   : > { %v6567_v38 = vpop.f32.mrf.mxu1 }
 0x2a2   : > { %v2211_v39 = vadd.f32 %v6566_v37, %v8425_v23 }
 0x2a3   : > { %v6568_v41 = vpop.f32.mrf.mxu1 }
 0x2a4   : > { %v2265_v43 = vmax.f32 %v2211_v39, 0.0  ;;  %v6569_v44 = vadd.f32 %v6568_v41, %v6567_v38 }
 0x2a5   : > { %v6570_v45 = vpop.f32.mrf.mxu1 }
 0x2a6   : > { %v2287_v46 = vpack.c.bf16 %v2265_v43, %v2264_v42  ;;  %v2216_v48 = vadd.f32 %v6569_v44, %v8425_v23 }
 0x2a7   : > { %v6571_v47 = vpop.f32.mrf.mxu1 }
 0x2a8   : > { %v6572_v49 = vadd.f32 %v6571_v47, %v6570_v45  ;;  %6960 = vmatmul.mubr.msk.bf16.vlgmr.msra.gmra.mxu0 %vm1106_vm0, %v2287_v46  ;;  %v2266_v53 = vmax.f32 %v2216_v48, 0.0  ;;  %v8455_v47 = vld [vmem:[%s9391_s7 + $0x38] sm:$0xff]   ;;  %v8462_v48 = vld [vmem:[%s9391_s7 + $0x30] sm:$0xff]  }
 0x2a9   : > { %v6573_v50 = vpop.f32.mrf.mxu1  ;;  %6975 = vmatprep.subr.bf16.mxu0 %v8455_v47 }
 0x2aa   : > { %v2219_v51 = vadd.f32 %v6572_v49, %v8425_v23  ;;  %6976 = vmatpush3.bf16.msra.mxu0 %v8455_v47  ;;  %v8476_v49 = vld [vmem:[%s9391_s7 + $0x20] sm:$0xff]  }
 0x2ab   : > { %v6574_v52 = vpop.f32.mrf.mxu1  ;;  %6977 = vmatprep.subr.bf16.mxu0 %v8462_v48 }
 0x2ac   : > { %v2267_v54 = vmax.f32 %v2219_v51, 0.0  ;;  %v6575_v55 = vadd.f32 %v6574_v52, %v6573_v50  ;;  %v8484_v50 = vld [vmem:[%s9391_s7 + $0x18] sm:$0xff]   ;;  %v8491_v51 = vld [vmem:[%s9391_s7 + $0x10] sm:$0xff]   ;;  %v8498_v52 = vld [vmem:[%s9391_s7 + $0x8] sm:$0xff]  }
 0x2ad   : > { %v6576_v56 = vpop.f32.mrf.mxu1  ;;  %6999 = vmatprep.subr.bf16.mxu1 %v8484_v50 }
 0x2ae   : > { %v2288_v57 = vpack.c.bf16 %v2267_v54, %v2266_v53  ;;  %v2224_v59 = vadd.f32 %v6575_v55, %v8425_v23  ;;  %6978 = vmatpush3.bf16.msra.mxu0 %v8462_v48  ;;  %7000 = vmatpush3.bf16.msra.mxu1 %v8484_v50  ;;  %v8505_v53 = vld [vmem:[%s9391_s7] sm:$0xff]  }
 0x2af   : > { %v6577_v58 = vpop.f32.mrf.mxu1  ;;  %7001 = vmatprep.subr.bf16.mxu1 %v8491_v51 }
 0x2b0   : > { %v6578_v60 = vadd.f32 %v6577_v58, %v6576_v56  ;;  %6963 = vmatprep.mubr.msk.bf16.mxu0 %vm1106_vm0, %v2288_v57  ;;  %v2268_v0 = vmax.f32 %v2224_v59, 0.0 }
 0x2b1   : > { %v6579_v61 = vpop.f32.mrf.mxu1 }
 0x2b2   : > { %v2227_v62 = vadd.f32 %v6578_v60, %v8425_v23  ;;  %7002 = vmatpush3.bf16.msra.mxu1 %v8491_v51 }
 0x2b3   : > { %v6580_v63 = vpop.f32.mrf.mxu1  ;;  %7003 = vmatprep.subr.bf16.mxu1 %v8498_v52 }
 0x2b4   : > { %v2269_v1 = vmax.f32 %v2227_v62, 0.0  ;;  %v6581_v2 = vadd.f32 %v6580_v63, %v6579_v61 }
 0x2b5   : > { %v6582_v5 = vpop.f32.mrf.mxu1 }
 0x2b6   : > { %v2289_v6 = vpack.c.bf16 %v2269_v1, %v2268_v0  ;;  %v2232_v8 = vadd.f32 %v6581_v2, %v8425_v23  ;;  %7004 = vmatpush3.bf16.msra.mxu1 %v8498_v52 }
 0x2b7   : > { %v6583_v7 = vpop.f32.mrf.mxu1  ;;  %7005 = vmatprep.subr.bf16.mxu1 %v8505_v53 }
 0x2b8   : > { %v6584_v9 = vadd.f32 %v6583_v7, %v6582_v5  ;;  %6964 = vmatmul.mubr.msk.bf16.gmra.mxu0 %vm1106_vm0, %v2289_v6  ;;  %v2270_v13 = vmax.f32 %v2232_v8, 0.0 }
 0x2b9   : > { %v6585_v10 = vpop.f32.mrf.mxu1 }
 0x2ba   : > { %v2235_v11 = vadd.f32 %v6584_v9, %v8425_v23  ;;  %7006 = vmatpush3.bf16.msra.mxu1 %v8505_v53 }
 0x2bb   : > { %v6586_v12 = vpop.f32.mrf.mxu1 }
 0x2bc   : > { %v2271_v14 = vmax.f32 %v2235_v11, 0.0  ;;  %v6587_v15 = vadd.f32 %v6586_v12, %v6585_v10 }
 0x2bd   : > { %v6588_v16 = vpop.f32.mrf.mxu1 }
 0x2be   : > { %v2290_v17 = vpack.c.bf16 %v2271_v14, %v2270_v13  ;;  %v2240_v19 = vadd.f32 %v6587_v15, %v8425_v23 }
 0x2bf   : > { %v6589_v18 = vpop.f32.mrf.mxu1 }
 0x2c0   : > { %v6590_v20 = vadd.f32 %v6589_v18, %v6588_v16  ;;  %6967 = vmatprep.mubr.msk.bf16.mxu0 %vm1106_vm0, %v2290_v17  ;;  %v2272_v25 = vmax.f32 %v2240_v19, 0.0 }
 0x2c1   : > { %v6591_v21 = vpop.f32.mrf.mxu1 }
 0x2c2   : > { %v2243_v22 = vadd.f32 %v6590_v20, %v8425_v23 }
 0x2c3   : > { %v6592_v24 = vpop.f32.mrf.mxu1 }
 0x2c4   : > { %v2273_v26 = vmax.f32 %v2243_v22, 0.0  ;;  %v6593_v27 = vadd.f32 %v6592_v24, %v6591_v21 }
 0x2c5   : > { %v6594_v28 = vpop.f32.mrf.mxu1 }
 0x2c6   : > { %v2291_v29 = vpack.c.bf16 %v2273_v26, %v2272_v25  ;;  %v2248_v31 = vadd.f32 %v6593_v27, %v8425_v23 }
 0x2c7   : > { %v6595_v30 = vpop.f32.mrf.mxu1 }
 0x2c8   : > { %v6596_v3 = vadd.f32 %v6595_v30, %v6594_v28  ;;  %6968 = vmatmul.mubr.msk.bf16.gmra.mxu0 %vm1106_vm0, %v2291_v29  ;;  %v2274_v34 = vmax.f32 %v2248_v31, 0.0 }
 0x2c9   : > { %v6597_v40 = vpop.f32.mrf.mxu1 }
 0x2ca   : > { %v2251_v32 = vadd.f32 %v6596_v3, %v8425_v23 }
 0x2cb   : > { %v6598_v33 = vpop.f32.mrf.mxu1 }
 0x2cc   : > { %v2275_v35 = vmax.f32 %v2251_v32, 0.0  ;;  %v6599_v36 = vadd.f32 %v6598_v33, %v6597_v40 }
 0x2cd   : > { %v6600_v37 = vpop.f32.mrf.mxu1 }
 0x2ce   : > { %v2292_v38 = vpack.c.bf16 %v2275_v35, %v2274_v34  ;;  %v2256_v41 = vadd.f32 %v6599_v36, %v8425_v23 }
 0x2cf   : > { %v6601_v39 = vpop.f32.mrf.mxu1 }
 0x2d0   : > { %v6602_v42 = vadd.f32 %v6601_v39, %v6600_v37  ;;  %6971 = vmatprep.mubr.msk.bf16.mxu0 %vm1106_vm0, %v2292_v38  ;;  %v2276_v44 = vmax.f32 %v2256_v41, 0.0 }
 0x2d2   : > { %v2259_v43 = vadd.f32 %v6602_v42, %v8425_v23  ;;  %v8469_v23 = vld [vmem:[%s9391_s7 + $0x28] sm:$0xff]  }
 0x2d3   : > { %6979 = vmatprep.subr.bf16.mxu0 %v8469_v23 }
 0x2d4   : > { %v2277_v45 = vmax.f32 %v2259_v43, 0.0  ;;  %6980 = vmatpush3.bf16.msra.mxu0 %v8469_v23 }
 0x2d5   : > { %6981 = vmatprep.subr.bf16.mxu0 %v8476_v49 }
 0x2d6   : > { %v2293_v46 = vpack.c.bf16 %v2277_v45, %v2276_v44 }
 0x2d8   : > { %6972 = vmatmul.mubr.msk.bf16.gmra.mxu0 %vm1106_vm0, %v2293_v46 }
 0x2d9   : > { %6982 = vmatpush3.bf16.msra.mxu0 %v8476_v49 }
 0x2da   : > { %7023 = vmatprep.subr.bf16.mxu0 %v8455_v47 }
 0x328   : > { %v6937_v54 = vpop.f32.mrf.mxu0 }
 0x329   : > { %v1767_v55 = vadd.f32 %v6937_v54, %v8357_v4 }
 0x32a   : > { %v1758_v56 = vpop.f32.mrf.mxu0 }
 0x32b   : > { %v6308_v57 = vpack.c.bf16 %v1767_v55, %v1767_v55  ;;  %v1759_v58 = vadd.f32 %v8357_v4, %v1758_v56 }
 0x32c   : > { %v6938_v59 = vpop.f32.mrf.mxu0 }
 0x32d   : > { %v6306_v60 = vpack.c.bf16 %v1759_v58, %v1759_v58  ;;  %v1770_v61 = vadd.f32 %v6938_v59, %v8357_v4  ;;  %1873 = vrot.lane.b32.xlu1 %v6308_v57, %s7864_s22 }
 0x32e   : > { %v1761_v62 = vpop.f32.mrf.mxu0 }
 0x32f   : > { %v6309_v63 = vpack.c.bf16 %v1770_v61, %v1770_v61  ;;  %v1762_v0 = vadd.f32 %v8357_v4, %v1761_v62  ;;  %1869 = vrot.lane.b32.xlu0 %v6306_v60, %s7864_s22 }
 0x331   : > { %v6307_v1 = vpack.c.bf16 %v1762_v0, %v1762_v0  ;;  %1875 = vrot.lane.b32.xlu1 %v6309_v63, %s7864_s22 }
 0x333   : > { %1871 = vrot.lane.b32.xlu0 %v6307_v1, %s7864_s22 }
 0x338   : > { %v6941_v2 = vpop.f32.mrf.mxu0 }
 0x339   : > { %v1783_v8 = vadd.f32 %v6941_v2, %v8357_v4 }
 0x33a   : > { %v1774_v5 = vpop.f32.mrf.mxu0 }
 0x33b   : > { %v1775_v6 = vadd.f32 %v8357_v4, %v1774_v5  ;;  %v6312_v12 = vpack.c.bf16 %v1783_v8, %v1783_v8 }
 0x33c   : > { %v6942_v7 = vpop.f32.mrf.mxu0 }
 0x33d   : > { %v6310_v9 = vpack.c.bf16 %v1775_v6, %v1775_v6  ;;  %v1786_v13 = vadd.f32 %v6942_v7, %v8357_v4 }
 0x33e   : > { %v1777_v10 = vpop.f32.mrf.mxu0 }
 0x33f   : > { %v1778_v11 = vadd.f32 %v8357_v4, %v1777_v10  ;;  %1877 = vrot.lane.b32.xlu0 %v6310_v9, %s7864_s22  ;;  %v6313_v15 = vpack.c.bf16 %v1786_v13, %v1786_v13 }
 0x341   : > { %v6311_v14 = vpack.c.bf16 %v1778_v11, %v1778_v11 }
 0x343   : > { %1879 = vrot.lane.b32.xlu1 %v6311_v14, %s7864_s22  ;;  %1881 = vrot.lane.b32.xlu0 %v6312_v12, %s7864_s22 }
 0x347   : > { %1883 = vrot.lane.b32.xlu1 %v6313_v15, %s7864_s22 }
 0x348   : > { %v6945_v16 = vpop.f32.mrf.mxu0 }
 0x349   : > { %v1799_v20 = vadd.f32 %v6945_v16, %v8357_v4 }
 0x34a   : > { %v1790_v17 = vpop.f32.mrf.mxu0 }
 0x34b   : > { %v1791_v18 = vadd.f32 %v8357_v4, %v1790_v17  ;;  %v6316_v25 = vpack.c.bf16 %v1799_v20, %v1799_v20 }
 0x34c   : > { %v6946_v19 = vpop.f32.mrf.mxu0 }
 0x34d   : > { %v6314_v21 = vpack.c.bf16 %v1791_v18, %v1791_v18  ;;  %v1802_v26 = vadd.f32 %v6946_v19, %v8357_v4 }
 0x34e   : > { %v1793_v22 = vpop.f32.mrf.mxu0 }
 0x34f   : > { %v1794_v24 = vadd.f32 %v8357_v4, %v1793_v22  ;;  %1885 = vrot.lane.b32.xlu0 %v6314_v21, %s7864_s22  ;;  %v6317_v28 = vpack.c.bf16 %v1802_v26, %v1802_v26 }
 0x351   : > { %v6315_v27 = vpack.c.bf16 %v1794_v24, %v1794_v24 }
 0x353   : > { %1887 = vrot.lane.b32.xlu1 %v6315_v27, %s7864_s22  ;;  %1889 = vrot.lane.b32.xlu0 %v6316_v25, %s7864_s22 }
 0x357   : > { %1891 = vrot.lane.b32.xlu1 %v6317_v28, %s7864_s22 }
 0x358   : > { %v6949_v29 = vpop.f32.mrf.mxu0 }
 0x359   : > { %v1815_v40 = vadd.f32 %v6949_v29, %v8357_v4 }
 0x35a   : > { %v1806_v30 = vpop.f32.mrf.mxu0 }
 0x35b   : > { %v1807_v31 = vadd.f32 %v8357_v4, %v1806_v30  ;;  %v6320_v35 = vpack.c.bf16 %v1815_v40, %v1815_v40 }
 0x35c   : > { %v6950_v3 = vpop.f32.mrf.mxu0 }
 0x35d   : > { %v6318_v32 = vpack.c.bf16 %v1807_v31, %v1807_v31  ;;  %v1818_v36 = vadd.f32 %v6950_v3, %v8357_v4 }
 0x35e   : > { %v1809_v33 = vpop.f32.mrf.mxu0 }
 0x35f   : > { %v1810_v34 = vadd.f32 %v8357_v4, %v1809_v33  ;;  %1893 = vrot.lane.b32.xlu0 %v6318_v32, %s7864_s22  ;;  %v6321_v38 = vpack.c.bf16 %v1818_v36, %v1818_v36 }
 0x361   : > { %v6319_v37 = vpack.c.bf16 %v1810_v34, %v1810_v34 }
 0x363   : > { %1895 = vrot.lane.b32.xlu1 %v6319_v37, %s7864_s22  ;;  %1897 = vrot.lane.b32.xlu0 %v6320_v35, %s7864_s22 }
 0x367   : > { %1899 = vrot.lane.b32.xlu1 %v6321_v38, %s7864_s22 }
 0x368   : > { %v6961_v39 = vpop.f32.mrf.mxu0 }
 0x369   : > { %v2392_v41 = vadd.f32 %v6961_v39, %v8357_v4 }
 0x36a   : > { %v2383_v42 = vpop.f32.mrf.mxu0 }
 0x36b   : > { %v6324_v43 = vpack.c.bf16 %v2392_v41, %v2392_v41  ;;  %v2384_v44 = vadd.f32 %v8357_v4, %v2383_v42 }
 0x36c   : > { %v6962_v45 = vpop.f32.mrf.mxu0 }
 0x36d   : > { %2512 = vst.msk [vmem:[#allocation2 + $0x1c] sm:$0xf] %vm1292_vm1, %v6324_v43  ;;  %v6322_v46 = vpack.c.bf16 %v2384_v44, %v2384_v44  ;;  %v2395_v54 = vadd.f32 %v6962_v45, %v8357_v4 }
 0x36e   : > { %v2386_v55 = vpop.f32.mrf.mxu0 }
 0x36f   : > { %2510 = vst.msk [vmem:[#allocation2 + $0x4] sm:$0xf] %vm1292_vm1, %v6322_v46  ;;  %v6325_v56 = vpack.c.bf16 %v2395_v54, %v2395_v54  ;;  %v2387_v57 = vadd.f32 %v8357_v4, %v2386_v55 }
 0x371   : > { %2513 = vst.msk [vmem:[#allocation2 + $0x28] sm:$0xf] %vm1292_vm1, %v6325_v56  ;;  %v6323_v58 = vpack.c.bf16 %v2387_v57, %v2387_v57 }
 0x373   : > { %2511 = vst.msk [vmem:[#allocation2 + $0x10] sm:$0xf] %vm1292_vm1, %v6323_v58 }
 0x378   : > { %v6965_v59 = vpop.f32.mrf.mxu0  ;;  %v7534_v1 = vld [vmem:[#allocation2 + $0x1c] ss:$12 sps:$4 sm:$0xff]  }
 0x379   : > { %v2408_v60 = vadd.f32 %v6965_v59, %v8357_v4  ;;  %v7549_v56 = vld [vmem:[#allocation2 + $0x1c] ss:$12 sps:$4 sm:$0xff]  }
 0x37a   : > { %v2399_v61 = vpop.f32.mrf.mxu0  ;;  %v7533_v62 = vld [vmem:[#allocation2 + $0x4] ss:$12 sps:$4 sm:$0xff]  }
 0x37b   : > { %v6328_v63 = vpack.c.bf16 %v2408_v60, %v2408_v60  ;;  %v2400_v0 = vadd.f32 %v8357_v4, %v2399_v61  ;;  %6983 = vmatprep.mubr.msk.bf16.mxu0 %vm1106_vm0, %v7533_v62 }
 0x37c   : > { %v6966_v2 = vpop.f32.mrf.mxu0  ;;  %6984 = vmatmul.mubr.msk.bf16.vlgmr.msra.gmra.mxu0 %vm1106_vm0, %v7534_v1 }
 0x37d   : > { %2516 = vst.msk [vmem:[#allocation2 + $0x4c] sm:$0xf] %vm1292_vm1, %v6328_v63  ;;  %v6326_v5 = vpack.c.bf16 %v2400_v0, %v2400_v0  ;;  %v2411_v6 = vadd.f32 %v6966_v2, %v8357_v4  ;;  %7024 = vmatpush3.bf16.msra.mxu0 %v8455_v47 }
 0x37e   : > { %v2402_v7 = vpop.f32.mrf.mxu0  ;;  %7025 = vmatprep.subr.bf16.mxu0 %v8462_v48 }
 0x37f   : > { %2514 = vst.msk [vmem:[#allocation2 + $0x34] sm:$0xf] %vm1292_vm1, %v6326_v5  ;;  %v6329_v8 = vpack.c.bf16 %v2411_v6, %v2411_v6  ;;  %v2403_v9 = vadd.f32 %v8357_v4, %v2402_v7 }
 0x381   : > { %2517 = vst.msk [vmem:[#allocation2 + $0x58] sm:$0xf] %vm1292_vm1, %v6329_v8  ;;  %v6327_v10 = vpack.c.bf16 %v2403_v9, %v2403_v9  ;;  %7026 = vmatpush3.bf16.msra.mxu0 %v8462_v48 }
 0x382   : > { %7027 = vmatprep.subr.bf16.mxu0 %v8469_v23 }
 0x383   : > { %2515 = vst.msk [vmem:[#allocation2 + $0x40] sm:$0xf] %vm1292_vm1, %v6327_v10 }
 0x385   : > { %7028 = vmatpush3.bf16.msra.mxu0 %v8469_v23 }
 0x386   : > { %7029 = vmatprep.subr.bf16.mxu0 %v8476_v49 }
 0x388   : > { %v6969_v11 = vpop.f32.mrf.mxu0  ;;  %v7537_v17 = vld [vmem:[#allocation2 + $0x4c] ss:$12 sps:$4 sm:$0xff]  }
 0x389   : > { %v2424_v12 = vadd.f32 %v6969_v11, %v8357_v4  ;;  %7030 = vmatpush3.bf16.msra.mxu0 %v8476_v49  ;;  %v7556_v0 = vld [vmem:[#allocation2 + $0x4c] ss:$12 sps:$4 sm:$0xff]  }
 0x38a   : > { %v2415_v13 = vpop.f32.mrf.mxu0  ;;  %v7536_v14 = vld [vmem:[#allocation2 + $0x34] ss:$12 sps:$4 sm:$0xff]   ;;  %7031 = vmatprep.subr.bf16.mxu0 %v8484_v50 }
 0x38b   : > { %v6332_v15 = vpack.c.bf16 %v2424_v12, %v2424_v12  ;;  %v2416_v16 = vadd.f32 %v8357_v4, %v2415_v13  ;;  %6987 = vmatprep.mubr.msk.bf16.mxu0 %vm1106_vm0, %v7536_v14  ;;  %v7552_v61 = vld [vmem:[#allocation2 + $0x34] ss:$12 sps:$4 sm:$0xff]  }
 0x38c   : > { %v6970_v18 = vpop.f32.mrf.mxu0  ;;  %6988 = vmatmul.mubr.msk.bf16.gmra.mxu0 %vm1106_vm0, %v7537_v17  ;;  %v7576_v17 = vld [vmem:[#allocation6 + $0x18] sm:$0xff]  }
 0x38d   : > { %2520 = vst.msk [vmem:[#allocation2 + $0x7c] sm:$0xf] %vm1292_vm1, %v6332_v15  ;;  %v6330_v19 = vpack.c.bf16 %v2416_v16, %v2416_v16  ;;  %v2427_v20 = vadd.f32 %v6970_v18, %v8357_v4  ;;  %7032 = vmatpush3.bf16.msra.mxu0 %v8484_v50  ;;  %v7577_v18 = vld [vmem:[#allocation6 + $0x10] sm:$0xff]   ;;  %7055 = vmatprep.subr.bf16.mxu1 %v7576_v17 }
 0x38e   : > { %v2418_v21 = vpop.f32.mrf.mxu0  ;;  %7033 = vmatprep.subr.bf16.mxu0 %v8491_v51 }
 0x38f   : > { %2518 = vst.msk [vmem:[#allocation2 + $0x64] sm:$0xf] %vm1292_vm1, %v6330_v19  ;;  %v6333_v22 = vpack.c.bf16 %v2427_v20, %v2427_v20  ;;  %v2419_v24 = vadd.f32 %v8357_v4, %v2418_v21  ;;  %v7578_v19 = vld [vmem:[#allocation6 + $0x18] sm:$0xff]   ;;  %v7579_v20 = vld [vmem:[#allocation6 + $0x8] sm:$0xff]   ;;  %v7582_v21 = vld [vmem:[#allocation6] sm:$0xff]  }
 0x391   : > { %2521 = vst.msk [vmem:[#allocation2 + $0x88] sm:$0xf] %vm1292_vm1, %v6333_v22  ;;  %v6331_v25 = vpack.c.bf16 %v2419_v24, %v2419_v24  ;;  %7034 = vmatpush3.bf16.msra.mxu0 %v8491_v51 }
 0x392   : > { %7035 = vmatprep.subr.bf16.mxu0 %v8498_v52 }
 0x393   : > { %2519 = vst.msk [vmem:[#allocation2 + $0x70] sm:$0xf] %vm1292_vm1, %v6331_v25 }
 0x395   : > { %7036 = vmatpush3.bf16.msra.mxu0 %v8498_v52 }
 0x396   : > { %7037 = vmatprep.subr.bf16.mxu0 %v8505_v53 }
 0x398   : > { %v6973_v26 = vpop.f32.mrf.mxu0  ;;  %v7540_v3 = vld [vmem:[#allocation2 + $0x7c] ss:$12 sps:$4 sm:$0xff]  }
 0x399   : > { %v2440_v27 = vadd.f32 %v6973_v26, %v8357_v4  ;;  %7038 = vmatpush3.bf16.msra.mxu0 %v8505_v53  ;;  %v7564_v8 = vld [vmem:[#allocation2 + $0x7c] ss:$12 sps:$4 sm:$0xff]  }
 0x39a   : > { %v2431_v28 = vpop.f32.mrf.mxu0  ;;  %v7539_v29 = vld [vmem:[#allocation2 + $0x64] ss:$12 sps:$4 sm:$0xff]   ;;  %7079 = vmatprep.subr.bf16.mxu0 %v8455_v47 }
 0x39b   : > { %v6336_v30 = vpack.c.bf16 %v2440_v27, %v2440_v27  ;;  %v2432_v31 = vadd.f32 %v8357_v4, %v2431_v28  ;;  %6991 = vmatprep.mubr.msk.bf16.mxu0 %vm1106_vm0, %v7539_v29  ;;  %v7560_v5 = vld [vmem:[#allocation2 + $0x64] ss:$12 sps:$4 sm:$0xff]  }
 0x39c   : > { %v6974_v40 = vpop.f32.mrf.mxu0  ;;  %6992 = vmatmul.mubr.msk.bf16.gmra.mxu0 %vm1106_vm0, %v7540_v3  ;;  %v7580_v28 = vld [vmem:[#allocation6 + $0x10] sm:$0xff]  }
 0x39d   : > { %2524 = vst.msk [vmem:[#allocation2 + $0xac] sm:$0xf] %vm1292_vm1, %v6336_v30  ;;  %v6334_v32 = vpack.c.bf16 %v2432_v31, %v2432_v31  ;;  %v2443_v33 = vadd.f32 %v6974_v40, %v8357_v4  ;;  %v7581_v30 = vld [vmem:[#allocation6 + $0x8] sm:$0xff]   ;;  %v7583_v31 = vld [vmem:[#allocation6] sm:$0xff]  }
 0x39e   : > { %v2434_v34 = vpop.f32.mrf.mxu0 }
 0x39f   : > { %2522 = vst.msk [vmem:[#allocation2 + $0x94] sm:$0xf] %vm1292_vm1, %v6334_v32  ;;  %v6337_v35 = vpack.c.bf16 %v2443_v33, %v2443_v33  ;;  %v2435_v36 = vadd.f32 %v8357_v4, %v2434_v34  ;;  %v1874_v37 = vpop.permute.xlu1 %1873  ;;  %v7544_v4 = vld [vmem:[#allocation2 + $0x4] ss:$12 sps:$4 sm:$0xff]   ;;  %v8655_v33 = vld [vmem:[#allocation6 + $0x18] sm:$0xff]  }
 0x3a0   : > { %1920 = vst.msk [vmem:[#allocation2 + $0x18] sm:$0xf] %vm1917_vm2, %v1874_v37  ;;  %3441 = vrot.lane.b32.xlu1 %v7544_v4, %s7864_s22 }
 0x3a1   : > { %2525 = vst.msk [vmem:[#allocation2 + $0xb8] sm:$0xf] %vm1292_vm1, %v6337_v35  ;;  %v6335_v38 = vpack.c.bf16 %v2435_v36, %v2435_v36  ;;  %v1870_v39 = vpop.permute.xlu0 %1869 }
 0x3a2   : > { %1918 = vst.msk [vmem:[#allocation2] sm:$0xf] %vm1917_vm2, %v1870_v39 }
 0x3a3   : > { %2523 = vst.msk [vmem:[#allocation2 + $0xa0] sm:$0xf] %vm1292_vm1, %v6335_v38  ;;  %v1876_v41 = vpop.permute.xlu1 %1875 }
 0x3a4   : > { %1921 = vst.msk [vmem:[#allocation2 + $0x24] sm:$0xf] %vm1917_vm2, %v1876_v41  ;;  %3445 = vrot.lane.b32.xlu1 %v7549_v56, %s7864_s22 }
 0x3a5   : > { %v1872_v42 = vpop.permute.xlu0 %1871 }
 0x3a6   : > { %1919 = vst.msk [vmem:[#allocation2 + $0xc] sm:$0xf] %vm1917_vm2, %v1872_v42 }
 0x3a8   : > { %v7543_v44 = vld [vmem:[#allocation2 + $0xac] ss:$12 sps:$4 sm:$0xff]   ;;  %3449 = vrot.lane.b32.xlu1 %v7552_v61, %s7864_s22 }
 0x3aa   : > { %v7542_v43 = vld [vmem:[#allocation2 + $0x94] ss:$12 sps:$4 sm:$0xff]  }
 0x3ab   : > { %6995 = vmatprep.mubr.msk.bf16.mxu0 %vm1106_vm0, %v7542_v43  ;;  %v7548_v54 = vld [vmem:[#allocation2 + $0x18] ss:$12 sps:$4 sm:$0xff]   ;;  %v7568_v12 = vld [vmem:[#allocation2 + $0x94] ss:$12 sps:$4 sm:$0xff]  }
 0x3ac   : > { %6996 = vmatmul.mubr.msk.bf16.gmra.mxu0 %vm1106_vm0, %v7543_v44  ;;  %v7551_v57 = vld [vmem:[#allocation2 + $0x18] ss:$12 sps:$4 sm:$0xff]   ;;  %3453 = vrot.lane.b32.xlu1 %v7556_v0, %s7864_s22 }
 0x3ad   : > { %v7546_v45 = vld [vmem:[#allocation2] ss:$12 sps:$4 sm:$0xff]  }
 0x3ae   : > { %v7547_v46 = vld [vmem:[#allocation2] ss:$12 sps:$4 sm:$0xff]   ;;  %3439 = vrot.lane.b32.xlu0 %v7546_v45, %s7864_s22 }
 0x3af   : > { %7007 = vmatprep.mubr.msk.bf16.mxu1 %vm1106_vm0, %v7547_v46  ;;  %7039 = vmatprep.mubr.bf16.mxu0 %v7547_v46 }
 0x3b0   : > { %7008 = vmatmul.mubr.msk.bf16.vlgmr.msra.gmra.mxu1 %vm1106_vm0, %v7548_v54  ;;  %3457 = vrot.lane.b32.xlu1 %v7560_v5, %s7864_s22 }
 0x3b1   : > { %v1878_v55 = vpop.permute.xlu0 %1877  ;;  %7056 = vmatpush3.bf16.msra.mxu1 %v7576_v17 }
 0x3b2   : > { %1922 = vst.msk [vmem:[#allocation2 + $0x30] sm:$0xf] %vm1917_vm2, %v1878_v55  ;;  %3443 = vrot.lane.b32.xlu0 %v7551_v57, %s7864_s22  ;;  %7057 = vmatprep.subr.bf16.mxu1 %v7577_v18 }
 0x3b4   : > { %7040 = vmatmul.mubr.bf16.vlgmr.msra.gmra.mxu0 %v7548_v54  ;;  %3461 = vrot.lane.b32.xlu1 %v7564_v8, %s7864_s22 }
 0x3b5   : > { %v1880_v58 = vpop.permute.xlu1 %1879  ;;  %v1882_v59 = vpop.permute.xlu0 %1881  ;;  %7080 = vmatpush3.bf16.msra.mxu0 %v8455_v47  ;;  %7058 = vmatpush3.bf16.msra.mxu1 %v7577_v18 }
 0x3b6   : > { %1923 = vst.msk [vmem:[#allocation2 + $0x3c] sm:$0xf] %vm1917_vm2, %v1880_v58  ;;  %1924 = vst.msk [vmem:[#allocation2 + $0x48] sm:$0xf] %vm1917_vm2, %v1882_v59  ;;  %7081 = vmatprep.subr.bf16.mxu0 %v8462_v48  ;;  %7059 = vmatprep.subr.bf16.mxu1 %v7579_v20 }
 0x3b8   : > { %3465 = vrot.lane.b32.xlu1 %v7568_v12, %s7864_s22 }
 0x3b9   : > { %v1884_v60 = vpop.permute.xlu1 %1883  ;;  %7082 = vmatpush3.bf16.msra.mxu0 %v8462_v48  ;;  %7060 = vmatpush3.bf16.msra.mxu1 %v7579_v20 }
 0x3ba   : > { %1925 = vst.msk [vmem:[#allocation2 + $0x54] sm:$0xf] %vm1917_vm2, %v1884_v60  ;;  %7083 = vmatprep.subr.bf16.mxu0 %v8469_v23  ;;  %7061 = vmatprep.subr.bf16.mxu1 %v7582_v21 }
 0x3bd   : > { %v7554_v62 = vld [vmem:[#allocation2 + $0x30] ss:$12 sps:$4 sm:$0xff]   ;;  %7084 = vmatpush3.bf16.msra.mxu0 %v8469_v23  ;;  %7062 = vmatpush3.bf16.msra.mxu1 %v7582_v21 }
 0x3be   : > { %v7555_v63 = vld [vmem:[#allocation2 + $0x30] ss:$12 sps:$4 sm:$0xff]   ;;  %3447 = vrot.lane.b32.xlu0 %v7554_v62, %s7864_s22  ;;  %7085 = vmatprep.subr.bf16.mxu0 %v8476_v49 }
 0x3bf   : > { %7011 = vmatprep.mubr.msk.bf16.mxu1 %vm1106_vm0, %v7555_v63  ;;  %7043 = vmatprep.mubr.bf16.mxu0 %v7555_v63 }
 0x3c0   : > { %7111 = vmatprep.subr.bf16.mxu1 %v8655_v33 }
 0x3c1   : > { %v1886_v47 = vpop.permute.xlu0 %1885  ;;  %v7558_v1 = vld [vmem:[#allocation2 + $0x48] ss:$12 sps:$4 sm:$0xff]   ;;  %7086 = vmatpush3.bf16.msra.mxu0 %v8476_v49 }
 0x3c2   : > { %1926 = vst.msk [vmem:[#allocation2 + $0x60] sm:$0xf] %vm1917_vm2, %v1886_v47  ;;  %v7559_v48 = vld [vmem:[#allocation2 + $0x48] ss:$12 sps:$4 sm:$0xff]   ;;  %3451 = vrot.lane.b32.xlu0 %v7558_v1, %s7864_s22  ;;  %7087 = vmatprep.subr.bf16.mxu0 %v8484_v50 }
 0x3c3   : > { %7012 = vmatmul.mubr.msk.bf16.gmra.mxu1 %vm1106_vm0, %v7559_v48  ;;  %7044 = vmatmul.mubr.bf16.gmra.mxu0 %v7559_v48 }
 0x3c5   : > { %v1888_v23 = vpop.permute.xlu1 %1887  ;;  %v1890_v2 = vpop.permute.xlu0 %1889  ;;  %7088 = vmatpush3.bf16.msra.mxu0 %v8484_v50 }
 0x3c6   : > { %1927 = vst.msk [vmem:[#allocation2 + $0x6c] sm:$0xf] %vm1917_vm2, %v1888_v23  ;;  %1928 = vst.msk [vmem:[#allocation2 + $0x78] sm:$0xf] %vm1917_vm2, %v1890_v2  ;;  %7089 = vmatprep.subr.bf16.mxu0 %v8491_v51 }
 0x3c9   : > { %v1892_v49 = vpop.permute.xlu1 %1891  ;;  %7090 = vmatpush3.bf16.msra.mxu0 %v8491_v51 }
 0x3ca   : > { %1929 = vst.msk [vmem:[#allocation2 + $0x84] sm:$0xf] %vm1917_vm2, %v1892_v49  ;;  %7091 = vmatprep.subr.bf16.mxu0 %v8498_v52 }
 0x3cd   : > { %v7562_v6 = vld [vmem:[#allocation2 + $0x60] ss:$12 sps:$4 sm:$0xff]   ;;  %7092 = vmatpush3.bf16.msra.mxu0 %v8498_v52 }
 0x3ce   : > { %v7563_v7 = vld [vmem:[#allocation2 + $0x60] ss:$12 sps:$4 sm:$0xff]   ;;  %3455 = vrot.lane.b32.xlu0 %v7562_v6, %s7864_s22  ;;  %7093 = vmatprep.subr.bf16.mxu0 %v8505_v53 }
 0x3cf   : > { %7015 = vmatprep.mubr.msk.bf16.mxu1 %vm1106_vm0, %v7563_v7  ;;  %7047 = vmatprep.mubr.bf16.mxu0 %v7563_v7 }
 0x3d1   : > { %v1894_v50 = vpop.permute.xlu0 %1893  ;;  %v7566_v9 = vld [vmem:[#allocation2 + $0x78] ss:$12 sps:$4 sm:$0xff]   ;;  %7094 = vmatpush3.bf16.msra.mxu0 %v8505_v53 }
 0x3d2   : > { %1930 = vst.msk [vmem:[#allocation2 + $0x90] sm:$0xf] %vm1917_vm2, %v1894_v50  ;;  %v7567_v51 = vld [vmem:[#allocation2 + $0x78] ss:$12 sps:$4 sm:$0xff]   ;;  %3459 = vrot.lane.b32.xlu0 %v7566_v9, %s7864_s22  ;;  %7135 = vmatprep.subr.bf16.mxu0 %v7578_v19 }
 0x3d3   : > { %7016 = vmatmul.mubr.msk.bf16.gmra.mxu1 %vm1106_vm0, %v7567_v51  ;;  %7048 = vmatmul.mubr.bf16.gmra.mxu0 %v7567_v51  ;;  %v7572_v53 = vld [vmem:[#allocation2 + $0xac] ss:$12 sps:$4 sm:$0xff]  }
 0x3d4   : > { %3469 = vrot.lane.b32.xlu1 %v7572_v53, %s7864_s22 }
 0x3d5   : > { %v1896_v52 = vpop.permute.xlu1 %1895  ;;  %v1898_v10 = vpop.permute.xlu0 %1897 }
 0x3d6   : > { %1931 = vst.msk [vmem:[#allocation2 + $0x9c] sm:$0xf] %vm1917_vm2, %v1896_v52  ;;  %1932 = vst.msk [vmem:[#allocation2 + $0xa8] sm:$0xf] %vm1917_vm2, %v1898_v10  ;;  %v8686_v52 = vld [vmem:[%s9392_s8] ss:$0 sm:$0xff] }
 0x3d9   : > { %v1900_v11 = vpop.permute.xlu1 %1899 }
 0x3da   : > { %1933 = vst.msk [vmem:[#allocation2 + $0xb4] sm:$0xf] %vm1917_vm2, %v1900_v11 }
 0x3dd   : > { %v7570_v13 = vld [vmem:[#allocation2 + $0x90] ss:$12 sps:$4 sm:$0xff]  }
 0x3de   : > { %v7571_v14 = vld [vmem:[#allocation2 + $0x90] ss:$12 sps:$4 sm:$0xff]   ;;  %3463 = vrot.lane.b32.xlu0 %v7570_v13, %s7864_s22 }
 0x3df   : > { %7019 = vmatprep.mubr.msk.bf16.mxu1 %vm1106_vm0, %v7571_v14  ;;  %7051 = vmatprep.mubr.bf16.mxu0 %v7571_v14 }
 0x3e1   : > { %v7574_v15 = vld [vmem:[#allocation2 + $0xa8] ss:$12 sps:$4 sm:$0xff]  }
 0x3e2   : > { %v7575_v16 = vld [vmem:[#allocation2 + $0xa8] ss:$12 sps:$4 sm:$0xff]   ;;  %3467 = vrot.lane.b32.xlu0 %v7574_v15, %s7864_s22 }
 0x3e3   : > { %7020 = vmatmul.mubr.msk.bf16.gmra.mxu1 %vm1106_vm0, %v7575_v16  ;;  %7052 = vmatmul.mubr.bf16.gmra.mxu0 %v7575_v16 }
 0x412   : > { %v3442_v22 = vpop.permute.xlu1 %3441 }
 0x416   : > { %v3446_v26 = vpop.permute.xlu1 %3445 }
 0x41a   : > { %v3450_v3 = vpop.permute.xlu1 %3449 }
 0x41e   : > { %v3454_v34 = vpop.permute.xlu1 %3453 }
 0x420   : > { %v3440_v24 = vpop.permute.xlu0 %3439 }
 0x421   : > { %v3472_v25 = vsel %vm1106_vm0, %v3440_v24, %v3442_v22 }
 0x422   : > { %7095 = vmatprep.mubr.bf16.mxu0 %v3472_v25  ;;  %v3458_v37 = vpop.permute.xlu1 %3457 }
 0x424   : > { %v3444_v27 = vpop.permute.xlu0 %3443 }
 0x425   : > { %v3473_v29 = vsel %vm1106_vm0, %v3444_v27, %v3446_v26 }
 0x426   : > { %7096 = vmatmul.mubr.bf16.vlgmr.msra.gmra.mxu0 %v3473_v29  ;;  %v3462_v42 = vpop.permute.xlu1 %3461 }
 0x427   : > { %7136 = vmatpush3.bf16.msra.mxu0 %v7578_v19 }
 0x428   : > { %7137 = vmatprep.subr.bf16.mxu0 %v7580_v28 }
 0x42a   : > { %v3466_v55 = vpop.permute.xlu1 %3465 }
 0x42b   : > { %7138 = vmatpush3.bf16.msra.mxu0 %v7580_v28 }
 0x42c   : > { %7139 = vmatprep.subr.bf16.mxu0 %v7581_v30 }
 0x42f   : > { %7140 = vmatpush3.bf16.msra.mxu0 %v7581_v30 }
 0x430   : > { %v3448_v40 = vpop.permute.xlu0 %3447  ;;  %7141 = vmatprep.subr.bf16.mxu0 %v7583_v31 }
 0x431   : > { %v3474_v32 = vsel %vm1106_vm0, %v3448_v40, %v3450_v3 }
 0x432   : > { %7099 = vmatprep.mubr.bf16.mxu0 %v3474_v32 }
 0x433   : > { %7142 = vmatpush3.bf16.msra.mxu0 %v7583_v31 }
 0x434   : > { %v3452_v35 = vpop.permute.xlu0 %3451 }
 0x435   : > { %v3475_v36 = vsel %vm1106_vm0, %v3452_v35, %v3454_v34  ;;  %v7585_v35 = vld [vmem:[#allocation6 + $0x10] sm:$0xff]  }
 0x436   : > { %7100 = vmatmul.mubr.bf16.gmra.mxu0 %v3475_v36 }
 0x43c   : > { %v6985_v39 = vpop.f32.mrf.mxu0 }
 0x43e   : > { %v2712_v44 = vpop.f32.mrf.mxu0 }
 0x440   : > { %v3456_v38 = vpop.permute.xlu0 %3455  ;;  %v6986_v45 = vpop.f32.mrf.mxu0 }
 0x441   : > { %v3476_v41 = vsel %vm1106_vm0, %v3456_v38, %v3458_v37  ;;  %v7586_v38 = vld [vmem:[#allocation6 + $0x8] sm:$0xff]  }
 0x442   : > { %7103 = vmatprep.mubr.bf16.mxu0 %v3476_v41  ;;  %v2715_v46 = vpop.f32.mrf.mxu0 }
 0x444   : > { %v3460_v43 = vpop.permute.xlu0 %3459 }
 0x445   : > { %v3477_v4 = vsel %vm1106_vm0, %v3460_v43, %v3462_v42 }
 0x446   : > { %7104 = vmatmul.mubr.bf16.gmra.mxu0 %v3477_v4  ;;  %v3470_v59 = vpop.permute.xlu1 %3469 }
 0x44c   : > { %v8661_v54 = vpop.f32.mrf.mxu0 }
 0x44e   : > { %v2728_v58 = vpop.f32.mrf.mxu0 }
 0x450   : > { %v3464_v56 = vpop.permute.xlu0 %3463  ;;  %v6990_v62 = vpop.f32.mrf.mxu0 }
 0x451   : > { %v3478_v57 = vsel %vm1106_vm0, %v3464_v56, %v3466_v55  ;;  %v7587_v55 = vld [vmem:[#allocation6] sm:$0xff]  }
 0x452   : > { %7107 = vmatprep.mubr.bf16.mxu0 %v3478_v57  ;;  %v8665_v63 = vpop.f32.mrf.mxu0 }
 0x454   : > { %v3468_v60 = vpop.permute.xlu0 %3467 }
 0x455   : > { %v3479_v61 = vsel %vm1106_vm0, %v3468_v60, %v3470_v59 }
 0x456   : > { %7108 = vmatmul.mubr.bf16.gmra.mxu0 %v3479_v61 }
 0x45c   : > { %v8667_v47 = vpop.f32.mrf.mxu0 }
 0x45e   : > { %v8669_v0 = vpop.f32.mrf.mxu0 }
 0x460   : > { %v8671_v1 = vpop.f32.mrf.mxu0 }
 0x462   : > { %v8673_v48 = vpop.f32.mrf.mxu0 }
 0x46c   : > { %v8675_v23 = vpop.f32.mrf.mxu0 }
 0x46e   : > { %v8677_v2 = vpop.f32.mrf.mxu0 }
 0x470   : > { %v7009_v49 = vpop.f32.mrf.mxu1  ;;  %v8679_v5 = vpop.f32.mrf.mxu0 }
 0x471   : > { %v2906_v8 = vadd.f32 %v7009_v49, %v6985_v39 }
 0x472   : > { %v2897_v6 = vpop.f32.mrf.mxu1  ;;  %v8681_v7 = vpop.f32.mrf.mxu0 }
 0x473   : > { %v2898_v50 = vadd.f32 %v2897_v6, %v2712_v44  ;;  %v3858_v15 = vadd.f32 %v8686_v52, %v2906_v8 }
 0x474   : > { %v7010_v9 = vpop.f32.mrf.mxu1  ;;  %v7041_v51 = vpop.f32.mrf.mxu0 }
 0x475   : > { %v2909_v10 = vadd.f32 %v7010_v9, %v6986_v45  ;;  %v3856_v13 = vadd.f32 %v8686_v52, %v2898_v50  ;;  %v3018_v21 = vadd.f32 %v7041_v51, %v8686_v52  ;;  %v3874_v27 = vmax.f32 %v3858_v15, 0.0 }
 0x476   : > { %v2900_v11 = vpop.f32.mrf.mxu1  ;;  %v3009_v12 = vpop.f32.mrf.mxu0 }
 0x477   : > { %v3859_v14 = vadd.f32 %v8686_v52, %v2909_v10  ;;  %v2901_v53 = vadd.f32 %v2900_v11, %v2715_v46  ;;  %v3010_v18 = vadd.f32 %v8686_v52, %v3009_v12  ;;  %v3872_v24 = vmax.f32 %v3856_v13, 0.0 }
 0x478   : > { %v7042_v16 = vpop.f32.mrf.mxu0  ;;  %v3074_v40 = vmax.f32 %v3018_v21, 0.0 }
 0x479   : > { %v3857_v17 = vadd.f32 %v8686_v52, %v2901_v53  ;;  %v3021_v19 = vadd.f32 %v7042_v16, %v8686_v52  ;;  %v3875_v20 = vmax.f32 %v3859_v14, 0.0  ;;  %v3072_v30 = vmax.f32 %v3010_v18, 0.0 }
 0x47a   : > { %v3012_v22 = vpop.f32.mrf.mxu0 }
 0x47b   : > { %v3873_v25 = vmax.f32 %v3857_v17, 0.0  ;;  %v3013_v26 = vadd.f32 %v8686_v52, %v3012_v22  ;;  %v3075_v28 = vmax.f32 %v3021_v19, 0.0  ;;  %v3897_v3 = vpack.c.bf16 %v3875_v20, %v3874_v27 }
 0x47d   : > { %v3896_v29 = vpack.c.bf16 %v3873_v25, %v3872_v24  ;;  %v3073_v31 = vmax.f32 %v3013_v26, 0.0  ;;  %v3097_v34 = vpack.c.bf16 %v3075_v28, %v3074_v40 }
 0x47f   : > { %v3096_v32 = vpack.c.bf16 %v3073_v31, %v3072_v30  ;;  %7143 = vmatprep.mubr.msk.bf16.mxu0 %vm1106_vm0, %v3896_v29 }
 0x480   : > { %7144 = vmatmul.mubr.msk.bf16.vlgmr.msra.gmra.mxu0 %vm1106_vm0, %v3897_v3 }
 0x481   : > { %7063 = vmatprep.mubr.msk.bf16.mxu1 %vm1106_vm0, %v3096_v32 }
 0x482   : > { %7064 = vmatmul.mubr.msk.bf16.vlgmr.msra.gmra.mxu1 %vm1106_vm0, %v3097_v34 }
 0x483   : > { %v7013_v36 = vpop.f32.mrf.mxu1  ;;  %v7045_v37 = vpop.f32.mrf.mxu0  ;;  %7112 = vmatpush3.bf16.msra.mxu1 %v8655_v33 }
 0x484   : > { %7113 = vmatprep.subr.bf16.mxu1 %v7585_v35  ;;  %v2922_v43 = vadd.f32 %v7013_v36, %v8661_v54  ;;  %v3034_v56 = vadd.f32 %v7045_v37, %v8686_v52 }
 0x485   : > { %v2913_v39 = vpop.f32.mrf.mxu1  ;;  %v3025_v41 = vpop.f32.mrf.mxu0 }
 0x486   : > { %v2914_v42 = vadd.f32 %v2913_v39, %v2728_v58  ;;  %v3026_v45 = vadd.f32 %v8686_v52, %v3025_v41  ;;  %v3862_v49 = vadd.f32 %v8686_v52, %v2922_v43  ;;  %v3078_v9 = vmax.f32 %v3034_v56, 0.0 }
 0x487   : > { %v7014_v44 = vpop.f32.mrf.mxu1  ;;  %v7046_v4 = vpop.f32.mrf.mxu0  ;;  %7114 = vmatpush3.bf16.msra.mxu1 %v7585_v35 }
 0x488   : > { %v2925_v46 = vadd.f32 %v7014_v44, %v6990_v62  ;;  %7115 = vmatprep.subr.bf16.mxu1 %v7586_v38  ;;  %v3037_v57 = vadd.f32 %v7046_v4, %v8686_v52  ;;  %v3860_v60 = vadd.f32 %v8686_v52, %v2914_v42  ;;  %v3076_v62 = vmax.f32 %v3026_v45, 0.0 }
 0x489   : > { %v2916_v33 = vpop.f32.mrf.mxu1  ;;  %v3028_v59 = vpop.f32.mrf.mxu0  ;;  %v3878_v13 = vmax.f32 %v3862_v49, 0.0 }
 0x48a   : > { %v3863_v58 = vadd.f32 %v8686_v52, %v2925_v46  ;;  %v2917_v54 = vadd.f32 %v2916_v33, %v8665_v63  ;;  %v3029_v61 = vadd.f32 %v8686_v52, %v3028_v59  ;;  %v3079_v6 = vmax.f32 %v3037_v57, 0.0 }
 0x48b   : > { %7116 = vmatpush3.bf16.msra.mxu1 %v7586_v38  ;;  %v3876_v10 = vmax.f32 %v3860_v60, 0.0 }
 0x48c   : > { %v3861_v50 = vadd.f32 %v8686_v52, %v2917_v54  ;;  %v3077_v8 = vmax.f32 %v3029_v61, 0.0  ;;  %7117 = vmatprep.subr.bf16.mxu1 %v7587_v55  ;;  %v3879_v51 = vmax.f32 %v3863_v58, 0.0  ;;  %v3099_v14 = vpack.c.bf16 %v3079_v6, %v3078_v9 }
 0x48e   : > { %v3877_v11 = vmax.f32 %v3861_v50, 0.0  ;;  %v3098_v12 = vpack.c.bf16 %v3077_v8, %v3076_v62  ;;  %v3899_v53 = vpack.c.bf16 %v3879_v51, %v3878_v13 }
 0x48f   : > { %7118 = vmatpush3.bf16.msra.mxu1 %v7587_v55 }
 0x490   : > { %v3898_v63 = vpack.c.bf16 %v3877_v11, %v3876_v10  ;;  %7067 = vmatprep.mubr.msk.bf16.mxu1 %vm1106_vm0, %v3098_v12 }
 0x491   : > { %7068 = vmatmul.mubr.msk.bf16.gmra.mxu1 %vm1106_vm0, %v3099_v14 }
 0x492   : > { %7147 = vmatprep.mubr.msk.bf16.mxu0 %vm1106_vm0, %v3898_v63 }
 0x493   : > { %v7017_v15 = vpop.f32.mrf.mxu1  ;;  %v7049_v16 = vpop.f32.mrf.mxu0  ;;  %7148 = vmatmul.mubr.msk.bf16.gmra.mxu0 %vm1106_vm0, %v3899_v53 }
 0x494   : > { %v2938_v20 = vadd.f32 %v7017_v15, %v8667_v47  ;;  %v3050_v26 = vadd.f32 %v7049_v16, %v8686_v52 }
 0x495   : > { %v2929_v17 = vpop.f32.mrf.mxu1  ;;  %v3041_v18 = vpop.f32.mrf.mxu0 }
 0x496   : > { %v2930_v19 = vadd.f32 %v2929_v17, %v8669_v0  ;;  %v3042_v24 = vadd.f32 %v8686_v52, %v3041_v18  ;;  %v3866_v3 = vadd.f32 %v8686_v52, %v2938_v20  ;;  %v3082_v35 = vmax.f32 %v3050_v26, 0.0 }
 0x497   : > { %v7018_v21 = vpop.f32.mrf.mxu1  ;;  %v7050_v22 = vpop.f32.mrf.mxu0 }
 0x498   : > { %v2941_v25 = vadd.f32 %v7018_v21, %v8671_v1  ;;  %v3053_v27 = vadd.f32 %v7050_v22, %v8686_v52  ;;  %v3864_v30 = vadd.f32 %v8686_v52, %v2930_v19  ;;  %v3080_v32 = vmax.f32 %v3042_v24, 0.0 }
 0x499   : > { %v2932_v28 = vpop.f32.mrf.mxu1  ;;  %v3044_v29 = vpop.f32.mrf.mxu0  ;;  %v3882_v41 = vmax.f32 %v3866_v3, 0.0 }
 0x49a   : > { %v3867_v31 = vadd.f32 %v8686_v52, %v2941_v25  ;;  %v2933_v0 = vadd.f32 %v2932_v28, %v8673_v48  ;;  %v3045_v47 = vadd.f32 %v8686_v52, %v3044_v29  ;;  %v3083_v40 = vmax.f32 %v3053_v27, 0.0 }
 0x49b   : > { %v3880_v37 = vmax.f32 %v3864_v30, 0.0 }
 0x49c   : > { %v3865_v1 = vadd.f32 %v8686_v52, %v2933_v0  ;;  %v3081_v34 = vmax.f32 %v3045_v47, 0.0  ;;  %v3883_v36 = vmax.f32 %v3867_v31, 0.0  ;;  %v3101_v42 = vpack.c.bf16 %v3083_v40, %v3082_v35 }
 0x49e   : > { %v3881_v38 = vmax.f32 %v3865_v1, 0.0  ;;  %v3100_v39 = vpack.c.bf16 %v3081_v34, %v3080_v32  ;;  %v3901_v48 = vpack.c.bf16 %v3883_v36, %v3882_v41 }
 0x4a0   : > { %v3900_v43 = vpack.c.bf16 %v3881_v38, %v3880_v37  ;;  %7071 = vmatprep.mubr.msk.bf16.mxu1 %vm1106_vm0, %v3100_v39 }
 0x4a1   : > { %7072 = vmatmul.mubr.msk.bf16.gmra.mxu1 %vm1106_vm0, %v3101_v42 }
 0x4a2   : > { %7151 = vmatprep.mubr.msk.bf16.mxu0 %vm1106_vm0, %v3900_v43 }
 0x4a3   : > { %v7021_v44 = vpop.f32.mrf.mxu1  ;;  %v7053_v4 = vpop.f32.mrf.mxu0  ;;  %7152 = vmatmul.mubr.msk.bf16.gmra.mxu0 %vm1106_vm0, %v3901_v48  ;;  %v7588_v48 = vld [vmem:[%s9395_s11 + $0x78] sm:$0xff]  }
 0x4a4   : > { %v2954_v56 = vadd.f32 %v7021_v44, %v8675_v23  ;;  %v3066_v58 = vadd.f32 %v7053_v4, %v8686_v52  ;;  %v7589_v44 = vld [vmem:[%s9395_s11 + $0x38] sm:$0xff]   ;;  %v7590_v4 = vld [vmem:[%s9395_s11 + $0x70] sm:$0xff]   ;;  %6707 = vmatprep.subr.bf16.mxu1 %v7588_v48 }
 0x4a5   : > { %v2945_v45 = vpop.f32.mrf.mxu1  ;;  %v3057_v46 = vpop.f32.mrf.mxu0 }
 0x4a6   : > { %v2946_v55 = vadd.f32 %v2945_v45, %v8677_v2  ;;  %v3058_v59 = vadd.f32 %v8686_v52, %v3057_v46  ;;  %v3870_v50 = vadd.f32 %v8686_v52, %v2954_v56  ;;  %v3086_v10 = vmax.f32 %v3066_v58, 0.0 }
 0x4a7   : > { %v7022_v57 = vpop.f32.mrf.mxu1  ;;  %v7054_v33 = vpop.f32.mrf.mxu0 }
 0x4a8   : > { %v2957_v60 = vadd.f32 %v7022_v57, %v8679_v5  ;;  %v3069_v54 = vadd.f32 %v7054_v33, %v8686_v52  ;;  %v3868_v6 = vadd.f32 %v8686_v52, %v2946_v55  ;;  %v3084_v9 = vmax.f32 %v3058_v59, 0.0  ;;  %v7591_v33 = vld [vmem:[%s9395_s11 + $0x30] sm:$0xff]  }
 0x4a9   : > { %v2948_v61 = vpop.f32.mrf.mxu1  ;;  %v3060_v49 = vpop.f32.mrf.mxu0  ;;  %v3886_v63 = vmax.f32 %v3870_v50, 0.0 }
 0x4aa   : > { %v3871_v62 = vadd.f32 %v8686_v52, %v2957_v60  ;;  %v2949_v2 = vadd.f32 %v2948_v61, %v8681_v7  ;;  %v3061_v23 = vadd.f32 %v8686_v52, %v3060_v49  ;;  %v3087_v8 = vmax.f32 %v3069_v54, 0.0  ;;  %v7592_v60 = vld [vmem:[%s9395_s11 + $0x68] sm:$0xff]  }
 0x4ab   : > { %v3884_v12 = vmax.f32 %v3868_v6, 0.0 }
 0x4ac   : > { %v3869_v5 = vadd.f32 %v8686_v52, %v2949_v2  ;;  %v3085_v51 = vmax.f32 %v3061_v23, 0.0  ;;  %v3887_v11 = vmax.f32 %v3871_v62, 0.0  ;;  %v3103_v53 = vpack.c.bf16 %v3087_v8, %v3086_v10  ;;  %v7593_v62 = vld [vmem:[%s9395_s11 + $0x28] sm:$0xff]  }
 0x4ae   : > { %v3885_v13 = vmax.f32 %v3869_v5, 0.0  ;;  %v3102_v14 = vpack.c.bf16 %v3085_v51, %v3084_v9  ;;  %v3903_v7 = vpack.c.bf16 %v3887_v11, %v3886_v63 }
 0x4b0   : > { %v3902_v15 = vpack.c.bf16 %v3885_v13, %v3884_v12  ;;  %7075 = vmatprep.mubr.msk.bf16.mxu1 %vm1106_vm0, %v3102_v14 }
 0x4b1   : > { %7076 = vmatmul.mubr.msk.bf16.gmra.mxu1 %vm1106_vm0, %v3103_v53 }
 0x4b2   : > { %7155 = vmatprep.mubr.msk.bf16.mxu0 %vm1106_vm0, %v3902_v15 }
 0x4b3   : > { %7156 = vmatmul.mubr.msk.bf16.gmra.mxu0 %vm1106_vm0, %v3903_v7  ;;  %v7594_v7 = vld [vmem:[%s9395_s11 + $0x60] sm:$0xff]  }
 0x4e6   : > { %v7097_v16 = vpop.f32.mrf.mxu0 }
 0x4e7   : > { %v3531_v21 = vadd.f32 %v7097_v16, %v8686_v52  ;;  %v7595_v16 = vld [vmem:[%s9395_s11 + $0x20] sm:$0xff]  }
 0x4e8   : > { %v3522_v17 = vpop.f32.mrf.mxu0 }
 0x4e9   : > { %v3523_v19 = vadd.f32 %v8686_v52, %v3522_v17  ;;  %v3587_v28 = vmax.f32 %v3531_v21, 0.0  ;;  %v7597_v17 = vld [vmem:[%s9395_s11 + $0x18] sm:$0xff]  }
 0x4ea   : > { %v7098_v18 = vpop.f32.mrf.mxu0 }
 0x4eb   : > { %v3534_v20 = vadd.f32 %v7098_v18, %v8686_v52  ;;  %v3585_v26 = vmax.f32 %v3523_v19, 0.0  ;;  %v7599_v18 = vld [vmem:[%s9395_s11 + $0xb8] sm:$0xff]   ;;  %v7598_v19 = vld [vmem:[%s9395_s11 + $0x50] sm:$0xff]  }
 0x4ec   : > { %v3525_v22 = vpop.f32.mrf.mxu0  ;;  %7159 = vmatprep.subr.bf16.mxu0 %v7599_v18 }
 0x4ed   : > { %v3526_v24 = vadd.f32 %v8686_v52, %v3525_v22  ;;  %v3588_v25 = vmax.f32 %v3534_v20, 0.0  ;;  %v7600_v20 = vld [vmem:[%s9395_s11 + $0x10] sm:$0xff]   ;;  %7160 = vmatpush3.bf16.msra.mxu0 %v7599_v18  ;;  %v7601_v22 = vld [vmem:[%s9395_s11 + $0x48] sm:$0xff]  }
 0x4ef   : > { %v3586_v27 = vmax.f32 %v3526_v24, 0.0  ;;  %v3610_v30 = vpack.c.bf16 %v3588_v25, %v3587_v28  ;;  %v7602_v24 = vld [vmem:[%s9395_s11 + $0xb0] sm:$0xff]   ;;  %v7603_v25 = vld [vmem:[%s9395_s11 + $0x8] sm:$0xff]  }
 0x4f0   : > { %7161 = vmatprep.subr.bf16.mxu0 %v7602_v24 }
 0x4f1   : > { %v3609_v29 = vpack.c.bf16 %v3586_v27, %v3585_v26  ;;  %v8824_v27 = vld [vmem:[%s9394_s10] ss:$0 sm:$0xff]  ;;  %7162 = vmatpush3.bf16.msra.mxu0 %v7602_v24 }
 0x4f3   : > { %7119 = vmatprep.mubr.msk.bf16.mxu1 %vm1106_vm0, %v3609_v29 }
 0x4f4   : > { %7120 = vmatmul.mubr.msk.bf16.vlgmr.msra.gmra.mxu1 %vm1106_vm0, %v3610_v30 }
 0x4f5   : > { %6708 = vmatpush3.bf16.msra.mxu1 %v7589_v44 }
 0x4f6   : > { %v7101_v31 = vpop.f32.mrf.mxu0  ;;  %6709 = vmatprep.subr.bf16.mxu1 %v7590_v4 }
 0x4f7   : > { %v3547_v32 = vadd.f32 %v7101_v31, %v8686_v52  ;;  %v7605_v31 = vld [vmem:[%s9395_s11 + $0xa8] sm:$0xff]  }
 0x4f8   : > { %v3538_v0 = vpop.f32.mrf.mxu0  ;;  %7163 = vmatprep.subr.bf16.mxu0 %v7605_v31 }
 0x4f9   : > { %v3539_v3 = vadd.f32 %v8686_v52, %v3538_v0  ;;  %v3591_v38 = vmax.f32 %v3547_v32, 0.0  ;;  %6710 = vmatpush3.bf16.msra.mxu1 %v7591_v33  ;;  %v7606_v32 = vld [vmem:[%s9395_s11] sm:$0xff]   ;;  %7164 = vmatpush3.bf16.msra.mxu0 %v7605_v31 }
 0x4fa   : > { %v7102_v47 = vpop.f32.mrf.mxu0  ;;  %6711 = vmatprep.subr.bf16.mxu1 %v7592_v60 }
 0x4fb   : > { %v3550_v40 = vadd.f32 %v7102_v47, %v8686_v52  ;;  %v3589_v36 = vmax.f32 %v3539_v3, 0.0  ;;  %v7604_v47 = vld [vmem:[%s9395_s11 + $0x40] sm:$0xff]  }
 0x4fc   : > { %v3541_v1 = vpop.f32.mrf.mxu0 }
 0x4fd   : > { %v3542_v34 = vadd.f32 %v8686_v52, %v3541_v1  ;;  %v3592_v35 = vmax.f32 %v3550_v40, 0.0  ;;  %6712 = vmatpush3.bf16.msra.mxu1 %v7593_v62 }
 0x4fe   : > { %6713 = vmatprep.subr.bf16.mxu1 %v7594_v7 }
 0x4ff   : > { %v3590_v37 = vmax.f32 %v3542_v34, 0.0  ;;  %v3612_v41 = vpack.c.bf16 %v3592_v35, %v3591_v38 }
 0x501   : > { %v3611_v39 = vpack.c.bf16 %v3590_v37, %v3589_v36  ;;  %6714 = vmatpush3.bf16.msra.mxu1 %v7595_v16  ;;  %v7610_v36 = vld [vmem:[%s9395_s11 + $0xa0] sm:$0xff]  }
 0x502   : > { %7165 = vmatprep.subr.bf16.mxu0 %v7610_v36 }
 0x503   : > { %7123 = vmatprep.mubr.msk.bf16.mxu1 %vm1106_vm0, %v3611_v39  ;;  %7166 = vmatpush3.bf16.msra.mxu0 %v7610_v36 }
 0x504   : > { %7124 = vmatmul.mubr.msk.bf16.gmra.mxu1 %vm1106_vm0, %v3612_v41 }
 0x506   : > { %v7105_v42 = vpop.f32.mrf.mxu0 }
 0x507   : > { %v3563_v56 = vadd.f32 %v7105_v42, %v8686_v52 }
 0x508   : > { %v3554_v43 = vpop.f32.mrf.mxu0 }
 0x509   : > { %v3555_v46 = vadd.f32 %v8686_v52, %v3554_v43  ;;  %v3595_v49 = vmax.f32 %v3563_v56, 0.0  ;;  %v7614_v43 = vld [vmem:[%s9395_s11 + $0x98] sm:$0xff]  }
 0x50a   : > { %v7106_v45 = vpop.f32.mrf.mxu0  ;;  %7167 = vmatprep.subr.bf16.mxu0 %v7614_v43 }
 0x50b   : > { %v3566_v55 = vadd.f32 %v7106_v45, %v8686_v52  ;;  %v3593_v54 = vmax.f32 %v3555_v46, 0.0  ;;  %7168 = vmatpush3.bf16.msra.mxu0 %v7614_v43  ;;  %v7615_v46 = vld [vmem:[%s9395_s11 + $0x90] sm:$0xff]  }
 0x50c   : > { %v3557_v57 = vpop.f32.mrf.mxu0  ;;  %7169 = vmatprep.subr.bf16.mxu0 %v7615_v46 }
 0x50d   : > { %v3558_v59 = vadd.f32 %v8686_v52, %v3557_v57  ;;  %v3596_v58 = vmax.f32 %v3566_v55, 0.0 }
 0x50f   : > { %v3594_v61 = vmax.f32 %v3558_v59, 0.0  ;;  %v3614_v2 = vpack.c.bf16 %v3596_v58, %v3595_v49  ;;  %7170 = vmatpush3.bf16.msra.mxu0 %v7615_v46 }
 0x511   : > { %v3613_v6 = vpack.c.bf16 %v3594_v61, %v3593_v54  ;;  %v7617_v61 = vld [vmem:[%s9395_s11 + $0x88] sm:$0xff]  }
 0x512   : > { %7171 = vmatprep.subr.bf16.mxu0 %v7617_v61 }
 0x513   : > { %7127 = vmatprep.mubr.msk.bf16.mxu1 %vm1106_vm0, %v3613_v6  ;;  %7172 = vmatpush3.bf16.msra.mxu0 %v7617_v61 }
 0x514   : > { %7128 = vmatmul.mubr.msk.bf16.gmra.mxu1 %vm1106_vm0, %v3614_v2 }
 0x516   : > { %v7109_v23 = vpop.f32.mrf.mxu0 }
 0x517   : > { %v3579_v51 = vadd.f32 %v7109_v23, %v8686_v52 }
 0x518   : > { %v3570_v50 = vpop.f32.mrf.mxu0 }
 0x519   : > { %v3571_v9 = vadd.f32 %v8686_v52, %v3570_v50  ;;  %v3599_v63 = vmax.f32 %v3579_v51, 0.0 }
 0x51a   : > { %v7110_v8 = vpop.f32.mrf.mxu0 }
 0x51b   : > { %v3582_v5 = vadd.f32 %v7110_v8, %v8686_v52  ;;  %v3597_v13 = vmax.f32 %v3571_v9, 0.0  ;;  %v7621_v9 = vld [vmem:[%s9395_s11 + $0x80] sm:$0xff]  }
 0x51c   : > { %v3573_v10 = vpop.f32.mrf.mxu0  ;;  %7173 = vmatprep.subr.bf16.mxu0 %v7621_v9 }
 0x51d   : > { %v3574_v11 = vadd.f32 %v8686_v52, %v3573_v10  ;;  %v3600_v12 = vmax.f32 %v3582_v5, 0.0  ;;  %v7596_v52 = vld [vmem:[%s9395_s11 + $0x58] sm:$0xff]   ;;  %7174 = vmatpush3.bf16.msra.mxu0 %v7621_v9 }
 0x51e   : > { %6715 = vmatprep.subr.bf16.mxu1 %v7596_v52 }
 0x51f   : > { %v3598_v14 = vmax.f32 %v3574_v11, 0.0  ;;  %v3616_v15 = vpack.c.bf16 %v3600_v12, %v3599_v63  ;;  %6716 = vmatpush3.bf16.msra.mxu1 %v7597_v17 }
 0x520   : > { %6717 = vmatprep.subr.bf16.mxu1 %v7598_v19 }
 0x521   : > { %v3615_v53 = vpack.c.bf16 %v3598_v14, %v3597_v13 }
 0x523   : > { %7131 = vmatprep.mubr.msk.bf16.mxu1 %vm1106_vm0, %v3615_v53  ;;  %6718 = vmatpush3.bf16.msra.mxu1 %v7600_v20 }
 0x524   : > { %7132 = vmatmul.mubr.msk.bf16.gmra.mxu1 %vm1106_vm0, %v3616_v15  ;;  %6719 = vmatprep.subr.bf16.mxu1 %v7601_v22 }
 0x527   : > { %6720 = vmatpush3.bf16.msra.mxu1 %v7603_v25 }
 0x528   : > { %6721 = vmatprep.subr.bf16.mxu1 %v7604_v47 }
 0x52b   : > { %6722 = vmatpush3.bf16.msra.mxu1 %v7606_v32 }
 0x540   : > { %v8810_v21 = vpop.f32.mrf.mxu0 }
 0x541   : > { %v4002_v62 = vadd.f32 %v8810_v21, %v8824_v27 }
 0x542   : > { %v7065_v26 = vpop.f32.mrf.mxu1  ;;  %v3993_v28 = vpop.f32.mrf.mxu0 }
 0x543   : > { %v3202_v3 = vadd.f32 %v7065_v26, %v8824_v27  ;;  %v3994_v37 = vadd.f32 %v8824_v27, %v3993_v28  ;;  %v6372_v5 = vpack.c.bf16 %v4002_v62, %v4002_v62 }
 0x544   : > { %v3193_v29 = vpop.f32.mrf.mxu1  ;;  %v7146_v1 = vpop.f32.mrf.mxu0 }
 0x545   : > { %v3194_v30 = vadd.f32 %v8824_v27, %v3193_v29  ;;  %v6340_v38 = vpack.c.bf16 %v3202_v3, %v3202_v3  ;;  %v6370_v48 = vpack.c.bf16 %v3994_v37, %v3994_v37  ;;  %v4005_v51 = vadd.f32 %v7146_v1, %v8824_v27 }
 0x546   : > { %v7066_v0 = vpop.f32.mrf.mxu1  ;;  %v3996_v42 = vpop.f32.mrf.mxu0 }
 0x547   : > { %v6338_v40 = vpack.c.bf16 %v3194_v30, %v3194_v30  ;;  %v3205_v39 = vadd.f32 %v7066_v0, %v8824_v27  ;;  %v3997_v44 = vadd.f32 %v8824_v27, %v3996_v42  ;;  %v6373_v13 = vpack.c.bf16 %v4005_v51, %v4005_v51 }
 0x548   : > { %v3196_v34 = vpop.f32.mrf.mxu1 }
 0x549   : > { %v3197_v35 = vadd.f32 %v8824_v27, %v3196_v34  ;;  %3304 = vrot.lane.b32.xlu0 %v6338_v40, %s7864_s22  ;;  %v6341_v4 = vpack.c.bf16 %v3205_v39, %v3205_v39  ;;  %v6371_v56 = vpack.c.bf16 %v3997_v44, %v3997_v44 }
 0x54b   : > { %v6339_v41 = vpack.c.bf16 %v3197_v35, %v3197_v35 }
 0x54d   : > { %3306 = vrot.lane.b32.xlu1 %v6339_v41, %s7864_s22  ;;  %3308 = vrot.lane.b32.xlu0 %v6340_v38, %s7864_s22 }
 0x551   : > { %v7069_v45 = vpop.f32.mrf.mxu1  ;;  %3310 = vrot.lane.b32.xlu1 %v6341_v4, %s7864_s22  ;;  %4104 = vrot.lane.b32.xlu0 %v6370_v48, %s7864_s22 }
 0x552   : > { %v3218_v55 = vadd.f32 %v7069_v45, %v8824_v27 }
 0x553   : > { %v3209_v57 = vpop.f32.mrf.mxu1  ;;  %v7149_v33 = vpop.f32.mrf.mxu0 }
 0x554   : > { %v6344_v59 = vpack.c.bf16 %v3218_v55, %v3218_v55  ;;  %v3210_v60 = vadd.f32 %v8824_v27, %v3209_v57  ;;  %v4018_v25 = vadd.f32 %v7149_v33, %v8824_v27 }
 0x555   : > { %v7070_v58 = vpop.f32.mrf.mxu1  ;;  %v4009_v54 = vpop.f32.mrf.mxu0  ;;  %4106 = vrot.lane.b32.xlu1 %v6371_v56, %s7864_s22 }
 0x556   : > { %v3221_v49 = vadd.f32 %v7070_v58, %v8824_v27  ;;  %3316 = vrot.lane.b32.xlu0 %v6344_v59, %s7864_s22  ;;  %v6342_v2 = vpack.c.bf16 %v3210_v60, %v3210_v60  ;;  %v4010_v10 = vadd.f32 %v8824_v27, %v4009_v54  ;;  %v6376_v31 = vpack.c.bf16 %v4018_v25, %v4018_v25 }
 0x557   : > { %v3212_v6 = vpop.f32.mrf.mxu1  ;;  %v7150_v8 = vpop.f32.mrf.mxu0 }
 0x558   : > { %v6345_v23 = vpack.c.bf16 %v3221_v49, %v3221_v49  ;;  %v3213_v50 = vadd.f32 %v8824_v27, %v3212_v6  ;;  %v6374_v14 = vpack.c.bf16 %v4010_v10, %v4010_v10  ;;  %v4021_v29 = vadd.f32 %v7150_v8, %v8824_v27 }
 0x559   : > { %v4012_v12 = vpop.f32.mrf.mxu0 }
 0x55a   : > { %3318 = vrot.lane.b32.xlu1 %v6345_v23, %s7864_s22  ;;  %3312 = vrot.lane.b32.xlu0 %v6342_v2, %s7864_s22  ;;  %v6343_v11 = vpack.c.bf16 %v3213_v50, %v3213_v50  ;;  %v4013_v63 = vadd.f32 %v8824_v27, %v4012_v12  ;;  %v6377_v3 = vpack.c.bf16 %v4021_v29, %v4021_v29 }
 0x55c   : > { %v6375_v16 = vpack.c.bf16 %v4013_v63, %v4013_v63 }
 0x55e   : > { %3314 = vrot.lane.b32.xlu1 %v6343_v11, %s7864_s22  ;;  %4108 = vrot.lane.b32.xlu0 %v6372_v5, %s7864_s22 }
 0x561   : > { %v7073_v53 = vpop.f32.mrf.mxu1 }
 0x562   : > { %v3234_v15 = vadd.f32 %v7073_v53, %v8824_v27  ;;  %4110 = vrot.lane.b32.xlu1 %v6373_v13, %s7864_s22  ;;  %4112 = vrot.lane.b32.xlu0 %v6374_v14, %s7864_s22 }
 0x563   : > { %v3225_v7 = vpop.f32.mrf.mxu1  ;;  %v7153_v18 = vpop.f32.mrf.mxu0 }
 0x564   : > { %v6348_v52 = vpack.c.bf16 %v3234_v15, %v3234_v15  ;;  %v3226_v17 = vadd.f32 %v8824_v27, %v3225_v7  ;;  %v4034_v32 = vadd.f32 %v7153_v18, %v8824_v27 }
 0x565   : > { %v7074_v19 = vpop.f32.mrf.mxu1  ;;  %v4025_v28 = vpop.f32.mrf.mxu0 }
 0x566   : > { %v3237_v20 = vadd.f32 %v7074_v19, %v8824_v27  ;;  %4114 = vrot.lane.b32.xlu1 %v6375_v16, %s7864_s22  ;;  %3324 = vrot.lane.b32.xlu0 %v6348_v52, %s7864_s22  ;;  %v6346_v26 = vpack.c.bf16 %v3226_v17, %v3226_v17  ;;  %v4026_v0 = vadd.f32 %v8824_v27, %v4025_v28 }
 0x567   : > { %v3228_v21 = vpop.f32.mrf.mxu1  ;;  %v7154_v47 = vpop.f32.mrf.mxu0  ;;  %v6380_v41 = vpack.c.bf16 %v4034_v32, %v4034_v32 }
 0x568   : > { %v6349_v22 = vpack.c.bf16 %v3237_v20, %v3237_v20  ;;  %v3229_v24 = vadd.f32 %v8824_v27, %v3228_v21  ;;  %v4037_v40 = vadd.f32 %v7154_v47, %v8824_v27  ;;  %v6378_v1 = vpack.c.bf16 %v4026_v0, %v4026_v0 }
 0x569   : > { %v4028_v34 = vpop.f32.mrf.mxu0 }
 0x56a   : > { %3326 = vrot.lane.b32.xlu1 %v6349_v22, %s7864_s22  ;;  %3320 = vrot.lane.b32.xlu0 %v6346_v26, %s7864_s22  ;;  %v6347_v30 = vpack.c.bf16 %v3229_v24, %v3229_v24  ;;  %v6381_v38 = vpack.c.bf16 %v4037_v40, %v4037_v40  ;;  %v4029_v39 = vadd.f32 %v8824_v27, %v4028_v34  ;;  %v8930_v26 = vld [vmem:[#allocation2] ss:$12 sps:$4 sm:$0xff]  }
 0x56c   : > { %v6379_v4 = vpack.c.bf16 %v4029_v39, %v4029_v39 }
 0x56e   : > { %3322 = vrot.lane.b32.xlu1 %v6347_v30, %s7864_s22  ;;  %4116 = vrot.lane.b32.xlu0 %v6376_v31, %s7864_s22 }
 0x571   : > { %v7077_v35 = vpop.f32.mrf.mxu1 }
 0x572   : > { %4118 = vrot.lane.b32.xlu1 %v6377_v3, %s7864_s22  ;;  %4120 = vrot.lane.b32.xlu0 %v6378_v1, %s7864_s22  ;;  %v3250_v46 = vadd.f32 %v7077_v35, %v8824_v27 }
 0x573   : > { %v3241_v36 = vpop.f32.mrf.mxu1  ;;  %v7157_v37 = vpop.f32.mrf.mxu0 }
 0x574   : > { %v3242_v42 = vadd.f32 %v8824_v27, %v3241_v36  ;;  %v6352_v59 = vpack.c.bf16 %v3250_v46, %v3250_v46  ;;  %v4050_v49 = vadd.f32 %v7157_v37, %v8824_v27  ;;  %v8951_v37 = vld [vmem:[#allocation2 + $0x18] ss:$12 sps:$4 sm:$0xff]  }
 0x575   : > { %v7078_v43 = vpop.f32.mrf.mxu1  ;;  %v4041_v48 = vpop.f32.mrf.mxu0 }
 0x576   : > { %4126 = vrot.lane.b32.xlu1 %v6381_v38, %s7864_s22  ;;  %4124 = vrot.lane.b32.xlu0 %v6380_v41, %s7864_s22  ;;  %v6350_v55 = vpack.c.bf16 %v3242_v42, %v3242_v42  ;;  %v3253_v57 = vadd.f32 %v7078_v43, %v8824_v27  ;;  %v4042_v60 = vadd.f32 %v8824_v27, %v4041_v48 }
 0x577   : > { %v3244_v44 = vpop.f32.mrf.mxu1  ;;  %v7158_v56 = vpop.f32.mrf.mxu0  ;;  %v6384_v23 = vpack.c.bf16 %v4050_v49, %v4050_v49 }
 0x578   : > { %v3245_v45 = vadd.f32 %v8824_v27, %v3244_v44  ;;  %v6353_v54 = vpack.c.bf16 %v3253_v57, %v3253_v57  ;;  %v6382_v6 = vpack.c.bf16 %v4042_v60, %v4042_v60  ;;  %v4053_v62 = vadd.f32 %v7158_v56, %v8824_v27 }
 0x579   : > { %v4044_v58 = vpop.f32.mrf.mxu0 }
 0x57a   : > { %4122 = vrot.lane.b32.xlu1 %v6379_v4, %s7864_s22  ;;  %3328 = vrot.lane.b32.xlu0 %v6350_v55, %s7864_s22  ;;  %v6351_v33 = vpack.c.bf16 %v3245_v45, %v3245_v45  ;;  %v4045_v61 = vadd.f32 %v8824_v27, %v4044_v58  ;;  %v6385_v50 = vpack.c.bf16 %v4053_v62, %v4053_v62  ;;  %v8961_v55 = vld [vmem:[#allocation2 + $0x30] ss:$12 sps:$4 sm:$0xff]  }
 0x57c   : > { %v6383_v2 = vpack.c.bf16 %v4045_v61, %v4045_v61 }
 0x57e   : > { %3330 = vrot.lane.b32.xlu1 %v6351_v33, %s7864_s22  ;;  %3332 = vrot.lane.b32.xlu0 %v6352_v59, %s7864_s22 }
 0x582   : > { %3334 = vrot.lane.b32.xlu1 %v6353_v54, %s7864_s22  ;;  %4128 = vrot.lane.b32.xlu0 %v6382_v6, %s7864_s22 }
 0x586   : > { %4130 = vrot.lane.b32.xlu1 %v6383_v2, %s7864_s22  ;;  %4132 = vrot.lane.b32.xlu0 %v6384_v23, %s7864_s22 }
 0x58a   : > { %4134 = vrot.lane.b32.xlu1 %v6385_v50, %s7864_s22  ;;  %s9336_s22 = scalar_lea.hbm %s9441_s29, %s6386_s26 }
 0x5b4   : > { %v7121_v8 = vpop.f32.mrf.mxu1 }
 0x5b5   : > { %v3715_v9 = vadd.f32 %v7121_v8, %v8824_v27 }
 0x5b6   : > { %v3706_v5 = vpop.f32.mrf.mxu1 }
 0x5b7   : > { %v6356_v51 = vpack.c.bf16 %v3715_v9, %v3715_v9  ;;  %v3707_v10 = vadd.f32 %v8824_v27, %v3706_v5  ;;  %v8985_v9 = vld [vmem:[#allocation2 + $0x48] ss:$12 sps:$4 sm:$0xff]  }
 0x5b8   : > { %v7122_v11 = vpop.f32.mrf.mxu1 }
 0x5b9   : > { %3835 = vst.msk [vmem:[#allocation2 + $0x20] sm:$0xf] %vm1292_vm1, %v6356_v51  ;;  %v6354_v12 = vpack.c.bf16 %v3707_v10, %v3707_v10  ;;  %v3718_v13 = vadd.f32 %v7122_v11, %v8824_v27 }
 0x5ba   : > { %v3709_v14 = vpop.f32.mrf.mxu1 }
 0x5bb   : > { %3833 = vst.msk [vmem:[#allocation2 + $0x8] sm:$0xf] %vm1292_vm1, %v6354_v12  ;;  %v6357_v63 = vpack.c.bf16 %v3718_v13, %v3718_v13  ;;  %v3710_v53 = vadd.f32 %v8824_v27, %v3709_v14  ;;  %v3305_v15 = vpop.permute.xlu0 %3304 }
 0x5bc   : > { %3352 = vst.msk [vmem:[#allocation2 + $0x4] sm:$0xf] %vm1917_vm2, %v3305_v15  ;;  %v8995_v15 = vld [vmem:[#allocation2 + $0x60] ss:$12 sps:$4 sm:$0xff]  }
 0x5bd   : > { %3836 = vst.msk [vmem:[#allocation2 + $0x2c] sm:$0xf] %vm1292_vm1, %v6357_v63  ;;  %v6355_v7 = vpack.c.bf16 %v3710_v53, %v3710_v53 }
 0x5bf   : > { %3834 = vst.msk [vmem:[#allocation2 + $0x14] sm:$0xf] %vm1292_vm1, %v6355_v7  ;;  %v3307_v16 = vpop.permute.xlu1 %3306  ;;  %v3309_v52 = vpop.permute.xlu0 %3308 }
 0x5c0   : > { %3353 = vst.msk [vmem:[#allocation2 + $0x10] sm:$0xf] %vm1917_vm2, %v3307_v16  ;;  %3354 = vst.msk [vmem:[#allocation2 + $0x1c] sm:$0xf] %vm1917_vm2, %v3309_v52 }
 0x5c3   : > { %v3311_v17 = vpop.permute.xlu1 %3310  ;;  %v4105_v18 = vpop.permute.xlu0 %4104 }
 0x5c4   : > { %3355 = vst.msk [vmem:[#allocation2 + $0x28] sm:$0xf] %vm1917_vm2, %v3311_v17  ;;  %4152 = vst.msk [vmem:[#allocation2 + $0x8] sm:$0xf] %vm1917_vm2, %v4105_v18  ;;  %v7125_v19 = vpop.f32.mrf.mxu1 }
 0x5c5   : > { %v3731_v20 = vadd.f32 %v7125_v19, %v8824_v27 }
 0x5c6   : > { %v3722_v21 = vpop.f32.mrf.mxu1 }
 0x5c7   : > { %v6360_v22 = vpack.c.bf16 %v3731_v20, %v3731_v20  ;;  %v3723_v24 = vadd.f32 %v8824_v27, %v3722_v21  ;;  %v4107_v25 = vpop.permute.xlu1 %4106  ;;  %v8932_v28 = vld [vmem:[#allocation2 + $0x4] ss:$12 sps:$4 sm:$0xff]  }
 0x5c8   : > { %4153 = vst.msk [vmem:[#allocation2 + $0x14] sm:$0xf] %vm1917_vm2, %v4107_v25  ;;  %v3317_v29 = vpop.permute.xlu0 %3316  ;;  %v7126_v30 = vpop.f32.mrf.mxu1  ;;  %4559 = vmatprep.mubr.bf16.mxu1 %v8932_v28 }
 0x5c9   : > { %3839 = vst.msk [vmem:[#allocation2 + $0x50] sm:$0xf] %vm1292_vm1, %v6360_v22  ;;  %v6358_v31 = vpack.c.bf16 %v3723_v24, %v3723_v24  ;;  %v3734_v0 = vadd.f32 %v7126_v30, %v8824_v27  ;;  %4560 = vmatmul.mubr.bf16.vlgmr.msra.gmra.mxu1 %v8930_v26 }
 0x5ca   : > { %3358 = vst.msk [vmem:[#allocation2 + $0x4c] sm:$0xf] %vm1917_vm2, %v3317_v29  ;;  %v3725_v47 = vpop.f32.mrf.mxu1 }
 0x5cb   : > { %3837 = vst.msk [vmem:[#allocation2 + $0x38] sm:$0xf] %vm1292_vm1, %v6358_v31  ;;  %v6361_v3 = vpack.c.bf16 %v3734_v0, %v3734_v0  ;;  %v3726_v40 = vadd.f32 %v8824_v27, %v3725_v47  ;;  %v8942_v32 = vld [vmem:[#allocation2 + $0x1c] ss:$12 sps:$4 sm:$0xff]   ;;  %v9017_v0 = vld [vmem:[#allocation2 + $0x78] ss:$12 sps:$4 sm:$0xff]  }
 0x5cc   : > { %v3319_v1 = vpop.permute.xlu1 %3318  ;;  %v3313_v34 = vpop.permute.xlu0 %3312  ;;  %4567 = vmatprep.mubr.bf16.mxu1 %v8942_v32 }
 0x5cd   : > { %3840 = vst.msk [vmem:[#allocation2 + $0x5c] sm:$0xf] %vm1292_vm1, %v6361_v3  ;;  %v6359_v35 = vpack.c.bf16 %v3726_v40, %v3726_v40 }
 0x5ce   : > { %3359 = vst.msk [vmem:[#allocation2 + $0x58] sm:$0xf] %vm1917_vm2, %v3319_v1  ;;  %3356 = vst.msk [vmem:[#allocation2 + $0x34] sm:$0xf] %vm1917_vm2, %v3313_v34 }
 0x5cf   : > { %3838 = vst.msk [vmem:[#allocation2 + $0x44] sm:$0xf] %vm1292_vm1, %v6359_v35  ;;  %v8949_v36 = vld [vmem:[#allocation2 + $0x8] ss:$12 sps:$4 sm:$0xff]   ;;  %v9030_v35 = vld [vmem:[#allocation2 + $0x90] ss:$12 sps:$4 sm:$0xff]  }
 0x5d0   : > { %v3315_v38 = vpop.permute.xlu1 %3314  ;;  %v4109_v39 = vpop.permute.xlu0 %4108  ;;  %7175 = vmatprep.mubr.bf16.mxu0 %v8949_v36 }
 0x5d1   : > { %3357 = vst.msk [vmem:[#allocation2 + $0x40] sm:$0xf] %vm1917_vm2, %v3315_v38  ;;  %4154 = vst.msk [vmem:[#allocation2 + $0x20] sm:$0xf] %vm1917_vm2, %v4109_v39  ;;  %4568 = vmatmul.mubr.bf16.gmra.mxu1 %v8951_v37 }
 0x5d4   : > { %v4111_v41 = vpop.permute.xlu1 %4110  ;;  %v4113_v42 = vpop.permute.xlu0 %4112 }
 0x5d5   : > { %4155 = vst.msk [vmem:[#allocation2 + $0x2c] sm:$0xf] %vm1917_vm2, %v4111_v41  ;;  %4156 = vst.msk [vmem:[#allocation2 + $0x38] sm:$0xf] %vm1917_vm2, %v4113_v42  ;;  %v7129_v43 = vpop.f32.mrf.mxu1  ;;  %v8970_v58 = vld [vmem:[#allocation2 + $0x4c] ss:$12 sps:$4 sm:$0xff]  }
 0x5d6   : > { %v3747_v48 = vadd.f32 %v7129_v43, %v8824_v27 }
 0x5d7   : > { %v3738_v44 = vpop.f32.mrf.mxu1 }
 0x5d8   : > { %v6364_v4 = vpack.c.bf16 %v3747_v48, %v3747_v48  ;;  %v3739_v45 = vadd.f32 %v8824_v27, %v3738_v44  ;;  %v4115_v46 = vpop.permute.xlu1 %4114  ;;  %v8963_v56 = vld [vmem:[#allocation2 + $0x34] ss:$12 sps:$4 sm:$0xff]   ;;  %v3325_v57 = vpop.permute.xlu0 %3324 }
 0x5d9   : > { %4157 = vst.msk [vmem:[#allocation2 + $0x44] sm:$0xf] %vm1917_vm2, %v4115_v46  ;;  %v7130_v33 = vpop.f32.mrf.mxu1  ;;  %3362 = vst.msk [vmem:[#allocation2 + $0x7c] sm:$0xf] %vm1917_vm2, %v3325_v57  ;;  %4575 = vmatprep.mubr.bf16.mxu1 %v8963_v56  ;;  %v9044_v48 = vld [vmem:[#allocation2 + $0xa8] ss:$12 sps:$4 sm:$0xff]  }
 0x5da   : > { %3843 = vst.msk [vmem:[#allocation2 + $0x80] sm:$0xf] %vm1292_vm1, %v6364_v4  ;;  %v6362_v59 = vpack.c.bf16 %v3739_v45, %v3739_v45  ;;  %v3750_v60 = vadd.f32 %v7130_v33, %v8824_v27  ;;  %4576 = vmatmul.mubr.bf16.gmra.mxu1 %v8961_v55  ;;  %v7644_v4 = vld [vmem:[#allocation8 + $0x18] sm:$0xff]   ;;  %v7645_v45 = vld [vmem:[#allocation8 + $0x10] sm:$0xff]   ;;  %v7646_v46 = vld [vmem:[#allocation8 + $0x8] sm:$0xff]  }
 0x5db   : > { %v3741_v54 = vpop.f32.mrf.mxu1  ;;  %4583 = vmatprep.mubr.bf16.mxu1 %v8970_v58  ;;  %7191 = vmatprep.subr.bf16.mxu0 %v7644_v4  ;;  %v7647_v57 = vld [vmem:[#allocation8] sm:$0xff]   ;;  %v7648_v33 = vld [vmem:[%s9399_s15 + $0x78] sm:$0xff]  }
 0x5dc   : > { %3841 = vst.msk [vmem:[#allocation2 + $0x68] sm:$0xf] %vm1292_vm1, %v6362_v59  ;;  %v6365_v61 = vpack.c.bf16 %v3750_v60, %v3750_v60  ;;  %v3742_v49 = vadd.f32 %v8824_v27, %v3741_v54  ;;  %v3327_v6 = vpop.permute.xlu1 %3326  ;;  %v8976_v62 = vld [vmem:[#allocation2 + $0x20] ss:$12 sps:$4 sm:$0xff]   ;;  %v3321_v2 = vpop.permute.xlu0 %3320 }
 0x5dd   : > { %3363 = vst.msk [vmem:[#allocation2 + $0x88] sm:$0xf] %vm1917_vm2, %v3327_v6  ;;  %3360 = vst.msk [vmem:[#allocation2 + $0x64] sm:$0xf] %vm1917_vm2, %v3321_v2  ;;  %7176 = vmatmul.mubr.bf16.vlgmr.msra.gmra.mxu0 %v8976_v62 }
 0x5de   : > { %3844 = vst.msk [vmem:[#allocation2 + $0x8c] sm:$0xf] %vm1292_vm1, %v6365_v61  ;;  %v6363_v23 = vpack.c.bf16 %v3742_v49, %v3742_v49  ;;  %7192 = vmatpush3.bf16.msra.mxu0 %v7644_v4 }
 0x5df   : > { %7193 = vmatprep.subr.bf16.mxu0 %v7645_v45 }
 0x5e0   : > { %3842 = vst.msk [vmem:[#allocation2 + $0x74] sm:$0xf] %vm1292_vm1, %v6363_v23  ;;  %v3323_v50 = vpop.permute.xlu1 %3322  ;;  %v8983_v8 = vld [vmem:[#allocation2 + $0x38] ss:$12 sps:$4 sm:$0xff]   ;;  %v4117_v5 = vpop.permute.xlu0 %4116 }
 0x5e1   : > { %3361 = vst.msk [vmem:[#allocation2 + $0x70] sm:$0xf] %vm1917_vm2, %v3323_v50  ;;  %4158 = vst.msk [vmem:[#allocation2 + $0x50] sm:$0xf] %vm1917_vm2, %v4117_v5  ;;  %7179 = vmatprep.mubr.bf16.mxu0 %v8983_v8  ;;  %v7672_v5 = vld [vmem:[%s9399_s15 + $0xd8] sm:$0xff]  }
 0x5e2   : > { %4584 = vmatmul.mubr.bf16.gmra.mxu1 %v8985_v9  ;;  %7194 = vmatpush3.bf16.msra.mxu0 %v7645_v45 }
 0x5e3   : > { %7195 = vmatprep.subr.bf16.mxu0 %v7646_v46  ;;  %7215 = vmatprep.subr.bf16.mxu1 %v7672_v5 }
 0x5e4   : > { %v4119_v51 = vpop.permute.xlu1 %4118  ;;  %v4121_v10 = vpop.permute.xlu0 %4120  ;;  %v9004_v19 = vld [vmem:[#allocation2 + $0x7c] ss:$12 sps:$4 sm:$0xff]   ;;  %7216 = vmatpush3.bf16.msra.mxu1 %v7672_v5  ;;  %v7651_v5 = vld [vmem:[%s9399_s15 + $0x30] sm:$0xff]  }
 0x5e5   : > { %4159 = vst.msk [vmem:[#allocation2 + $0x5c] sm:$0xf] %vm1917_vm2, %v4119_v51  ;;  %v7133_v11 = vpop.f32.mrf.mxu1  ;;  %4160 = vst.msk [vmem:[#allocation2 + $0x68] sm:$0xf] %vm1917_vm2, %v4121_v10  ;;  %v7673_v51 = vld [vmem:[%s9399_s15 + $0xd0] sm:$0xff]  }
 0x5e6   : > { %v3763_v12 = vadd.f32 %v7133_v11, %v8824_v27  ;;  %7196 = vmatpush3.bf16.msra.mxu0 %v7646_v46  ;;  %7217 = vmatprep.subr.bf16.mxu1 %v7673_v51 }
 0x5e7   : > { %v3754_v13 = vpop.f32.mrf.mxu1  ;;  %7197 = vmatprep.subr.bf16.mxu0 %v7647_v57 }
 0x5e8   : > { %v6368_v14 = vpack.c.bf16 %v3763_v12, %v3763_v12  ;;  %v3755_v63 = vadd.f32 %v8824_v27, %v3754_v13  ;;  %v4127_v53 = vpop.permute.xlu1 %4126  ;;  %v8997_v7 = vld [vmem:[#allocation2 + $0x64] ss:$12 sps:$4 sm:$0xff]   ;;  %v4125_v16 = vpop.permute.xlu0 %4124  ;;  %7218 = vmatpush3.bf16.msra.mxu1 %v7673_v51 }
 0x5e9   : > { %4163 = vst.msk [vmem:[#allocation2 + $0x8c] sm:$0xf] %vm1917_vm2, %v4127_v53  ;;  %v7134_v52 = vpop.f32.mrf.mxu1  ;;  %4162 = vst.msk [vmem:[#allocation2 + $0x80] sm:$0xf] %vm1917_vm2, %v4125_v16  ;;  %4591 = vmatprep.mubr.bf16.mxu1 %v8997_v7 }
 0x5ea   : > { %3847 = vst.msk [vmem:[#allocation2 + $0xb0] sm:$0xf] %vm1292_vm1, %v6368_v14  ;;  %v6366_v17 = vpack.c.bf16 %v3755_v63, %v3755_v63  ;;  %v3766_v18 = vadd.f32 %v7134_v52, %v8824_v27  ;;  %4592 = vmatmul.mubr.bf16.gmra.mxu1 %v8995_v15  ;;  %7198 = vmatpush3.bf16.msra.mxu0 %v7647_v57  ;;  %v9063_v14 = vld [vmem:[%s9396_s12] ss:$0 sm:$0xff] }
 0x5eb   : > { %v3757_v20 = vpop.f32.mrf.mxu1  ;;  %4599 = vmatprep.mubr.bf16.mxu1 %v9004_v19  ;;  %6811 = vmatprep.subr.bf16.mxu0 %v7648_v33 }
 0x5ec   : > { %3845 = vst.msk [vmem:[#allocation2 + $0x98] sm:$0xf] %vm1292_vm1, %v6366_v17  ;;  %v6369_v21 = vpack.c.bf16 %v3766_v18, %v3766_v18  ;;  %v3758_v22 = vadd.f32 %v8824_v27, %v3757_v20  ;;  %v4123_v24 = vpop.permute.xlu1 %4122  ;;  %v9010_v25 = vld [vmem:[#allocation2 + $0x50] ss:$12 sps:$4 sm:$0xff]   ;;  %v3329_v29 = vpop.permute.xlu0 %3328  ;;  %v7674_v17 = vld [vmem:[%s9399_s15 + $0xc8] sm:$0xff]  }
 0x5ed   : > { %4161 = vst.msk [vmem:[#allocation2 + $0x74] sm:$0xf] %vm1917_vm2, %v4123_v24  ;;  %3364 = vst.msk [vmem:[#allocation2 + $0x94] sm:$0xf] %vm1917_vm2, %v3329_v29  ;;  %7180 = vmatmul.mubr.bf16.gmra.mxu0 %v9010_v25  ;;  %7219 = vmatprep.subr.bf16.mxu1 %v7674_v17 }
 0x5ee   : > { %3848 = vst.msk [vmem:[#allocation2 + $0xbc] sm:$0xf] %vm1292_vm1, %v6369_v21  ;;  %v6367_v30 = vpack.c.bf16 %v3758_v22, %v3758_v22  ;;  %7220 = vmatpush3.bf16.msra.mxu1 %v7674_v17  ;;  %v7653_v17 = vld [vmem:[%s9399_s15 + $0x28] sm:$0xff]  }
 0x5f0   : > { %3846 = vst.msk [vmem:[#allocation2 + $0xa4] sm:$0xf] %vm1292_vm1, %v6367_v30  ;;  %v3331_v31 = vpop.permute.xlu1 %3330  ;;  %v3333_v27 = vpop.permute.xlu0 %3332  ;;  %v9025_v1 = vld [vmem:[#allocation2 + $0x80] ss:$12 sps:$4 sm:$0xff]  }
 0x5f1   : > { %3365 = vst.msk [vmem:[#allocation2 + $0xa0] sm:$0xf] %vm1917_vm2, %v3331_v31  ;;  %3366 = vst.msk [vmem:[#allocation2 + $0xac] sm:$0xf] %vm1917_vm2, %v3333_v27 }
 0x5f2   : > { %4600 = vmatmul.mubr.bf16.gmra.mxu1 %v9017_v0 }
 0x5f4   : > { %v3335_v47 = vpop.permute.xlu1 %3334  ;;  %v9022_v3 = vld [vmem:[#allocation2 + $0x68] ss:$12 sps:$4 sm:$0xff]   ;;  %v4129_v40 = vpop.permute.xlu0 %4128 }
 0x5f5   : > { %3367 = vst.msk [vmem:[#allocation2 + $0xb8] sm:$0xf] %vm1917_vm2, %v3335_v47  ;;  %4164 = vst.msk [vmem:[#allocation2 + $0x98] sm:$0xf] %vm1917_vm2, %v4129_v40  ;;  %7183 = vmatprep.mubr.bf16.mxu0 %v9022_v3 }
 0x5f6   : > { %7184 = vmatmul.mubr.bf16.gmra.mxu0 %v9025_v1 }
 0x5f8   : > { %v4131_v34 = vpop.permute.xlu1 %4130  ;;  %v9032_v38 = vld [vmem:[#allocation2 + $0x94] ss:$12 sps:$4 sm:$0xff]   ;;  %v4133_v39 = vpop.permute.xlu0 %4132 }
 0x5f9   : > { %4165 = vst.msk [vmem:[#allocation2 + $0xa4] sm:$0xf] %vm1917_vm2, %v4131_v34  ;;  %4166 = vst.msk [vmem:[#allocation2 + $0xb0] sm:$0xf] %vm1917_vm2, %v4133_v39  ;;  %4607 = vmatprep.mubr.bf16.mxu1 %v9032_v38 }
 0x5fa   : > { %4608 = vmatmul.mubr.bf16.gmra.mxu1 %v9030_v35 }
 0x5fc   : > { %v4135_v41 = vpop.permute.xlu1 %4134  ;;  %v9038_v42 = vld [vmem:[#allocation2 + $0xac] ss:$12 sps:$4 sm:$0xff]  }
 0x5fd   : > { %4167 = vst.msk [vmem:[#allocation2 + $0xbc] sm:$0xf] %vm1917_vm2, %v4135_v41  ;;  %4615 = vmatprep.mubr.bf16.mxu1 %v9038_v42 }
 0x600   : > { %v9042_v43 = vld [vmem:[#allocation2 + $0x98] ss:$12 sps:$4 sm:$0xff]  }
 0x601   : > { %7187 = vmatprep.mubr.bf16.mxu0 %v9042_v43 }
 0x602   : > { %4616 = vmatmul.mubr.bf16.gmra.mxu1 %v9044_v48 }
 0x604   : > { %v9048_v44 = vld [vmem:[#allocation2 + $0xb0] ss:$12 sps:$4 sm:$0xff]  }
 0x605   : > { %7188 = vmatmul.mubr.bf16.gmra.mxu0 %v9048_v44 }
 0x689   : > { %v6723_v59 = vpop.f32.mrf.mxu1 }
 0x68b   : > { %v6724_v60 = vpop.f32.mrf.mxu1 }
 0x68c   : > { %v6725_v10 = vadd.f32 %v6724_v60, %v6723_v59  ;;  %v7649_v60 = vld [vmem:[%s9399_s15 + $0x38] sm:$0xff]  }
 0x68d   : > { %v6726_v54 = vpop.f32.mrf.mxu1 }
 0x68e   : > { %v4562_v18 = vadd.f32 %v6725_v10, %v9063_v14 }
 0x68f   : > { %v6727_v61 = vpop.f32.mrf.mxu1 }
 0x690   : > { %v6728_v53 = vadd.f32 %v6727_v61, %v6726_v54  ;;  %v7650_v61 = vld [vmem:[%s9399_s15 + $0x70] sm:$0xff]  }
 0x691   : > { %v6729_v49 = vpop.f32.mrf.mxu1 }
 0x692   : > { %v4565_v27 = vadd.f32 %v6728_v53, %v9063_v14 }
 0x693   : > { %v6730_v6 = vpop.f32.mrf.mxu1 }
 0x694   : > { %v6731_v13 = vadd.f32 %v6730_v6, %v6729_v49 }
 0x695   : > { %v6732_v2 = vpop.f32.mrf.mxu1 }
 0x696   : > { %v4570_v22 = vadd.f32 %v6731_v13, %v9063_v14 }
 0x697   : > { %v6733_v23 = vpop.f32.mrf.mxu1 }
 0x698   : > { %v6734_v11 = vadd.f32 %v6733_v23, %v6732_v2 }
 0x69a   : > { %v6735_v50 = vpop.f32.mrf.mxu1  ;;  %v4573_v21 = vadd.f32 %v6734_v11, %v9063_v14  ;;  %v7652_v11 = vld [vmem:[%s9399_s15 + $0x68] sm:$0xff]  }
 0x69c   : > { %v6736_v12 = vpop.f32.mrf.mxu1 }
 0x69d   : > { %v7177_v63 = vpop.f32.mrf.mxu0  ;;  %v6737_v6 = vadd.f32 %v6736_v12, %v6735_v50 }
 0x69e   : > { %v6738_v16 = vpop.f32.mrf.mxu1  ;;  %v4667_v47 = vadd.f32 %v7177_v63, %v4570_v22 }
 0x69f   : > { %v4658_v52 = vpop.f32.mrf.mxu0 }
 0x6a0   : > { %v6739_v20 = vpop.f32.mrf.mxu1  ;;  %v4659_v29 = vadd.f32 %v4658_v52, %v4562_v18  ;;  %v4723_v57 = vmax.f32 %v4667_v47, 0.0  ;;  %v4578_v52 = vadd.f32 %v6737_v6, %v9063_v14 }
 0x6a1   : > { %v7178_v24 = vpop.f32.mrf.mxu0  ;;  %v6740_v13 = vadd.f32 %v6739_v20, %v6738_v16  ;;  %v7654_v16 = vld [vmem:[%s9399_s15 + $0x60] sm:$0xff]  }
 0x6a2   : > { %v4670_v30 = vadd.f32 %v7178_v24, %v4573_v21  ;;  %v6741_v31 = vpop.f32.mrf.mxu1  ;;  %v4721_v4 = vmax.f32 %v4659_v29, 0.0 }
 0x6a3   : > { %v4661_v40 = vpop.f32.mrf.mxu0  ;;  %v4581_v29 = vadd.f32 %v6740_v13, %v9063_v14 }
 0x6a4   : > { %v4662_v34 = vadd.f32 %v4661_v40, %v4565_v27  ;;  %v6742_v39 = vpop.f32.mrf.mxu1  ;;  %v4724_v41 = vmax.f32 %v4670_v30, 0.0  ;;  %v7655_v40 = vld [vmem:[%s9399_s15 + $0x20] sm:$0xff]  }
 0x6a5   : > { %v6743_v51 = vadd.f32 %v6742_v39, %v6741_v31 }
 0x6a6   : > { %v4722_v45 = vmax.f32 %v4662_v34, 0.0  ;;  %v6744_v46 = vpop.f32.mrf.mxu1  ;;  %v4746_v54 = vpack.c.bf16 %v4724_v41, %v4723_v57 }
 0x6a7   : > { %v4586_v18 = vadd.f32 %v6743_v51, %v9063_v14 }
 0x6a8   : > { %v4745_v33 = vpack.c.bf16 %v4722_v45, %v4721_v4  ;;  %v6745_v59 = vpop.f32.mrf.mxu1  ;;  %v7656_v4 = vld [vmem:[%s9399_s15 + $0x58] sm:$0xff]  }
 0x6a9   : > { %v6746_v2 = vadd.f32 %v6745_v59, %v6744_v46 }
 0x6aa   : > { %v6747_v49 = vpop.f32.mrf.mxu1  ;;  %7199 = vmatprep.mubr.msk.bf16.mxu0 %vm1106_vm0, %v4745_v33 }
 0x6ab   : > { %7200 = vmatmul.mubr.msk.bf16.vlgmr.msra.gmra.mxu0 %vm1106_vm0, %v4746_v54  ;;  %v4589_v12 = vadd.f32 %v6746_v2, %v9063_v14 }
 0x6ac   : > { %v6748_v23 = vpop.f32.mrf.mxu1  ;;  %6812 = vmatpush3.bf16.msra.mxu0 %v7649_v60 }
 0x6ad   : > { %v7181_v10 = vpop.f32.mrf.mxu0  ;;  %6813 = vmatprep.subr.bf16.mxu0 %v7650_v61  ;;  %v6749_v34 = vadd.f32 %v6748_v23, %v6747_v49  ;;  %v7657_v49 = vld [vmem:[%s9399_s15 + $0x18] sm:$0xff]  }
 0x6ae   : > { %v6750_v63 = vpop.f32.mrf.mxu1  ;;  %v4683_v30 = vadd.f32 %v7181_v10, %v4586_v18  ;;  %v7658_v10 = vld [vmem:[%s9399_s15 + $0x50] sm:$0xff]  }
 0x6af   : > { %v4674_v53 = vpop.f32.mrf.mxu0  ;;  %v4594_v51 = vadd.f32 %v6749_v34, %v9063_v14  ;;  %v7659_v18 = vld [vmem:[%s9399_s15 + $0x10] sm:$0xff]   ;;  %v7661_v34 = vld [vmem:[%s9399_s15 + $0x8] sm:$0xff]  }
 0x6b0   : > { %v6751_v50 = vpop.f32.mrf.mxu1  ;;  %6814 = vmatpush3.bf16.msra.mxu0 %v7651_v5  ;;  %v4675_v20 = vadd.f32 %v4674_v53, %v4578_v52  ;;  %v4727_v59 = vmax.f32 %v4683_v30, 0.0 }
 0x6b1   : > { %v7182_v21 = vpop.f32.mrf.mxu0  ;;  %6815 = vmatprep.subr.bf16.mxu0 %v7652_v11  ;;  %v6752_v60 = vadd.f32 %v6751_v50, %v6750_v63 }
 0x6b2   : > { %v4686_v22 = vadd.f32 %v7182_v21, %v4589_v12  ;;  %v6753_v24 = vpop.f32.mrf.mxu1  ;;  %v4725_v45 = vmax.f32 %v4675_v20, 0.0  ;;  %v7660_v20 = vld [vmem:[%s9399_s15 + $0x48] sm:$0xff]  }
 0x6b3   : > { %v4677_v31 = vpop.f32.mrf.mxu0  ;;  %v4597_v50 = vadd.f32 %v6752_v60, %v9063_v14 }
 0x6b4   : > { %v4678_v27 = vadd.f32 %v4677_v31, %v4581_v29  ;;  %v6754_v47 = vpop.f32.mrf.mxu1  ;;  %6816 = vmatpush3.bf16.msra.mxu0 %v7653_v17  ;;  %v4728_v39 = vmax.f32 %v4686_v22, 0.0 }
 0x6b5   : > { %v6755_v41 = vadd.f32 %v6754_v47, %v6753_v24  ;;  %6817 = vmatprep.subr.bf16.mxu0 %v7654_v16 }
 0x6b6   : > { %v4726_v46 = vmax.f32 %v4678_v27, 0.0  ;;  %v6756_v57 = vpop.f32.mrf.mxu1  ;;  %v7185_v33 = vpop.f32.mrf.mxu0  ;;  %v4748_v23 = vpack.c.bf16 %v4728_v39, %v4727_v59 }
 0x6b7   : > { %v4602_v54 = vadd.f32 %v6755_v41, %v9063_v14  ;;  %v7662_v41 = vld [vmem:[%s9399_s15 + $0x40] sm:$0xff]  }
 0x6b8   : > { %v4747_v61 = vpack.c.bf16 %v4726_v46, %v4725_v45  ;;  %v6757_v6 = vpop.f32.mrf.mxu1  ;;  %v4690_v2 = vpop.f32.mrf.mxu0  ;;  %6818 = vmatpush3.bf16.msra.mxu0 %v7655_v40 }
 0x6b9   : > { %v6758_v5 = vadd.f32 %v6757_v6, %v6756_v57  ;;  %6819 = vmatprep.subr.bf16.mxu0 %v7656_v4  ;;  %v4699_v63 = vadd.f32 %v7185_v33, %v4602_v54  ;;  %v4691_v53 = vadd.f32 %v4690_v2, %v4594_v51  ;;  %v7663_v33 = vld [vmem:[%s9399_s15] sm:$0xff]   ;;  %v9134_v54 = vld [vmem:[%s9399_s15 + $0xb8] sm:$0xff]  }
 0x6ba   : > { %v6759_v11 = vpop.f32.mrf.mxu1  ;;  %v7186_v13 = vpop.f32.mrf.mxu0  ;;  %7203 = vmatprep.mubr.msk.bf16.mxu0 %vm1106_vm0, %v4747_v61 }
 0x6bb   : > { %v4605_v52 = vadd.f32 %v6758_v5, %v9063_v14  ;;  %7204 = vmatmul.mubr.msk.bf16.gmra.mxu0 %vm1106_vm0, %v4748_v23  ;;  %v4731_v24 = vmax.f32 %v4699_v63, 0.0  ;;  %v4729_v29 = vmax.f32 %v4691_v53, 0.0 }
 0x6bc   : > { %v6760_v12 = vpop.f32.mrf.mxu1  ;;  %v4693_v17 = vpop.f32.mrf.mxu0  ;;  %6820 = vmatpush3.bf16.msra.mxu0 %v7657_v49 }
 0x6bd   : > { %v4702_v21 = vadd.f32 %v7186_v13, %v4605_v52  ;;  %v4694_v16 = vadd.f32 %v4693_v17, %v4597_v50  ;;  %6821 = vmatprep.subr.bf16.mxu0 %v7658_v10  ;;  %v6761_v4 = vadd.f32 %v6760_v12, %v6759_v11 }
 0x6be   : > { %v6762_v22 = vpop.f32.mrf.mxu1 }
 0x6bf   : > { %v4732_v30 = vmax.f32 %v4702_v21, 0.0  ;;  %v4730_v31 = vmax.f32 %v4694_v16, 0.0  ;;  %v4610_v2 = vadd.f32 %v6761_v4, %v9063_v14 }
 0x6c0   : > { %v6763_v27 = vpop.f32.mrf.mxu1  ;;  %6822 = vmatpush3.bf16.msra.mxu0 %v7659_v18 }
 0x6c1   : > { %v4750_v47 = vpack.c.bf16 %v4732_v30, %v4731_v24  ;;  %v4749_v40 = vpack.c.bf16 %v4730_v31, %v4729_v29  ;;  %6823 = vmatprep.subr.bf16.mxu0 %v7660_v20  ;;  %v6764_v59 = vadd.f32 %v6763_v27, %v6762_v22  ;;  %v7665_v20 = vld [vmem:[%s9399_s15 + $0xb0] sm:$0xff]  }
 0x6c2   : > { %v6765_v39 = vpop.f32.mrf.mxu1 }
 0x6c3   : > { %7207 = vmatprep.mubr.msk.bf16.mxu0 %vm1106_vm0, %v4749_v40  ;;  %v4613_v10 = vadd.f32 %v6764_v59, %v9063_v14 }
 0x6c4   : > { %v6766_v45 = vpop.f32.mrf.mxu1  ;;  %7208 = vmatmul.mubr.msk.bf16.gmra.mxu0 %vm1106_vm0, %v4750_v47 }
 0x6c5   : > { %v6767_v46 = vadd.f32 %v6766_v45, %v6765_v39  ;;  %v7189_v57 = vpop.f32.mrf.mxu0  ;;  %6824 = vmatpush3.bf16.msra.mxu0 %v7661_v34 }
 0x6c6   : > { %v6768_v60 = vpop.f32.mrf.mxu1  ;;  %6825 = vmatprep.subr.bf16.mxu0 %v7662_v41 }
 0x6c7   : > { %v4618_v61 = vadd.f32 %v6767_v46, %v9063_v14  ;;  %v4706_v6 = vpop.f32.mrf.mxu0 }
 0x6c8   : > { %v6769_v49 = vpop.f32.mrf.mxu1  ;;  %v4707_v51 = vadd.f32 %v4706_v6, %v4610_v2 }
 0x6c9   : > { %v6770_v23 = vadd.f32 %v6769_v49, %v6768_v60  ;;  %v7190_v5 = vpop.f32.mrf.mxu0  ;;  %6826 = vmatpush3.bf16.msra.mxu0 %v7663_v33  ;;  %v4715_v11 = vadd.f32 %v7189_v57, %v4618_v61 }
 0x6ca   : > { %7239 = vmatprep.subr.bf16.mxu0 %v9134_v54  ;;  %v4733_v50 = vmax.f32 %v4707_v51, 0.0 }
 0x6cb   : > { %v4621_v13 = vadd.f32 %v6770_v23, %v9063_v14  ;;  %v4709_v63 = vpop.f32.mrf.mxu0  ;;  %v4735_v17 = vmax.f32 %v4715_v11, 0.0  ;;  %v7666_v14 = vld [vmem:[%s9399_s15 + $0xa8] sm:$0xff]  }
 0x6cc   : > { %v4710_v53 = vadd.f32 %v4709_v63, %v4613_v10 }
 0x6cd   : > { %v4718_v52 = vadd.f32 %v7190_v5, %v4621_v13 }
 0x6ce   : > { %v4734_v12 = vmax.f32 %v4710_v53, 0.0 }
 0x6cf   : > { %v4736_v18 = vmax.f32 %v4718_v52, 0.0 }
 0x6d0   : > { %v4751_v21 = vpack.c.bf16 %v4734_v12, %v4733_v50 }
 0x6d1   : > { %v4752_v16 = vpack.c.bf16 %v4736_v18, %v4735_v17 }
 0x6d2   : > { %7211 = vmatprep.mubr.msk.bf16.mxu0 %vm1106_vm0, %v4751_v21 }
 0x6d3   : > { %7212 = vmatmul.mubr.msk.bf16.gmra.mxu0 %vm1106_vm0, %v4752_v16 }
 0x6d4   : > { %5290 = vmatprep.mubr.bf16.mxu0 %v8932_v28  ;;  %v9156_v28 = vld [vmem:[%s9399_s15 + $0xa0] sm:$0xff]  }
 0x6db   : > { %5291 = vmatmul.mubr.bf16.vlgmr.msra.gmra.mxu0 %v8930_v26  ;;  %v9164_v26 = vld [vmem:[%s9399_s15 + $0x98] sm:$0xff]  }
 0x6dc   : > { %5298 = vmatprep.mubr.bf16.mxu0 %v8942_v32  ;;  %7240 = vmatpush3.bf16.msra.mxu0 %v9134_v54  ;;  %v9171_v32 = vld [vmem:[%s9399_s15 + $0x90] sm:$0xff]  }
 0x6dd   : > { %7241 = vmatprep.subr.bf16.mxu0 %v7665_v20 }
 0x6e0   : > { %7242 = vmatpush3.bf16.msra.mxu0 %v7665_v20 }
 0x6e1   : > { %7243 = vmatprep.subr.bf16.mxu0 %v7666_v14 }
 0x6e3   : > { %5299 = vmatmul.mubr.bf16.gmra.mxu0 %v8951_v37  ;;  %v9180_v37 = vld [vmem:[%s9399_s15 + $0x88] sm:$0xff]  }
 0x6e4   : > { %5306 = vmatprep.mubr.bf16.mxu0 %v8963_v56  ;;  %7244 = vmatpush3.bf16.msra.mxu0 %v7666_v14  ;;  %v9187_v56 = vld [vmem:[%s9399_s15 + $0x80] sm:$0xff]  }
 0x6e5   : > { %7245 = vmatprep.subr.bf16.mxu0 %v9156_v28 }
 0x6e8   : > { %7246 = vmatpush3.bf16.msra.mxu0 %v9156_v28 }
 0x6e9   : > { %7247 = vmatprep.subr.bf16.mxu0 %v9164_v26 }
 0x6eb   : > { %5307 = vmatmul.mubr.bf16.gmra.mxu0 %v8961_v55  ;;  %v7675_v55 = vld [vmem:[%s9399_s15 + $0xc0] sm:$0xff]  }
 0x6ec   : > { %5314 = vmatprep.mubr.bf16.mxu0 %v8970_v58  ;;  %7248 = vmatpush3.bf16.msra.mxu0 %v9164_v26 }
 0x6ed   : > { %7249 = vmatprep.subr.bf16.mxu0 %v9171_v32  ;;  %7221 = vmatprep.subr.bf16.mxu1 %v7675_v55 }
 0x6ee   : > { %7222 = vmatpush3.bf16.msra.mxu1 %v7675_v55 }
 0x6ef   : > { %7295 = vmatprep.subr.bf16.mxu1 %v9134_v54 }
 0x6f0   : > { %7250 = vmatpush3.bf16.msra.mxu0 %v9171_v32 }
 0x6f1   : > { %7251 = vmatprep.subr.bf16.mxu0 %v9180_v37 }
 0x6f3   : > { %5315 = vmatmul.mubr.bf16.gmra.mxu0 %v8985_v9 }
 0x6f4   : > { %5322 = vmatprep.mubr.bf16.mxu0 %v8997_v7  ;;  %7252 = vmatpush3.bf16.msra.mxu0 %v9180_v37 }
 0x6f5   : > { %7253 = vmatprep.subr.bf16.mxu0 %v9187_v56 }
 0x6f8   : > { %7254 = vmatpush3.bf16.msra.mxu0 %v9187_v56 }
 0x6fb   : > { %5323 = vmatmul.mubr.bf16.gmra.mxu0 %v8995_v15  ;;  %v6219_v15 = vld [vmem:[%s9398_s14] ss:$0 sm:$0xff] }
 0x6fc   : > { %5330 = vmatprep.mubr.bf16.mxu0 %v9004_v19 }
 0x703   : > { %5331 = vmatmul.mubr.bf16.gmra.mxu0 %v9017_v0 }
 0x704   : > { %5338 = vmatprep.mubr.bf16.mxu0 %v9032_v38 }
 0x70b   : > { %5339 = vmatmul.mubr.bf16.gmra.mxu0 %v9030_v35 }
 0x70c   : > { %5346 = vmatprep.mubr.bf16.mxu0 %v9038_v42 }
 0x713   : > { %5347 = vmatmul.mubr.bf16.gmra.mxu0 %v9044_v48 }
 0x714   : > { %7255 = vmatprep.mubr.bf16.mxu0 %v8949_v36 }
 0x71b   : > { %7256 = vmatmul.mubr.bf16.vlgmr.msra.gmra.mxu0 %v8976_v62 }
 0x76b   : > { %v7201_v58 = vpop.f32.mrf.mxu0 }
 0x76c   : > { %v4851_v35 = vadd.f32 %v7201_v58, %v6219_v15 }
 0x76d   : > { %v4842_v9 = vpop.f32.mrf.mxu0 }
 0x76e   : > { %v4843_v38 = vadd.f32 %v6219_v15, %v4842_v9 }
 0x76f   : > { %v7202_v7 = vpop.f32.mrf.mxu0 }
 0x770   : > { %v4854_v19 = vadd.f32 %v7202_v7, %v6219_v15 }
 0x771   : > { %v4845_v0 = vpop.f32.mrf.mxu0 }
 0x772   : > { %v4846_v22 = vadd.f32 %v6219_v15, %v4845_v0  ;;  %v4962_v42 = vpack.c.bf16 %v4854_v19, %v4851_v35  ;;  %v7678_v0 = vld [vmem:[#allocation9 + $0x8] sm:$0xff]   ;;  %v7679_v35 = vld [vmem:[#allocation9] sm:$0xff]  }
 0x774   : > { %v4961_v24 = vpack.c.bf16 %v4846_v22, %v4843_v38 }
 0x776   : > { %7223 = vmatprep.mubr.msk.bf16.mxu1 %vm1106_vm0, %v4961_v24 }
 0x777   : > { %7224 = vmatmul.mubr.msk.bf16.vlgmr.msra.gmra.mxu1 %vm1106_vm0, %v4962_v42 }
 0x778   : > { %7303 = vmatpush3.bf16.msra.mxu1 %v9134_v54 }
 0x779   : > { %7296 = vmatprep.subr.bf16.mxu1 %v7665_v20 }
 0x77b   : > { %v7205_v36 = vpop.f32.mrf.mxu0 }
 0x77c   : > { %7304 = vmatpush3.bf16.msra.mxu1 %v7665_v20  ;;  %v4867_v47 = vadd.f32 %v7205_v36, %v6219_v15 }
 0x77d   : > { %v4858_v62 = vpop.f32.mrf.mxu0  ;;  %7297 = vmatprep.subr.bf16.mxu1 %v7666_v14 }
 0x77e   : > { %v4859_v31 = vadd.f32 %v6219_v15, %v4858_v62 }
 0x77f   : > { %v7206_v48 = vpop.f32.mrf.mxu0 }
 0x780   : > { %7305 = vmatpush3.bf16.msra.mxu1 %v7666_v14  ;;  %v4870_v29 = vadd.f32 %v7206_v48, %v6219_v15 }
 0x781   : > { %v4861_v30 = vpop.f32.mrf.mxu0  ;;  %7298 = vmatprep.subr.bf16.mxu1 %v9156_v28 }
 0x782   : > { %v4862_v27 = vadd.f32 %v6219_v15, %v4861_v30  ;;  %v4964_v39 = vpack.c.bf16 %v4870_v29, %v4867_v47 }
 0x784   : > { %v4963_v40 = vpack.c.bf16 %v4862_v27, %v4859_v31  ;;  %v7209_v34 = vpop.f32.mrf.mxu0  ;;  %7306 = vmatpush3.bf16.msra.mxu1 %v9156_v28 }
 0x785   : > { %7299 = vmatprep.subr.bf16.mxu1 %v9164_v26  ;;  %v4883_v59 = vadd.f32 %v7209_v34, %v6219_v15 }
 0x786   : > { %v4874_v41 = vpop.f32.mrf.mxu0  ;;  %7227 = vmatprep.mubr.msk.bf16.mxu1 %vm1106_vm0, %v4963_v40 }
 0x787   : > { %7228 = vmatmul.mubr.msk.bf16.gmra.mxu1 %vm1106_vm0, %v4964_v39  ;;  %v4875_v57 = vadd.f32 %v6219_v15, %v4874_v41 }
 0x788   : > { %v7210_v4 = vpop.f32.mrf.mxu0  ;;  %7307 = vmatpush3.bf16.msra.mxu1 %v9164_v26 }
 0x789   : > { %7300 = vmatprep.subr.bf16.mxu1 %v9171_v32  ;;  %v4886_v45 = vadd.f32 %v7210_v4, %v6219_v15 }
 0x78a   : > { %v4877_v46 = vpop.f32.mrf.mxu0 }
 0x78b   : > { %v4878_v33 = vadd.f32 %v6219_v15, %v4877_v46  ;;  %v4966_v54 = vpack.c.bf16 %v4886_v45, %v4883_v59 }
 0x78c   : > { %7308 = vmatpush3.bf16.msra.mxu1 %v9171_v32 }
 0x78d   : > { %v4965_v60 = vpack.c.bf16 %v4878_v33, %v4875_v57  ;;  %7301 = vmatprep.subr.bf16.mxu1 %v9180_v37 }
 0x78f   : > { %7231 = vmatprep.mubr.msk.bf16.mxu1 %vm1106_vm0, %v4965_v60 }
 0x790   : > { %7232 = vmatmul.mubr.msk.bf16.gmra.mxu1 %vm1106_vm0, %v4966_v54 }
 0x791   : > { %7309 = vmatpush3.bf16.msra.mxu1 %v9180_v37 }
 0x792   : > { %7302 = vmatprep.subr.bf16.mxu1 %v9187_v56 }
 0x793   : > { %v7213_v61 = vpop.f32.mrf.mxu0 }
 0x794   : > { %v4899_v10 = vadd.f32 %v7213_v61, %v6219_v15 }
 0x795   : > { %v4890_v6 = vpop.f32.mrf.mxu0  ;;  %7310 = vmatpush3.bf16.msra.mxu1 %v9187_v56 }
 0x796   : > { %v4891_v5 = vadd.f32 %v6219_v15, %v4890_v6 }
 0x797   : > { %v7214_v2 = vpop.f32.mrf.mxu0 }
 0x798   : > { %v4902_v49 = vadd.f32 %v7214_v2, %v6219_v15 }
 0x799   : > { %v4893_v23 = vpop.f32.mrf.mxu0 }
 0x79a   : > { %v4894_v51 = vadd.f32 %v6219_v15, %v4893_v23  ;;  %v4968_v63 = vpack.c.bf16 %v4902_v49, %v4899_v10 }
 0x79b   : > { %v6827_v11 = vpop.f32.mrf.mxu0 }
 0x79c   : > { %v4967_v13 = vpack.c.bf16 %v4894_v51, %v4891_v5 }
 0x79d   : > { %v6828_v53 = vpop.f32.mrf.mxu0 }
 0x79e   : > { %v9227_v52 = vadd.f32 %v6828_v53, %v6827_v11  ;;  %7235 = vmatprep.mubr.msk.bf16.mxu1 %vm1106_vm0, %v4967_v13 }
 0x79f   : > { %7236 = vmatmul.mubr.msk.bf16.gmra.mxu1 %vm1106_vm0, %v4968_v63  ;;  %v9231_v50 = vpop.f32.mrf.mxu0  ;;  %v9271_v63 = vld [vmem:[%s9400_s16] ss:$0 sm:$0xff] }
 0x7a0   : > { %7259 = vmatprep.mubr.bf16.mxu1 %v8983_v8 }
 0x7a1   : > { %v9234_v12 = vpop.f32.mrf.mxu0 }
 0x7a2   : > { %v6832_v5 = vadd.f32 %v9234_v12, %v9231_v50 }
 0x7a3   : > { %v6833_v17 = vpop.f32.mrf.mxu0 }
 0x7a5   : > { %v6834_v18 = vpop.f32.mrf.mxu0 }
 0x7a6   : > { %v6835_v33 = vadd.f32 %v6834_v18, %v6833_v17 }
 0x7a7   : > { %v6836_v21 = vpop.f32.mrf.mxu0  ;;  %7260 = vmatmul.mubr.bf16.vlgmr.msra.gmra.mxu1 %v9010_v25 }
 0x7a8   : > { %7263 = vmatprep.mubr.bf16.mxu1 %v9022_v3  ;;  %v7676_v3 = vld [vmem:[#allocation9 + $0x18] sm:$0xff]  }
 0x7a9   : > { %v6837_v16 = vpop.f32.mrf.mxu0  ;;  %7271 = vmatprep.subr.bf16.mxu1 %v7676_v3 }
 0x7aa   : > { %7272 = vmatpush3.bf16.msra.mxu1 %v7676_v3  ;;  %v6838_v6 = vadd.f32 %v6837_v16, %v6836_v21 }
 0x7ab   : > { %v6839_v20 = vpop.f32.mrf.mxu0 }
 0x7ad   : > { %v6840_v14 = vpop.f32.mrf.mxu0 }
 0x7ae   : > { %v9238_v28 = vadd.f32 %v6840_v14, %v6839_v20 }
 0x7af   : > { %v6842_v26 = vpop.f32.mrf.mxu0  ;;  %7264 = vmatmul.mubr.bf16.gmra.mxu1 %v9025_v1  ;;  %v7677_v1 = vld [vmem:[#allocation9 + $0x10] sm:$0xff]  }
 0x7b0   : > { %7267 = vmatprep.mubr.bf16.mxu1 %v9042_v43  ;;  %7273 = vmatprep.subr.bf16.mxu1 %v7677_v1 }
 0x7b1   : > { %v6843_v8 = vpop.f32.mrf.mxu0  ;;  %7274 = vmatpush3.bf16.msra.mxu1 %v7677_v1 }
 0x7b2   : > { %v9242_v32 = vadd.f32 %v6843_v8, %v6842_v26  ;;  %7275 = vmatprep.subr.bf16.mxu1 %v7678_v0 }
 0x7b3   : > { %v6845_v37 = vpop.f32.mrf.mxu0 }
 0x7b5   : > { %v6846_v56 = vpop.f32.mrf.mxu0  ;;  %7276 = vmatpush3.bf16.msra.mxu1 %v7678_v0 }
 0x7b6   : > { %v9244_v55 = vadd.f32 %v6846_v56, %v6845_v37  ;;  %7277 = vmatprep.subr.bf16.mxu1 %v7679_v35 }
 0x7b7   : > { %v6848_v25 = vpop.f32.mrf.mxu0  ;;  %7268 = vmatmul.mubr.bf16.gmra.mxu1 %v9048_v44 }
 0x7b9   : > { %v6849_v58 = vpop.f32.mrf.mxu0  ;;  %7278 = vmatpush3.bf16.msra.mxu1 %v7679_v35 }
 0x7ba   : > { %v9247_v9 = vadd.f32 %v6849_v58, %v6848_v25 }
 0x7bb   : > { %v6851_v7 = vpop.f32.mrf.mxu0 }
 0x7bd   : > { %v6852_v15 = vpop.f32.mrf.mxu0 }
 0x7be   : > { %v9249_v43 = vadd.f32 %v6852_v15, %v6851_v7 }
 0x7bf   : > { %v6854_v19 = vpop.f32.mrf.mxu0 }
 0x7c1   : > { %v6855_v38 = vpop.f32.mrf.mxu0 }
 0x7c2   : > { %v9251_v22 = vadd.f32 %v6855_v38, %v6854_v19 }
 0x7c3   : > { %v6857_v44 = vpop.f32.mrf.mxu0 }
 0x7c5   : > { %v6858_v24 = vpop.f32.mrf.mxu0 }
 0x7c6   : > { %v9253_v42 = vadd.f32 %v6858_v24, %v6857_v44 }
 0x7c7   : > { %v6860_v36 = vpop.f32.mrf.mxu0 }
 0x7c9   : > { %v6861_v62 = vpop.f32.mrf.mxu0 }
 0x7ca   : > { %v9255_v48 = vadd.f32 %v6861_v62, %v6860_v36 }
 0x7cb   : > { %v6863_v29 = vpop.f32.mrf.mxu0 }
 0x7cd   : > { %v6864_v30 = vpop.f32.mrf.mxu0 }
 0x7ce   : > { %v9257_v31 = vadd.f32 %v6864_v30, %v6863_v29 }
 0x7cf   : > { %v6866_v27 = vpop.f32.mrf.mxu0 }
 0x7d1   : > { %v6867_v47 = vpop.f32.mrf.mxu0 }
 0x7d2   : > { %v9259_v40 = vadd.f32 %v6867_v47, %v6866_v27 }
 0x7d3   : > { %v6869_v34 = vpop.f32.mrf.mxu0 }
 0x7d5   : > { %v6870_v39 = vpop.f32.mrf.mxu0 }
 0x7d6   : > { %v9261_v41 = vadd.f32 %v6870_v39, %v6869_v34 }
 0x7d7   : > { %v6872_v4 = vpop.f32.mrf.mxu0 }
 0x7d9   : > { %v6873_v45 = vpop.f32.mrf.mxu0 }
 0x7da   : > { %v9263_v46 = vadd.f32 %v6873_v45, %v6872_v4 }
 0x7db   : > { %v7257_v57 = vpop.f32.mrf.mxu0 }
 0x7dd   : > { %v5389_v59 = vpop.f32.mrf.mxu0 }
 0x7df   : > { %v7258_v49 = vpop.f32.mrf.mxu0 }
 0x7e1   : > { %v5392_v18 = vpop.f32.mrf.mxu0 }
 0x837   : > { %v7225_v60 = vpop.f32.mrf.mxu1 }
 0x838   : > { %v5301_v54 = vadd.f32 %v7225_v60, %v6835_v33 }
 0x839   : > { %v5051_v61 = vpop.f32.mrf.mxu1 }
 0x83a   : > { %v5293_v2 = vadd.f32 %v9227_v52, %v5051_v61  ;;  %v5398_v11 = vadd.f32 %v7257_v57, %v5301_v54 }
 0x83b   : > { %v7226_v23 = vpop.f32.mrf.mxu1 }
 0x83c   : > { %v5390_v51 = vadd.f32 %v5389_v59, %v5293_v2  ;;  %v5304_v10 = vadd.f32 %v7226_v23, %v6838_v6  ;;  %v5461_v20 = vadd.f32 %v9271_v63, %v5398_v11 }
 0x83d   : > { %v5054_v13 = vpop.f32.mrf.mxu1 }
 0x83e   : > { %v5401_v53 = vadd.f32 %v7258_v49, %v5304_v10  ;;  %v5296_v17 = vadd.f32 %v6832_v5, %v5054_v13  ;;  %v5459_v21 = vadd.f32 %v9271_v63, %v5390_v51  ;;  %v5477_v8 = vmax.f32 %v5461_v20, 0.0 }
 0x840   : > { %v5462_v52 = vadd.f32 %v9271_v63, %v5401_v53  ;;  %v5393_v16 = vadd.f32 %v5392_v18, %v5296_v17  ;;  %v5475_v14 = vmax.f32 %v5459_v21, 0.0 }
 0x842   : > { %v5460_v50 = vadd.f32 %v9271_v63, %v5393_v16  ;;  %v5478_v12 = vmax.f32 %v5462_v52, 0.0 }
 0x844   : > { %v5476_v26 = vmax.f32 %v5460_v50, 0.0  ;;  %v5500_v56 = vpack.c.bf16 %v5478_v12, %v5477_v8 }
 0x846   : > { %v5499_v37 = vpack.c.bf16 %v5476_v26, %v5475_v14 }
 0x847   : > { %v7229_v25 = vpop.f32.mrf.mxu1 }
 0x848   : > { %7279 = vmatprep.mubr.msk.bf16.mxu1 %vm1106_vm0, %v5499_v37  ;;  %v5317_v36 = vadd.f32 %v7229_v25, %v9244_v55 }
 0x849   : > { %v5067_v3 = vpop.f32.mrf.mxu1  ;;  %7280 = vmatmul.mubr.msk.bf16.vlgmr.msra.gmra.mxu1 %vm1106_vm0, %v5500_v56 }
 0x84a   : > { %v5309_v29 = vadd.f32 %v9238_v28, %v5067_v3 }
 0x84b   : > { %v7230_v58 = vpop.f32.mrf.mxu1 }
 0x84c   : > { %v5320_v47 = vadd.f32 %v7230_v58, %v9247_v9 }
 0x84d   : > { %v5070_v7 = vpop.f32.mrf.mxu1 }
 0x84e   : > { %v5312_v4 = vadd.f32 %v9242_v32, %v5070_v7 }
 0x850   : > { %v7233_v1 = vpop.f32.mrf.mxu1 }
 0x851   : > { %v5333_v59 = vadd.f32 %v7233_v1, %v9253_v42 }
 0x852   : > { %v5083_v15 = vpop.f32.mrf.mxu1 }
 0x853   : > { %v5325_v28 = vadd.f32 %v9249_v43, %v5083_v15 }
 0x854   : > { %v7234_v19 = vpop.f32.mrf.mxu1 }
 0x855   : > { %v5336_v32 = vadd.f32 %v7234_v19, %v9255_v48 }
 0x856   : > { %v5086_v0 = vpop.f32.mrf.mxu1 }
 0x857   : > { %v5328_v13 = vadd.f32 %v9251_v22, %v5086_v0 }
 0x85f   : > { %v7237_v38 = vpop.f32.mrf.mxu1 }
 0x860   : > { %v5349_v21 = vadd.f32 %v7237_v38, %v9261_v41 }
 0x861   : > { %v5099_v44 = vpop.f32.mrf.mxu1 }
 0x862   : > { %v5341_v20 = vadd.f32 %v9257_v31, %v5099_v44 }
 0x863   : > { %v7238_v35 = vpop.f32.mrf.mxu1 }
 0x864   : > { %v5352_v8 = vadd.f32 %v7238_v35, %v9263_v46 }
 0x865   : > { %v5102_v24 = vpop.f32.mrf.mxu1 }
 0x866   : > { %v5344_v7 = vadd.f32 %v9259_v40, %v5102_v24 }
 0x867   : > { %v7261_v62 = vpop.f32.mrf.mxu1 }
 0x868   : > { %v5414_v30 = vadd.f32 %v7261_v62, %v5317_v36 }
 0x869   : > { %v5405_v27 = vpop.f32.mrf.mxu1 }
 0x86a   : > { %v5406_v34 = vadd.f32 %v5405_v27, %v5309_v29  ;;  %v5465_v45 = vadd.f32 %v9271_v63, %v5414_v30  ;;  %v6269_v30 = vld [vmem:[%s9402_s18] ss:$0 sm:$0xff] }
 0x86b   : > { %v7262_v39 = vpop.f32.mrf.mxu1 }
 0x86c   : > { %v5417_v57 = vadd.f32 %v7262_v39, %v5320_v47  ;;  %v5463_v60 = vadd.f32 %v9271_v63, %v5406_v34  ;;  %v5481_v6 = vmax.f32 %v5465_v45, 0.0 }
 0x86d   : > { %v5408_v33 = vpop.f32.mrf.mxu1 }
 0x86e   : > { %v5466_v55 = vadd.f32 %v9271_v63, %v5417_v57  ;;  %v5409_v54 = vadd.f32 %v5408_v33, %v5312_v4  ;;  %v5479_v5 = vmax.f32 %v5463_v60, 0.0 }
 0x86f   : > { %v7265_v61 = vpop.f32.mrf.mxu1 }
 0x870   : > { %v5482_v9 = vmax.f32 %v5466_v55, 0.0  ;;  %v5464_v2 = vadd.f32 %v9271_v63, %v5409_v54  ;;  %v5430_v49 = vadd.f32 %v7265_v61, %v5333_v59 }
 0x871   : > { %v5421_v23 = vpop.f32.mrf.mxu1 }
 0x872   : > { %v5502_v51 = vpack.c.bf16 %v5482_v9, %v5481_v6  ;;  %v5480_v10 = vmax.f32 %v5464_v2, 0.0  ;;  %v5422_v42 = vadd.f32 %v5421_v23, %v5325_v28  ;;  %v5469_v17 = vadd.f32 %v9271_v63, %v5430_v49 }
 0x873   : > { %v7266_v11 = vpop.f32.mrf.mxu1 }
 0x874   : > { %v5501_v53 = vpack.c.bf16 %v5480_v10, %v5479_v5  ;;  %v5433_v43 = vadd.f32 %v7266_v11, %v5336_v32  ;;  %v5467_v52 = vadd.f32 %v9271_v63, %v5422_v42  ;;  %v5485_v22 = vmax.f32 %v5469_v17, 0.0 }
 0x875   : > { %v5424_v18 = vpop.f32.mrf.mxu1 }
 0x876   : > { %v5470_v16 = vadd.f32 %v9271_v63, %v5433_v43  ;;  %v5425_v48 = vadd.f32 %v5424_v18, %v5328_v13  ;;  %7283 = vmatprep.mubr.msk.bf16.mxu1 %vm1106_vm0, %v5501_v53  ;;  %v5483_v37 = vmax.f32 %v5467_v52, 0.0 }
 0x877   : > { %v7269_v50 = vpop.f32.mrf.mxu1  ;;  %7284 = vmatmul.mubr.msk.bf16.gmra.mxu1 %vm1106_vm0, %v5502_v51 }
 0x878   : > { %v5486_v12 = vmax.f32 %v5470_v16, 0.0  ;;  %v5468_v14 = vadd.f32 %v9271_v63, %v5425_v48  ;;  %v5446_v26 = vadd.f32 %v7269_v50, %v5349_v21 }
 0x879   : > { %v5437_v41 = vpop.f32.mrf.mxu1 }
 0x87a   : > { %v5504_v56 = vpack.c.bf16 %v5486_v12, %v5485_v22  ;;  %v5484_v25 = vmax.f32 %v5468_v14, 0.0  ;;  %v5438_v3 = vadd.f32 %v5437_v41, %v5341_v20  ;;  %v5473_v31 = vadd.f32 %v9271_v63, %v5446_v26 }
 0x87b   : > { %v7270_v58 = vpop.f32.mrf.mxu1 }
 0x87c   : > { %v5503_v1 = vpack.c.bf16 %v5484_v25, %v5483_v37  ;;  %v5449_v15 = vadd.f32 %v7270_v58, %v5352_v8  ;;  %v5471_v0 = vadd.f32 %v9271_v63, %v5438_v3  ;;  %v5489_v44 = vmax.f32 %v5473_v31, 0.0 }
 0x87d   : > { %v5440_v19 = vpop.f32.mrf.mxu1 }
 0x87e   : > { %v5474_v38 = vadd.f32 %v9271_v63, %v5449_v15  ;;  %v5441_v46 = vadd.f32 %v5440_v19, %v5344_v7  ;;  %7287 = vmatprep.mubr.msk.bf16.mxu1 %vm1106_vm0, %v5503_v1  ;;  %v5487_v24 = vmax.f32 %v5471_v0, 0.0 }
 0x87f   : > { %7288 = vmatmul.mubr.msk.bf16.gmra.mxu1 %vm1106_vm0, %v5504_v56 }
 0x880   : > { %v5490_v35 = vmax.f32 %v5474_v38, 0.0  ;;  %v5472_v40 = vadd.f32 %v9271_v63, %v5441_v46 }
 0x882   : > { %v5506_v36 = vpack.c.bf16 %v5490_v35, %v5489_v44  ;;  %v5488_v62 = vmax.f32 %v5472_v40, 0.0 }
 0x884   : > { %v5505_v29 = vpack.c.bf16 %v5488_v62, %v5487_v24 }
 0x886   : > { %7291 = vmatprep.mubr.msk.bf16.mxu1 %vm1106_vm0, %v5505_v29 }
 0x887   : > { %7292 = vmatmul.mubr.msk.bf16.gmra.mxu1 %vm1106_vm0, %v5506_v36 }
 0x909   : > { %v7281_v27 = vpop.f32.mrf.mxu1 }
 0x90a   : > { %v5605_v47 = vadd.f32 %v7281_v27, %v6269_v30 }
 0x90b   : > { %v5596_v34 = vpop.f32.mrf.mxu1 }
 0x90c   : > { %5661 = vst [vmem:[%s9315_s23 + $0x10] sm:$0xff] %v5605_v47  ;;  %v5597_v63 = vadd.f32 %v6269_v30, %v5596_v34 }
 0x90d   : > { %v7282_v39 = vpop.f32.mrf.mxu1 }
 0x90e   : > { %5659 = vst [vmem:[%s9315_s23] sm:$0xff] %v5597_v63  ;;  %v5608_v4 = vadd.f32 %v7282_v39, %v6269_v30 }
 0x90f   : > { %v5599_v45 = vpop.f32.mrf.mxu1 }
 0x910   : > { %5662 = vst [vmem:[%s9315_s23 + $0x18] sm:$0xff] %v5608_v4  ;;  %v5600_v57 = vadd.f32 %v6269_v30, %v5599_v45 }
 0x912   : > { %5660 = vst [vmem:[%s9315_s23 + $0x8] sm:$0xff] %v5600_v57 }
 0x937   : > { %v7285_v33 = vpop.f32.mrf.mxu1 }
 0x938   : > { %v5621_v59 = vadd.f32 %v7285_v33, %v6269_v30 }
 0x939   : > { %v5612_v60 = vpop.f32.mrf.mxu1 }
 0x93a   : > { %5665 = vst [vmem:[%s9315_s23 + $0x30] sm:$0xff] %v5621_v59  ;;  %v5613_v55 = vadd.f32 %v6269_v30, %v5612_v60 }
 0x93b   : > { %v7286_v54 = vpop.f32.mrf.mxu1 }
 0x93c   : > { %5663 = vst [vmem:[%s9315_s23 + $0x20] sm:$0xff] %v5613_v55  ;;  %v5624_v28 = vadd.f32 %v7286_v54, %v6269_v30 }
 0x93d   : > { %v5615_v61 = vpop.f32.mrf.mxu1 }
 0x93e   : > { %5666 = vst [vmem:[%s9315_s23 + $0x38] sm:$0xff] %v5624_v28  ;;  %v5616_v6 = vadd.f32 %v6269_v30, %v5615_v61 }
 0x93f   : > { %v7289_v9 = vpop.f32.mrf.mxu1 }
 0x940   : > { %5664 = vst [vmem:[%s9315_s23 + $0x28] sm:$0xff] %v5616_v6  ;;  %v5637_v2 = vadd.f32 %v7289_v9, %v6269_v30 }
 0x941   : > { %v5628_v49 = vpop.f32.mrf.mxu1 }
 0x942   : > { %5669 = vst [vmem:[%s9315_s23 + $0x50] sm:$0xff] %v5637_v2  ;;  %v5629_v32 = vadd.f32 %v6269_v30, %v5628_v49 }
 0x943   : > { %v7290_v23 = vpop.f32.mrf.mxu1 }
 0x944   : > { %5667 = vst [vmem:[%s9315_s23 + $0x40] sm:$0xff] %v5629_v32  ;;  %v5640_v5 = vadd.f32 %v7290_v23, %v6269_v30 }
 0x945   : > { %v5631_v51 = vpop.f32.mrf.mxu1 }
 0x946   : > { %5670 = vst [vmem:[%s9315_s23 + $0x58] sm:$0xff] %v5640_v5  ;;  %v5632_v10 = vadd.f32 %v6269_v30, %v5631_v51 }
 0x947   : > { %v7293_v42 = vpop.f32.mrf.mxu1 }
 0x948   : > { %5668 = vst [vmem:[%s9315_s23 + $0x48] sm:$0xff] %v5632_v10  ;;  %v5653_v11 = vadd.f32 %v7293_v42, %v6269_v30 }
 0x949   : > { %v5644_v13 = vpop.f32.mrf.mxu1 }
 0x94a   : > { %5673 = vst [vmem:[%s9315_s23 + $0x70] sm:$0xff] %v5653_v11  ;;  %v5645_v53 = vadd.f32 %v6269_v30, %v5644_v13 }
 0x94b   : > { %v7294_v17 = vpop.f32.mrf.mxu1 }
 0x94c   : > { %5671 = vst [vmem:[%s9315_s23 + $0x60] sm:$0xff] %v5645_v53  ;;  %v5656_v43 = vadd.f32 %v7294_v17, %v6269_v30 }
 0x94d   : > { %v5647_v18 = vpop.f32.mrf.mxu1 }
 0x94e   : > { %5674 = vst [vmem:[%s9315_s23 + $0x78] sm:$0xff] %v5656_v43  ;;  %v5648_v21 = vadd.f32 %v6269_v30, %v5647_v18 }
 0x950   : > { %5672 = vst [vmem:[%s9315_s23 + $0x68] sm:$0xff] %v5648_v21 }
 0x951   : > { %7797 = shalt.err (!%p7794_p13)
}
 0x952   : > { %s7798_s25 = scalar_lea.hbm %s9336_s22, 2048  ;;  %s7802_s21 = scalar_lea.hbm %s9441_s29, 4096 }
 0x953   : > { %p7799_p8 = scmp.ne.s32.totalorder %s9336_s22, %s7798_s25  ;;  %p7803_p2 = scmp.lt.s32.totalorder %s9336_s22, %s9441_s29 }
 0x954   : > { %p7804_p12 = scmp.lt.s32.totalorder %s7802_s21, %s7798_s25 }
 0x955   : > { %p7800_p11 = pnand %p7799_p8, %p9442_p6 }
 0x956   : > { %p7805_p10 = por %p7804_p12, %p7803_p2 }
 0x957   : > { %p7801_p0 = pneg %p7800_p11 }
 0x959   : > { %p7806_p1 = pnand %p7805_p10, %p7801_p0 }
 0x95b   : > { %7809 = shalt.err (!%p7806_p1)
}
 0x95c   : > { %s7866_s20 = smov 128   ;;  %s7867_s2 = smov 8  }
 0x95d   : > { %7327 = dma.vmem_to_hbm [thread:$0]  (%p9442_p6), %s9338_s19, 2048, %s9336_s22, %s9344_s1, %s7866_s20, %s7866_s20, %s7867_s2  }
 0x95e PF: > { %s9443_s27 = sld [smem:[#allocation18_spill]] }
 0x95f   : > { %s9444_s23 = sld [smem:[#allocation16_spill]] }
 0x960   : > { %s9445_s26 = sld [smem:[#allocation21_spill]] }
 0x964   : > { %p7354_p5 = scmp.ge.s32.totalorder %s9443_s27, 2 }
 0x965   : > { %s5704_s4 = sand.u32 1, %s9444_s23  }
 0x966   : > { %p9446_p9 = scmp.ne.s32.totalorder %s9445_s26, 0  ;;  %s5705_s25 = scalar_lea.sflag [#allocation5], %s5704_s4 }
 0x968   : > { %p7343_p3 = pnand %p7354_p5, %p9446_p9 }
 0x96a   : > { %p7344_p4 = pneg %p7343_p3 }
 0x96c   : > { %7839 = dma.done.wait (%p7344_p4), %s5705_s25, 2048  }
 0x96d   : > { %7841 = vsyncadd (%p7344_p4), %s5705_s25, 4294965248  ;;  %s9447_s21 = sld [smem:[#allocation19_spill]]  ;;  %s9450_s0 = smov %s7848_s30 }
 0x96e   : > { %s9448_s24 = sld [smem:[#allocation17_spill]] }
 0x96f   : > { %s9449_s20 = sld [smem:[#allocation20_spill]] }
 0x973   : > { %p32_p7 = scmp.ge.s32.totalorder %s9447_s21, 4  }
 0x974   : > { %s9451_s30 = smov %s9448_s24 }
 0x975   :  { %34 = sbr.rel (!%p32_p7) target bundleno = 13 (0xd), region = 154 }
 0x97a   :  { %5710 = vsyncpa [#allocation4], 1 }
 0x97b   :  { %5712 = vsyncpa [#allocation4 + $0x1], 1 }
 0x97c   :  { %5713 = vsyncpa [#allocation7], 1 }
 0x97d   :  { %5714 = vsyncpa [#allocation10], 1 }
 0x97e   :  { %5715 = vsyncpa [#allocation5], 1 }
 0x97f   :  { %5717 = vsyncpa [#allocation5 + $0x1], 1 }

// kernel: tpu_custom_call.1
= control target key start
LH: loop header
LB: loop body
LE: loop exit
PB: predicated region body
PF: predicated region fallthrough
CT: control target
= control target key end

     0   :  { %s9384_s0 = inlined_call_operand.vmem [shape: bf16[256,256], index: 0, kind: input, shape index: {}]   ;;  %s9385_s1 = inlined_call_operand.vmem [shape: bf16[256,256], index: 1, kind: input, shape index: {}]   ;;  %s9386_s2 = inlined_call_operand.vmem [shape: bf16[256,256], index: 2, kind: input, shape index: {}]   ;;  %s9387_s3 = inlined_call_operand.vmem [shape: bf16[256,64], index: 3, kind: input, shape index: {}]   ;;  %s9388_s4 = inlined_call_operand.hbm [shape: f32[1,64], index: 4, kind: input, shape index: {}]   ;;  %s9389_s5 = inlined_call_operand.vmem [shape: bf16[64,64], index: 5, kind: input, shape index: {}]   ;;  %s9390_s6 = inlined_call_operand.vmem [shape: f32[1,64], index: 6, kind: input, shape index: {}]   ;;  %s9391_s7 = inlined_call_operand.vmem [shape: bf16[128,64], index: 7, kind: input, shape index: {}]   ;;  %s9392_s8 = inlined_call_operand.vmem [shape: f32[1,64], index: 8, kind: input, shape index: {}]   ;;  %s9393_s9 = inlined_call_operand.hbm [shape: bf16[64,64], index: 9, kind: input, shape index: {}]   ;;  %s9394_s10 = inlined_call_operand.vmem [shape: f32[1,64], index: 10, kind: input, shape index: {}]   ;;  %s9395_s11 = inlined_call_operand.vmem [shape: bf16[384,64], index: 11, kind: input, shape index: {}]   ;;  %s9396_s12 = inlined_call_operand.vmem [shape: f32[1,64], index: 12, kind: input, shape index: {}]   ;;  %s9397_s13 = inlined_call_operand.hbm [shape: bf16[64,64], index: 13, kind: input, shape index: {}]   ;;  %s9398_s14 = inlined_call_operand.vmem [shape: f32[1,64], index: 14, kind: input, shape index: {}]   ;;  %s9399_s15 = inlined_call_operand.vmem [shape: bf16[448,64], index: 15, kind: input, shape index: {}]   ;;  %s9400_s16 = inlined_call_operand.vmem [shape: f32[1,64], index: 16, kind: input, shape index: {}]   ;;  %s9401_s17 = inlined_call_operand.hbm [shape: bf16[64,128], index: 17, kind: input, shape index: {}]   ;;  %s9402_s18 = inlined_call_operand.vmem [shape: f32[1,128], index: 18, kind: input, shape index: {}]   ;;  %s9403_s19 = inlined_call_operand.hbm [shape: f32[256,128], index: 19, kind: output, shape index: {}]  }
   0x1   :  { %9414 = sst [smem:[#allocation22_spill]] %s9384_s0 }
   0x2   :  { %9415 = sst [smem:[#allocation23_spill]] %s9385_s1 }
   0x3   :  { %9416 = sst [smem:[#allocation24_spill]] %s9386_s2 }
   0x4   :  { %9417 = sst [smem:[#allocation25_spill]] %s9387_s3 }
   0x5   :  { %9418 = sst [smem:[#allocation26_spill]] %s9388_s4 }
   0x6   :  { %9419 = sst [smem:[#allocation27_spill]] %s9403_s19 }
   0x7   :  { %24 = vsyncpa [#allocation4], 0 }
   0x8   :  { %25 = vsyncpa [#allocation7], 0 }
   0x9   :  { %26 = vsyncpa [#allocation10], 0 }
   0xa   :  { %27 = vsyncpa [#allocation5], 0 }
   0xb   :  { %29 = vsyncpa [#allocation5 + $0x1], 0  ;;  %s7968_s0 = smov 0   ;;  %s7970_s30 = smov 0  }
   0xc   :  { %s7972_s20 = smov 0   ;;  %s7974_s21 = smov 0  }
   0xd LB: > { %9420 = sst [smem:[#allocation16_spill]] %s7844_s0  ;;  %s7989_s1 = sadd.s32 4294967295, %s7856_s21   ;;  %s7856_s21 = sphi %s7974_s21, %s9447_s21   ;;  %s7852_s20 = sphi %s7972_s20, %s9449_s20   ;;  %s7848_s30 = sphi %s7970_s30, %s9451_s30   ;;  %s7844_s0 = sphi %s7968_s0, %s9450_s0  }
   0xe   : > { %9421 = sst [smem:[#allocation17_spill]] %s7852_s20  ;;  %s5816_s22 = sadd.s32 4294967294, %s7856_s21  }
   0xf   : > { %9422 = sst [smem:[#allocation18_spill]] %s7856_s21  ;;  %s7993_s2 = sadd.s32 1, %s7856_s21  }
  0x10   : > { %9423 = sst [smem:[#allocation19_spill]] %s7993_s2  ;;  %s456_s23 = sadd.s32 1, %s7852_s20 }
  0x11   : > { %s453_s24 = ssub.s32 %s7856_s21, %s7993_s2  ;;  %p466_p0 = scmp.ne.s32.totalorder %s7852_s20, %s7848_s30 }
  0x12   : > { %p454_p1 = scmp.eq.s32.totalorder %s453_s24, 0  ;;  %p467_p2 = scmp.eq.s32.totalorder %s7989_s1, 1 }
  0x13   : > { %p472_p3 = scmp.ne.s32.totalorder %s7848_s30, %s7844_s0  ;;  %p473_p4 = scmp.eq.s32.totalorder %s5816_s22, 1 }
  0x14   : > { %s8004_s25 = scalar_select %p454_p1, %s7852_s20, %s456_s23  }
  0x15   : > { %p8006_p5 = por %p467_p2, %p466_p0  ;;  %p8010_p6 = por %p473_p4, %p472_p3 }
  0x16   : > { %9424 = sst [smem:[#allocation20_spill]] %s8004_s25  ;;  %p5817_p7 = scmp.ge.s32.totalorder %s7856_s21, 1 }
  0x17   : > { %s9425_s3 = scalar_select %p8006_p5, 1, 0 }
  0x18   : > { %s9426_s26 = scalar_select %p8010_p6, 1, 0 }
  0x19   : > { %p480_p8 = scmp.lt.s32.totalorder %s7856_s21, 3  ;;  %p9412_p9 = scmp.eq.s32.totalorder %s7989_s1, 0 }
  0x1a   : > { %9427 = sst [smem:[#allocation21_spill]] %s9426_s26  ;;  %s7858_s28 = smov [#allocation6]  }
  0x1b   : > { %p8017_p10 = pnand %p5817_p7, %p480_p8  ;;  %s518_s29 = sshll.u32 %s7858_s28, 4  ;;  %s519_s29 = int_to_ptr.vmem [resolvable:$true] %s518_s29 }
  0x1c   : > { %s7859_s23 = smov [#allocation3]   ;;  %s7860_s25 = smov [#allocation8]  }
  0x1d   : > { %p7329_p11 = pneg %p8017_p10  ;;  %s496_s24 = sshll.u32 %s7859_s23, 4  ;;  %s497_s24 = int_to_ptr.vmem [resolvable:$true] %s496_s24 }
  0x1e   : > { %s540_s20 = sshll.u32 %s7860_s25, 4  ;;  %s7691_s2 = scalar_lea.vmem %s519_s29, 512  ;;  %s541_s20 = int_to_ptr.vmem [resolvable:$true] %s540_s20 }
  0x1f   : > { %p8025_p12 = pnand %p9412_p9, %p7329_p11  ;;  %p7692_p0 = scmp.ne.s32.totalorder %s519_s29, %s7691_s2 }
  0x20   : > { %p7699_p3 = scmp.lt.s32.totalorder %s519_s29, %s519_s29  ;;  %p7700_p4 = scmp.lt.s32.totalorder %s7691_s2, %s7691_s2 }
  0x21   : > { %p7682_p13 = pneg %p8025_p12 }
  0x22   : > { %p7701_p7 = por %p7700_p4, %p7699_p3 }
  0x23   : > { %p7694_p1 = pnand %p7692_p0, %p7682_p13 }
  0x25   : > { %p7695_p2 = pneg %p7694_p1 }
  0x27   : > { %p7702_p8 = pnand %p7701_p7, %p7695_p2 }
  0x29   : > { %7705 = shalt.err (!%p7702_p8)
}
  0x2a   : > { %s7861_s28 = smov 64   ;;  %s7862_s23 = smov 4  }
  0x2b   : > { %7335 = dma.hbm_to_vmem [thread:$0]  (!%p8025_p12), %s9393_s9, 512, %s519_s29, [#allocation7], %s7861_s28, %s7861_s28, %s7862_s23  }
  0x2c   : > { %s7717_s0 = scalar_lea.vmem %s497_s24, 16  ;;  %s7724_s2 = scalar_lea.vmem %s497_s24, 32 }
  0x2d   : > { %p7718_p11 = scmp.ne.s32.totalorder %s497_s24, %s7717_s0  ;;  %p7725_p2 = scmp.lt.s32.totalorder %s497_s24, %s497_s24 }
  0x2e   : > { %p7726_p3 = scmp.lt.s32.totalorder %s7724_s2, %s7717_s0 }
  0x2f   : > { %p7720_p0 = pnand %p7718_p11, %p7682_p13 }
  0x30   : > { %p7727_p4 = por %p7726_p3, %p7725_p2 }
  0x31   : > { %p7721_p1 = pneg %p7720_p0 }
  0x33   : > { %p7728_p7 = pnand %p7727_p4, %p7721_p1 }
  0x35   : > { %7731 = shalt.err (!%p7728_p7)
}
  0x36   : > { %s9430_s4 = sld [smem:[#allocation26_spill]]  ;;  %s7743_s26 = scalar_lea.vmem %s541_s20, 512 }
  0x37   : > { %p7744_p8 = scmp.ne.s32.totalorder %s541_s20, %s7743_s26  ;;  %p7751_p9 = scmp.lt.s32.totalorder %s541_s20, %s541_s20 }
  0x38   : > { %p7752_p6 = scmp.lt.s32.totalorder %s7743_s26, %s7743_s26 }
  0x39   : > { %p7746_p11 = pnand %p7744_p8, %p7682_p13 }
  0x3a   : > { %p7753_p5 = por %p7752_p6, %p7751_p9 }
  0x3b   : > { %p7747_p0 = pneg %p7746_p11 }
  0x3c   : > { %7332 = dma.hbm_to_vmem [thread:$0]  (!%p8025_p12), %s9430_s4, 16, %s497_s24, [#allocation4]  }
  0x3d   : > { %p7754_p2 = pnand %p7753_p5, %p7747_p0 }
  0x3f   : > { %7757 = shalt.err (!%p7754_p2)
}
  0x40   : > { %7338 = dma.hbm_to_vmem [thread:$0]  (!%p8025_p12), %s9397_s13, 512, %s541_s20, [#allocation7], %s7861_s28, %s7861_s28, %s7862_s23  }
  0x41   : > { %s7863_s21 = smov [#allocation9]  }
  0x42   : > { %s562_s29 = sshll.u32 %s7863_s21, 4  ;;  %s563_s29 = int_to_ptr.vmem [resolvable:$true] %s562_s29 }
  0x43   : > { %s7769_s24 = scalar_lea.vmem %s563_s29, 512  ;;  %p7777_p9 = scmp.lt.s32.totalorder %s563_s29, %s563_s29 }
  0x44   : > { %p7770_p1 = scmp.ne.s32.totalorder %s563_s29, %s7769_s24  ;;  %p7778_p3 = scmp.lt.s32.totalorder %s7769_s24, %s7769_s24 }
  0x46   : > { %p7772_p6 = pnand %p7770_p1, %p7682_p13  ;;  %p7779_p4 = por %p7778_p3, %p7777_p9 }
  0x48   : > { %p7773_p5 = pneg %p7772_p6 }
  0x4a   : > { %p7780_p7 = pnand %p7779_p4, %p7773_p5 }
  0x4c   : > { %7783 = shalt.err (!%p7780_p7)
}
  0x4d   : > { %7341 = dma.hbm_to_vmem [thread:$0]  (!%p8025_p12), %s9401_s17, 512, %s563_s29, [#allocation10], %s7861_s28, %s7861_s28, %s7862_s23  }
  0x4e   : > { %611 = sbr.rel (%p8017_p10) target bundleno = 2398 (0x95e), region = 96  ;;  %p9431_p13 = scmp.eq.s32.totalorder (!%p8017_p10), %s7989_s1, 0 }
  0x53   : > { %7827 = dma.done.wait (%p9431_p13), [#allocation4], 16   ;;  %p9432_p8 = pmov %p9431_p13 }
  0x55   : > { %7829 = vsyncadd (%p9432_p8), [#allocation4], 4294967280  ;;  %p9433_p11 = pmov %p9432_p8 }
  0x56   : > { %p9434_p0 = pmov %p9432_p8 }
  0x57   : > { %7831 = dma.done.wait (%p9433_p11), [#allocation7], 1024  }
  0x58   : > { %7833 = vsyncadd (%p9434_p0), [#allocation7], 4294966272  ;;  %p9435_p2 = pmov %p9434_p0 }
  0x59   : > { %p9436_p12 = pmov %p9434_p0 }
  0x5a   : > { %7835 = dma.done.wait (%p9435_p2), [#allocation10], 512  }
  0x5b   : > { %7837 = vsyncadd (%p9436_p12), [#allocation10], 4294966784  ;;  %s9437_s28 = sld [smem:[#allocation25_spill]]  ;;  %s5829_s23 = sshll.u32 %s7989_s1, 4  ;;  %v7436_v32 = vld [vmem:[%s9389_s5 + $0x18] sm:$0xff]   ;;  %v7437_v33 = vld [vmem:[%s9389_s5 + $0x10] sm:$0xff]  }
  0x5c   : > { %p693_p10 = scmp.lt.s32.totalorder %s5829_s23, 31  ;;  %s9438_s25 = sld [smem:[#allocation22_spill]]  ;;  %6903 = vmatprep.subr.bf16.mxu1 %v7436_v32  ;;  %v7438_v34 = vld [vmem:[%s9389_s5 + $0x8] sm:$0xff]   ;;  %v7439_v35 = vld [vmem:[%s9389_s5] sm:$0xff]   ;;  %vm1106_vm0 = vcmask 523264   ;;  %vm1292_vm1 = vcmask 519168  }
  0x5d   : > { %6904 = vmatpush3.bf16.msra.mxu1 %v7436_v32  ;;  %s9439_s21 = sld [smem:[#allocation23_spill]]  ;;  %v8180_v40 = vld [vmem:[#allocation3] ss:$0 sm:$0xff]  ;;  %s7864_s22 = smov 64   ;;  %vm1917_vm2 = vcmask 1043968  }
  0x5e   : > { %s9453_s23 = smov (!%p693_p10, %s5829_s23), 31  ;;  %6905 = vmatprep.subr.bf16.mxu1 %v7437_v33  ;;  %s6386_s26 = sshll.u32 %s7989_s1, 11 }
  0x5f   : > { %s8111_s0 = sshll.u32 %s9453_s23, 3  ;;  %p9442_p6 = scmp.ne.s32.totalorder %s9425_s3, 0 }
  0x61   : > { %v7396_v0 = vld [vmem:[%s9437_s28 + $0x78] sm:$0xff]   ;;  %v7398_v2 = vld [vmem:[%s9437_s28 + $0x70] sm:$0xff]   ;;  %v7400_v4 = vld [vmem:[%s9437_s28 + $0x68] sm:$0xff]   ;;  %6906 = vmatpush3.bf16.msra.mxu1 %v7437_v33 }
  0x62   : > { %v7397_v1 = vld [vmem:[%s9437_s28 + $0x38] sm:$0xff]   ;;  %6387 = vmatprep.subr.bf16.mxu0 %v7396_v0  ;;  %v7399_v3 = vld [vmem:[%s9437_s28 + $0x30] sm:$0xff]   ;;  %v7401_v5 = vld [vmem:[%s9437_s28 + $0x28] sm:$0xff]   ;;  %s8120_s27 = scalar_lea.vmem %s9438_s25, %s8111_s0  ;;  %6907 = vmatprep.subr.bf16.mxu1 %v7438_v34  ;;  %s9440_s25 = sld [smem:[#allocation24_spill]] }
  0x63   : > { %6388 = vmatpush3.bf16.msra.mxu0 %v7397_v1  ;;  %v7402_v6 = vld [vmem:[%s9437_s28 + $0x60] sm:$0xff]   ;;  %v7404_v8 = vld [vmem:[%s9437_s28 + $0x58] sm:$0xff]   ;;  %v7406_v10 = vld [vmem:[%s9437_s28 + $0x50] sm:$0xff]   ;;  %s8178_s29 = scalar_lea.vmem %s9439_s21, %s8111_s0 }
  0x64   : > { %6389 = vmatprep.subr.bf16.mxu0 %v7398_v2  ;;  %v7403_v7 = vld [vmem:[%s9437_s28 + $0x20] sm:$0xff]   ;;  %v7405_v9 = vld [vmem:[%s9437_s28 + $0x18] sm:$0xff]   ;;  %v7407_v12 = vld [vmem:[%s9437_s28 + $0x10] sm:$0xff]  }
  0x65   : > { %v7414_v11 = vld [vmem:[%s8120_s27 + $0x4] ss:$8 sps:$4 sm:$0xff]   ;;  %v7412_v17 = vld [vmem:[%s8120_s27] ss:$8 sps:$4 sm:$0xff]   ;;  %v7415_v18 = vld [vmem:[%s8120_s27 + $0x14] ss:$8 sps:$4 sm:$0xff]   ;;  %6908 = vmatpush3.bf16.msra.mxu1 %v7438_v34 }
  0x66   : > { %978 = vmatprep.mubr.bf16.mxu0 %v7414_v11  ;;  %v7408_v13 = vld [vmem:[%s9437_s28 + $0x48] sm:$0xff]   ;;  %v7410_v15 = vld [vmem:[%s9437_s28 + $0x40] sm:$0xff]   ;;  %v7417_v19 = vld [vmem:[%s8120_s27 + $0x10] ss:$8 sps:$4 sm:$0xff]   ;;  %6909 = vmatprep.subr.bf16.mxu1 %v7439_v35 }
  0x67   : > { %6390 = vmatpush3.bf16.msra.mxu0 %v7399_v3  ;;  %v7409_v14 = vld [vmem:[%s9437_s28 + $0x8] sm:$0xff]   ;;  %v7411_v16 = vld [vmem:[%s9437_s28] sm:$0xff]   ;;  %v7421_v22 = vld [vmem:[%s8120_s27 + $0x34] ss:$8 sps:$4 sm:$0xff]  }
  0x68   : > { %6391 = vmatprep.subr.bf16.mxu0 %v7400_v4  ;;  %v7418_v20 = vld [vmem:[%s8120_s27 + $0x24] ss:$8 sps:$4 sm:$0xff]   ;;  %v7420_v21 = vld [vmem:[%s8120_s27 + $0x20] ss:$8 sps:$4 sm:$0xff]   ;;  %v7423_v23 = vld [vmem:[%s8120_s27 + $0x30] ss:$8 sps:$4 sm:$0xff]  }
  0x69   : > { %v7424_v24 = vld [vmem:[%s8120_s27 + $0x44] ss:$8 sps:$4 sm:$0xff]   ;;  %v7426_v25 = vld [vmem:[%s8120_s27 + $0x40] ss:$8 sps:$4 sm:$0xff]   ;;  %v7427_v26 = vld [vmem:[%s8120_s27 + $0x54] ss:$8 sps:$4 sm:$0xff]   ;;  %6910 = vmatpush3.bf16.msra.mxu1 %v7439_v35 }
  0x6a   : > { %v7429_v27 = vld [vmem:[%s8120_s27 + $0x50] ss:$8 sps:$4 sm:$0xff]   ;;  %v7430_v28 = vld [vmem:[%s8120_s27 + $0x64] ss:$8 sps:$4 sm:$0xff]   ;;  %v7432_v29 = vld [vmem:[%s8120_s27 + $0x60] ss:$8 sps:$4 sm:$0xff]  }
  0x6b   : > { %6392 = vmatpush3.bf16.msra.mxu0 %v7401_v5  ;;  %v7433_v30 = vld [vmem:[%s8120_s27 + $0x74] ss:$8 sps:$4 sm:$0xff]   ;;  %v7435_v31 = vld [vmem:[%s8120_s27 + $0x70] ss:$8 sps:$4 sm:$0xff]   ;;  %s8187_s27 = scalar_lea.vmem %s9440_s25, %s8111_s0  ;;  %s689_s25 = sand.u32 1, %s7848_s30  }
  0x6c   : > { %6393 = vmatprep.subr.bf16.mxu0 %v7402_v6  ;;  %v7440_v36 = vld [vmem:[%s9437_s28 + $0x78] sm:$0xff]   ;;  %v7442_v1 = vld [vmem:[%s9437_s28 + $0x70] sm:$0xff]   ;;  %s5828_s0 = sshll.u32 %s689_s25, 7  ;;  %s9344_s1 = scalar_lea.sflag [#allocation5], %s689_s25 }
  0x6d   : > { %6463 = vmatprep.subr.bf16.mxu1 %v7440_v36  ;;  %v7441_v63 = vld [vmem:[%s9437_s28 + $0x38] sm:$0xff]   ;;  %v7443_v6 = vld [vmem:[%s9437_s28 + $0x30] sm:$0xff]   ;;  %s9315_s23 = scalar_lea.vmem [#allocation11], %s5828_s0  ;;  %s7865_s0 = smov [#allocation11]  }
  0x6e   : > { %v7451_v36 = vld [vmem:[%s9437_s28 + $0x10] sm:$0xff]   ;;  %s5689_s19 = sshll.u32 %s9315_s23, 4  ;;  %s7788_s2 = sshll.u32 %s7865_s0, 4  ;;  %s9338_s19 = int_to_ptr.vmem [resolvable:$true] %s5689_s19  ;;  %s7789_s2 = int_to_ptr.vmem [resolvable:$false] %s7788_s2 }
  0x6f   : > { %6394 = vmatpush3.bf16.msra.mxu0 %v7403_v7  ;;  %s7784_s20 = scalar_lea.vmem %s9338_s19, 2048  ;;  %p7791_p3 = scmp.lt.s32.totalorder %s9338_s19, %s7789_s2 }
  0x70   : > { %6395 = vmatprep.subr.bf16.mxu0 %v7404_v8  ;;  %v7444_v8 = vld [vmem:[%s9437_s28 + $0x68] sm:$0xff]   ;;  %p7785_p1 = scmp.ne.s32.totalorder %s9338_s19, %s7784_s20 }
  0x72   : > { %p7786_p5 = pnand %p7785_p1, %p9442_p6 }
  0x73   : > { %6396 = vmatpush3.bf16.msra.mxu0 %v7405_v9 }
  0x74   : > { %6397 = vmatprep.subr.bf16.mxu0 %v7406_v10  ;;  %p7787_p9 = pneg %p7786_p5 }
  0x77   : > { %6398 = vmatpush3.bf16.msra.mxu0 %v7407_v12 }
  0x78   : > { %6399 = vmatprep.subr.bf16.mxu0 %v7408_v13 }
  0x7b   : > { %6400 = vmatpush3.bf16.msra.mxu0 %v7409_v14  ;;  %v7445_v14 = vld [vmem:[%s9437_s28 + $0x28] sm:$0xff]  }
  0x7c   : > { %6401 = vmatprep.subr.bf16.mxu0 %v7410_v15 }
  0x7f   : > { %6402 = vmatpush3.bf16.msra.mxu0 %v7411_v16  ;;  %v7446_v16 = vld [vmem:[%s9437_s28 + $0x60] sm:$0xff]  }
  0x82   : > { %979 = vmatmul.mubr.bf16.vlgmr.msra.gmra.mxu0 %v7412_v17 }
  0x83   : > { %986 = vmatprep.mubr.bf16.mxu0 %v7415_v18 }
  0x8a   : > { %987 = vmatmul.mubr.bf16.gmra.mxu0 %v7417_v19 }
  0x8b   : > { %994 = vmatprep.mubr.bf16.mxu0 %v7418_v20 }
  0x92   : > { %995 = vmatmul.mubr.bf16.gmra.mxu0 %v7420_v21  ;;  %v7447_v21 = vld [vmem:[%s9437_s28 + $0x20] sm:$0xff]  }
  0x93   : > { %1002 = vmatprep.mubr.bf16.mxu0 %v7421_v22 }
  0x9a   : > { %1003 = vmatmul.mubr.bf16.gmra.mxu0 %v7423_v23  ;;  %v7448_v23 = vld [vmem:[%s9437_s28 + $0x58] sm:$0xff]  }
  0x9b   : > { %1010 = vmatprep.mubr.bf16.mxu0 %v7424_v24 }
  0xa2   : > { %1011 = vmatmul.mubr.bf16.gmra.mxu0 %v7426_v25 }
  0xa3   : > { %1018 = vmatprep.mubr.bf16.mxu0 %v7427_v26 }
  0xaa   : > { %1019 = vmatmul.mubr.bf16.gmra.mxu0 %v7429_v27 }
  0xab   : > { %1026 = vmatprep.mubr.bf16.mxu0 %v7430_v28 }
  0xb2   : > { %1027 = vmatmul.mubr.bf16.gmra.mxu0 %v7432_v29  ;;  %v7449_v29 = vld [vmem:[%s9437_s28 + $0x18] sm:$0xff]  }
  0xb3   : > { %1034 = vmatprep.mubr.bf16.mxu0 %v7433_v30 }
  0xba   : > { %1035 = vmatmul.mubr.bf16.gmra.mxu0 %v7435_v31  ;;  %v7450_v31 = vld [vmem:[%s9437_s28 + $0x50] sm:$0xff]  }
 0x142   : > { %v6403_v37 = vpop.f32.mrf.mxu0 }
 0x144   : > { %v6404_v38 = vpop.f32.mrf.mxu0 }
 0x145   : > { %v6405_v39 = vadd.f32 %v6404_v38, %v6403_v37  ;;  %v7452_v38 = vld [vmem:[%s9437_s28 + $0x48] sm:$0xff]  }
 0x146   : > { %v6406_v41 = vpop.f32.mrf.mxu0 }
 0x147   : > { %v981_v43 = vadd.f32 %v6405_v39, %v8180_v40 }
 0x148   : > { %v6407_v42 = vpop.f32.mrf.mxu0 }
 0x149   : > { %v6408_v44 = vadd.f32 %v6407_v42, %v6406_v41  ;;  %v1043_v48 = vmax.f32 %v981_v43, 0.0 }
 0x14a   : > { %v6409_v45 = vpop.f32.mrf.mxu0 }
 0x14b   : > { %v984_v46 = vadd.f32 %v6408_v44, %v8180_v40 }
 0x14c   : > { %v6410_v47 = vpop.f32.mrf.mxu0 }
 0x14d   : > { %v6411_v49 = vadd.f32 %v6410_v47, %v6409_v45  ;;  %v1044_v50 = vmax.f32 %v984_v46, 0.0  ;;  %v7453_v45 = vld [vmem:[%s9437_s28 + $0x8] sm:$0xff]   ;;  %v7454_v47 = vld [vmem:[%s9437_s28 + $0x40] sm:$0xff]  }
 0x14e   : > { %v6412_v51 = vpop.f32.mrf.mxu0 }
 0x14f   : > { %v1067_v52 = vpack.c.bf16 %v1044_v50, %v1043_v48  ;;  %v989_v54 = vadd.f32 %v6411_v49, %v8180_v40 }
 0x150   : > { %v6413_v53 = vpop.f32.mrf.mxu0 }
 0x151   : > { %v6414_v55 = vadd.f32 %v6413_v53, %v6412_v51  ;;  %6911 = vmatprep.mubr.msk.bf16.mxu1 %vm1106_vm0, %v1067_v52  ;;  %v1045_v59 = vmax.f32 %v989_v54, 0.0  ;;  %v7455_v52 = vld [vmem:[%s9437_s28] sm:$0xff]   ;;  %v7459_v54 = vld [vmem:[%s9437_s28 + $0x78] sm:$0xff]  }
 0x152   : > { %v6415_v56 = vpop.f32.mrf.mxu0 }
 0x153   : > { %v992_v57 = vadd.f32 %v6414_v55, %v8180_v40 }
 0x154   : > { %v6416_v58 = vpop.f32.mrf.mxu0 }
 0x155   : > { %v1046_v60 = vmax.f32 %v992_v57, 0.0  ;;  %v6417_v61 = vadd.f32 %v6416_v58, %v6415_v56 }
 0x156   : > { %v6418_v62 = vpop.f32.mrf.mxu0 }
 0x157   : > { %v1068_v0 = vpack.c.bf16 %v1046_v60, %v1045_v59  ;;  %v997_v3 = vadd.f32 %v6417_v61, %v8180_v40 }
 0x158   : > { %v6419_v2 = vpop.f32.mrf.mxu0 }
 0x159   : > { %v6420_v4 = vadd.f32 %v6419_v2, %v6418_v62  ;;  %6912 = vmatmul.mubr.msk.bf16.vlgmr.msra.gmra.mxu1 %vm1106_vm0, %v1068_v0  ;;  %v1047_v10 = vmax.f32 %v997_v3, 0.0 }
 0x15a   : > { %v6421_v5 = vpop.f32.mrf.mxu0  ;;  %6464 = vmatpush3.bf16.msra.mxu1 %v7441_v63 }
 0x15b   : > { %v1000_v7 = vadd.f32 %v6420_v4, %v8180_v40  ;;  %6465 = vmatprep.subr.bf16.mxu1 %v7442_v1 }
 0x15c   : > { %v6422_v9 = vpop.f32.mrf.mxu0 }
 0x15d   : > { %v1048_v11 = vmax.f32 %v1000_v7, 0.0  ;;  %v6423_v12 = vadd.f32 %v6422_v9, %v6421_v5 }
 0x15e   : > { %v6424_v13 = vpop.f32.mrf.mxu0  ;;  %6466 = vmatpush3.bf16.msra.mxu1 %v7443_v6 }
 0x15f   : > { %v1069_v15 = vpack.c.bf16 %v1048_v11, %v1047_v10  ;;  %6467 = vmatprep.subr.bf16.mxu1 %v7444_v8  ;;  %v1005_v18 = vadd.f32 %v6423_v12, %v8180_v40 }
 0x160   : > { %v6425_v17 = vpop.f32.mrf.mxu0 }
 0x161   : > { %v6426_v19 = vadd.f32 %v6425_v17, %v6424_v13  ;;  %6915 = vmatprep.mubr.msk.bf16.mxu1 %vm1106_vm0, %v1069_v15  ;;  %v1049_v25 = vmax.f32 %v1005_v18, 0.0  ;;  %v7460_v17 = vld [vmem:[%s9437_s28 + $0x38] sm:$0xff]  }
 0x162   : > { %v6427_v20 = vpop.f32.mrf.mxu0  ;;  %6468 = vmatpush3.bf16.msra.mxu1 %v7445_v14  ;;  %v7458_v14 = vld [vmem:[%s8178_s29 + $0x4] ss:$8 sps:$4 sm:$0xff]   ;;  %v7461_v18 = vld [vmem:[%s8178_s29 + $0x14] ss:$8 sps:$4 sm:$0xff]  }
 0x163   : > { %v1008_v22 = vadd.f32 %v6426_v19, %v8180_v40  ;;  %6469 = vmatprep.subr.bf16.mxu1 %v7446_v16  ;;  %v7456_v16 = vld [vmem:[%s8178_s29] ss:$8 sps:$4 sm:$0xff]   ;;  %v7463_v19 = vld [vmem:[%s9437_s28 + $0x70] sm:$0xff]  }
 0x164   : > { %v6428_v24 = vpop.f32.mrf.mxu0 }
 0x165   : > { %v1050_v26 = vmax.f32 %v1008_v22, 0.0  ;;  %v6429_v27 = vadd.f32 %v6428_v24, %v6427_v20  ;;  %v7465_v20 = vld [vmem:[%s9437_s28 + $0x30] sm:$0xff]   ;;  %v7470_v24 = vld [vmem:[%s9437_s28 + $0x28] sm:$0xff]  }
 0x166   : > { %v6430_v28 = vpop.f32.mrf.mxu0  ;;  %6470 = vmatpush3.bf16.msra.mxu1 %v7447_v21  ;;  %v7468_v21 = vld [vmem:[%s9437_s28 + $0x68] sm:$0xff]   ;;  %v7464_v22 = vld [vmem:[%s8178_s29 + $0x10] ss:$8 sps:$4 sm:$0xff]  }
 0x167   : > { %v1070_v30 = vpack.c.bf16 %v1050_v26, %v1049_v25  ;;  %6471 = vmatprep.subr.bf16.mxu1 %v7448_v23  ;;  %v1013_v33 = vadd.f32 %v6429_v27, %v8180_v40  ;;  %v7466_v23 = vld [vmem:[%s8178_s29 + $0x24] ss:$8 sps:$4 sm:$0xff]   ;;  %v7478_v27 = vld [vmem:[%s9437_s28 + $0x58] sm:$0xff]  }
 0x168   : > { %v6431_v32 = vpop.f32.mrf.mxu0  ;;  %v7473_v25 = vld [vmem:[%s9437_s28 + $0x60] sm:$0xff]  }
 0x169   : > { %v6432_v34 = vadd.f32 %v6431_v32, %v6430_v28  ;;  %6916 = vmatmul.mubr.msk.bf16.gmra.mxu1 %vm1106_vm0, %v1070_v30  ;;  %v1051_v41 = vmax.f32 %v1013_v33, 0.0  ;;  %v7475_v26 = vld [vmem:[%s9437_s28 + $0x20] sm:$0xff]   ;;  %v7480_v30 = vld [vmem:[%s9437_s28 + $0x18] sm:$0xff]   ;;  %v7485_v32 = vld [vmem:[%s9437_s28 + $0x10] sm:$0xff]  }
 0x16a   : > { %v6433_v35 = vpop.f32.mrf.mxu0  ;;  %6472 = vmatpush3.bf16.msra.mxu1 %v7449_v29  ;;  %v7469_v28 = vld [vmem:[%s8178_s29 + $0x20] ss:$8 sps:$4 sm:$0xff]   ;;  %v7471_v29 = vld [vmem:[%s8178_s29 + $0x34] ss:$8 sps:$4 sm:$0xff]  }
 0x16b   : > { %v1016_v37 = vadd.f32 %v6432_v34, %v8180_v40  ;;  %6473 = vmatprep.subr.bf16.mxu1 %v7450_v31  ;;  %v7483_v31 = vld [vmem:[%s9437_s28 + $0x50] sm:$0xff]   ;;  %v7488_v33 = vld [vmem:[%s9437_s28 + $0x48] sm:$0xff]  }
 0x16c   : > { %v6434_v39 = vpop.f32.mrf.mxu0  ;;  %v7474_v34 = vld [vmem:[%s8178_s29 + $0x30] ss:$8 sps:$4 sm:$0xff]  }
 0x16d   : > { %v1052_v42 = vmax.f32 %v1016_v37, 0.0  ;;  %v6435_v43 = vadd.f32 %v6434_v39, %v6433_v35  ;;  %v7476_v35 = vld [vmem:[%s8178_s29 + $0x44] ss:$8 sps:$4 sm:$0xff]   ;;  %v7479_v39 = vld [vmem:[%s8178_s29 + $0x40] ss:$8 sps:$4 sm:$0xff]  }
 0x16e   : > { %v6436_v44 = vpop.f32.mrf.mxu0  ;;  %6474 = vmatpush3.bf16.msra.mxu1 %v7451_v36  ;;  %v7490_v36 = vld [vmem:[%s9437_s28 + $0x8] sm:$0xff]   ;;  %v7493_v37 = vld [vmem:[%s9437_s28 + $0x40] sm:$0xff]  }
 0x16f   : > { %v1071_v46 = vpack.c.bf16 %v1052_v42, %v1051_v41  ;;  %6475 = vmatprep.subr.bf16.mxu1 %v7452_v38  ;;  %v1021_v49 = vadd.f32 %v6435_v43, %v8180_v40  ;;  %v7495_v38 = vld [vmem:[%s9437_s28] sm:$0xff]   ;;  %v7481_v41 = vld [vmem:[%s8178_s29 + $0x54] ss:$8 sps:$4 sm:$0xff]   ;;  %v7484_v43 = vld [vmem:[%s8178_s29 + $0x50] ss:$8 sps:$4 sm:$0xff]  }
 0x170   : > { %v6437_v48 = vpop.f32.mrf.mxu0  ;;  %v7520_v42 = vld [vmem:[%s9389_s5 + $0x18] sm:$0xff]  }
 0x171   : > { %v6438_v50 = vadd.f32 %v6437_v48, %v6436_v44  ;;  %6919 = vmatprep.mubr.msk.bf16.mxu1 %vm1106_vm0, %v1071_v46  ;;  %v1053_v56 = vmax.f32 %v1021_v49, 0.0  ;;  %6927 = vmatprep.subr.bf16.mxu0 %v7520_v42  ;;  %v7486_v44 = vld [vmem:[%s8178_s29 + $0x64] ss:$8 sps:$4 sm:$0xff]   ;;  %v7491_v46 = vld [vmem:[%s8178_s29 + $0x74] ss:$8 sps:$4 sm:$0xff]  }
 0x172   : > { %v6439_v51 = vpop.f32.mrf.mxu0  ;;  %6476 = vmatpush3.bf16.msra.mxu1 %v7453_v45  ;;  %6928 = vmatpush3.bf16.msra.mxu0 %v7520_v42  ;;  %v7489_v45 = vld [vmem:[%s8178_s29 + $0x60] ss:$8 sps:$4 sm:$0xff]   ;;  %v7494_v48 = vld [vmem:[%s8178_s29 + $0x70] ss:$8 sps:$4 sm:$0xff]   ;;  %v7498_v49 = vld [vmem:[%s8187_s27 + $0x4] ss:$8 sps:$4 sm:$0xff]  }
 0x173   : > { %v1024_v53 = vadd.f32 %v6438_v50, %v8180_v40  ;;  %6477 = vmatprep.subr.bf16.mxu1 %v7454_v47  ;;  %v7521_v47 = vld [vmem:[%s9389_s5 + $0x10] sm:$0xff]   ;;  %v7496_v50 = vld [vmem:[%s8187_s27] ss:$8 sps:$4 sm:$0xff]   ;;  %s9441_s29 = sld [smem:[#allocation27_spill]] }
 0x174   : > { %v6440_v55 = vpop.f32.mrf.mxu0  ;;  %6929 = vmatprep.subr.bf16.mxu0 %v7521_v47 }
 0x175   : > { %v1054_v57 = vmax.f32 %v1024_v53, 0.0  ;;  %v6441_v58 = vadd.f32 %v6440_v55, %v6439_v51  ;;  %v7499_v51 = vld [vmem:[%s8187_s27 + $0x14] ss:$8 sps:$4 sm:$0xff]   ;;  %v7501_v53 = vld [vmem:[%s8187_s27 + $0x10] ss:$8 sps:$4 sm:$0xff]  }
 0x176   : > { %v6442_v59 = vpop.f32.mrf.mxu0  ;;  %6478 = vmatpush3.bf16.msra.mxu1 %v7455_v52  ;;  %6930 = vmatpush3.bf16.msra.mxu0 %v7521_v47  ;;  %v7522_v52 = vld [vmem:[%s9389_s5 + $0x8] sm:$0xff]  }
 0x177   : > { %v1072_v60 = vpack.c.bf16 %v1054_v57, %v1053_v56  ;;  %6539 = vmatprep.subr.bf16.mxu1 %v7459_v54  ;;  %v1029_v62 = vadd.f32 %v6441_v58, %v8180_v40  ;;  %6931 = vmatprep.subr.bf16.mxu0 %v7522_v52  ;;  %v7502_v54 = vld [vmem:[%s8187_s27 + $0x24] ss:$8 sps:$4 sm:$0xff]   ;;  %v7504_v55 = vld [vmem:[%s8187_s27 + $0x20] ss:$8 sps:$4 sm:$0xff]   ;;  %v7505_v56 = vld [vmem:[%s8187_s27 + $0x34] ss:$8 sps:$4 sm:$0xff]  }
 0x178   : > { %v6443_v61 = vpop.f32.mrf.mxu0  ;;  %v7523_v57 = vld [vmem:[%s9389_s5] sm:$0xff]   ;;  %v7507_v58 = vld [vmem:[%s8187_s27 + $0x30] ss:$8 sps:$4 sm:$0xff]  }
 0x179   : > { %v6444_v63 = vadd.f32 %v6443_v61, %v6442_v59  ;;  %6920 = vmatmul.mubr.msk.bf16.gmra.mxu1 %vm1106_vm0, %v1072_v60  ;;  %v1055_v3 = vmax.f32 %v1029_v62, 0.0  ;;  %v7508_v59 = vld [vmem:[%s8187_s27 + $0x44] ss:$8 sps:$4 sm:$0xff]   ;;  %v7510_v60 = vld [vmem:[%s8187_s27 + $0x40] ss:$8 sps:$4 sm:$0xff]  }
 0x17a   : > { %v6445_v0 = vpop.f32.mrf.mxu0  ;;  %6932 = vmatpush3.bf16.msra.mxu0 %v7522_v52  ;;  %v7511_v61 = vld [vmem:[%s8187_s27 + $0x54] ss:$8 sps:$4 sm:$0xff]   ;;  %v7513_v62 = vld [vmem:[%s8187_s27 + $0x50] ss:$8 sps:$4 sm:$0xff]  }
 0x17b   : > { %v1032_v1 = vadd.f32 %v6444_v63, %v8180_v40  ;;  %6933 = vmatprep.subr.bf16.mxu0 %v7523_v57  ;;  %v7514_v63 = vld [vmem:[%s8187_s27 + $0x64] ss:$8 sps:$4 sm:$0xff]  }
 0x17c   : > { %v6446_v2 = vpop.f32.mrf.mxu0 }
 0x17d   : > { %v1056_v4 = vmax.f32 %v1032_v1, 0.0  ;;  %v6447_v5 = vadd.f32 %v6446_v2, %v6445_v0  ;;  %v7516_v0 = vld [vmem:[%s8187_s27 + $0x60] ss:$8 sps:$4 sm:$0xff]   ;;  %v7517_v1 = vld [vmem:[%s8187_s27 + $0x74] ss:$8 sps:$4 sm:$0xff]  }
 0x17e   : > { %v6448_v6 = vpop.f32.mrf.mxu0  ;;  %6934 = vmatpush3.bf16.msra.mxu0 %v7523_v57  ;;  %v7519_v2 = vld [vmem:[%s8187_s27 + $0x70] ss:$8 sps:$4 sm:$0xff]   ;;  %s7790_s27 = scalar_lea.vmem %s7789_s2, 4096 }
 0x17f   : > { %v1073_v7 = vpack.c.bf16 %v1056_v4, %v1055_v3  ;;  %v1037_v9 = vadd.f32 %v6447_v5, %v8180_v40  ;;  %v8352_v3 = vld [vmem:[%s9389_s5 + $0x18] sm:$0xff]   ;;  %v8357_v4 = vld [vmem:[%s9390_s6] ss:$0 sm:$0xff]  ;;  %p7792_p4 = scmp.lt.s32.totalorder %s7790_s27, %s7784_s20 }
 0x180   : > { %v6449_v8 = vpop.f32.mrf.mxu0  ;;  %6951 = vmatprep.subr.bf16.mxu0 %v8352_v3 }
 0x181   : > { %v6450_v10 = vadd.f32 %v6449_v8, %v6448_v6  ;;  %6923 = vmatprep.mubr.msk.bf16.mxu1 %vm1106_vm0, %v1073_v7  ;;  %v1057_v12 = vmax.f32 %v1037_v9, 0.0  ;;  %p7793_p7 = por %p7792_p4, %p7791_p3 }
 0x183   : > { %v1040_v11 = vadd.f32 %v6450_v10, %v8180_v40  ;;  %p7794_p13 = pnand %p7793_p7, %p7787_p9 }
 0x185   : > { %v1058_v13 = vmax.f32 %v1040_v11, 0.0 }
 0x187   : > { %v1074_v15 = vpack.c.bf16 %v1058_v13, %v1057_v12 }
 0x189   : > { %6924 = vmatmul.mubr.msk.bf16.gmra.mxu1 %vm1106_vm0, %v1074_v15 }
 0x18a   : > { %1572 = vmatprep.mubr.bf16.mxu1 %v7458_v14 }
 0x191   : > { %1573 = vmatmul.mubr.bf16.vlgmr.msra.gmra.mxu1 %v7456_v16 }
 0x192   : > { %6540 = vmatpush3.bf16.msra.mxu1 %v7460_v17  ;;  %1580 = vmatprep.mubr.bf16.mxu1 %v7461_v18 }
 0x193   : > { %6541 = vmatprep.subr.bf16.mxu1 %v7463_v19 }
 0x196   : > { %6542 = vmatpush3.bf16.msra.mxu1 %v7465_v20 }
 0x197   : > { %6543 = vmatprep.subr.bf16.mxu1 %v7468_v21 }
 0x199   : > { %1581 = vmatmul.mubr.bf16.gmra.mxu1 %v7464_v22 }
 0x19a   : > { %1588 = vmatprep.mubr.bf16.mxu1 %v7466_v23  ;;  %6544 = vmatpush3.bf16.msra.mxu1 %v7470_v24 }
 0x19b   : > { %6545 = vmatprep.subr.bf16.mxu1 %v7473_v25 }
 0x19e   : > { %6546 = vmatpush3.bf16.msra.mxu1 %v7475_v26 }
 0x19f   : > { %6547 = vmatprep.subr.bf16.mxu1 %v7478_v27 }
 0x1a1   : > { %1589 = vmatmul.mubr.bf16.gmra.mxu1 %v7469_v28 }
 0x1a2   : > { %1596 = vmatprep.mubr.bf16.mxu1 %v7471_v29  ;;  %6548 = vmatpush3.bf16.msra.mxu1 %v7480_v30 }
 0x1a3   : > { %6549 = vmatprep.subr.bf16.mxu1 %v7483_v31 }
 0x1a6   : > { %6550 = vmatpush3.bf16.msra.mxu1 %v7485_v32 }
 0x1a7   : > { %6551 = vmatprep.subr.bf16.mxu1 %v7488_v33 }
 0x1a9   : > { %1597 = vmatmul.mubr.bf16.gmra.mxu1 %v7474_v34 }
 0x1aa   : > { %1604 = vmatprep.mubr.bf16.mxu1 %v7476_v35  ;;  %6552 = vmatpush3.bf16.msra.mxu1 %v7490_v36 }
 0x1ab   : > { %6553 = vmatprep.subr.bf16.mxu1 %v7493_v37 }
 0x1ae   : > { %6554 = vmatpush3.bf16.msra.mxu1 %v7495_v38 }
 0x1b1   : > { %1605 = vmatmul.mubr.bf16.gmra.mxu1 %v7479_v39 }
 0x1b2   : > { %1612 = vmatprep.mubr.bf16.mxu1 %v7481_v41 }
 0x1b9   : > { %1613 = vmatmul.mubr.bf16.gmra.mxu1 %v7484_v43 }
 0x1ba   : > { %1620 = vmatprep.mubr.bf16.mxu1 %v7486_v44 }
 0x1c1   : > { %1621 = vmatmul.mubr.bf16.gmra.mxu1 %v7489_v45 }
 0x1c2   : > { %1628 = vmatprep.mubr.bf16.mxu1 %v7491_v46 }
 0x1c9   : > { %1629 = vmatmul.mubr.bf16.gmra.mxu1 %v7494_v48 }
 0x1ca   : > { %2197 = vmatprep.mubr.bf16.mxu1 %v7498_v49 }
 0x1d1   : > { %2198 = vmatmul.mubr.bf16.vlgmr.msra.gmra.mxu1 %v7496_v50 }
 0x1d2   : > { %2205 = vmatprep.mubr.bf16.mxu1 %v7499_v51 }
 0x1d9   : > { %2206 = vmatmul.mubr.bf16.gmra.mxu1 %v7501_v53 }
 0x1da   : > { %2213 = vmatprep.mubr.bf16.mxu1 %v7502_v54 }
 0x1e1   : > { %2214 = vmatmul.mubr.bf16.gmra.mxu1 %v7504_v55 }
 0x1e2   : > { %2221 = vmatprep.mubr.bf16.mxu1 %v7505_v56 }
 0x1e9   : > { %2222 = vmatmul.mubr.bf16.gmra.mxu1 %v7507_v58 }
 0x1ea   : > { %2229 = vmatprep.mubr.bf16.mxu1 %v7508_v59 }
 0x1f1   : > { %2230 = vmatmul.mubr.bf16.gmra.mxu1 %v7510_v60 }
 0x1f2   : > { %2237 = vmatprep.mubr.bf16.mxu1 %v7511_v61 }
 0x1f9   : > { %2238 = vmatmul.mubr.bf16.gmra.mxu1 %v7513_v62 }
 0x1fa   : > { %2245 = vmatprep.mubr.bf16.mxu1 %v7514_v63 }
 0x201   : > { %2246 = vmatmul.mubr.bf16.gmra.mxu1 %v7516_v0 }
 0x202   : > { %2253 = vmatprep.mubr.bf16.mxu1 %v7517_v1 }
 0x209   : > { %2254 = vmatmul.mubr.bf16.gmra.mxu1 %v7519_v2 }
 0x219   : > { %v6913_v5 = vpop.f32.mrf.mxu1 }
 0x21a   : > { %v1174_v6 = vadd.f32 %v6913_v5, %v8357_v4 }
 0x21b   : > { %v1165_v7 = vpop.f32.mrf.mxu1 }
 0x21c   : > { %v6292_v8 = vpack.c.bf16 %v1174_v6, %v1174_v6  ;;  %v1166_v9 = vadd.f32 %v8357_v4, %v1165_v7 }
 0x21d   : > { %v6914_v10 = vpop.f32.mrf.mxu1 }
 0x21e   : > { %1295 = vst.msk [vmem:[#allocation2 + $0x18] sm:$0xf] %vm1292_vm1, %v6292_v8  ;;  %v6290_v11 = vpack.c.bf16 %v1166_v9, %v1166_v9  ;;  %v1177_v12 = vadd.f32 %v6914_v10, %v8357_v4 }
 0x21f   : > { %v1168_v13 = vpop.f32.mrf.mxu1 }
 0x220   : > { %1293 = vst.msk [vmem:[#allocation2] sm:$0xf] %vm1292_vm1, %v6290_v11  ;;  %v6293_v14 = vpack.c.bf16 %v1177_v12, %v1177_v12  ;;  %v1169_v15 = vadd.f32 %v8357_v4, %v1168_v13 }
 0x222   : > { %1296 = vst.msk [vmem:[#allocation2 + $0x24] sm:$0xf] %vm1292_vm1, %v6293_v14  ;;  %v6291_v16 = vpack.c.bf16 %v1169_v15, %v1169_v15 }
 0x224   : > { %1294 = vst.msk [vmem:[#allocation2 + $0xc] sm:$0xf] %vm1292_vm1, %v6291_v16 }
 0x229   : > { %v6917_v17 = vpop.f32.mrf.mxu1 }
 0x22a   : > { %v1190_v18 = vadd.f32 %v6917_v17, %v8357_v4 }
 0x22b   : > { %v1181_v19 = vpop.f32.mrf.mxu1 }
 0x22c   : > { %v6296_v20 = vpack.c.bf16 %v1190_v18, %v1190_v18  ;;  %v1182_v21 = vadd.f32 %v8357_v4, %v1181_v19  ;;  %v7525_v18 = vld [vmem:[%s9389_s5 + $0x10] sm:$0xff]  }
 0x22d   : > { %v6918_v22 = vpop.f32.mrf.mxu1 }
 0x22e   : > { %1299 = vst.msk [vmem:[#allocation2 + $0x48] sm:$0xf] %vm1292_vm1, %v6296_v20  ;;  %v6294_v23 = vpack.c.bf16 %v1182_v21, %v1182_v21  ;;  %v1193_v24 = vadd.f32 %v6918_v22, %v8357_v4 }
 0x22f   : > { %v1184_v25 = vpop.f32.mrf.mxu1 }
 0x230   : > { %1297 = vst.msk [vmem:[#allocation2 + $0x30] sm:$0xf] %vm1292_vm1, %v6294_v23  ;;  %v6297_v26 = vpack.c.bf16 %v1193_v24, %v1193_v24  ;;  %v1185_v27 = vadd.f32 %v8357_v4, %v1184_v25  ;;  %v7526_v24 = vld [vmem:[%s9389_s5 + $0x8] sm:$0xff]  }
 0x232   : > { %1300 = vst.msk [vmem:[#allocation2 + $0x54] sm:$0xf] %vm1292_vm1, %v6297_v26  ;;  %v6295_v28 = vpack.c.bf16 %v1185_v27, %v1185_v27 }
 0x234   : > { %1298 = vst.msk [vmem:[#allocation2 + $0x3c] sm:$0xf] %vm1292_vm1, %v6295_v28 }
 0x239   : > { %v6921_v29 = vpop.f32.mrf.mxu1 }
 0x23a   : > { %v1206_v30 = vadd.f32 %v6921_v29, %v8357_v4 }
 0x23b   : > { %v1197_v31 = vpop.f32.mrf.mxu1 }
 0x23c   : > { %v6300_v32 = vpack.c.bf16 %v1206_v30, %v1206_v30  ;;  %v1198_v33 = vadd.f32 %v8357_v4, %v1197_v31  ;;  %v7527_v31 = vld [vmem:[%s9389_s5] sm:$0xff]  }
 0x23d   : > { %v6922_v34 = vpop.f32.mrf.mxu1 }
 0x23e   : > { %1303 = vst.msk [vmem:[#allocation2 + $0x78] sm:$0xf] %vm1292_vm1, %v6300_v32  ;;  %v6298_v35 = vpack.c.bf16 %v1198_v33, %v1198_v33  ;;  %v1209_v36 = vadd.f32 %v6922_v34, %v8357_v4 }
 0x23f   : > { %v1200_v37 = vpop.f32.mrf.mxu1 }
 0x240   : > { %1301 = vst.msk [vmem:[#allocation2 + $0x60] sm:$0xf] %vm1292_vm1, %v6298_v35  ;;  %v6301_v38 = vpack.c.bf16 %v1209_v36, %v1209_v36  ;;  %v1201_v39 = vadd.f32 %v8357_v4, %v1200_v37 }
 0x242   : > { %1304 = vst.msk [vmem:[#allocation2 + $0x84] sm:$0xf] %vm1292_vm1, %v6301_v38  ;;  %v6299_v41 = vpack.c.bf16 %v1201_v39, %v1201_v39 }
 0x244   : > { %1302 = vst.msk [vmem:[#allocation2 + $0x6c] sm:$0xf] %vm1292_vm1, %v6299_v41 }
 0x249   : > { %v6925_v42 = vpop.f32.mrf.mxu1 }
 0x24a   : > { %v1222_v43 = vadd.f32 %v6925_v42, %v8357_v4 }
 0x24b   : > { %v1213_v44 = vpop.f32.mrf.mxu1 }
 0x24c   : > { %v6304_v45 = vpack.c.bf16 %v1222_v43, %v1222_v43  ;;  %v1214_v46 = vadd.f32 %v8357_v4, %v1213_v44 }
 0x24d   : > { %v6926_v47 = vpop.f32.mrf.mxu1 }
 0x24e   : > { %1307 = vst.msk [vmem:[#allocation2 + $0xa8] sm:$0xf] %vm1292_vm1, %v6304_v45  ;;  %v6302_v48 = vpack.c.bf16 %v1214_v46, %v1214_v46  ;;  %v1225_v49 = vadd.f32 %v6926_v47, %v8357_v4 }
 0x24f   : > { %v1216_v50 = vpop.f32.mrf.mxu1 }
 0x250   : > { %1305 = vst.msk [vmem:[#allocation2 + $0x90] sm:$0xf] %vm1292_vm1, %v6302_v48  ;;  %v6305_v51 = vpack.c.bf16 %v1225_v49, %v1225_v49  ;;  %v1217_v52 = vadd.f32 %v8357_v4, %v1216_v50 }
 0x251   : > { %v6479_v53 = vpop.f32.mrf.mxu1 }
 0x252   : > { %1308 = vst.msk [vmem:[#allocation2 + $0xb4] sm:$0xf] %vm1292_vm1, %v6305_v51  ;;  %v6303_v54 = vpack.c.bf16 %v1217_v52, %v1217_v52 }
 0x253   : > { %v6480_v55 = vpop.f32.mrf.mxu1 }
 0x254   : > { %1306 = vst.msk [vmem:[#allocation2 + $0x9c] sm:$0xf] %vm1292_vm1, %v6303_v54  ;;  %v6481_v56 = vadd.f32 %v6480_v55, %v6479_v53 }
 0x255   : > { %v6482_v57 = vpop.f32.mrf.mxu1 }
 0x256   : > { %v1575_v59 = vadd.f32 %v6481_v56, %v8180_v40 }
 0x257   : > { %v6483_v58 = vpop.f32.mrf.mxu1 }
 0x258   : > { %v6484_v60 = vadd.f32 %v6483_v58, %v6482_v57  ;;  %v1637_v0 = vmax.f32 %v1575_v59, 0.0 }
 0x259   : > { %v6485_v61 = vpop.f32.mrf.mxu1 }
 0x25a   : > { %v1578_v62 = vadd.f32 %v6484_v60, %v8180_v40 }
 0x25b   : > { %v6486_v63 = vpop.f32.mrf.mxu1 }
 0x25c   : > { %v1638_v1 = vmax.f32 %v1578_v62, 0.0  ;;  %v6487_v2 = vadd.f32 %v6486_v63, %v6485_v61 }
 0x25d   : > { %v6488_v5 = vpop.f32.mrf.mxu1 }
 0x25e   : > { %v1661_v6 = vpack.c.bf16 %v1638_v1, %v1637_v0  ;;  %v1583_v8 = vadd.f32 %v6487_v2, %v8180_v40 }
 0x25f   : > { %v6489_v7 = vpop.f32.mrf.mxu1 }
 0x260   : > { %v6490_v9 = vadd.f32 %v6489_v7, %v6488_v5  ;;  %6935 = vmatprep.mubr.msk.bf16.mxu0 %vm1106_vm0, %v1661_v6  ;;  %v1639_v13 = vmax.f32 %v1583_v8, 0.0 }
 0x261   : > { %v6491_v10 = vpop.f32.mrf.mxu1 }
 0x262   : > { %v1586_v11 = vadd.f32 %v6490_v9, %v8180_v40 }
 0x263   : > { %v6492_v12 = vpop.f32.mrf.mxu1 }
 0x264   : > { %v1640_v14 = vmax.f32 %v1586_v11, 0.0  ;;  %v6493_v15 = vadd.f32 %v6492_v12, %v6491_v10 }
 0x265   : > { %v6494_v16 = vpop.f32.mrf.mxu1 }
 0x266   : > { %v1662_v17 = vpack.c.bf16 %v1640_v14, %v1639_v13  ;;  %v1591_v20 = vadd.f32 %v6493_v15, %v8180_v40 }
 0x267   : > { %v6495_v19 = vpop.f32.mrf.mxu1 }
 0x268   : > { %v6496_v21 = vadd.f32 %v6495_v19, %v6494_v16  ;;  %6936 = vmatmul.mubr.msk.bf16.vlgmr.msra.gmra.mxu0 %vm1106_vm0, %v1662_v17  ;;  %v1641_v26 = vmax.f32 %v1591_v20, 0.0 }
 0x269   : > { %v6497_v22 = vpop.f32.mrf.mxu1  ;;  %6952 = vmatpush3.bf16.msra.mxu0 %v8352_v3 }
 0x26a   : > { %v1594_v23 = vadd.f32 %v6496_v21, %v8180_v40  ;;  %6953 = vmatprep.subr.bf16.mxu0 %v7525_v18 }
 0x26b   : > { %v6498_v25 = vpop.f32.mrf.mxu1 }
 0x26c   : > { %v1642_v27 = vmax.f32 %v1594_v23, 0.0  ;;  %v6499_v28 = vadd.f32 %v6498_v25, %v6497_v22  ;;  %v8425_v23 = vld [vmem:[#allocation3] ss:$0 sm:$0xff] }
 0x26d   : > { %v6500_v29 = vpop.f32.mrf.mxu1  ;;  %6954 = vmatpush3.bf16.msra.mxu0 %v7525_v18 }
 0x26e   : > { %v1663_v30 = vpack.c.bf16 %v1642_v27, %v1641_v26  ;;  %6955 = vmatprep.subr.bf16.mxu0 %v7526_v24  ;;  %v1599_v32 = vadd.f32 %v6499_v28, %v8180_v40 }
 0x26f   : > { %v6501_v3 = vpop.f32.mrf.mxu1 }
 0x270   : > { %v6502_v33 = vadd.f32 %v6501_v3, %v6500_v29  ;;  %6939 = vmatprep.mubr.msk.bf16.mxu0 %vm1106_vm0, %v1663_v30  ;;  %v1643_v37 = vmax.f32 %v1599_v32, 0.0 }
 0x271   : > { %v6503_v34 = vpop.f32.mrf.mxu1  ;;  %6956 = vmatpush3.bf16.msra.mxu0 %v7526_v24 }
 0x272   : > { %v1602_v35 = vadd.f32 %v6502_v33, %v8180_v40  ;;  %6957 = vmatprep.subr.bf16.mxu0 %v7527_v31 }
 0x273   : > { %v6504_v36 = vpop.f32.mrf.mxu1 }
 0x274   : > { %v1644_v38 = vmax.f32 %v1602_v35, 0.0  ;;  %v6505_v39 = vadd.f32 %v6504_v36, %v6503_v34 }
 0x275   : > { %v6506_v41 = vpop.f32.mrf.mxu1  ;;  %6958 = vmatpush3.bf16.msra.mxu0 %v7527_v31 }
 0x276   : > { %v1664_v42 = vpack.c.bf16 %v1644_v38, %v1643_v37  ;;  %v1607_v44 = vadd.f32 %v6505_v39, %v8180_v40 }
 0x277   : > { %v6507_v43 = vpop.f32.mrf.mxu1 }
 0x278   : > { %v6508_v45 = vadd.f32 %v6507_v43, %v6506_v41  ;;  %6940 = vmatmul.mubr.msk.bf16.gmra.mxu0 %vm1106_vm0, %v1664_v42  ;;  %v1645_v49 = vmax.f32 %v1607_v44, 0.0 }
 0x279   : > { %v6509_v46 = vpop.f32.mrf.mxu1 }
 0x27a   : > { %v1610_v47 = vadd.f32 %v6508_v45, %v8180_v40 }
 0x27b   : > { %v6510_v48 = vpop.f32.mrf.mxu1 }
 0x27c   : > { %v1646_v50 = vmax.f32 %v1610_v47, 0.0  ;;  %v6511_v51 = vadd.f32 %v6510_v48, %v6509_v46 }
 0x27d   : > { %v6512_v52 = vpop.f32.mrf.mxu1 }
 0x27e   : > { %v1665_v53 = vpack.c.bf16 %v1646_v50, %v1645_v49  ;;  %v1615_v55 = vadd.f32 %v6511_v51, %v8180_v40 }
 0x27f   : > { %v6513_v54 = vpop.f32.mrf.mxu1 }
 0x280   : > { %v6514_v56 = vadd.f32 %v6513_v54, %v6512_v52  ;;  %6943 = vmatprep.mubr.msk.bf16.mxu0 %vm1106_vm0, %v1665_v53  ;;  %v1647_v60 = vmax.f32 %v1615_v55, 0.0 }
 0x281   : > { %v6515_v57 = vpop.f32.mrf.mxu1 }
 0x282   : > { %v1618_v58 = vadd.f32 %v6514_v56, %v8180_v40 }
 0x283   : > { %v6516_v59 = vpop.f32.mrf.mxu1 }
 0x284   : > { %v1648_v61 = vmax.f32 %v1618_v58, 0.0  ;;  %v6517_v62 = vadd.f32 %v6516_v59, %v6515_v57 }
 0x285   : > { %v6518_v63 = vpop.f32.mrf.mxu1 }
 0x286   : > { %v1666_v0 = vpack.c.bf16 %v1648_v61, %v1647_v60  ;;  %v1623_v2 = vadd.f32 %v6517_v62, %v8180_v40 }
 0x287   : > { %v6519_v1 = vpop.f32.mrf.mxu1 }
 0x288   : > { %v6520_v5 = vadd.f32 %v6519_v1, %v6518_v63  ;;  %6944 = vmatmul.mubr.msk.bf16.gmra.mxu0 %vm1106_vm0, %v1666_v0  ;;  %v1649_v9 = vmax.f32 %v1623_v2, 0.0 }
 0x289   : > { %v6521_v6 = vpop.f32.mrf.mxu1 }
 0x28a   : > { %v1626_v7 = vadd.f32 %v6520_v5, %v8180_v40 }
 0x28b   : > { %v6522_v8 = vpop.f32.mrf.mxu1 }
 0x28c   : > { %v1650_v10 = vmax.f32 %v1626_v7, 0.0  ;;  %v6523_v11 = vadd.f32 %v6522_v8, %v6521_v6 }
 0x28d   : > { %v6524_v12 = vpop.f32.mrf.mxu1 }
 0x28e   : > { %v1667_v13 = vpack.c.bf16 %v1650_v10, %v1649_v9  ;;  %v1631_v15 = vadd.f32 %v6523_v11, %v8180_v40 }
 0x28f   : > { %v6525_v14 = vpop.f32.mrf.mxu1 }
 0x290   : > { %v6526_v16 = vadd.f32 %v6525_v14, %v6524_v12  ;;  %6947 = vmatprep.mubr.msk.bf16.mxu0 %vm1106_vm0, %v1667_v13  ;;  %v1651_v20 = vmax.f32 %v1631_v15, 0.0 }
 0x291   : > { %v6555_v17 = vpop.f32.mrf.mxu1 }
 0x292   : > { %v1634_v18 = vadd.f32 %v6526_v16, %v8180_v40 }
 0x293   : > { %v6556_v19 = vpop.f32.mrf.mxu1 }
 0x294   : > { %v1652_v21 = vmax.f32 %v1634_v18, 0.0  ;;  %v6557_v22 = vadd.f32 %v6556_v19, %v6555_v17 }
 0x295   : > { %v6558_v24 = vpop.f32.mrf.mxu1 }
 0x296   : > { %v1668_v25 = vpack.c.bf16 %v1652_v21, %v1651_v20  ;;  %v2200_v27 = vadd.f32 %v6557_v22, %v8425_v23 }
 0x297   : > { %v6559_v26 = vpop.f32.mrf.mxu1 }
 0x298   : > { %v6560_v28 = vadd.f32 %v6559_v26, %v6558_v24  ;;  %6948 = vmatmul.mubr.msk.bf16.gmra.mxu0 %vm1106_vm0, %v1668_v25  ;;  %v2262_v3 = vmax.f32 %v2200_v27, 0.0 }
 0x299   : > { %v6561_v29 = vpop.f32.mrf.mxu1 }
 0x29a   : > { %v2203_v30 = vadd.f32 %v6560_v28, %v8425_v23 }
 0x29b   : > { %v6562_v31 = vpop.f32.mrf.mxu1 }
 0x29c   : > { %v2263_v40 = vmax.f32 %v2203_v30, 0.0  ;;  %v6563_v32 = vadd.f32 %v6562_v31, %v6561_v29 }
 0x29d   : > { %v6564_v33 = vpop.f32.mrf.mxu1 }
 0x29e   : > { %v2286_v34 = vpack.c.bf16 %v2263_v40, %v2262_v3  ;;  %v2208_v36 = vadd.f32 %v6563_v32, %v8425_v23 }
 0x29f   : > { %v6565_v35 = vpop.f32.mrf.mxu1 }
 0x2a0   : > { %v6566_v37 = vadd.f32 %v6565_v35, %v6564_v33  ;;  %6959 = vmatprep.mubr.msk.bf16.mxu0 %vm1106_vm0, %v2286_v34  ;;  %v2264_v42 = vmax.f32 %v2208_v36, 0.0 }
 0x2a1   : > { %v6567_v38 = vpop.f32.mrf.mxu1 }
 0x2a2   : > { %v2211_v39 = vadd.f32 %v6566_v37, %v8425_v23 }
 0x2a3   : > { %v6568_v41 = vpop.f32.mrf.mxu1 }
 0x2a4   : > { %v2265_v43 = vmax.f32 %v2211_v39, 0.0  ;;  %v6569_v44 = vadd.f32 %v6568_v41, %v6567_v38 }
 0x2a5   : > { %v6570_v45 = vpop.f32.mrf.mxu1 }
 0x2a6   : > { %v2287_v46 = vpack.c.bf16 %v2265_v43, %v2264_v42  ;;  %v2216_v48 = vadd.f32 %v6569_v44, %v8425_v23 }
 0x2a7   : > { %v6571_v47 = vpop.f32.mrf.mxu1 }
 0x2a8   : > { %v6572_v49 = vadd.f32 %v6571_v47, %v6570_v45  ;;  %6960 = vmatmul.mubr.msk.bf16.vlgmr.msra.gmra.mxu0 %vm1106_vm0, %v2287_v46  ;;  %v2266_v53 = vmax.f32 %v2216_v48, 0.0  ;;  %v8455_v47 = vld [vmem:[%s9391_s7 + $0x38] sm:$0xff]   ;;  %v8462_v48 = vld [vmem:[%s9391_s7 + $0x30] sm:$0xff]  }
 0x2a9   : > { %v6573_v50 = vpop.f32.mrf.mxu1  ;;  %6975 = vmatprep.subr.bf16.mxu0 %v8455_v47 }
 0x2aa   : > { %v2219_v51 = vadd.f32 %v6572_v49, %v8425_v23  ;;  %6976 = vmatpush3.bf16.msra.mxu0 %v8455_v47  ;;  %v8476_v49 = vld [vmem:[%s9391_s7 + $0x20] sm:$0xff]  }
 0x2ab   : > { %v6574_v52 = vpop.f32.mrf.mxu1  ;;  %6977 = vmatprep.subr.bf16.mxu0 %v8462_v48 }
 0x2ac   : > { %v2267_v54 = vmax.f32 %v2219_v51, 0.0  ;;  %v6575_v55 = vadd.f32 %v6574_v52, %v6573_v50  ;;  %v8484_v50 = vld [vmem:[%s9391_s7 + $0x18] sm:$0xff]   ;;  %v8491_v51 = vld [vmem:[%s9391_s7 + $0x10] sm:$0xff]   ;;  %v8498_v52 = vld [vmem:[%s9391_s7 + $0x8] sm:$0xff]  }
 0x2ad   : > { %v6576_v56 = vpop.f32.mrf.mxu1  ;;  %6999 = vmatprep.subr.bf16.mxu1 %v8484_v50 }
 0x2ae   : > { %v2288_v57 = vpack.c.bf16 %v2267_v54, %v2266_v53  ;;  %v2224_v59 = vadd.f32 %v6575_v55, %v8425_v23  ;;  %6978 = vmatpush3.bf16.msra.mxu0 %v8462_v48  ;;  %7000 = vmatpush3.bf16.msra.mxu1 %v8484_v50  ;;  %v8505_v53 = vld [vmem:[%s9391_s7] sm:$0xff]  }
 0x2af   : > { %v6577_v58 = vpop.f32.mrf.mxu1  ;;  %7001 = vmatprep.subr.bf16.mxu1 %v8491_v51 }
 0x2b0   : > { %v6578_v60 = vadd.f32 %v6577_v58, %v6576_v56  ;;  %6963 = vmatprep.mubr.msk.bf16.mxu0 %vm1106_vm0, %v2288_v57  ;;  %v2268_v0 = vmax.f32 %v2224_v59, 0.0 }
 0x2b1   : > { %v6579_v61 = vpop.f32.mrf.mxu1 }
 0x2b2   : > { %v2227_v62 = vadd.f32 %v6578_v60, %v8425_v23  ;;  %7002 = vmatpush3.bf16.msra.mxu1 %v8491_v51 }
 0x2b3   : > { %v6580_v63 = vpop.f32.mrf.mxu1  ;;  %7003 = vmatprep.subr.bf16.mxu1 %v8498_v52 }
 0x2b4   : > { %v2269_v1 = vmax.f32 %v2227_v62, 0.0  ;;  %v6581_v2 = vadd.f32 %v6580_v63, %v6579_v61 }
 0x2b5   : > { %v6582_v5 = vpop.f32.mrf.mxu1 }
 0x2b6   : > { %v2289_v6 = vpack.c.bf16 %v2269_v1, %v2268_v0  ;;  %v2232_v8 = vadd.f32 %v6581_v2, %v8425_v23  ;;  %7004 = vmatpush3.bf16.msra.mxu1 %v8498_v52 }
 0x2b7   : > { %v6583_v7 = vpop.f32.mrf.mxu1  ;;  %7005 = vmatprep.subr.bf16.mxu1 %v8505_v53 }
 0x2b8   : > { %v6584_v9 = vadd.f32 %v6583_v7, %v6582_v5  ;;  %6964 = vmatmul.mubr.msk.bf16.gmra.mxu0 %vm1106_vm0, %v2289_v6  ;;  %v2270_v13 = vmax.f32 %v2232_v8, 0.0 }
 0x2b9   : > { %v6585_v10 = vpop.f32.mrf.mxu1 }
 0x2ba   : > { %v2235_v11 = vadd.f32 %v6584_v9, %v8425_v23  ;;  %7006 = vmatpush3.bf16.msra.mxu1 %v8505_v53 }
 0x2bb   : > { %v6586_v12 = vpop.f32.mrf.mxu1 }
 0x2bc   : > { %v2271_v14 = vmax.f32 %v2235_v11, 0.0  ;;  %v6587_v15 = vadd.f32 %v6586_v12, %v6585_v10 }
 0x2bd   : > { %v6588_v16 = vpop.f32.mrf.mxu1 }
 0x2be   : > { %v2290_v17 = vpack.c.bf16 %v2271_v14, %v2270_v13  ;;  %v2240_v19 = vadd.f32 %v6587_v15, %v8425_v23 }
 0x2bf   : > { %v6589_v18 = vpop.f32.mrf.mxu1 }
 0x2c0   : > { %v6590_v20 = vadd.f32 %v6589_v18, %v6588_v16  ;;  %6967 = vmatprep.mubr.msk.bf16.mxu0 %vm1106_vm0, %v2290_v17  ;;  %v2272_v25 = vmax.f32 %v2240_v19, 0.0 }
 0x2c1   : > { %v6591_v21 = vpop.f32.mrf.mxu1 }
 0x2c2   : > { %v2243_v22 = vadd.f32 %v6590_v20, %v8425_v23 }
 0x2c3   : > { %v6592_v24 = vpop.f32.mrf.mxu1 }
 0x2c4   : > { %v2273_v26 = vmax.f32 %v2243_v22, 0.0  ;;  %v6593_v27 = vadd.f32 %v6592_v24, %v6591_v21 }
 0x2c5   : > { %v6594_v28 = vpop.f32.mrf.mxu1 }
 0x2c6   : > { %v2291_v29 = vpack.c.bf16 %v2273_v26, %v2272_v25  ;;  %v2248_v31 = vadd.f32 %v6593_v27, %v8425_v23 }
 0x2c7   : > { %v6595_v30 = vpop.f32.mrf.mxu1 }
 0x2c8   : > { %v6596_v3 = vadd.f32 %v6595_v30, %v6594_v28  ;;  %6968 = vmatmul.mubr.msk.bf16.gmra.mxu0 %vm1106_vm0, %v2291_v29  ;;  %v2274_v34 = vmax.f32 %v2248_v31, 0.0 }
 0x2c9   : > { %v6597_v40 = vpop.f32.mrf.mxu1 }
 0x2ca   : > { %v2251_v32 = vadd.f32 %v6596_v3, %v8425_v23 }
 0x2cb   : > { %v6598_v33 = vpop.f32.mrf.mxu1 }
 0x2cc   : > { %v2275_v35 = vmax.f32 %v2251_v32, 0.0  ;;  %v6599_v36 = vadd.f32 %v6598_v33, %v6597_v40 }
 0x2cd   : > { %v6600_v37 = vpop.f32.mrf.mxu1 }
 0x2ce   : > { %v2292_v38 = vpack.c.bf16 %v2275_v35, %v2274_v34  ;;  %v2256_v41 = vadd.f32 %v6599_v36, %v8425_v23 }
 0x2cf   : > { %v6601_v39 = vpop.f32.mrf.mxu1 }
 0x2d0   : > { %v6602_v42 = vadd.f32 %v6601_v39, %v6600_v37  ;;  %6971 = vmatprep.mubr.msk.bf16.mxu0 %vm1106_vm0, %v2292_v38  ;;  %v2276_v44 = vmax.f32 %v2256_v41, 0.0 }
 0x2d2   : > { %v2259_v43 = vadd.f32 %v6602_v42, %v8425_v23  ;;  %v8469_v23 = vld [vmem:[%s9391_s7 + $0x28] sm:$0xff]  }
 0x2d3   : > { %6979 = vmatprep.subr.bf16.mxu0 %v8469_v23 }
 0x2d4   : > { %v2277_v45 = vmax.f32 %v2259_v43, 0.0  ;;  %6980 = vmatpush3.bf16.msra.mxu0 %v8469_v23 }
 0x2d5   : > { %6981 = vmatprep.subr.bf16.mxu0 %v8476_v49 }
 0x2d6   : > { %v2293_v46 = vpack.c.bf16 %v2277_v45, %v2276_v44 }
 0x2d8   : > { %6972 = vmatmul.mubr.msk.bf16.gmra.mxu0 %vm1106_vm0, %v2293_v46 }
 0x2d9   : > { %6982 = vmatpush3.bf16.msra.mxu0 %v8476_v49 }
 0x2da   : > { %7023 = vmatprep.subr.bf16.mxu0 %v8455_v47 }
 0x328   : > { %v6937_v54 = vpop.f32.mrf.mxu0 }
 0x329   : > { %v1767_v55 = vadd.f32 %v6937_v54, %v8357_v4 }
 0x32a   : > { %v1758_v56 = vpop.f32.mrf.mxu0 }
 0x32b   : > { %v6308_v57 = vpack.c.bf16 %v1767_v55, %v1767_v55  ;;  %v1759_v58 = vadd.f32 %v8357_v4, %v1758_v56 }
 0x32c   : > { %v6938_v59 = vpop.f32.mrf.mxu0 }
 0x32d   : > { %v6306_v60 = vpack.c.bf16 %v1759_v58, %v1759_v58  ;;  %v1770_v61 = vadd.f32 %v6938_v59, %v8357_v4  ;;  %1873 = vrot.lane.b32.xlu1 %v6308_v57, %s7864_s22 }
 0x32e   : > { %v1761_v62 = vpop.f32.mrf.mxu0 }
 0x32f   : > { %v6309_v63 = vpack.c.bf16 %v1770_v61, %v1770_v61  ;;  %v1762_v0 = vadd.f32 %v8357_v4, %v1761_v62  ;;  %1869 = vrot.lane.b32.xlu0 %v6306_v60, %s7864_s22 }
 0x331   : > { %v6307_v1 = vpack.c.bf16 %v1762_v0, %v1762_v0  ;;  %1875 = vrot.lane.b32.xlu1 %v6309_v63, %s7864_s22 }
 0x333   : > { %1871 = vrot.lane.b32.xlu0 %v6307_v1, %s7864_s22 }
 0x338   : > { %v6941_v2 = vpop.f32.mrf.mxu0 }
 0x339   : > { %v1783_v8 = vadd.f32 %v6941_v2, %v8357_v4 }
 0x33a   : > { %v1774_v5 = vpop.f32.mrf.mxu0 }
 0x33b   : > { %v1775_v6 = vadd.f32 %v8357_v4, %v1774_v5  ;;  %v6312_v12 = vpack.c.bf16 %v1783_v8, %v1783_v8 }
 0x33c   : > { %v6942_v7 = vpop.f32.mrf.mxu0 }
 0x33d   : > { %v6310_v9 = vpack.c.bf16 %v1775_v6, %v1775_v6  ;;  %v1786_v13 = vadd.f32 %v6942_v7, %v8357_v4 }
 0x33e   : > { %v1777_v10 = vpop.f32.mrf.mxu0 }
 0x33f   : > { %v1778_v11 = vadd.f32 %v8357_v4, %v1777_v10  ;;  %1877 = vrot.lane.b32.xlu0 %v6310_v9, %s7864_s22  ;;  %v6313_v15 = vpack.c.bf16 %v1786_v13, %v1786_v13 }
 0x341   : > { %v6311_v14 = vpack.c.bf16 %v1778_v11, %v1778_v11 }
 0x343   : > { %1879 = vrot.lane.b32.xlu1 %v6311_v14, %s7864_s22  ;;  %1881 = vrot.lane.b32.xlu0 %v6312_v12, %s7864_s22 }
 0x347   : > { %1883 = vrot.lane.b32.xlu1 %v6313_v15, %s7864_s22 }
 0x348   : > { %v6945_v16 = vpop.f32.mrf.mxu0 }
 0x349   : > { %v1799_v20 = vadd.f32 %v6945_v16, %v8357_v4 }
 0x34a   : > { %v1790_v17 = vpop.f32.mrf.mxu0 }
 0x34b   : > { %v1791_v18 = vadd.f32 %v8357_v4, %v1790_v17  ;;  %v6316_v25 = vpack.c.bf16 %v1799_v20, %v1799_v20 }
 0x34c   : > { %v6946_v19 = vpop.f32.mrf.mxu0 }
 0x34d   : > { %v6314_v21 = vpack.c.bf16 %v1791_v18, %v1791_v18  ;;  %v1802_v26 = vadd.f32 %v6946_v19, %v8357_v4 }
 0x34e   : > { %v1793_v22 = vpop.f32.mrf.mxu0 }
 0x34f   : > { %v1794_v24 = vadd.f32 %v8357_v4, %v1793_v22  ;;  %1885 = vrot.lane.b32.xlu0 %v6314_v21, %s7864_s22  ;;  %v6317_v28 = vpack.c.bf16 %v1802_v26, %v1802_v26 }
 0x351   : > { %v6315_v27 = vpack.c.bf16 %v1794_v24, %v1794_v24 }
 0x353   : > { %1887 = vrot.lane.b32.xlu1 %v6315_v27, %s7864_s22  ;;  %1889 = vrot.lane.b32.xlu0 %v6316_v25, %s7864_s22 }
 0x357   : > { %1891 = vrot.lane.b32.xlu1 %v6317_v28, %s7864_s22 }
 0x358   : > { %v6949_v29 = vpop.f32.mrf.mxu0 }
 0x359   : > { %v1815_v40 = vadd.f32 %v6949_v29, %v8357_v4 }
 0x35a   : > { %v1806_v30 = vpop.f32.mrf.mxu0 }
 0x35b   : > { %v1807_v31 = vadd.f32 %v8357_v4, %v1806_v30  ;;  %v6320_v35 = vpack.c.bf16 %v1815_v40, %v1815_v40 }
 0x35c   : > { %v6950_v3 = vpop.f32.mrf.mxu0 }
 0x35d   : > { %v6318_v32 = vpack.c.bf16 %v1807_v31, %v1807_v31  ;;  %v1818_v36 = vadd.f32 %v6950_v3, %v8357_v4 }
 0x35e   : > { %v1809_v33 = vpop.f32.mrf.mxu0 }
 0x35f   : > { %v1810_v34 = vadd.f32 %v8357_v4, %v1809_v33  ;;  %1893 = vrot.lane.b32.xlu0 %v6318_v32, %s7864_s22  ;;  %v6321_v38 = vpack.c.bf16 %v1818_v36, %v1818_v36 }
 0x361   : > { %v6319_v37 = vpack.c.bf16 %v1810_v34, %v1810_v34 }
 0x363   : > { %1895 = vrot.lane.b32.xlu1 %v6319_v37, %s7864_s22  ;;  %1897 = vrot.lane.b32.xlu0 %v6320_v35, %s7864_s22 }
 0x367   : > { %1899 = vrot.lane.b32.xlu1 %v6321_v38, %s7864_s22 }
 0x368   : > { %v6961_v39 = vpop.f32.mrf.mxu0 }
 0x369   : > { %v2392_v41 = vadd.f32 %v6961_v39, %v8357_v4 }
 0x36a   : > { %v2383_v42 = vpop.f32.mrf.mxu0 }
 0x36b   : > { %v6324_v43 = vpack.c.bf16 %v2392_v41, %v2392_v41  ;;  %v2384_v44 = vadd.f32 %v8357_v4, %v2383_v42 }
 0x36c   : > { %v6962_v45 = vpop.f32.mrf.mxu0 }
 0x36d   : > { %2512 = vst.msk [vmem:[#allocation2 + $0x1c] sm:$0xf] %vm1292_vm1, %v6324_v43  ;;  %v6322_v46 = vpack.c.bf16 %v2384_v44, %v2384_v44  ;;  %v2395_v54 = vadd.f32 %v6962_v45, %v8357_v4 }
 0x36e   : > { %v2386_v55 = vpop.f32.mrf.mxu0 }
 0x36f   : > { %2510 = vst.msk [vmem:[#allocation2 + $0x4] sm:$0xf] %vm1292_vm1, %v6322_v46  ;;  %v6325_v56 = vpack.c.bf16 %v2395_v54, %v2395_v54  ;;  %v2387_v57 = vadd.f32 %v8357_v4, %v2386_v55 }
 0x371   : > { %2513 = vst.msk [vmem:[#allocation2 + $0x28] sm:$0xf] %vm1292_vm1, %v6325_v56  ;;  %v6323_v58 = vpack.c.bf16 %v2387_v57, %v2387_v57 }
 0x373   : > { %2511 = vst.msk [vmem:[#allocation2 + $0x10] sm:$0xf] %vm1292_vm1, %v6323_v58 }
 0x378   : > { %v6965_v59 = vpop.f32.mrf.mxu0  ;;  %v7534_v1 = vld [vmem:[#allocation2 + $0x1c] ss:$12 sps:$4 sm:$0xff]  }
 0x379   : > { %v2408_v60 = vadd.f32 %v6965_v59, %v8357_v4  ;;  %v7549_v56 = vld [vmem:[#allocation2 + $0x1c] ss:$12 sps:$4 sm:$0xff]  }
 0x37a   : > { %v2399_v61 = vpop.f32.mrf.mxu0  ;;  %v7533_v62 = vld [vmem:[#allocation2 + $0x4] ss:$12 sps:$4 sm:$0xff]  }
 0x37b   : > { %v6328_v63 = vpack.c.bf16 %v2408_v60, %v2408_v60  ;;  %v2400_v0 = vadd.f32 %v8357_v4, %v2399_v61  ;;  %6983 = vmatprep.mubr.msk.bf16.mxu0 %vm1106_vm0, %v7533_v62 }
 0x37c   : > { %v6966_v2 = vpop.f32.mrf.mxu0  ;;  %6984 = vmatmul.mubr.msk.bf16.vlgmr.msra.gmra.mxu0 %vm1106_vm0, %v7534_v1 }
 0x37d   : > { %2516 = vst.msk [vmem:[#allocation2 + $0x4c] sm:$0xf] %vm1292_vm1, %v6328_v63  ;;  %v6326_v5 = vpack.c.bf16 %v2400_v0, %v2400_v0  ;;  %v2411_v6 = vadd.f32 %v6966_v2, %v8357_v4  ;;  %7024 = vmatpush3.bf16.msra.mxu0 %v8455_v47 }
 0x37e   : > { %v2402_v7 = vpop.f32.mrf.mxu0  ;;  %7025 = vmatprep.subr.bf16.mxu0 %v8462_v48 }
 0x37f   : > { %2514 = vst.msk [vmem:[#allocation2 + $0x34] sm:$0xf] %vm1292_vm1, %v6326_v5  ;;  %v6329_v8 = vpack.c.bf16 %v2411_v6, %v2411_v6  ;;  %v2403_v9 = vadd.f32 %v8357_v4, %v2402_v7 }
 0x381   : > { %2517 = vst.msk [vmem:[#allocation2 + $0x58] sm:$0xf] %vm1292_vm1, %v6329_v8  ;;  %v6327_v10 = vpack.c.bf16 %v2403_v9, %v2403_v9  ;;  %7026 = vmatpush3.bf16.msra.mxu0 %v8462_v48 }
 0x382   : > { %7027 = vmatprep.subr.bf16.mxu0 %v8469_v23 }
 0x383   : > { %2515 = vst.msk [vmem:[#allocation2 + $0x40] sm:$0xf] %vm1292_vm1, %v6327_v10 }
 0x385   : > { %7028 = vmatpush3.bf16.msra.mxu0 %v8469_v23 }
 0x386   : > { %7029 = vmatprep.subr.bf16.mxu0 %v8476_v49 }
 0x388   : > { %v6969_v11 = vpop.f32.mrf.mxu0  ;;  %v7537_v17 = vld [vmem:[#allocation2 + $0x4c] ss:$12 sps:$4 sm:$0xff]  }
 0x389   : > { %v2424_v12 = vadd.f32 %v6969_v11, %v8357_v4  ;;  %7030 = vmatpush3.bf16.msra.mxu0 %v8476_v49  ;;  %v7556_v0 = vld [vmem:[#allocation2 + $0x4c] ss:$12 sps:$4 sm:$0xff]  }
 0x38a   : > { %v2415_v13 = vpop.f32.mrf.mxu0  ;;  %v7536_v14 = vld [vmem:[#allocation2 + $0x34] ss:$12 sps:$4 sm:$0xff]   ;;  %7031 = vmatprep.subr.bf16.mxu0 %v8484_v50 }
 0x38b   : > { %v6332_v15 = vpack.c.bf16 %v2424_v12, %v2424_v12  ;;  %v2416_v16 = vadd.f32 %v8357_v4, %v2415_v13  ;;  %6987 = vmatprep.mubr.msk.bf16.mxu0 %vm1106_vm0, %v7536_v14  ;;  %v7552_v61 = vld [vmem:[#allocation2 + $0x34] ss:$12 sps:$4 sm:$0xff]  }
 0x38c   : > { %v6970_v18 = vpop.f32.mrf.mxu0  ;;  %6988 = vmatmul.mubr.msk.bf16.gmra.mxu0 %vm1106_vm0, %v7537_v17  ;;  %v7576_v17 = vld [vmem:[#allocation6 + $0x18] sm:$0xff]  }
 0x38d   : > { %2520 = vst.msk [vmem:[#allocation2 + $0x7c] sm:$0xf] %vm1292_vm1, %v6332_v15  ;;  %v6330_v19 = vpack.c.bf16 %v2416_v16, %v2416_v16  ;;  %v2427_v20 = vadd.f32 %v6970_v18, %v8357_v4  ;;  %7032 = vmatpush3.bf16.msra.mxu0 %v8484_v50  ;;  %v7577_v18 = vld [vmem:[#allocation6 + $0x10] sm:$0xff]   ;;  %7055 = vmatprep.subr.bf16.mxu1 %v7576_v17 }
 0x38e   : > { %v2418_v21 = vpop.f32.mrf.mxu0  ;;  %7033 = vmatprep.subr.bf16.mxu0 %v8491_v51 }
 0x38f   : > { %2518 = vst.msk [vmem:[#allocation2 + $0x64] sm:$0xf] %vm1292_vm1, %v6330_v19  ;;  %v6333_v22 = vpack.c.bf16 %v2427_v20, %v2427_v20  ;;  %v2419_v24 = vadd.f32 %v8357_v4, %v2418_v21  ;;  %v7578_v19 = vld [vmem:[#allocation6 + $0x18] sm:$0xff]   ;;  %v7579_v20 = vld [vmem:[#allocation6 + $0x8] sm:$0xff]   ;;  %v7582_v21 = vld [vmem:[#allocation6] sm:$0xff]  }
 0x391   : > { %2521 = vst.msk [vmem:[#allocation2 + $0x88] sm:$0xf] %vm1292_vm1, %v6333_v22  ;;  %v6331_v25 = vpack.c.bf16 %v2419_v24, %v2419_v24  ;;  %7034 = vmatpush3.bf16.msra.mxu0 %v8491_v51 }
 0x392   : > { %7035 = vmatprep.subr.bf16.mxu0 %v8498_v52 }
 0x393   : > { %2519 = vst.msk [vmem:[#allocation2 + $0x70] sm:$0xf] %vm1292_vm1, %v6331_v25 }
 0x395   : > { %7036 = vmatpush3.bf16.msra.mxu0 %v8498_v52 }
 0x396   : > { %7037 = vmatprep.subr.bf16.mxu0 %v8505_v53 }
 0x398   : > { %v6973_v26 = vpop.f32.mrf.mxu0  ;;  %v7540_v3 = vld [vmem:[#allocation2 + $0x7c] ss:$12 sps:$4 sm:$0xff]  }
 0x399   : > { %v2440_v27 = vadd.f32 %v6973_v26, %v8357_v4  ;;  %7038 = vmatpush3.bf16.msra.mxu0 %v8505_v53  ;;  %v7564_v8 = vld [vmem:[#allocation2 + $0x7c] ss:$12 sps:$4 sm:$0xff]  }
 0x39a   : > { %v2431_v28 = vpop.f32.mrf.mxu0  ;;  %v7539_v29 = vld [vmem:[#allocation2 + $0x64] ss:$12 sps:$4 sm:$0xff]   ;;  %7079 = vmatprep.subr.bf16.mxu0 %v8455_v47 }
 0x39b   : > { %v6336_v30 = vpack.c.bf16 %v2440_v27, %v2440_v27  ;;  %v2432_v31 = vadd.f32 %v8357_v4, %v2431_v28  ;;  %6991 = vmatprep.mubr.msk.bf16.mxu0 %vm1106_vm0, %v7539_v29  ;;  %v7560_v5 = vld [vmem:[#allocation2 + $0x64] ss:$12 sps:$4 sm:$0xff]  }
 0x39c   : > { %v6974_v40 = vpop.f32.mrf.mxu0  ;;  %6992 = vmatmul.mubr.msk.bf16.gmra.mxu0 %vm1106_vm0, %v7540_v3  ;;  %v7580_v28 = vld [vmem:[#allocation6 + $0x10] sm:$0xff]  }
 0x39d   : > { %2524 = vst.msk [vmem:[#allocation2 + $0xac] sm:$0xf] %vm1292_vm1, %v6336_v30  ;;  %v6334_v32 = vpack.c.bf16 %v2432_v31, %v2432_v31  ;;  %v2443_v33 = vadd.f32 %v6974_v40, %v8357_v4  ;;  %v7581_v30 = vld [vmem:[#allocation6 + $0x8] sm:$0xff]   ;;  %v7583_v31 = vld [vmem:[#allocation6] sm:$0xff]  }
 0x39e   : > { %v2434_v34 = vpop.f32.mrf.mxu0 }
 0x39f   : > { %2522 = vst.msk [vmem:[#allocation2 + $0x94] sm:$0xf] %vm1292_vm1, %v6334_v32  ;;  %v6337_v35 = vpack.c.bf16 %v2443_v33, %v2443_v33  ;;  %v2435_v36 = vadd.f32 %v8357_v4, %v2434_v34  ;;  %v1874_v37 = vpop.permute.xlu1 %1873  ;;  %v7544_v4 = vld [vmem:[#allocation2 + $0x4] ss:$12 sps:$4 sm:$0xff]   ;;  %v8655_v33 = vld [vmem:[#allocation6 + $0x18] sm:$0xff]  }
 0x3a0   : > { %1920 = vst.msk [vmem:[#allocation2 + $0x18] sm:$0xf] %vm1917_vm2, %v1874_v37  ;;  %3441 = vrot.lane.b32.xlu1 %v7544_v4, %s7864_s22 }
 0x3a1   : > { %2525 = vst.msk [vmem:[#allocation2 + $0xb8] sm:$0xf] %vm1292_vm1, %v6337_v35  ;;  %v6335_v38 = vpack.c.bf16 %v2435_v36, %v2435_v36  ;;  %v1870_v39 = vpop.permute.xlu0 %1869 }
 0x3a2   : > { %1918 = vst.msk [vmem:[#allocation2] sm:$0xf] %vm1917_vm2, %v1870_v39 }
 0x3a3   : > { %2523 = vst.msk [vmem:[#allocation2 + $0xa0] sm:$0xf] %vm1292_vm1, %v6335_v38  ;;  %v1876_v41 = vpop.permute.xlu1 %1875 }
 0x3a4   : > { %1921 = vst.msk [vmem:[#allocation2 + $0x24] sm:$0xf] %vm1917_vm2, %v1876_v41  ;;  %3445 = vrot.lane.b32.xlu1 %v7549_v56, %s7864_s22 }
 0x3a5   : > { %v1872_v42 = vpop.permute.xlu0 %1871 }
 0x3a6   : > { %1919 = vst.msk [vmem:[#allocation2 + $0xc] sm:$0xf] %vm1917_vm2, %v1872_v42 }
 0x3a8   : > { %v7543_v44 = vld [vmem:[#allocation2 + $0xac] ss:$12 sps:$4 sm:$0xff]   ;;  %3449 = vrot.lane.b32.xlu1 %v7552_v61, %s7864_s22 }
 0x3aa   : > { %v7542_v43 = vld [vmem:[#allocation2 + $0x94] ss:$12 sps:$4 sm:$0xff]  }
 0x3ab   : > { %6995 = vmatprep.mubr.msk.bf16.mxu0 %vm1106_vm0, %v7542_v43  ;;  %v7548_v54 = vld [vmem:[#allocation2 + $0x18] ss:$12 sps:$4 sm:$0xff]   ;;  %v7568_v12 = vld [vmem:[#allocation2 + $0x94] ss:$12 sps:$4 sm:$0xff]  }
 0x3ac   : > { %6996 = vmatmul.mubr.msk.bf16.gmra.mxu0 %vm1106_vm0, %v7543_v44  ;;  %v7551_v57 = vld [vmem:[#allocation2 + $0x18] ss:$12 sps:$4 sm:$0xff]   ;;  %3453 = vrot.lane.b32.xlu1 %v7556_v0, %s7864_s22 }
 0x3ad   : > { %v7546_v45 = vld [vmem:[#allocation2] ss:$12 sps:$4 sm:$0xff]  }
 0x3ae   : > { %v7547_v46 = vld [vmem:[#allocation2] ss:$12 sps:$4 sm:$0xff]   ;;  %3439 = vrot.lane.b32.xlu0 %v7546_v45, %s7864_s22 }
 0x3af   : > { %7007 = vmatprep.mubr.msk.bf16.mxu1 %vm1106_vm0, %v7547_v46  ;;  %7039 = vmatprep.mubr.bf16.mxu0 %v7547_v46 }
 0x3b0   : > { %7008 = vmatmul.mubr.msk.bf16.vlgmr.msra.gmra.mxu1 %vm1106_vm0, %v7548_v54  ;;  %3457 = vrot.lane.b32.xlu1 %v7560_v5, %s7864_s22 }
 0x3b1   : > { %v1878_v55 = vpop.permute.xlu0 %1877  ;;  %7056 = vmatpush3.bf16.msra.mxu1 %v7576_v17 }
 0x3b2   : > { %1922 = vst.msk [vmem:[#allocation2 + $0x30] sm:$0xf] %vm1917_vm2, %v1878_v55  ;;  %3443 = vrot.lane.b32.xlu0 %v7551_v57, %s7864_s22  ;;  %7057 = vmatprep.subr.bf16.mxu1 %v7577_v18 }
 0x3b4   : > { %7040 = vmatmul.mubr.bf16.vlgmr.msra.gmra.mxu0 %v7548_v54  ;;  %3461 = vrot.lane.b32.xlu1 %v7564_v8, %s7864_s22 }
 0x3b5   : > { %v1880_v58 = vpop.permute.xlu1 %1879  ;;  %v1882_v59 = vpop.permute.xlu0 %1881  ;;  %7080 = vmatpush3.bf16.msra.mxu0 %v8455_v47  ;;  %7058 = vmatpush3.bf16.msra.mxu1 %v7577_v18 }
 0x3b6   : > { %1923 = vst.msk [vmem:[#allocation2 + $0x3c] sm:$0xf] %vm1917_vm2, %v1880_v58  ;;  %1924 = vst.msk [vmem:[#allocation2 + $0x48] sm:$0xf] %vm1917_vm2, %v1882_v59  ;;  %7081 = vmatprep.subr.bf16.mxu0 %v8462_v48  ;;  %7059 = vmatprep.subr.bf16.mxu1 %v7579_v20 }
 0x3b8   : > { %3465 = vrot.lane.b32.xlu1 %v7568_v12, %s7864_s22 }
 0x3b9   : > { %v1884_v60 = vpop.permute.xlu1 %1883  ;;  %7082 = vmatpush3.bf16.msra.mxu0 %v8462_v48  ;;  %7060 = vmatpush3.bf16.msra.mxu1 %v7579_v20 }
 0x3ba   : > { %1925 = vst.msk [vmem:[#allocation2 + $0x54] sm:$0xf] %vm1917_vm2, %v1884_v60  ;;  %7083 = vmatprep.subr.bf16.mxu0 %v8469_v23  ;;  %7061 = vmatprep.subr.bf16.mxu1 %v7582_v21 }
 0x3bd   : > { %v7554_v62 = vld [vmem:[#allocation2 + $0x30] ss:$12 sps:$4 sm:$0xff]   ;;  %7084 = vmatpush3.bf16.msra.mxu0 %v8469_v23  ;;  %7062 = vmatpush3.bf16.msra.mxu1 %v7582_v21 }
 0x3be   : > { %v7555_v63 = vld [vmem:[#allocation2 + $0x30] ss:$12 sps:$4 sm:$0xff]   ;;  %3447 = vrot.lane.b32.xlu0 %v7554_v62, %s7864_s22  ;;  %7085 = vmatprep.subr.bf16.mxu0 %v8476_v49 }
 0x3bf   : > { %7011 = vmatprep.mubr.msk.bf16.mxu1 %vm1106_vm0, %v7555_v63  ;;  %7043 = vmatprep.mubr.bf16.mxu0 %v7555_v63 }
 0x3c0   : > { %7111 = vmatprep.subr.bf16.mxu1 %v8655_v33 }
 0x3c1   : > { %v1886_v47 = vpop.permute.xlu0 %1885  ;;  %v7558_v1 = vld [vmem:[#allocation2 + $0x48] ss:$12 sps:$4 sm:$0xff]   ;;  %7086 = vmatpush3.bf16.msra.mxu0 %v8476_v49 }
 0x3c2   : > { %1926 = vst.msk [vmem:[#allocation2 + $0x60] sm:$0xf] %vm1917_vm2, %v1886_v47  ;;  %v7559_v48 = vld [vmem:[#allocation2 + $0x48] ss:$12 sps:$4 sm:$0xff]   ;;  %3451 = vrot.lane.b32.xlu0 %v7558_v1, %s7864_s22  ;;  %7087 = vmatprep.subr.bf16.mxu0 %v8484_v50 }
 0x3c3   : > { %7012 = vmatmul.mubr.msk.bf16.gmra.mxu1 %vm1106_vm0, %v7559_v48  ;;  %7044 = vmatmul.mubr.bf16.gmra.mxu0 %v7559_v48 }
 0x3c5   : > { %v1888_v23 = vpop.permute.xlu1 %1887  ;;  %v1890_v2 = vpop.permute.xlu0 %1889  ;;  %7088 = vmatpush3.bf16.msra.mxu0 %v8484_v50 }
 0x3c6   : > { %1927 = vst.msk [vmem:[#allocation2 + $0x6c] sm:$0xf] %vm1917_vm2, %v1888_v23  ;;  %1928 = vst.msk [vmem:[#allocation2 + $0x78] sm:$0xf] %vm1917_vm2, %v1890_v2  ;;  %7089 = vmatprep.subr.bf16.mxu0 %v8491_v51 }
 0x3c9   : > { %v1892_v49 = vpop.permute.xlu1 %1891  ;;  %7090 = vmatpush3.bf16.msra.mxu0 %v8491_v51 }
 0x3ca   : > { %1929 = vst.msk [vmem:[#allocation2 + $0x84] sm:$0xf] %vm1917_vm2, %v1892_v49  ;;  %7091 = vmatprep.subr.bf16.mxu0 %v8498_v52 }
 0x3cd   : > { %v7562_v6 = vld [vmem:[#allocation2 + $0x60] ss:$12 sps:$4 sm:$0xff]   ;;  %7092 = vmatpush3.bf16.msra.mxu0 %v8498_v52 }
 0x3ce   : > { %v7563_v7 = vld [vmem:[#allocation2 + $0x60] ss:$12 sps:$4 sm:$0xff]   ;;  %3455 = vrot.lane.b32.xlu0 %v7562_v6, %s7864_s22  ;;  %7093 = vmatprep.subr.bf16.mxu0 %v8505_v53 }
 0x3cf   : > { %7015 = vmatprep.mubr.msk.bf16.mxu1 %vm1106_vm0, %v7563_v7  ;;  %7047 = vmatprep.mubr.bf16.mxu0 %v7563_v7 }
 0x3d1   : > { %v1894_v50 = vpop.permute.xlu0 %1893  ;;  %v7566_v9 = vld [vmem:[#allocation2 + $0x78] ss:$12 sps:$4 sm:$0xff]   ;;  %7094 = vmatpush3.bf16.msra.mxu0 %v8505_v53 }
 0x3d2   : > { %1930 = vst.msk [vmem:[#allocation2 + $0x90] sm:$0xf] %vm1917_vm2, %v1894_v50  ;;  %v7567_v51 = vld [vmem:[#allocation2 + $0x78] ss:$12 sps:$4 sm:$0xff]   ;;  %3459 = vrot.lane.b32.xlu0 %v7566_v9, %s7864_s22  ;;  %7135 = vmatprep.subr.bf16.mxu0 %v7578_v19 }
 0x3d3   : > { %7016 = vmatmul.mubr.msk.bf16.gmra.mxu1 %vm1106_vm0, %v7567_v51  ;;  %7048 = vmatmul.mubr.bf16.gmra.mxu0 %v7567_v51  ;;  %v7572_v53 = vld [vmem:[#allocation2 + $0xac] ss:$12 sps:$4 sm:$0xff]  }
 0x3d4   : > { %3469 = vrot.lane.b32.xlu1 %v7572_v53, %s7864_s22 }
 0x3d5   : > { %v1896_v52 = vpop.permute.xlu1 %1895  ;;  %v1898_v10 = vpop.permute.xlu0 %1897 }
 0x3d6   : > { %1931 = vst.msk [vmem:[#allocation2 + $0x9c] sm:$0xf] %vm1917_vm2, %v1896_v52  ;;  %1932 = vst.msk [vmem:[#allocation2 + $0xa8] sm:$0xf] %vm1917_vm2, %v1898_v10  ;;  %v8686_v52 = vld [vmem:[%s9392_s8] ss:$0 sm:$0xff] }
 0x3d9   : > { %v1900_v11 = vpop.permute.xlu1 %1899 }
 0x3da   : > { %1933 = vst.msk [vmem:[#allocation2 + $0xb4] sm:$0xf] %vm1917_vm2, %v1900_v11 }
 0x3dd   : > { %v7570_v13 = vld [vmem:[#allocation2 + $0x90] ss:$12 sps:$4 sm:$0xff]  }
 0x3de   : > { %v7571_v14 = vld [vmem:[#allocation2 + $0x90] ss:$12 sps:$4 sm:$0xff]   ;;  %3463 = vrot.lane.b32.xlu0 %v7570_v13, %s7864_s22 }
 0x3df   : > { %7019 = vmatprep.mubr.msk.bf16.mxu1 %vm1106_vm0, %v7571_v14  ;;  %7051 = vmatprep.mubr.bf16.mxu0 %v7571_v14 }
 0x3e1   : > { %v7574_v15 = vld [vmem:[#allocation2 + $0xa8] ss:$12 sps:$4 sm:$0xff]  }
 0x3e2   : > { %v7575_v16 = vld [vmem:[#allocation2 + $0xa8] ss:$12 sps:$4 sm:$0xff]   ;;  %3467 = vrot.lane.b32.xlu0 %v7574_v15, %s7864_s22 }
 0x3e3   : > { %7020 = vmatmul.mubr.msk.bf16.gmra.mxu1 %vm1106_vm0, %v7575_v16  ;;  %7052 = vmatmul.mubr.bf16.gmra.mxu0 %v7575_v16 }
 0x412   : > { %v3442_v22 = vpop.permute.xlu1 %3441 }
 0x416   : > { %v3446_v26 = vpop.permute.xlu1 %3445 }
 0x41a   : > { %v3450_v3 = vpop.permute.xlu1 %3449 }
 0x41e   : > { %v3454_v34 = vpop.permute.xlu1 %3453 }
 0x420   : > { %v3440_v24 = vpop.permute.xlu0 %3439 }
 0x421   : > { %v3472_v25 = vsel %vm1106_vm0, %v3440_v24, %v3442_v22 }
 0x422   : > { %7095 = vmatprep.mubr.bf16.mxu0 %v3472_v25  ;;  %v3458_v37 = vpop.permute.xlu1 %3457 }
 0x424   : > { %v3444_v27 = vpop.permute.xlu0 %3443 }
 0x425   : > { %v3473_v29 = vsel %vm1106_vm0, %v3444_v27, %v3446_v26 }
 0x426   : > { %7096 = vmatmul.mubr.bf16.vlgmr.msra.gmra.mxu0 %v3473_v29  ;;  %v3462_v42 = vpop.permute.xlu1 %3461 }
 0x427   : > { %7136 = vmatpush3.bf16.msra.mxu0 %v7578_v19 }
 0x428   : > { %7137 = vmatprep.subr.bf16.mxu0 %v7580_v28 }
 0x42a   : > { %v3466_v55 = vpop.permute.xlu1 %3465 }
 0x42b   : > { %7138 = vmatpush3.bf16.msra.mxu0 %v7580_v28 }
 0x42c   : > { %7139 = vmatprep.subr.bf16.mxu0 %v7581_v30 }
 0x42f   : > { %7140 = vmatpush3.bf16.msra.mxu0 %v7581_v30 }
 0x430   : > { %v3448_v40 = vpop.permute.xlu0 %3447  ;;  %7141 = vmatprep.subr.bf16.mxu0 %v7583_v31 }
 0x431   : > { %v3474_v32 = vsel %vm1106_vm0, %v3448_v40, %v3450_v3 }
 0x432   : > { %7099 = vmatprep.mubr.bf16.mxu0 %v3474_v32 }
 0x433   : > { %7142 = vmatpush3.bf16.msra.mxu0 %v7583_v31 }
 0x434   : > { %v3452_v35 = vpop.permute.xlu0 %3451 }
 0x435   : > { %v3475_v36 = vsel %vm1106_vm0, %v3452_v35, %v3454_v34  ;;  %v7585_v35 = vld [vmem:[#allocation6 + $0x10] sm:$0xff]  }
 0x436   : > { %7100 = vmatmul.mubr.bf16.gmra.mxu0 %v3475_v36 }
 0x43c   : > { %v6985_v39 = vpop.f32.mrf.mxu0 }
 0x43e   : > { %v2712_v44 = vpop.f32.mrf.mxu0 }
 0x440   : > { %v3456_v38 = vpop.permute.xlu0 %3455  ;;  %v6986_v45 = vpop.f32.mrf.mxu0 }
 0x441   : > { %v3476_v41 = vsel %vm1106_vm0, %v3456_v38, %v3458_v37  ;;  %v7586_v38 = vld [vmem:[#allocation6 + $0x8] sm:$0xff]  }
 0x442   : > { %7103 = vmatprep.mubr.bf16.mxu0 %v3476_v41  ;;  %v2715_v46 = vpop.f32.mrf.mxu0 }
 0x444   : > { %v3460_v43 = vpop.permute.xlu0 %3459 }
 0x445   : > { %v3477_v4 = vsel %vm1106_vm0, %v3460_v43, %v3462_v42 }
 0x446   : > { %7104 = vmatmul.mubr.bf16.gmra.mxu0 %v3477_v4  ;;  %v3470_v59 = vpop.permute.xlu1 %3469 }
 0x44c   : > { %v8661_v54 = vpop.f32.mrf.mxu0 }
 0x44e   : > { %v2728_v58 = vpop.f32.mrf.mxu0 }
 0x450   : > { %v3464_v56 = vpop.permute.xlu0 %3463  ;;  %v6990_v62 = vpop.f32.mrf.mxu0 }
 0x451   : > { %v3478_v57 = vsel %vm1106_vm0, %v3464_v56, %v3466_v55  ;;  %v7587_v55 = vld [vmem:[#allocation6] sm:$0xff]  }
 0x452   : > { %7107 = vmatprep.mubr.bf16.mxu0 %v3478_v57  ;;  %v8665_v63 = vpop.f32.mrf.mxu0 }
 0x454   : > { %v3468_v60 = vpop.permute.xlu0 %3467 }
 0x455   : > { %v3479_v61 = vsel %vm1106_vm0, %v3468_v60, %v3470_v59 }
 0x456   : > { %7108 = vmatmul.mubr.bf16.gmra.mxu0 %v3479_v61 }
 0x45c   : > { %v8667_v47 = vpop.f32.mrf.mxu0 }
 0x45e   : > { %v8669_v0 = vpop.f32.mrf.mxu0 }
 0x460   : > { %v8671_v1 = vpop.f32.mrf.mxu0 }
 0x462   : > { %v8673_v48 = vpop.f32.mrf.mxu0 }
 0x46c   : > { %v8675_v23 = vpop.f32.mrf.mxu0 }
 0x46e   : > { %v8677_v2 = vpop.f32.mrf.mxu0 }
 0x470   : > { %v7009_v49 = vpop.f32.mrf.mxu1  ;;  %v8679_v5 = vpop.f32.mrf.mxu0 }
 0x471   : > { %v2906_v8 = vadd.f32 %v7009_v49, %v6985_v39 }
 0x472   : > { %v2897_v6 = vpop.f32.mrf.mxu1  ;;  %v8681_v7 = vpop.f32.mrf.mxu0 }
 0x473   : > { %v2898_v50 = vadd.f32 %v2897_v6, %v2712_v44  ;;  %v3858_v15 = vadd.f32 %v8686_v52, %v2906_v8 }
 0x474   : > { %v7010_v9 = vpop.f32.mrf.mxu1  ;;  %v7041_v51 = vpop.f32.mrf.mxu0 }
 0x475   : > { %v2909_v10 = vadd.f32 %v7010_v9, %v6986_v45  ;;  %v3856_v13 = vadd.f32 %v8686_v52, %v2898_v50  ;;  %v3018_v21 = vadd.f32 %v7041_v51, %v8686_v52  ;;  %v3874_v27 = vmax.f32 %v3858_v15, 0.0 }
 0x476   : > { %v2900_v11 = vpop.f32.mrf.mxu1  ;;  %v3009_v12 = vpop.f32.mrf.mxu0 }
 0x477   : > { %v3859_v14 = vadd.f32 %v8686_v52, %v2909_v10  ;;  %v2901_v53 = vadd.f32 %v2900_v11, %v2715_v46  ;;  %v3010_v18 = vadd.f32 %v8686_v52, %v3009_v12  ;;  %v3872_v24 = vmax.f32 %v3856_v13, 0.0 }
 0x478   : > { %v7042_v16 = vpop.f32.mrf.mxu0  ;;  %v3074_v40 = vmax.f32 %v3018_v21, 0.0 }
 0x479   : > { %v3857_v17 = vadd.f32 %v8686_v52, %v2901_v53  ;;  %v3021_v19 = vadd.f32 %v7042_v16, %v8686_v52  ;;  %v3875_v20 = vmax.f32 %v3859_v14, 0.0  ;;  %v3072_v30 = vmax.f32 %v3010_v18, 0.0 }
 0x47a   : > { %v3012_v22 = vpop.f32.mrf.mxu0 }
 0x47b   : > { %v3873_v25 = vmax.f32 %v3857_v17, 0.0  ;;  %v3013_v26 = vadd.f32 %v8686_v52, %v3012_v22  ;;  %v3075_v28 = vmax.f32 %v3021_v19, 0.0  ;;  %v3897_v3 = vpack.c.bf16 %v3875_v20, %v3874_v27 }
 0x47d   : > { %v3896_v29 = vpack.c.bf16 %v3873_v25, %v3872_v24  ;;  %v3073_v31 = vmax.f32 %v3013_v26, 0.0  ;;  %v3097_v34 = vpack.c.bf16 %v3075_v28, %v3074_v40 }
 0x47f   : > { %v3096_v32 = vpack.c.bf16 %v3073_v31, %v3072_v30  ;;  %7143 = vmatprep.mubr.msk.bf16.mxu0 %vm1106_vm0, %v3896_v29 }
 0x480   : > { %7144 = vmatmul.mubr.msk.bf16.vlgmr.msra.gmra.mxu0 %vm1106_vm0, %v3897_v3 }
 0x481   : > { %7063 = vmatprep.mubr.msk.bf16.mxu1 %vm1106_vm0, %v3096_v32 }
 0x482   : > { %7064 = vmatmul.mubr.msk.bf16.vlgmr.msra.gmra.mxu1 %vm1106_vm0, %v3097_v34 }
 0x483   : > { %v7013_v36 = vpop.f32.mrf.mxu1  ;;  %v7045_v37 = vpop.f32.mrf.mxu0  ;;  %7112 = vmatpush3.bf16.msra.mxu1 %v8655_v33 }
 0x484   : > { %7113 = vmatprep.subr.bf16.mxu1 %v7585_v35  ;;  %v2922_v43 = vadd.f32 %v7013_v36, %v8661_v54  ;;  %v3034_v56 = vadd.f32 %v7045_v37, %v8686_v52 }
 0x485   : > { %v2913_v39 = vpop.f32.mrf.mxu1  ;;  %v3025_v41 = vpop.f32.mrf.mxu0 }
 0x486   : > { %v2914_v42 = vadd.f32 %v2913_v39, %v2728_v58  ;;  %v3026_v45 = vadd.f32 %v8686_v52, %v3025_v41  ;;  %v3862_v49 = vadd.f32 %v8686_v52, %v2922_v43  ;;  %v3078_v9 = vmax.f32 %v3034_v56, 0.0 }
 0x487   : > { %v7014_v44 = vpop.f32.mrf.mxu1  ;;  %v7046_v4 = vpop.f32.mrf.mxu0  ;;  %7114 = vmatpush3.bf16.msra.mxu1 %v7585_v35 }
 0x488   : > { %v2925_v46 = vadd.f32 %v7014_v44, %v6990_v62  ;;  %7115 = vmatprep.subr.bf16.mxu1 %v7586_v38  ;;  %v3037_v57 = vadd.f32 %v7046_v4, %v8686_v52  ;;  %v3860_v60 = vadd.f32 %v8686_v52, %v2914_v42  ;;  %v3076_v62 = vmax.f32 %v3026_v45, 0.0 }
 0x489   : > { %v2916_v33 = vpop.f32.mrf.mxu1  ;;  %v3028_v59 = vpop.f32.mrf.mxu0  ;;  %v3878_v13 = vmax.f32 %v3862_v49, 0.0 }
 0x48a   : > { %v3863_v58 = vadd.f32 %v8686_v52, %v2925_v46  ;;  %v2917_v54 = vadd.f32 %v2916_v33, %v8665_v63  ;;  %v3029_v61 = vadd.f32 %v8686_v52, %v3028_v59  ;;  %v3079_v6 = vmax.f32 %v3037_v57, 0.0 }
 0x48b   : > { %7116 = vmatpush3.bf16.msra.mxu1 %v7586_v38  ;;  %v3876_v10 = vmax.f32 %v3860_v60, 0.0 }
 0x48c   : > { %v3861_v50 = vadd.f32 %v8686_v52, %v2917_v54  ;;  %v3077_v8 = vmax.f32 %v3029_v61, 0.0  ;;  %7117 = vmatprep.subr.bf16.mxu1 %v7587_v55  ;;  %v3879_v51 = vmax.f32 %v3863_v58, 0.0  ;;  %v3099_v14 = vpack.c.bf16 %v3079_v6, %v3078_v9 }
 0x48e   : > { %v3877_v11 = vmax.f32 %v3861_v50, 0.0  ;;  %v3098_v12 = vpack.c.bf16 %v3077_v8, %v3076_v62  ;;  %v3899_v53 = vpack.c.bf16 %v3879_v51, %v3878_v13 }
 0x48f   : > { %7118 = vmatpush3.bf16.msra.mxu1 %v7587_v55 }
 0x490   : > { %v3898_v63 = vpack.c.bf16 %v3877_v11, %v3876_v10  ;;  %7067 = vmatprep.mubr.msk.bf16.mxu1 %vm1106_vm0, %v3098_v12 }
 0x491   : > { %7068 = vmatmul.mubr.msk.bf16.gmra.mxu1 %vm1106_vm0, %v3099_v14 }
 0x492   : > { %7147 = vmatprep.mubr.msk.bf16.mxu0 %vm1106_vm0, %v3898_v63 }
 0x493   : > { %v7017_v15 = vpop.f32.mrf.mxu1  ;;  %v7049_v16 = vpop.f32.mrf.mxu0  ;;  %7148 = vmatmul.mubr.msk.bf16.gmra.mxu0 %vm1106_vm0, %v3899_v53 }
 0x494   : > { %v2938_v20 = vadd.f32 %v7017_v15, %v8667_v47  ;;  %v3050_v26 = vadd.f32 %v7049_v16, %v8686_v52 }
 0x495   : > { %v2929_v17 = vpop.f32.mrf.mxu1  ;;  %v3041_v18 = vpop.f32.mrf.mxu0 }
 0x496   : > { %v2930_v19 = vadd.f32 %v2929_v17, %v8669_v0  ;;  %v3042_v24 = vadd.f32 %v8686_v52, %v3041_v18  ;;  %v3866_v3 = vadd.f32 %v8686_v52, %v2938_v20  ;;  %v3082_v35 = vmax.f32 %v3050_v26, 0.0 }
 0x497   : > { %v7018_v21 = vpop.f32.mrf.mxu1  ;;  %v7050_v22 = vpop.f32.mrf.mxu0 }
 0x498   : > { %v2941_v25 = vadd.f32 %v7018_v21, %v8671_v1  ;;  %v3053_v27 = vadd.f32 %v7050_v22, %v8686_v52  ;;  %v3864_v30 = vadd.f32 %v8686_v52, %v2930_v19  ;;  %v3080_v32 = vmax.f32 %v3042_v24, 0.0 }
 0x499   : > { %v2932_v28 = vpop.f32.mrf.mxu1  ;;  %v3044_v29 = vpop.f32.mrf.mxu0  ;;  %v3882_v41 = vmax.f32 %v3866_v3, 0.0 }
 0x49a   : > { %v3867_v31 = vadd.f32 %v8686_v52, %v2941_v25  ;;  %v2933_v0 = vadd.f32 %v2932_v28, %v8673_v48  ;;  %v3045_v47 = vadd.f32 %v8686_v52, %v3044_v29  ;;  %v3083_v40 = vmax.f32 %v3053_v27, 0.0 }
 0x49b   : > { %v3880_v37 = vmax.f32 %v3864_v30, 0.0 }
 0x49c   : > { %v3865_v1 = vadd.f32 %v8686_v52, %v2933_v0  ;;  %v3081_v34 = vmax.f32 %v3045_v47, 0.0  ;;  %v3883_v36 = vmax.f32 %v3867_v31, 0.0  ;;  %v3101_v42 = vpack.c.bf16 %v3083_v40, %v3082_v35 }
 0x49e   : > { %v3881_v38 = vmax.f32 %v3865_v1, 0.0  ;;  %v3100_v39 = vpack.c.bf16 %v3081_v34, %v3080_v32  ;;  %v3901_v48 = vpack.c.bf16 %v3883_v36, %v3882_v41 }
 0x4a0   : > { %v3900_v43 = vpack.c.bf16 %v3881_v38, %v3880_v37  ;;  %7071 = vmatprep.mubr.msk.bf16.mxu1 %vm1106_vm0, %v3100_v39 }
 0x4a1   : > { %7072 = vmatmul.mubr.msk.bf16.gmra.mxu1 %vm1106_vm0, %v3101_v42 }
 0x4a2   : > { %7151 = vmatprep.mubr.msk.bf16.mxu0 %vm1106_vm0, %v3900_v43 }
 0x4a3   : > { %v7021_v44 = vpop.f32.mrf.mxu1  ;;  %v7053_v4 = vpop.f32.mrf.mxu0  ;;  %7152 = vmatmul.mubr.msk.bf16.gmra.mxu0 %vm1106_vm0, %v3901_v48  ;;  %v7588_v48 = vld [vmem:[%s9395_s11 + $0x78] sm:$0xff]  }
 0x4a4   : > { %v2954_v56 = vadd.f32 %v7021_v44, %v8675_v23  ;;  %v3066_v58 = vadd.f32 %v7053_v4, %v8686_v52  ;;  %v7589_v44 = vld [vmem:[%s9395_s11 + $0x38] sm:$0xff]   ;;  %v7590_v4 = vld [vmem:[%s9395_s11 + $0x70] sm:$0xff]   ;;  %6707 = vmatprep.subr.bf16.mxu1 %v7588_v48 }
 0x4a5   : > { %v2945_v45 = vpop.f32.mrf.mxu1  ;;  %v3057_v46 = vpop.f32.mrf.mxu0 }
 0x4a6   : > { %v2946_v55 = vadd.f32 %v2945_v45, %v8677_v2  ;;  %v3058_v59 = vadd.f32 %v8686_v52, %v3057_v46  ;;  %v3870_v50 = vadd.f32 %v8686_v52, %v2954_v56  ;;  %v3086_v10 = vmax.f32 %v3066_v58, 0.0 }
 0x4a7   : > { %v7022_v57 = vpop.f32.mrf.mxu1  ;;  %v7054_v33 = vpop.f32.mrf.mxu0 }
 0x4a8   : > { %v2957_v60 = vadd.f32 %v7022_v57, %v8679_v5  ;;  %v3069_v54 = vadd.f32 %v7054_v33, %v8686_v52  ;;  %v3868_v6 = vadd.f32 %v8686_v52, %v2946_v55  ;;  %v3084_v9 = vmax.f32 %v3058_v59, 0.0  ;;  %v7591_v33 = vld [vmem:[%s9395_s11 + $0x30] sm:$0xff]  }
 0x4a9   : > { %v2948_v61 = vpop.f32.mrf.mxu1  ;;  %v3060_v49 = vpop.f32.mrf.mxu0  ;;  %v3886_v63 = vmax.f32 %v3870_v50, 0.0 }
 0x4aa   : > { %v3871_v62 = vadd.f32 %v8686_v52, %v2957_v60  ;;  %v2949_v2 = vadd.f32 %v2948_v61, %v8681_v7  ;;  %v3061_v23 = vadd.f32 %v8686_v52, %v3060_v49  ;;  %v3087_v8 = vmax.f32 %v3069_v54, 0.0  ;;  %v7592_v60 = vld [vmem:[%s9395_s11 + $0x68] sm:$0xff]  }
 0x4ab   : > { %v3884_v12 = vmax.f32 %v3868_v6, 0.0 }
 0x4ac   : > { %v3869_v5 = vadd.f32 %v8686_v52, %v2949_v2  ;;  %v3085_v51 = vmax.f32 %v3061_v23, 0.0  ;;  %v3887_v11 = vmax.f32 %v3871_v62, 0.0  ;;  %v3103_v53 = vpack.c.bf16 %v3087_v8, %v3086_v10  ;;  %v7593_v62 = vld [vmem:[%s9395_s11 + $0x28] sm:$0xff]  }
 0x4ae   : > { %v3885_v13 = vmax.f32 %v3869_v5, 0.0  ;;  %v3102_v14 = vpack.c.bf16 %v3085_v51, %v3084_v9  ;;  %v3903_v7 = vpack.c.bf16 %v3887_v11, %v3886_v63 }
 0x4b0   : > { %v3902_v15 = vpack.c.bf16 %v3885_v13, %v3884_v12  ;;  %7075 = vmatprep.mubr.msk.bf16.mxu1 %vm1106_vm0, %v3102_v14 }
 0x4b1   : > { %7076 = vmatmul.mubr.msk.bf16.gmra.mxu1 %vm1106_vm0, %v3103_v53 }
 0x4b2   : > { %7155 = vmatprep.mubr.msk.bf16.mxu0 %vm1106_vm0, %v3902_v15 }
 0x4b3   : > { %7156 = vmatmul.mubr.msk.bf16.gmra.mxu0 %vm1106_vm0, %v3903_v7  ;;  %v7594_v7 = vld [vmem:[%s9395_s11 + $0x60] sm:$0xff]  }
 0x4e6   : > { %v7097_v16 = vpop.f32.mrf.mxu0 }
 0x4e7   : > { %v3531_v21 = vadd.f32 %v7097_v16, %v8686_v52  ;;  %v7595_v16 = vld [vmem:[%s9395_s11 + $0x20] sm:$0xff]  }
 0x4e8   : > { %v3522_v17 = vpop.f32.mrf.mxu0 }
 0x4e9   : > { %v3523_v19 = vadd.f32 %v8686_v52, %v3522_v17  ;;  %v3587_v28 = vmax.f32 %v3531_v21, 0.0  ;;  %v7597_v17 = vld [vmem:[%s9395_s11 + $0x18] sm:$0xff]  }
 0x4ea   : > { %v7098_v18 = vpop.f32.mrf.mxu0 }
 0x4eb   : > { %v3534_v20 = vadd.f32 %v7098_v18, %v8686_v52  ;;  %v3585_v26 = vmax.f32 %v3523_v19, 0.0  ;;  %v7599_v18 = vld [vmem:[%s9395_s11 + $0xb8] sm:$0xff]   ;;  %v7598_v19 = vld [vmem:[%s9395_s11 + $0x50] sm:$0xff]  }
 0x4ec   : > { %v3525_v22 = vpop.f32.mrf.mxu0  ;;  %7159 = vmatprep.subr.bf16.mxu0 %v7599_v18 }
 0x4ed   : > { %v3526_v24 = vadd.f32 %v8686_v52, %v3525_v22  ;;  %v3588_v25 = vmax.f32 %v3534_v20, 0.0  ;;  %v7600_v20 = vld [vmem:[%s9395_s11 + $0x10] sm:$0xff]   ;;  %7160 = vmatpush3.bf16.msra.mxu0 %v7599_v18  ;;  %v7601_v22 = vld [vmem:[%s9395_s11 + $0x48] sm:$0xff]  }
 0x4ef   : > { %v3586_v27 = vmax.f32 %v3526_v24, 0.0  ;;  %v3610_v30 = vpack.c.bf16 %v3588_v25, %v3587_v28  ;;  %v7602_v24 = vld [vmem:[%s9395_s11 + $0xb0] sm:$0xff]   ;;  %v7603_v25 = vld [vmem:[%s9395_s11 + $0x8] sm:$0xff]  }
 0x4f0   : > { %7161 = vmatprep.subr.bf16.mxu0 %v7602_v24 }
 0x4f1   : > { %v3609_v29 = vpack.c.bf16 %v3586_v27, %v3585_v26  ;;  %v8824_v27 = vld [vmem:[%s9394_s10] ss:$0 sm:$0xff]  ;;  %7162 = vmatpush3.bf16.msra.mxu0 %v7602_v24 }
 0x4f3   : > { %7119 = vmatprep.mubr.msk.bf16.mxu1 %vm1106_vm0, %v3609_v29 }
 0x4f4   : > { %7120 = vmatmul.mubr.msk.bf16.vlgmr.msra.gmra.mxu1 %vm1106_vm0, %v3610_v30 }
 0x4f5   : > { %6708 = vmatpush3.bf16.msra.mxu1 %v7589_v44 }
 0x4f6   : > { %v7101_v31 = vpop.f32.mrf.mxu0  ;;  %6709 = vmatprep.subr.bf16.mxu1 %v7590_v4 }
 0x4f7   : > { %v3547_v32 = vadd.f32 %v7101_v31, %v8686_v52  ;;  %v7605_v31 = vld [vmem:[%s9395_s11 + $0xa8] sm:$0xff]  }
 0x4f8   : > { %v3538_v0 = vpop.f32.mrf.mxu0  ;;  %7163 = vmatprep.subr.bf16.mxu0 %v7605_v31 }
 0x4f9   : > { %v3539_v3 = vadd.f32 %v8686_v52, %v3538_v0  ;;  %v3591_v38 = vmax.f32 %v3547_v32, 0.0  ;;  %6710 = vmatpush3.bf16.msra.mxu1 %v7591_v33  ;;  %v7606_v32 = vld [vmem:[%s9395_s11] sm:$0xff]   ;;  %7164 = vmatpush3.bf16.msra.mxu0 %v7605_v31 }
 0x4fa   : > { %v7102_v47 = vpop.f32.mrf.mxu0  ;;  %6711 = vmatprep.subr.bf16.mxu1 %v7592_v60 }
 0x4fb   : > { %v3550_v40 = vadd.f32 %v7102_v47, %v8686_v52  ;;  %v3589_v36 = vmax.f32 %v3539_v3, 0.0  ;;  %v7604_v47 = vld [vmem:[%s9395_s11 + $0x40] sm:$0xff]  }
 0x4fc   : > { %v3541_v1 = vpop.f32.mrf.mxu0 }
 0x4fd   : > { %v3542_v34 = vadd.f32 %v8686_v52, %v3541_v1  ;;  %v3592_v35 = vmax.f32 %v3550_v40, 0.0  ;;  %6712 = vmatpush3.bf16.msra.mxu1 %v7593_v62 }
 0x4fe   : > { %6713 = vmatprep.subr.bf16.mxu1 %v7594_v7 }
 0x4ff   : > { %v3590_v37 = vmax.f32 %v3542_v34, 0.0  ;;  %v3612_v41 = vpack.c.bf16 %v3592_v35, %v3591_v38 }
 0x501   : > { %v3611_v39 = vpack.c.bf16 %v3590_v37, %v3589_v36  ;;  %6714 = vmatpush3.bf16.msra.mxu1 %v7595_v16  ;;  %v7610_v36 = vld [vmem:[%s9395_s11 + $0xa0] sm:$0xff]  }
 0x502   : > { %7165 = vmatprep.subr.bf16.mxu0 %v7610_v36 }
 0x503   : > { %7123 = vmatprep.mubr.msk.bf16.mxu1 %vm1106_vm0, %v3611_v39  ;;  %7166 = vmatpush3.bf16.msra.mxu0 %v7610_v36 }
 0x504   : > { %7124 = vmatmul.mubr.msk.bf16.gmra.mxu1 %vm1106_vm0, %v3612_v41 }
 0x506   : > { %v7105_v42 = vpop.f32.mrf.mxu0 }
 0x507   : > { %v3563_v56 = vadd.f32 %v7105_v42, %v8686_v52 }
 0x508   : > { %v3554_v43 = vpop.f32.mrf.mxu0 }
 0x509   : > { %v3555_v46 = vadd.f32 %v8686_v52, %v3554_v43  ;;  %v3595_v49 = vmax.f32 %v3563_v56, 0.0  ;;  %v7614_v43 = vld [vmem:[%s9395_s11 + $0x98] sm:$0xff]  }
 0x50a   : > { %v7106_v45 = vpop.f32.mrf.mxu0  ;;  %7167 = vmatprep.subr.bf16.mxu0 %v7614_v43 }
 0x50b   : > { %v3566_v55 = vadd.f32 %v7106_v45, %v8686_v52  ;;  %v3593_v54 = vmax.f32 %v3555_v46, 0.0  ;;  %7168 = vmatpush3.bf16.msra.mxu0 %v7614_v43  ;;  %v7615_v46 = vld [vmem:[%s9395_s11 + $0x90] sm:$0xff]  }
 0x50c   : > { %v3557_v57 = vpop.f32.mrf.mxu0  ;;  %7169 = vmatprep.subr.bf16.mxu0 %v7615_v46 }
 0x50d   : > { %v3558_v59 = vadd.f32 %v8686_v52, %v3557_v57  ;;  %v3596_v58 = vmax.f32 %v3566_v55, 0.0 }
 0x50f   : > { %v3594_v61 = vmax.f32 %v3558_v59, 0.0  ;;  %v3614_v2 = vpack.c.bf16 %v3596_v58, %v3595_v49  ;;  %7170 = vmatpush3.bf16.msra.mxu0 %v7615_v46 }
 0x511   : > { %v3613_v6 = vpack.c.bf16 %v3594_v61, %v3593_v54  ;;  %v7617_v61 = vld [vmem:[%s9395_s11 + $0x88] sm:$0xff]  }
 0x512   : > { %7171 = vmatprep.subr.bf16.mxu0 %v7617_v61 }
 0x513   : > { %7127 = vmatprep.mubr.msk.bf16.mxu1 %vm1106_vm0, %v3613_v6  ;;  %7172 = vmatpush3.bf16.msra.mxu0 %v7617_v61 }
 0x514   : > { %7128 = vmatmul.mubr.msk.bf16.gmra.mxu1 %vm1106_vm0, %v3614_v2 }
 0x516   : > { %v7109_v23 = vpop.f32.mrf.mxu0 }
 0x517   : > { %v3579_v51 = vadd.f32 %v7109_v23, %v8686_v52 }
 0x518   : > { %v3570_v50 = vpop.f32.mrf.mxu0 }
 0x519   : > { %v3571_v9 = vadd.f32 %v8686_v52, %v3570_v50  ;;  %v3599_v63 = vmax.f32 %v3579_v51, 0.0 }
 0x51a   : > { %v7110_v8 = vpop.f32.mrf.mxu0 }
 0x51b   : > { %v3582_v5 = vadd.f32 %v7110_v8, %v8686_v52  ;;  %v3597_v13 = vmax.f32 %v3571_v9, 0.0  ;;  %v7621_v9 = vld [vmem:[%s9395_s11 + $0x80] sm:$0xff]  }
 0x51c   : > { %v3573_v10 = vpop.f32.mrf.mxu0  ;;  %7173 = vmatprep.subr.bf16.mxu0 %v7621_v9 }
 0x51d   : > { %v3574_v11 = vadd.f32 %v8686_v52, %v3573_v10  ;;  %v3600_v12 = vmax.f32 %v3582_v5, 0.0  ;;  %v7596_v52 = vld [vmem:[%s9395_s11 + $0x58] sm:$0xff]   ;;  %7174 = vmatpush3.bf16.msra.mxu0 %v7621_v9 }
 0x51e   : > { %6715 = vmatprep.subr.bf16.mxu1 %v7596_v52 }
 0x51f   : > { %v3598_v14 = vmax.f32 %v3574_v11, 0.0  ;;  %v3616_v15 = vpack.c.bf16 %v3600_v12, %v3599_v63  ;;  %6716 = vmatpush3.bf16.msra.mxu1 %v7597_v17 }
 0x520   : > { %6717 = vmatprep.subr.bf16.mxu1 %v7598_v19 }
 0x521   : > { %v3615_v53 = vpack.c.bf16 %v3598_v14, %v3597_v13 }
 0x523   : > { %7131 = vmatprep.mubr.msk.bf16.mxu1 %vm1106_vm0, %v3615_v53  ;;  %6718 = vmatpush3.bf16.msra.mxu1 %v7600_v20 }
 0x524   : > { %7132 = vmatmul.mubr.msk.bf16.gmra.mxu1 %vm1106_vm0, %v3616_v15  ;;  %6719 = vmatprep.subr.bf16.mxu1 %v7601_v22 }
 0x527   : > { %6720 = vmatpush3.bf16.msra.mxu1 %v7603_v25 }
 0x528   : > { %6721 = vmatprep.subr.bf16.mxu1 %v7604_v47 }
 0x52b   : > { %6722 = vmatpush3.bf16.msra.mxu1 %v7606_v32 }
 0x540   : > { %v8810_v21 = vpop.f32.mrf.mxu0 }
 0x541   : > { %v4002_v62 = vadd.f32 %v8810_v21, %v8824_v27 }
 0x542   : > { %v7065_v26 = vpop.f32.mrf.mxu1  ;;  %v3993_v28 = vpop.f32.mrf.mxu0 }
 0x543   : > { %v3202_v3 = vadd.f32 %v7065_v26, %v8824_v27  ;;  %v3994_v37 = vadd.f32 %v8824_v27, %v3993_v28  ;;  %v6372_v5 = vpack.c.bf16 %v4002_v62, %v4002_v62 }
 0x544   : > { %v3193_v29 = vpop.f32.mrf.mxu1  ;;  %v7146_v1 = vpop.f32.mrf.mxu0 }
 0x545   : > { %v3194_v30 = vadd.f32 %v8824_v27, %v3193_v29  ;;  %v6340_v38 = vpack.c.bf16 %v3202_v3, %v3202_v3  ;;  %v6370_v48 = vpack.c.bf16 %v3994_v37, %v3994_v37  ;;  %v4005_v51 = vadd.f32 %v7146_v1, %v8824_v27 }
 0x546   : > { %v7066_v0 = vpop.f32.mrf.mxu1  ;;  %v3996_v42 = vpop.f32.mrf.mxu0 }
 0x547   : > { %v6338_v40 = vpack.c.bf16 %v3194_v30, %v3194_v30  ;;  %v3205_v39 = vadd.f32 %v7066_v0, %v8824_v27  ;;  %v3997_v44 = vadd.f32 %v8824_v27, %v3996_v42  ;;  %v6373_v13 = vpack.c.bf16 %v4005_v51, %v4005_v51 }
 0x548   : > { %v3196_v34 = vpop.f32.mrf.mxu1 }
 0x549   : > { %v3197_v35 = vadd.f32 %v8824_v27, %v3196_v34  ;;  %3304 = vrot.lane.b32.xlu0 %v6338_v40, %s7864_s22  ;;  %v6341_v4 = vpack.c.bf16 %v3205_v39, %v3205_v39  ;;  %v6371_v56 = vpack.c.bf16 %v3997_v44, %v3997_v44 }
 0x54b   : > { %v6339_v41 = vpack.c.bf16 %v3197_v35, %v3197_v35 }
 0x54d   : > { %3306 = vrot.lane.b32.xlu1 %v6339_v41, %s7864_s22  ;;  %3308 = vrot.lane.b32.xlu0 %v6340_v38, %s7864_s22 }
 0x551   : > { %v7069_v45 = vpop.f32.mrf.mxu1  ;;  %3310 = vrot.lane.b32.xlu1 %v6341_v4, %s7864_s22  ;;  %4104 = vrot.lane.b32.xlu0 %v6370_v48, %s7864_s22 }
 0x552   : > { %v3218_v55 = vadd.f32 %v7069_v45, %v8824_v27 }
 0x553   : > { %v3209_v57 = vpop.f32.mrf.mxu1  ;;  %v7149_v33 = vpop.f32.mrf.mxu0 }
 0x554   : > { %v6344_v59 = vpack.c.bf16 %v3218_v55, %v3218_v55  ;;  %v3210_v60 = vadd.f32 %v8824_v27, %v3209_v57  ;;  %v4018_v25 = vadd.f32 %v7149_v33, %v8824_v27 }
 0x555   : > { %v7070_v58 = vpop.f32.mrf.mxu1  ;;  %v4009_v54 = vpop.f32.mrf.mxu0  ;;  %4106 = vrot.lane.b32.xlu1 %v6371_v56, %s7864_s22 }
 0x556   : > { %v3221_v49 = vadd.f32 %v7070_v58, %v8824_v27  ;;  %3316 = vrot.lane.b32.xlu0 %v6344_v59, %s7864_s22  ;;  %v6342_v2 = vpack.c.bf16 %v3210_v60, %v3210_v60  ;;  %v4010_v10 = vadd.f32 %v8824_v27, %v4009_v54  ;;  %v6376_v31 = vpack.c.bf16 %v4018_v25, %v4018_v25 }
 0x557   : > { %v3212_v6 = vpop.f32.mrf.mxu1  ;;  %v7150_v8 = vpop.f32.mrf.mxu0 }
 0x558   : > { %v6345_v23 = vpack.c.bf16 %v3221_v49, %v3221_v49  ;;  %v3213_v50 = vadd.f32 %v8824_v27, %v3212_v6  ;;  %v6374_v14 = vpack.c.bf16 %v4010_v10, %v4010_v10  ;;  %v4021_v29 = vadd.f32 %v7150_v8, %v8824_v27 }
 0x559   : > { %v4012_v12 = vpop.f32.mrf.mxu0 }
 0x55a   : > { %3318 = vrot.lane.b32.xlu1 %v6345_v23, %s7864_s22  ;;  %3312 = vrot.lane.b32.xlu0 %v6342_v2, %s7864_s22  ;;  %v6343_v11 = vpack.c.bf16 %v3213_v50, %v3213_v50  ;;  %v4013_v63 = vadd.f32 %v8824_v27, %v4012_v12  ;;  %v6377_v3 = vpack.c.bf16 %v4021_v29, %v4021_v29 }
 0x55c   : > { %v6375_v16 = vpack.c.bf16 %v4013_v63, %v4013_v63 }
 0x55e   : > { %3314 = vrot.lane.b32.xlu1 %v6343_v11, %s7864_s22  ;;  %4108 = vrot.lane.b32.xlu0 %v6372_v5, %s7864_s22 }
 0x561   : > { %v7073_v53 = vpop.f32.mrf.mxu1 }
 0x562   : > { %v3234_v15 = vadd.f32 %v7073_v53, %v8824_v27  ;;  %4110 = vrot.lane.b32.xlu1 %v6373_v13, %s7864_s22  ;;  %4112 = vrot.lane.b32.xlu0 %v6374_v14, %s7864_s22 }
 0x563   : > { %v3225_v7 = vpop.f32.mrf.mxu1  ;;  %v7153_v18 = vpop.f32.mrf.mxu0 }
 0x564   : > { %v6348_v52 = vpack.c.bf16 %v3234_v15, %v3234_v15  ;;  %v3226_v17 = vadd.f32 %v8824_v27, %v3225_v7  ;;  %v4034_v32 = vadd.f32 %v7153_v18, %v8824_v27 }
 0x565   : > { %v7074_v19 = vpop.f32.mrf.mxu1  ;;  %v4025_v28 = vpop.f32.mrf.mxu0 }
 0x566   : > { %v3237_v20 = vadd.f32 %v7074_v19, %v8824_v27  ;;  %4114 = vrot.lane.b32.xlu1 %v6375_v16, %s7864_s22  ;;  %3324 = vrot.lane.b32.xlu0 %v6348_v52, %s7864_s22  ;;  %v6346_v26 = vpack.c.bf16 %v3226_v17, %v3226_v17  ;;  %v4026_v0 = vadd.f32 %v8824_v27, %v4025_v28 }
 0x567   : > { %v3228_v21 = vpop.f32.mrf.mxu1  ;;  %v7154_v47 = vpop.f32.mrf.mxu0  ;;  %v6380_v41 = vpack.c.bf16 %v4034_v32, %v4034_v32 }
 0x568   : > { %v6349_v22 = vpack.c.bf16 %v3237_v20, %v3237_v20  ;;  %v3229_v24 = vadd.f32 %v8824_v27, %v3228_v21  ;;  %v4037_v40 = vadd.f32 %v7154_v47, %v8824_v27  ;;  %v6378_v1 = vpack.c.bf16 %v4026_v0, %v4026_v0 }
 0x569   : > { %v4028_v34 = vpop.f32.mrf.mxu0 }
 0x56a   : > { %3326 = vrot.lane.b32.xlu1 %v6349_v22, %s7864_s22  ;;  %3320 = vrot.lane.b32.xlu0 %v6346_v26, %s7864_s22  ;;  %v6347_v30 = vpack.c.bf16 %v3229_v24, %v3229_v24  ;;  %v6381_v38 = vpack.c.bf16 %v4037_v40, %v4037_v40  ;;  %v4029_v39 = vadd.f32 %v8824_v27, %v4028_v34  ;;  %v8930_v26 = vld [vmem:[#allocation2] ss:$12 sps:$4 sm:$0xff]  }
 0x56c   : > { %v6379_v4 = vpack.c.bf16 %v4029_v39, %v4029_v39 }
 0x56e   : > { %3322 = vrot.lane.b32.xlu1 %v6347_v30, %s7864_s22  ;;  %4116 = vrot.lane.b32.xlu0 %v6376_v31, %s7864_s22 }
 0x571   : > { %v7077_v35 = vpop.f32.mrf.mxu1 }
 0x572   : > { %4118 = vrot.lane.b32.xlu1 %v6377_v3, %s7864_s22  ;;  %4120 = vrot.lane.b32.xlu0 %v6378_v1, %s7864_s22  ;;  %v3250_v46 = vadd.f32 %v7077_v35, %v8824_v27 }
 0x573   : > { %v3241_v36 = vpop.f32.mrf.mxu1  ;;  %v7157_v37 = vpop.f32.mrf.mxu0 }
 0x574   : > { %v3242_v42 = vadd.f32 %v8824_v27, %v3241_v36  ;;  %v6352_v59 = vpack.c.bf16 %v3250_v46, %v3250_v46  ;;  %v4050_v49 = vadd.f32 %v7157_v37, %v8824_v27  ;;  %v8951_v37 = vld [vmem:[#allocation2 + $0x18] ss:$12 sps:$4 sm:$0xff]  }
 0x575   : > { %v7078_v43 = vpop.f32.mrf.mxu1  ;;  %v4041_v48 = vpop.f32.mrf.mxu0 }
 0x576   : > { %4126 = vrot.lane.b32.xlu1 %v6381_v38, %s7864_s22  ;;  %4124 = vrot.lane.b32.xlu0 %v6380_v41, %s7864_s22  ;;  %v6350_v55 = vpack.c.bf16 %v3242_v42, %v3242_v42  ;;  %v3253_v57 = vadd.f32 %v7078_v43, %v8824_v27  ;;  %v4042_v60 = vadd.f32 %v8824_v27, %v4041_v48 }
 0x577   : > { %v3244_v44 = vpop.f32.mrf.mxu1  ;;  %v7158_v56 = vpop.f32.mrf.mxu0  ;;  %v6384_v23 = vpack.c.bf16 %v4050_v49, %v4050_v49 }
 0x578   : > { %v3245_v45 = vadd.f32 %v8824_v27, %v3244_v44  ;;  %v6353_v54 = vpack.c.bf16 %v3253_v57, %v3253_v57  ;;  %v6382_v6 = vpack.c.bf16 %v4042_v60, %v4042_v60  ;;  %v4053_v62 = vadd.f32 %v7158_v56, %v8824_v27 }
 0x579   : > { %v4044_v58 = vpop.f32.mrf.mxu0 }
 0x57a   : > { %4122 = vrot.lane.b32.xlu1 %v6379_v4, %s7864_s22  ;;  %3328 = vrot.lane.b32.xlu0 %v6350_v55, %s7864_s22  ;;  %v6351_v33 = vpack.c.bf16 %v3245_v45, %v3245_v45  ;;  %v4045_v61 = vadd.f32 %v8824_v27, %v4044_v58  ;;  %v6385_v50 = vpack.c.bf16 %v4053_v62, %v4053_v62  ;;  %v8961_v55 = vld [vmem:[#allocation2 + $0x30] ss:$12 sps:$4 sm:$0xff]  }
 0x57c   : > { %v6383_v2 = vpack.c.bf16 %v4045_v61, %v4045_v61 }
 0x57e   : > { %3330 = vrot.lane.b32.xlu1 %v6351_v33, %s7864_s22  ;;  %3332 = vrot.lane.b32.xlu0 %v6352_v59, %s7864_s22 }
 0x582   : > { %3334 = vrot.lane.b32.xlu1 %v6353_v54, %s7864_s22  ;;  %4128 = vrot.lane.b32.xlu0 %v6382_v6, %s7864_s22 }
 0x586   : > { %4130 = vrot.lane.b32.xlu1 %v6383_v2, %s7864_s22  ;;  %4132 = vrot.lane.b32.xlu0 %v6384_v23, %s7864_s22 }
 0x58a   : > { %4134 = vrot.lane.b32.xlu1 %v6385_v50, %s7864_s22  ;;  %s9336_s22 = scalar_lea.hbm %s9441_s29, %s6386_s26 }
 0x5b4   : > { %v7121_v8 = vpop.f32.mrf.mxu1 }
 0x5b5   : > { %v3715_v9 = vadd.f32 %v7121_v8, %v8824_v27 }
 0x5b6   : > { %v3706_v5 = vpop.f32.mrf.mxu1 }
 0x5b7   : > { %v6356_v51 = vpack.c.bf16 %v3715_v9, %v3715_v9  ;;  %v3707_v10 = vadd.f32 %v8824_v27, %v3706_v5  ;;  %v8985_v9 = vld [vmem:[#allocation2 + $0x48] ss:$12 sps:$4 sm:$0xff]  }
 0x5b8   : > { %v7122_v11 = vpop.f32.mrf.mxu1 }
 0x5b9   : > { %3835 = vst.msk [vmem:[#allocation2 + $0x20] sm:$0xf] %vm1292_vm1, %v6356_v51  ;;  %v6354_v12 = vpack.c.bf16 %v3707_v10, %v3707_v10  ;;  %v3718_v13 = vadd.f32 %v7122_v11, %v8824_v27 }
 0x5ba   : > { %v3709_v14 = vpop.f32.mrf.mxu1 }
 0x5bb   : > { %3833 = vst.msk [vmem:[#allocation2 + $0x8] sm:$0xf] %vm1292_vm1, %v6354_v12  ;;  %v6357_v63 = vpack.c.bf16 %v3718_v13, %v3718_v13  ;;  %v3710_v53 = vadd.f32 %v8824_v27, %v3709_v14  ;;  %v3305_v15 = vpop.permute.xlu0 %3304 }
 0x5bc   : > { %3352 = vst.msk [vmem:[#allocation2 + $0x4] sm:$0xf] %vm1917_vm2, %v3305_v15  ;;  %v8995_v15 = vld [vmem:[#allocation2 + $0x60] ss:$12 sps:$4 sm:$0xff]  }
 0x5bd   : > { %3836 = vst.msk [vmem:[#allocation2 + $0x2c] sm:$0xf] %vm1292_vm1, %v6357_v63  ;;  %v6355_v7 = vpack.c.bf16 %v3710_v53, %v3710_v53 }
 0x5bf   : > { %3834 = vst.msk [vmem:[#allocation2 + $0x14] sm:$0xf] %vm1292_vm1, %v6355_v7  ;;  %v3307_v16 = vpop.permute.xlu1 %3306  ;;  %v3309_v52 = vpop.permute.xlu0 %3308 }
 0x5c0   : > { %3353 = vst.msk [vmem:[#allocation2 + $0x10] sm:$0xf] %vm1917_vm2, %v3307_v16  ;;  %3354 = vst.msk [vmem:[#allocation2 + $0x1c] sm:$0xf] %vm1917_vm2, %v3309_v52 }
 0x5c3   : > { %v3311_v17 = vpop.permute.xlu1 %3310  ;;  %v4105_v18 = vpop.permute.xlu0 %4104 }
 0x5c4   : > { %3355 = vst.msk [vmem:[#allocation2 + $0x28] sm:$0xf] %vm1917_vm2, %v3311_v17  ;;  %4152 = vst.msk [vmem:[#allocation2 + $0x8] sm:$0xf] %vm1917_vm2, %v4105_v18  ;;  %v7125_v19 = vpop.f32.mrf.mxu1 }
 0x5c5   : > { %v3731_v20 = vadd.f32 %v7125_v19, %v8824_v27 }
 0x5c6   : > { %v3722_v21 = vpop.f32.mrf.mxu1 }
 0x5c7   : > { %v6360_v22 = vpack.c.bf16 %v3731_v20, %v3731_v20  ;;  %v3723_v24 = vadd.f32 %v8824_v27, %v3722_v21  ;;  %v4107_v25 = vpop.permute.xlu1 %4106  ;;  %v8932_v28 = vld [vmem:[#allocation2 + $0x4] ss:$12 sps:$4 sm:$0xff]  }
 0x5c8   : > { %4153 = vst.msk [vmem:[#allocation2 + $0x14] sm:$0xf] %vm1917_vm2, %v4107_v25  ;;  %v3317_v29 = vpop.permute.xlu0 %3316  ;;  %v7126_v30 = vpop.f32.mrf.mxu1  ;;  %4559 = vmatprep.mubr.bf16.mxu1 %v8932_v28 }
 0x5c9   : > { %3839 = vst.msk [vmem:[#allocation2 + $0x50] sm:$0xf] %vm1292_vm1, %v6360_v22  ;;  %v6358_v31 = vpack.c.bf16 %v3723_v24, %v3723_v24  ;;  %v3734_v0 = vadd.f32 %v7126_v30, %v8824_v27  ;;  %4560 = vmatmul.mubr.bf16.vlgmr.msra.gmra.mxu1 %v8930_v26 }
 0x5ca   : > { %3358 = vst.msk [vmem:[#allocation2 + $0x4c] sm:$0xf] %vm1917_vm2, %v3317_v29  ;;  %v3725_v47 = vpop.f32.mrf.mxu1 }
 0x5cb   : > { %3837 = vst.msk [vmem:[#allocation2 + $0x38] sm:$0xf] %vm1292_vm1, %v6358_v31  ;;  %v6361_v3 = vpack.c.bf16 %v3734_v0, %v3734_v0  ;;  %v3726_v40 = vadd.f32 %v8824_v27, %v3725_v47  ;;  %v8942_v32 = vld [vmem:[#allocation2 + $0x1c] ss:$12 sps:$4 sm:$0xff]   ;;  %v9017_v0 = vld [vmem:[#allocation2 + $0x78] ss:$12 sps:$4 sm:$0xff]  }
 0x5cc   : > { %v3319_v1 = vpop.permute.xlu1 %3318  ;;  %v3313_v34 = vpop.permute.xlu0 %3312  ;;  %4567 = vmatprep.mubr.bf16.mxu1 %v8942_v32 }
 0x5cd   : > { %3840 = vst.msk [vmem:[#allocation2 + $0x5c] sm:$0xf] %vm1292_vm1, %v6361_v3  ;;  %v6359_v35 = vpack.c.bf16 %v3726_v40, %v3726_v40 }
 0x5ce   : > { %3359 = vst.msk [vmem:[#allocation2 + $0x58] sm:$0xf] %vm1917_vm2, %v3319_v1  ;;  %3356 = vst.msk [vmem:[#allocation2 + $0x34] sm:$0xf] %vm1917_vm2, %v3313_v34 }
 0x5cf   : > { %3838 = vst.msk [vmem:[#allocation2 + $0x44] sm:$0xf] %vm1292_vm1, %v6359_v35  ;;  %v8949_v36 = vld [vmem:[#allocation2 + $0x8] ss:$12 sps:$4 sm:$0xff]   ;;  %v9030_v35 = vld [vmem:[#allocation2 + $0x90] ss:$12 sps:$4 sm:$0xff]  }
 0x5d0   : > { %v3315_v38 = vpop.permute.xlu1 %3314  ;;  %v4109_v39 = vpop.permute.xlu0 %4108  ;;  %7175 = vmatprep.mubr.bf16.mxu0 %v8949_v36 }
 0x5d1   : > { %3357 = vst.msk [vmem:[#allocation2 + $0x40] sm:$0xf] %vm1917_vm2, %v3315_v38  ;;  %4154 = vst.msk [vmem:[#allocation2 + $0x20] sm:$0xf] %vm1917_vm2, %v4109_v39  ;;  %4568 = vmatmul.mubr.bf16.gmra.mxu1 %v8951_v37 }
 0x5d4   : > { %v4111_v41 = vpop.permute.xlu1 %4110  ;;  %v4113_v42 = vpop.permute.xlu0 %4112 }
 0x5d5   : > { %4155 = vst.msk [vmem:[#allocation2 + $0x2c] sm:$0xf] %vm1917_vm2, %v4111_v41  ;;  %4156 = vst.msk [vmem:[#allocation2 + $0x38] sm:$0xf] %vm1917_vm2, %v4113_v42  ;;  %v7129_v43 = vpop.f32.mrf.mxu1  ;;  %v8970_v58 = vld [vmem:[#allocation2 + $0x4c] ss:$12 sps:$4 sm:$0xff]  }
 0x5d6   : > { %v3747_v48 = vadd.f32 %v7129_v43, %v8824_v27 }
 0x5d7   : > { %v3738_v44 = vpop.f32.mrf.mxu1 }
 0x5d8   : > { %v6364_v4 = vpack.c.bf16 %v3747_v48, %v3747_v48  ;;  %v3739_v45 = vadd.f32 %v8824_v27, %v3738_v44  ;;  %v4115_v46 = vpop.permute.xlu1 %4114  ;;  %v8963_v56 = vld [vmem:[#allocation2 + $0x34] ss:$12 sps:$4 sm:$0xff]   ;;  %v3325_v57 = vpop.permute.xlu0 %3324 }
 0x5d9   : > { %4157 = vst.msk [vmem:[#allocation2 + $0x44] sm:$0xf] %vm1917_vm2, %v4115_v46  ;;  %v7130_v33 = vpop.f32.mrf.mxu1  ;;  %3362 = vst.msk [vmem:[#allocation2 + $0x7c] sm:$0xf] %vm1917_vm2, %v3325_v57  ;;  %4575 = vmatprep.mubr.bf16.mxu1 %v8963_v56  ;;  %v9044_v48 = vld [vmem:[#allocation2 + $0xa8] ss:$12 sps:$4 sm:$0xff]  }
 0x5da   : > { %3843 = vst.msk [vmem:[#allocation2 + $0x80] sm:$0xf] %vm1292_vm1, %v6364_v4  ;;  %v6362_v59 = vpack.c.bf16 %v3739_v45, %v3739_v45  ;;  %v3750_v60 = vadd.f32 %v7130_v33, %v8824_v27  ;;  %4576 = vmatmul.mubr.bf16.gmra.mxu1 %v8961_v55  ;;  %v7644_v4 = vld [vmem:[#allocation8 + $0x18] sm:$0xff]   ;;  %v7645_v45 = vld [vmem:[#allocation8 + $0x10] sm:$0xff]   ;;  %v7646_v46 = vld [vmem:[#allocation8 + $0x8] sm:$0xff]  }
 0x5db   : > { %v3741_v54 = vpop.f32.mrf.mxu1  ;;  %4583 = vmatprep.mubr.bf16.mxu1 %v8970_v58  ;;  %7191 = vmatprep.subr.bf16.mxu0 %v7644_v4  ;;  %v7647_v57 = vld [vmem:[#allocation8] sm:$0xff]   ;;  %v7648_v33 = vld [vmem:[%s9399_s15 + $0x78] sm:$0xff]  }
 0x5dc   : > { %3841 = vst.msk [vmem:[#allocation2 + $0x68] sm:$0xf] %vm1292_vm1, %v6362_v59  ;;  %v6365_v61 = vpack.c.bf16 %v3750_v60, %v3750_v60  ;;  %v3742_v49 = vadd.f32 %v8824_v27, %v3741_v54  ;;  %v3327_v6 = vpop.permute.xlu1 %3326  ;;  %v8976_v62 = vld [vmem:[#allocation2 + $0x20] ss:$12 sps:$4 sm:$0xff]   ;;  %v3321_v2 = vpop.permute.xlu0 %3320 }
 0x5dd   : > { %3363 = vst.msk [vmem:[#allocation2 + $0x88] sm:$0xf] %vm1917_vm2, %v3327_v6  ;;  %3360 = vst.msk [vmem:[#allocation2 + $0x64] sm:$0xf] %vm1917_vm2, %v3321_v2  ;;  %7176 = vmatmul.mubr.bf16.vlgmr.msra.gmra.mxu0 %v8976_v62 }
 0x5de   : > { %3844 = vst.msk [vmem:[#allocation2 + $0x8c] sm:$0xf] %vm1292_vm1, %v6365_v61  ;;  %v6363_v23 = vpack.c.bf16 %v3742_v49, %v3742_v49  ;;  %7192 = vmatpush3.bf16.msra.mxu0 %v7644_v4 }
 0x5df   : > { %7193 = vmatprep.subr.bf16.mxu0 %v7645_v45 }
 0x5e0   : > { %3842 = vst.msk [vmem:[#allocation2 + $0x74] sm:$0xf] %vm1292_vm1, %v6363_v23  ;;  %v3323_v50 = vpop.permute.xlu1 %3322  ;;  %v8983_v8 = vld [vmem:[#allocation2 + $0x38] ss:$12 sps:$4 sm:$0xff]   ;;  %v4117_v5 = vpop.permute.xlu0 %4116 }
 0x5e1   : > { %3361 = vst.msk [vmem:[#allocation2 + $0x70] sm:$0xf] %vm1917_vm2, %v3323_v50  ;;  %4158 = vst.msk [vmem:[#allocation2 + $0x50] sm:$0xf] %vm1917_vm2, %v4117_v5  ;;  %7179 = vmatprep.mubr.bf16.mxu0 %v8983_v8  ;;  %v7672_v5 = vld [vmem:[%s9399_s15 + $0xd8] sm:$0xff]  }
 0x5e2   : > { %4584 = vmatmul.mubr.bf16.gmra.mxu1 %v8985_v9  ;;  %7194 = vmatpush3.bf16.msra.mxu0 %v7645_v45 }
 0x5e3   : > { %7195 = vmatprep.subr.bf16.mxu0 %v7646_v46  ;;  %7215 = vmatprep.subr.bf16.mxu1 %v7672_v5 }
 0x5e4   : > { %v4119_v51 = vpop.permute.xlu1 %4118  ;;  %v4121_v10 = vpop.permute.xlu0 %4120  ;;  %v9004_v19 = vld [vmem:[#allocation2 + $0x7c] ss:$12 sps:$4 sm:$0xff]   ;;  %7216 = vmatpush3.bf16.msra.mxu1 %v7672_v5  ;;  %v7651_v5 = vld [vmem:[%s9399_s15 + $0x30] sm:$0xff]  }
 0x5e5   : > { %4159 = vst.msk [vmem:[#allocation2 + $0x5c] sm:$0xf] %vm1917_vm2, %v4119_v51  ;;  %v7133_v11 = vpop.f32.mrf.mxu1  ;;  %4160 = vst.msk [vmem:[#allocation2 + $0x68] sm:$0xf] %vm1917_vm2, %v4121_v10  ;;  %v7673_v51 = vld [vmem:[%s9399_s15 + $0xd0] sm:$0xff]  }
 0x5e6   : > { %v3763_v12 = vadd.f32 %v7133_v11, %v8824_v27  ;;  %7196 = vmatpush3.bf16.msra.mxu0 %v7646_v46  ;;  %7217 = vmatprep.subr.bf16.mxu1 %v7673_v51 }
 0x5e7   : > { %v3754_v13 = vpop.f32.mrf.mxu1  ;;  %7197 = vmatprep.subr.bf16.mxu0 %v7647_v57 }
 0x5e8   : > { %v6368_v14 = vpack.c.bf16 %v3763_v12, %v3763_v12  ;;  %v3755_v63 = vadd.f32 %v8824_v27, %v3754_v13  ;;  %v4127_v53 = vpop.permute.xlu1 %4126  ;;  %v8997_v7 = vld [vmem:[#allocation2 + $0x64] ss:$12 sps:$4 sm:$0xff]   ;;  %v4125_v16 = vpop.permute.xlu0 %4124  ;;  %7218 = vmatpush3.bf16.msra.mxu1 %v7673_v51 }
 0x5e9   : > { %4163 = vst.msk [vmem:[#allocation2 + $0x8c] sm:$0xf] %vm1917_vm2, %v4127_v53  ;;  %v7134_v52 = vpop.f32.mrf.mxu1  ;;  %4162 = vst.msk [vmem:[#allocation2 + $0x80] sm:$0xf] %vm1917_vm2, %v4125_v16  ;;  %4591 = vmatprep.mubr.bf16.mxu1 %v8997_v7 }
 0x5ea   : > { %3847 = vst.msk [vmem:[#allocation2 + $0xb0] sm:$0xf] %vm1292_vm1, %v6368_v14  ;;  %v6366_v17 = vpack.c.bf16 %v3755_v63, %v3755_v63  ;;  %v3766_v18 = vadd.f32 %v7134_v52, %v8824_v27  ;;  %4592 = vmatmul.mubr.bf16.gmra.mxu1 %v8995_v15  ;;  %7198 = vmatpush3.bf16.msra.mxu0 %v7647_v57  ;;  %v9063_v14 = vld [vmem:[%s9396_s12] ss:$0 sm:$0xff] }
 0x5eb   : > { %v3757_v20 = vpop.f32.mrf.mxu1  ;;  %4599 = vmatprep.mubr.bf16.mxu1 %v9004_v19  ;;  %6811 = vmatprep.subr.bf16.mxu0 %v7648_v33 }
 0x5ec   : > { %3845 = vst.msk [vmem:[#allocation2 + $0x98] sm:$0xf] %vm1292_vm1, %v6366_v17  ;;  %v6369_v21 = vpack.c.bf16 %v3766_v18, %v3766_v18  ;;  %v3758_v22 = vadd.f32 %v8824_v27, %v3757_v20  ;;  %v4123_v24 = vpop.permute.xlu1 %4122  ;;  %v9010_v25 = vld [vmem:[#allocation2 + $0x50] ss:$12 sps:$4 sm:$0xff]   ;;  %v3329_v29 = vpop.permute.xlu0 %3328  ;;  %v7674_v17 = vld [vmem:[%s9399_s15 + $0xc8] sm:$0xff]  }
 0x5ed   : > { %4161 = vst.msk [vmem:[#allocation2 + $0x74] sm:$0xf] %vm1917_vm2, %v4123_v24  ;;  %3364 = vst.msk [vmem:[#allocation2 + $0x94] sm:$0xf] %vm1917_vm2, %v3329_v29  ;;  %7180 = vmatmul.mubr.bf16.gmra.mxu0 %v9010_v25  ;;  %7219 = vmatprep.subr.bf16.mxu1 %v7674_v17 }
 0x5ee   : > { %3848 = vst.msk [vmem:[#allocation2 + $0xbc] sm:$0xf] %vm1292_vm1, %v6369_v21  ;;  %v6367_v30 = vpack.c.bf16 %v3758_v22, %v3758_v22  ;;  %7220 = vmatpush3.bf16.msra.mxu1 %v7674_v17  ;;  %v7653_v17 = vld [vmem:[%s9399_s15 + $0x28] sm:$0xff]  }
 0x5f0   : > { %3846 = vst.msk [vmem:[#allocation2 + $0xa4] sm:$0xf] %vm1292_vm1, %v6367_v30  ;;  %v3331_v31 = vpop.permute.xlu1 %3330  ;;  %v3333_v27 = vpop.permute.xlu0 %3332  ;;  %v9025_v1 = vld [vmem:[#allocation2 + $0x80] ss:$12 sps:$4 sm:$0xff]  }
 0x5f1   : > { %3365 = vst.msk [vmem:[#allocation2 + $0xa0] sm:$0xf] %vm1917_vm2, %v3331_v31  ;;  %3366 = vst.msk [vmem:[#allocation2 + $0xac] sm:$0xf] %vm1917_vm2, %v3333_v27 }
 0x5f2   : > { %4600 = vmatmul.mubr.bf16.gmra.mxu1 %v9017_v0 }
 0x5f4   : > { %v3335_v47 = vpop.permute.xlu1 %3334  ;;  %v9022_v3 = vld [vmem:[#allocation2 + $0x68] ss:$12 sps:$4 sm:$0xff]   ;;  %v4129_v40 = vpop.permute.xlu0 %4128 }
 0x5f5   : > { %3367 = vst.msk [vmem:[#allocation2 + $0xb8] sm:$0xf] %vm1917_vm2, %v3335_v47  ;;  %4164 = vst.msk [vmem:[#allocation2 + $0x98] sm:$0xf] %vm1917_vm2, %v4129_v40  ;;  %7183 = vmatprep.mubr.bf16.mxu0 %v9022_v3 }
 0x5f6   : > { %7184 = vmatmul.mubr.bf16.gmra.mxu0 %v9025_v1 }
 0x5f8   : > { %v4131_v34 = vpop.permute.xlu1 %4130  ;;  %v9032_v38 = vld [vmem:[#allocation2 + $0x94] ss:$12 sps:$4 sm:$0xff]   ;;  %v4133_v39 = vpop.permute.xlu0 %4132 }
 0x5f9   : > { %4165 = vst.msk [vmem:[#allocation2 + $0xa4] sm:$0xf] %vm1917_vm2, %v4131_v34  ;;  %4166 = vst.msk [vmem:[#allocation2 + $0xb0] sm:$0xf] %vm1917_vm2, %v4133_v39  ;;  %4607 = vmatprep.mubr.bf16.mxu1 %v9032_v38 }
 0x5fa   : > { %4608 = vmatmul.mubr.bf16.gmra.mxu1 %v9030_v35 }
 0x5fc   : > { %v4135_v41 = vpop.permute.xlu1 %4134  ;;  %v9038_v42 = vld [vmem:[#allocation2 + $0xac] ss:$12 sps:$4 sm:$0xff]  }
 0x5fd   : > { %4167 = vst.msk [vmem:[#allocation2 + $0xbc] sm:$0xf] %vm1917_vm2, %v4135_v41  ;;  %4615 = vmatprep.mubr.bf16.mxu1 %v9038_v42 }
 0x600   : > { %v9042_v43 = vld [vmem:[#allocation2 + $0x98] ss:$12 sps:$4 sm:$0xff]  }
 0x601   : > { %7187 = vmatprep.mubr.bf16.mxu0 %v9042_v43 }
 0x602   : > { %4616 = vmatmul.mubr.bf16.gmra.mxu1 %v9044_v48 }
 0x604   : > { %v9048_v44 = vld [vmem:[#allocation2 + $0xb0] ss:$12 sps:$4 sm:$0xff]  }
 0x605   : > { %7188 = vmatmul.mubr.bf16.gmra.mxu0 %v9048_v44 }
 0x689   : > { %v6723_v59 = vpop.f32.mrf.mxu1 }
 0x68b   : > { %v6724_v60 = vpop.f32.mrf.mxu1 }
 0x68c   : > { %v6725_v10 = vadd.f32 %v6724_v60, %v6723_v59  ;;  %v7649_v60 = vld [vmem:[%s9399_s15 + $0x38] sm:$0xff]  }
 0x68d   : > { %v6726_v54 = vpop.f32.mrf.mxu1 }
 0x68e   : > { %v4562_v18 = vadd.f32 %v6725_v10, %v9063_v14 }
 0x68f   : > { %v6727_v61 = vpop.f32.mrf.mxu1 }
 0x690   : > { %v6728_v53 = vadd.f32 %v6727_v61, %v6726_v54  ;;  %v7650_v61 = vld [vmem:[%s9399_s15 + $0x70] sm:$0xff]  }
 0x691   : > { %v6729_v49 = vpop.f32.mrf.mxu1 }
 0x692   : > { %v4565_v27 = vadd.f32 %v6728_v53, %v9063_v14 }
 0x693   : > { %v6730_v6 = vpop.f32.mrf.mxu1 }
 0x694   : > { %v6731_v13 = vadd.f32 %v6730_v6, %v6729_v49 }
 0x695   : > { %v6732_v2 = vpop.f32.mrf.mxu1 }
 0x696   : > { %v4570_v22 = vadd.f32 %v6731_v13, %v9063_v14 }
 0x697   : > { %v6733_v23 = vpop.f32.mrf.mxu1 }
 0x698   : > { %v6734_v11 = vadd.f32 %v6733_v23, %v6732_v2 }
 0x69a   : > { %v6735_v50 = vpop.f32.mrf.mxu1  ;;  %v4573_v21 = vadd.f32 %v6734_v11, %v9063_v14  ;;  %v7652_v11 = vld [vmem:[%s9399_s15 + $0x68] sm:$0xff]  }
 0x69c   : > { %v6736_v12 = vpop.f32.mrf.mxu1 }
 0x69d   : > { %v7177_v63 = vpop.f32.mrf.mxu0  ;;  %v6737_v6 = vadd.f32 %v6736_v12, %v6735_v50 }
 0x69e   : > { %v6738_v16 = vpop.f32.mrf.mxu1  ;;  %v4667_v47 = vadd.f32 %v7177_v63, %v4570_v22 }
 0x69f   : > { %v4658_v52 = vpop.f32.mrf.mxu0 }
 0x6a0   : > { %v6739_v20 = vpop.f32.mrf.mxu1  ;;  %v4659_v29 = vadd.f32 %v4658_v52, %v4562_v18  ;;  %v4723_v57 = vmax.f32 %v4667_v47, 0.0  ;;  %v4578_v52 = vadd.f32 %v6737_v6, %v9063_v14 }
 0x6a1   : > { %v7178_v24 = vpop.f32.mrf.mxu0  ;;  %v6740_v13 = vadd.f32 %v6739_v20, %v6738_v16  ;;  %v7654_v16 = vld [vmem:[%s9399_s15 + $0x60] sm:$0xff]  }
 0x6a2   : > { %v4670_v30 = vadd.f32 %v7178_v24, %v4573_v21  ;;  %v6741_v31 = vpop.f32.mrf.mxu1  ;;  %v4721_v4 = vmax.f32 %v4659_v29, 0.0 }
 0x6a3   : > { %v4661_v40 = vpop.f32.mrf.mxu0  ;;  %v4581_v29 = vadd.f32 %v6740_v13, %v9063_v14 }
 0x6a4   : > { %v4662_v34 = vadd.f32 %v4661_v40, %v4565_v27  ;;  %v6742_v39 = vpop.f32.mrf.mxu1  ;;  %v4724_v41 = vmax.f32 %v4670_v30, 0.0  ;;  %v7655_v40 = vld [vmem:[%s9399_s15 + $0x20] sm:$0xff]  }
 0x6a5   : > { %v6743_v51 = vadd.f32 %v6742_v39, %v6741_v31 }
 0x6a6   : > { %v4722_v45 = vmax.f32 %v4662_v34, 0.0  ;;  %v6744_v46 = vpop.f32.mrf.mxu1  ;;  %v4746_v54 = vpack.c.bf16 %v4724_v41, %v4723_v57 }
 0x6a7   : > { %v4586_v18 = vadd.f32 %v6743_v51, %v9063_v14 }
 0x6a8   : > { %v4745_v33 = vpack.c.bf16 %v4722_v45, %v4721_v4  ;;  %v6745_v59 = vpop.f32.mrf.mxu1  ;;  %v7656_v4 = vld [vmem:[%s9399_s15 + $0x58] sm:$0xff]  }
 0x6a9   : > { %v6746_v2 = vadd.f32 %v6745_v59, %v6744_v46 }
 0x6aa   : > { %v6747_v49 = vpop.f32.mrf.mxu1  ;;  %7199 = vmatprep.mubr.msk.bf16.mxu0 %vm1106_vm0, %v4745_v33 }
 0x6ab   : > { %7200 = vmatmul.mubr.msk.bf16.vlgmr.msra.gmra.mxu0 %vm1106_vm0, %v4746_v54  ;;  %v4589_v12 = vadd.f32 %v6746_v2, %v9063_v14 }
 0x6ac   : > { %v6748_v23 = vpop.f32.mrf.mxu1  ;;  %6812 = vmatpush3.bf16.msra.mxu0 %v7649_v60 }
 0x6ad   : > { %v7181_v10 = vpop.f32.mrf.mxu0  ;;  %6813 = vmatprep.subr.bf16.mxu0 %v7650_v61  ;;  %v6749_v34 = vadd.f32 %v6748_v23, %v6747_v49  ;;  %v7657_v49 = vld [vmem:[%s9399_s15 + $0x18] sm:$0xff]  }
 0x6ae   : > { %v6750_v63 = vpop.f32.mrf.mxu1  ;;  %v4683_v30 = vadd.f32 %v7181_v10, %v4586_v18  ;;  %v7658_v10 = vld [vmem:[%s9399_s15 + $0x50] sm:$0xff]  }
 0x6af   : > { %v4674_v53 = vpop.f32.mrf.mxu0  ;;  %v4594_v51 = vadd.f32 %v6749_v34, %v9063_v14  ;;  %v7659_v18 = vld [vmem:[%s9399_s15 + $0x10] sm:$0xff]   ;;  %v7661_v34 = vld [vmem:[%s9399_s15 + $0x8] sm:$0xff]  }
 0x6b0   : > { %v6751_v50 = vpop.f32.mrf.mxu1  ;;  %6814 = vmatpush3.bf16.msra.mxu0 %v7651_v5  ;;  %v4675_v20 = vadd.f32 %v4674_v53, %v4578_v52  ;;  %v4727_v59 = vmax.f32 %v4683_v30, 0.0 }
 0x6b1   : > { %v7182_v21 = vpop.f32.mrf.mxu0  ;;  %6815 = vmatprep.subr.bf16.mxu0 %v7652_v11  ;;  %v6752_v60 = vadd.f32 %v6751_v50, %v6750_v63 }
 0x6b2   : > { %v4686_v22 = vadd.f32 %v7182_v21, %v4589_v12  ;;  %v6753_v24 = vpop.f32.mrf.mxu1  ;;  %v4725_v45 = vmax.f32 %v4675_v20, 0.0  ;;  %v7660_v20 = vld [vmem:[%s9399_s15 + $0x48] sm:$0xff]  }
 0x6b3   : > { %v4677_v31 = vpop.f32.mrf.mxu0  ;;  %v4597_v50 = vadd.f32 %v6752_v60, %v9063_v14 }
 0x6b4   : > { %v4678_v27 = vadd.f32 %v4677_v31, %v4581_v29  ;;  %v6754_v47 = vpop.f32.mrf.mxu1  ;;  %6816 = vmatpush3.bf16.msra.mxu0 %v7653_v17  ;;  %v4728_v39 = vmax.f32 %v4686_v22, 0.0 }
 0x6b5   : > { %v6755_v41 = vadd.f32 %v6754_v47, %v6753_v24  ;;  %6817 = vmatprep.subr.bf16.mxu0 %v7654_v16 }
 0x6b6   : > { %v4726_v46 = vmax.f32 %v4678_v27, 0.0  ;;  %v6756_v57 = vpop.f32.mrf.mxu1  ;;  %v7185_v33 = vpop.f32.mrf.mxu0  ;;  %v4748_v23 = vpack.c.bf16 %v4728_v39, %v4727_v59 }
 0x6b7   : > { %v4602_v54 = vadd.f32 %v6755_v41, %v9063_v14  ;;  %v7662_v41 = vld [vmem:[%s9399_s15 + $0x40] sm:$0xff]  }
 0x6b8   : > { %v4747_v61 = vpack.c.bf16 %v4726_v46, %v4725_v45  ;;  %v6757_v6 = vpop.f32.mrf.mxu1  ;;  %v4690_v2 = vpop.f32.mrf.mxu0  ;;  %6818 = vmatpush3.bf16.msra.mxu0 %v7655_v40 }
 0x6b9   : > { %v6758_v5 = vadd.f32 %v6757_v6, %v6756_v57  ;;  %6819 = vmatprep.subr.bf16.mxu0 %v7656_v4  ;;  %v4699_v63 = vadd.f32 %v7185_v33, %v4602_v54  ;;  %v4691_v53 = vadd.f32 %v4690_v2, %v4594_v51  ;;  %v7663_v33 = vld [vmem:[%s9399_s15] sm:$0xff]   ;;  %v9134_v54 = vld [vmem:[%s9399_s15 + $0xb8] sm:$0xff]  }
 0x6ba   : > { %v6759_v11 = vpop.f32.mrf.mxu1  ;;  %v7186_v13 = vpop.f32.mrf.mxu0  ;;  %7203 = vmatprep.mubr.msk.bf16.mxu0 %vm1106_vm0, %v4747_v61 }
 0x6bb   : > { %v4605_v52 = vadd.f32 %v6758_v5, %v9063_v14  ;;  %7204 = vmatmul.mubr.msk.bf16.gmra.mxu0 %vm1106_vm0, %v4748_v23  ;;  %v4731_v24 = vmax.f32 %v4699_v63, 0.0  ;;  %v4729_v29 = vmax.f32 %v4691_v53, 0.0 }
 0x6bc   : > { %v6760_v12 = vpop.f32.mrf.mxu1  ;;  %v4693_v17 = vpop.f32.mrf.mxu0  ;;  %6820 = vmatpush3.bf16.msra.mxu0 %v7657_v49 }
 0x6bd   : > { %v4702_v21 = vadd.f32 %v7186_v13, %v4605_v52  ;;  %v4694_v16 = vadd.f32 %v4693_v17, %v4597_v50  ;;  %6821 = vmatprep.subr.bf16.mxu0 %v7658_v10  ;;  %v6761_v4 = vadd.f32 %v6760_v12, %v6759_v11 }
 0x6be   : > { %v6762_v22 = vpop.f32.mrf.mxu1 }
 0x6bf   : > { %v4732_v30 = vmax.f32 %v4702_v21, 0.0  ;;  %v4730_v31 = vmax.f32 %v4694_v16, 0.0  ;;  %v4610_v2 = vadd.f32 %v6761_v4, %v9063_v14 }
 0x6c0   : > { %v6763_v27 = vpop.f32.mrf.mxu1  ;;  %6822 = vmatpush3.bf16.msra.mxu0 %v7659_v18 }
 0x6c1   : > { %v4750_v47 = vpack.c.bf16 %v4732_v30, %v4731_v24  ;;  %v4749_v40 = vpack.c.bf16 %v4730_v31, %v4729_v29  ;;  %6823 = vmatprep.subr.bf16.mxu0 %v7660_v20  ;;  %v6764_v59 = vadd.f32 %v6763_v27, %v6762_v22  ;;  %v7665_v20 = vld [vmem:[%s9399_s15 + $0xb0] sm:$0xff]  }
 0x6c2   : > { %v6765_v39 = vpop.f32.mrf.mxu1 }
 0x6c3   : > { %7207 = vmatprep.mubr.msk.bf16.mxu0 %vm1106_vm0, %v4749_v40  ;;  %v4613_v10 = vadd.f32 %v6764_v59, %v9063_v14 }
 0x6c4   : > { %v6766_v45 = vpop.f32.mrf.mxu1  ;;  %7208 = vmatmul.mubr.msk.bf16.gmra.mxu0 %vm1106_vm0, %v4750_v47 }
 0x6c5   : > { %v6767_v46 = vadd.f32 %v6766_v45, %v6765_v39  ;;  %v7189_v57 = vpop.f32.mrf.mxu0  ;;  %6824 = vmatpush3.bf16.msra.mxu0 %v7661_v34 }
 0x6c6   : > { %v6768_v60 = vpop.f32.mrf.mxu1  ;;  %6825 = vmatprep.subr.bf16.mxu0 %v7662_v41 }
 0x6c7   : > { %v4618_v61 = vadd.f32 %v6767_v46, %v9063_v14  ;;  %v4706_v6 = vpop.f32.mrf.mxu0 }
 0x6c8   : > { %v6769_v49 = vpop.f32.mrf.mxu1  ;;  %v4707_v51 = vadd.f32 %v4706_v6, %v4610_v2 }
 0x6c9   : > { %v6770_v23 = vadd.f32 %v6769_v49, %v6768_v60  ;;  %v7190_v5 = vpop.f32.mrf.mxu0  ;;  %6826 = vmatpush3.bf16.msra.mxu0 %v7663_v33  ;;  %v4715_v11 = vadd.f32 %v7189_v57, %v4618_v61 }
 0x6ca   : > { %7239 = vmatprep.subr.bf16.mxu0 %v9134_v54  ;;  %v4733_v50 = vmax.f32 %v4707_v51, 0.0 }
 0x6cb   : > { %v4621_v13 = vadd.f32 %v6770_v23, %v9063_v14  ;;  %v4709_v63 = vpop.f32.mrf.mxu0  ;;  %v4735_v17 = vmax.f32 %v4715_v11, 0.0  ;;  %v7666_v14 = vld [vmem:[%s9399_s15 + $0xa8] sm:$0xff]  }
 0x6cc   : > { %v4710_v53 = vadd.f32 %v4709_v63, %v4613_v10 }
 0x6cd   : > { %v4718_v52 = vadd.f32 %v7190_v5, %v4621_v13 }
 0x6ce   : > { %v4734_v12 = vmax.f32 %v4710_v53, 0.0 }
 0x6cf   : > { %v4736_v18 = vmax.f32 %v4718_v52, 0.0 }
 0x6d0   : > { %v4751_v21 = vpack.c.bf16 %v4734_v12, %v4733_v50 }
 0x6d1   : > { %v4752_v16 = vpack.c.bf16 %v4736_v18, %v4735_v17 }
 0x6d2   : > { %7211 = vmatprep.mubr.msk.bf16.mxu0 %vm1106_vm0, %v4751_v21 }
 0x6d3   : > { %7212 = vmatmul.mubr.msk.bf16.gmra.mxu0 %vm1106_vm0, %v4752_v16 }
 0x6d4   : > { %5290 = vmatprep.mubr.bf16.mxu0 %v8932_v28  ;;  %v9156_v28 = vld [vmem:[%s9399_s15 + $0xa0] sm:$0xff]  }
 0x6db   : > { %5291 = vmatmul.mubr.bf16.vlgmr.msra.gmra.mxu0 %v8930_v26  ;;  %v9164_v26 = vld [vmem:[%s9399_s15 + $0x98] sm:$0xff]  }
 0x6dc   : > { %5298 = vmatprep.mubr.bf16.mxu0 %v8942_v32  ;;  %7240 = vmatpush3.bf16.msra.mxu0 %v9134_v54  ;;  %v9171_v32 = vld [vmem:[%s9399_s15 + $0x90] sm:$0xff]  }
 0x6dd   : > { %7241 = vmatprep.subr.bf16.mxu0 %v7665_v20 }
 0x6e0   : > { %7242 = vmatpush3.bf16.msra.mxu0 %v7665_v20 }
 0x6e1   : > { %7243 = vmatprep.subr.bf16.mxu0 %v7666_v14 }
 0x6e3   : > { %5299 = vmatmul.mubr.bf16.gmra.mxu0 %v8951_v37  ;;  %v9180_v37 = vld [vmem:[%s9399_s15 + $0x88] sm:$0xff]  }
 0x6e4   : > { %5306 = vmatprep.mubr.bf16.mxu0 %v8963_v56  ;;  %7244 = vmatpush3.bf16.msra.mxu0 %v7666_v14  ;;  %v9187_v56 = vld [vmem:[%s9399_s15 + $0x80] sm:$0xff]  }
 0x6e5   : > { %7245 = vmatprep.subr.bf16.mxu0 %v9156_v28 }
 0x6e8   : > { %7246 = vmatpush3.bf16.msra.mxu0 %v9156_v28 }
 0x6e9   : > { %7247 = vmatprep.subr.bf16.mxu0 %v9164_v26 }
 0x6eb   : > { %5307 = vmatmul.mubr.bf16.gmra.mxu0 %v8961_v55  ;;  %v7675_v55 = vld [vmem:[%s9399_s15 + $0xc0] sm:$0xff]  }
 0x6ec   : > { %5314 = vmatprep.mubr.bf16.mxu0 %v8970_v58  ;;  %7248 = vmatpush3.bf16.msra.mxu0 %v9164_v26 }
 0x6ed   : > { %7249 = vmatprep.subr.bf16.mxu0 %v9171_v32  ;;  %7221 = vmatprep.subr.bf16.mxu1 %v7675_v55 }
 0x6ee   : > { %7222 = vmatpush3.bf16.msra.mxu1 %v7675_v55 }
 0x6ef   : > { %7295 = vmatprep.subr.bf16.mxu1 %v9134_v54 }
 0x6f0   : > { %7250 = vmatpush3.bf16.msra.mxu0 %v9171_v32 }
 0x6f1   : > { %7251 = vmatprep.subr.bf16.mxu0 %v9180_v37 }
 0x6f3   : > { %5315 = vmatmul.mubr.bf16.gmra.mxu0 %v8985_v9 }
 0x6f4   : > { %5322 = vmatprep.mubr.bf16.mxu0 %v8997_v7  ;;  %7252 = vmatpush3.bf16.msra.mxu0 %v9180_v37 }
 0x6f5   : > { %7253 = vmatprep.subr.bf16.mxu0 %v9187_v56 }
 0x6f8   : > { %7254 = vmatpush3.bf16.msra.mxu0 %v9187_v56 }
 0x6fb   : > { %5323 = vmatmul.mubr.bf16.gmra.mxu0 %v8995_v15  ;;  %v6219_v15 = vld [vmem:[%s9398_s14] ss:$0 sm:$0xff] }
 0x6fc   : > { %5330 = vmatprep.mubr.bf16.mxu0 %v9004_v19 }
 0x703   : > { %5331 = vmatmul.mubr.bf16.gmra.mxu0 %v9017_v0 }
 0x704   : > { %5338 = vmatprep.mubr.bf16.mxu0 %v9032_v38 }
 0x70b   : > { %5339 = vmatmul.mubr.bf16.gmra.mxu0 %v9030_v35 }
 0x70c   : > { %5346 = vmatprep.mubr.bf16.mxu0 %v9038_v42 }
 0x713   : > { %5347 = vmatmul.mubr.bf16.gmra.mxu0 %v9044_v48 }
 0x714   : > { %7255 = vmatprep.mubr.bf16.mxu0 %v8949_v36 }
 0x71b   : > { %7256 = vmatmul.mubr.bf16.vlgmr.msra.gmra.mxu0 %v8976_v62 }
 0x76b   : > { %v7201_v58 = vpop.f32.mrf.mxu0 }
 0x76c   : > { %v4851_v35 = vadd.f32 %v7201_v58, %v6219_v15 }
 0x76d   : > { %v4842_v9 = vpop.f32.mrf.mxu0 }
 0x76e   : > { %v4843_v38 = vadd.f32 %v6219_v15, %v4842_v9 }
 0x76f   : > { %v7202_v7 = vpop.f32.mrf.mxu0 }
 0x770   : > { %v4854_v19 = vadd.f32 %v7202_v7, %v6219_v15 }
 0x771   : > { %v4845_v0 = vpop.f32.mrf.mxu0 }
 0x772   : > { %v4846_v22 = vadd.f32 %v6219_v15, %v4845_v0  ;;  %v4962_v42 = vpack.c.bf16 %v4854_v19, %v4851_v35  ;;  %v7678_v0 = vld [vmem:[#allocation9 + $0x8] sm:$0xff]   ;;  %v7679_v35 = vld [vmem:[#allocation9] sm:$0xff]  }
 0x774   : > { %v4961_v24 = vpack.c.bf16 %v4846_v22, %v4843_v38 }
 0x776   : > { %7223 = vmatprep.mubr.msk.bf16.mxu1 %vm1106_vm0, %v4961_v24 }
 0x777   : > { %7224 = vmatmul.mubr.msk.bf16.vlgmr.msra.gmra.mxu1 %vm1106_vm0, %v4962_v42 }
 0x778   : > { %7303 = vmatpush3.bf16.msra.mxu1 %v9134_v54 }
 0x779   : > { %7296 = vmatprep.subr.bf16.mxu1 %v7665_v20 }
 0x77b   : > { %v7205_v36 = vpop.f32.mrf.mxu0 }
 0x77c   : > { %7304 = vmatpush3.bf16.msra.mxu1 %v7665_v20  ;;  %v4867_v47 = vadd.f32 %v7205_v36, %v6219_v15 }
 0x77d   : > { %v4858_v62 = vpop.f32.mrf.mxu0  ;;  %7297 = vmatprep.subr.bf16.mxu1 %v7666_v14 }
 0x77e   : > { %v4859_v31 = vadd.f32 %v6219_v15, %v4858_v62 }
 0x77f   : > { %v7206_v48 = vpop.f32.mrf.mxu0 }
 0x780   : > { %7305 = vmatpush3.bf16.msra.mxu1 %v7666_v14  ;;  %v4870_v29 = vadd.f32 %v7206_v48, %v6219_v15 }
 0x781   : > { %v4861_v30 = vpop.f32.mrf.mxu0  ;;  %7298 = vmatprep.subr.bf16.mxu1 %v9156_v28 }
 0x782   : > { %v4862_v27 = vadd.f32 %v6219_v15, %v4861_v30  ;;  %v4964_v39 = vpack.c.bf16 %v4870_v29, %v4867_v47 }
 0x784   : > { %v4963_v40 = vpack.c.bf16 %v4862_v27, %v4859_v31  ;;  %v7209_v34 = vpop.f32.mrf.mxu0  ;;  %7306 = vmatpush3.bf16.msra.mxu1 %v9156_v28 }
 0x785   : > { %7299 = vmatprep.subr.bf16.mxu1 %v9164_v26  ;;  %v4883_v59 = vadd.f32 %v7209_v34, %v6219_v15 }
 0x786   : > { %v4874_v41 = vpop.f32.mrf.mxu0  ;;  %7227 = vmatprep.mubr.msk.bf16.mxu1 %vm1106_vm0, %v4963_v40 }
 0x787   : > { %7228 = vmatmul.mubr.msk.bf16.gmra.mxu1 %vm1106_vm0, %v4964_v39  ;;  %v4875_v57 = vadd.f32 %v6219_v15, %v4874_v41 }
 0x788   : > { %v7210_v4 = vpop.f32.mrf.mxu0  ;;  %7307 = vmatpush3.bf16.msra.mxu1 %v9164_v26 }
 0x789   : > { %7300 = vmatprep.subr.bf16.mxu1 %v9171_v32  ;;  %v4886_v45 = vadd.f32 %v7210_v4, %v6219_v15 }
 0x78a   : > { %v4877_v46 = vpop.f32.mrf.mxu0 }
 0x78b   : > { %v4878_v33 = vadd.f32 %v6219_v15, %v4877_v46  ;;  %v4966_v54 = vpack.c.bf16 %v4886_v45, %v4883_v59 }
 0x78c   : > { %7308 = vmatpush3.bf16.msra.mxu1 %v9171_v32 }
 0x78d   : > { %v4965_v60 = vpack.c.bf16 %v4878_v33, %v4875_v57  ;;  %7301 = vmatprep.subr.bf16.mxu1 %v9180_v37 }
 0x78f   : > { %7231 = vmatprep.mubr.msk.bf16.mxu1 %vm1106_vm0, %v4965_v60 }
 0x790   : > { %7232 = vmatmul.mubr.msk.bf16.gmra.mxu1 %vm1106_vm0, %v4966_v54 }
 0x791   : > { %7309 = vmatpush3.bf16.msra.mxu1 %v9180_v37 }
 0x792   : > { %7302 = vmatprep.subr.bf16.mxu1 %v9187_v56 }
 0x793   : > { %v7213_v61 = vpop.f32.mrf.mxu0 }
 0x794   : > { %v4899_v10 = vadd.f32 %v7213_v61, %v6219_v15 }
 0x795   : > { %v4890_v6 = vpop.f32.mrf.mxu0  ;;  %7310 = vmatpush3.bf16.msra.mxu1 %v9187_v56 }
 0x796   : > { %v4891_v5 = vadd.f32 %v6219_v15, %v4890_v6 }
 0x797   : > { %v7214_v2 = vpop.f32.mrf.mxu0 }
 0x798   : > { %v4902_v49 = vadd.f32 %v7214_v2, %v6219_v15 }
 0x799   : > { %v4893_v23 = vpop.f32.mrf.mxu0 }
 0x79a   : > { %v4894_v51 = vadd.f32 %v6219_v15, %v4893_v23  ;;  %v4968_v63 = vpack.c.bf16 %v4902_v49, %v4899_v10 }
 0x79b   : > { %v6827_v11 = vpop.f32.mrf.mxu0 }
 0x79c   : > { %v4967_v13 = vpack.c.bf16 %v4894_v51, %v4891_v5 }
 0x79d   : > { %v6828_v53 = vpop.f32.mrf.mxu0 }
 0x79e   : > { %v9227_v52 = vadd.f32 %v6828_v53, %v6827_v11  ;;  %7235 = vmatprep.mubr.msk.bf16.mxu1 %vm1106_vm0, %v4967_v13 }
 0x79f   : > { %7236 = vmatmul.mubr.msk.bf16.gmra.mxu1 %vm1106_vm0, %v4968_v63  ;;  %v9231_v50 = vpop.f32.mrf.mxu0  ;;  %v9271_v63 = vld [vmem:[%s9400_s16] ss:$0 sm:$0xff] }
 0x7a0   : > { %7259 = vmatprep.mubr.bf16.mxu1 %v8983_v8 }
 0x7a1   : > { %v9234_v12 = vpop.f32.mrf.mxu0 }
 0x7a2   : > { %v6832_v5 = vadd.f32 %v9234_v12, %v9231_v50 }
 0x7a3   : > { %v6833_v17 = vpop.f32.mrf.mxu0 }
 0x7a5   : > { %v6834_v18 = vpop.f32.mrf.mxu0 }
 0x7a6   : > { %v6835_v33 = vadd.f32 %v6834_v18, %v6833_v17 }
 0x7a7   : > { %v6836_v21 = vpop.f32.mrf.mxu0  ;;  %7260 = vmatmul.mubr.bf16.vlgmr.msra.gmra.mxu1 %v9010_v25 }
 0x7a8   : > { %7263 = vmatprep.mubr.bf16.mxu1 %v9022_v3  ;;  %v7676_v3 = vld [vmem:[#allocation9 + $0x18] sm:$0xff]  }
 0x7a9   : > { %v6837_v16 = vpop.f32.mrf.mxu0  ;;  %7271 = vmatprep.subr.bf16.mxu1 %v7676_v3 }
 0x7aa   : > { %7272 = vmatpush3.bf16.msra.mxu1 %v7676_v3  ;;  %v6838_v6 = vadd.f32 %v6837_v16, %v6836_v21 }
 0x7ab   : > { %v6839_v20 = vpop.f32.mrf.mxu0 }
 0x7ad   : > { %v6840_v14 = vpop.f32.mrf.mxu0 }
 0x7ae   : > { %v9238_v28 = vadd.f32 %v6840_v14, %v6839_v20 }
 0x7af   : > { %v6842_v26 = vpop.f32.mrf.mxu0  ;;  %7264 = vmatmul.mubr.bf16.gmra.mxu1 %v9025_v1  ;;  %v7677_v1 = vld [vmem:[#allocation9 + $0x10] sm:$0xff]  }
 0x7b0   : > { %7267 = vmatprep.mubr.bf16.mxu1 %v9042_v43  ;;  %7273 = vmatprep.subr.bf16.mxu1 %v7677_v1 }
 0x7b1   : > { %v6843_v8 = vpop.f32.mrf.mxu0  ;;  %7274 = vmatpush3.bf16.msra.mxu1 %v7677_v1 }
 0x7b2   : > { %v9242_v32 = vadd.f32 %v6843_v8, %v6842_v26  ;;  %7275 = vmatprep.subr.bf16.mxu1 %v7678_v0 }
 0x7b3   : > { %v6845_v37 = vpop.f32.mrf.mxu0 }
 0x7b5   : > { %v6846_v56 = vpop.f32.mrf.mxu0  ;;  %7276 = vmatpush3.bf16.msra.mxu1 %v7678_v0 }
 0x7b6   : > { %v9244_v55 = vadd.f32 %v6846_v56, %v6845_v37  ;;  %7277 = vmatprep.subr.bf16.mxu1 %v7679_v35 }
 0x7b7   : > { %v6848_v25 = vpop.f32.mrf.mxu0  ;;  %7268 = vmatmul.mubr.bf16.gmra.mxu1 %v9048_v44 }
 0x7b9   : > { %v6849_v58 = vpop.f32.mrf.mxu0  ;;  %7278 = vmatpush3.bf16.msra.mxu1 %v7679_v35 }
 0x7ba   : > { %v9247_v9 = vadd.f32 %v6849_v58, %v6848_v25 }
 0x7bb   : > { %v6851_v7 = vpop.f32.mrf.mxu0 }
 0x7bd   : > { %v6852_v15 = vpop.f32.mrf.mxu0 }
 0x7be   : > { %v9249_v43 = vadd.f32 %v6852_v15, %v6851_v7 }
 0x7bf   : > { %v6854_v19 = vpop.f32.mrf.mxu0 }
 0x7c1   : > { %v6855_v38 = vpop.f32.mrf.mxu0 }
 0x7c2   : > { %v9251_v22 = vadd.f32 %v6855_v38, %v6854_v19 }
 0x7c3   : > { %v6857_v44 = vpop.f32.mrf.mxu0 }
 0x7c5   : > { %v6858_v24 = vpop.f32.mrf.mxu0 }
 0x7c6   : > { %v9253_v42 = vadd.f32 %v6858_v24, %v6857_v44 }
 0x7c7   : > { %v6860_v36 = vpop.f32.mrf.mxu0 }
 0x7c9   : > { %v6861_v62 = vpop.f32.mrf.mxu0 }
 0x7ca   : > { %v9255_v48 = vadd.f32 %v6861_v62, %v6860_v36 }
 0x7cb   : > { %v6863_v29 = vpop.f32.mrf.mxu0 }
 0x7cd   : > { %v6864_v30 = vpop.f32.mrf.mxu0 }
 0x7ce   : > { %v9257_v31 = vadd.f32 %v6864_v30, %v6863_v29 }
 0x7cf   : > { %v6866_v27 = vpop.f32.mrf.mxu0 }
 0x7d1   : > { %v6867_v47 = vpop.f32.mrf.mxu0 }
 0x7d2   : > { %v9259_v40 = vadd.f32 %v6867_v47, %v6866_v27 }
 0x7d3   : > { %v6869_v34 = vpop.f32.mrf.mxu0 }
 0x7d5   : > { %v6870_v39 = vpop.f32.mrf.mxu0 }
 0x7d6   : > { %v9261_v41 = vadd.f32 %v6870_v39, %v6869_v34 }
 0x7d7   : > { %v6872_v4 = vpop.f32.mrf.mxu0 }
 0x7d9   : > { %v6873_v45 = vpop.f32.mrf.mxu0 }
 0x7da   : > { %v9263_v46 = vadd.f32 %v6873_v45, %v6872_v4 }
 0x7db   : > { %v7257_v57 = vpop.f32.mrf.mxu0 }
 0x7dd   : > { %v5389_v59 = vpop.f32.mrf.mxu0 }
 0x7df   : > { %v7258_v49 = vpop.f32.mrf.mxu0 }
 0x7e1   : > { %v5392_v18 = vpop.f32.mrf.mxu0 }
 0x837   : > { %v7225_v60 = vpop.f32.mrf.mxu1 }
 0x838   : > { %v5301_v54 = vadd.f32 %v7225_v60, %v6835_v33 }
 0x839   : > { %v5051_v61 = vpop.f32.mrf.mxu1 }
 0x83a   : > { %v5293_v2 = vadd.f32 %v9227_v52, %v5051_v61  ;;  %v5398_v11 = vadd.f32 %v7257_v57, %v5301_v54 }
 0x83b   : > { %v7226_v23 = vpop.f32.mrf.mxu1 }
 0x83c   : > { %v5390_v51 = vadd.f32 %v5389_v59, %v5293_v2  ;;  %v5304_v10 = vadd.f32 %v7226_v23, %v6838_v6  ;;  %v5461_v20 = vadd.f32 %v9271_v63, %v5398_v11 }
 0x83d   : > { %v5054_v13 = vpop.f32.mrf.mxu1 }
 0x83e   : > { %v5401_v53 = vadd.f32 %v7258_v49, %v5304_v10  ;;  %v5296_v17 = vadd.f32 %v6832_v5, %v5054_v13  ;;  %v5459_v21 = vadd.f32 %v9271_v63, %v5390_v51  ;;  %v5477_v8 = vmax.f32 %v5461_v20, 0.0 }
 0x840   : > { %v5462_v52 = vadd.f32 %v9271_v63, %v5401_v53  ;;  %v5393_v16 = vadd.f32 %v5392_v18, %v5296_v17  ;;  %v5475_v14 = vmax.f32 %v5459_v21, 0.0 }
 0x842   : > { %v5460_v50 = vadd.f32 %v9271_v63, %v5393_v16  ;;  %v5478_v12 = vmax.f32 %v5462_v52, 0.0 }
 0x844   : > { %v5476_v26 = vmax.f32 %v5460_v50, 0.0  ;;  %v5500_v56 = vpack.c.bf16 %v5478_v12, %v5477_v8 }
 0x846   : > { %v5499_v37 = vpack.c.bf16 %v5476_v26, %v5475_v14 }
 0x847   : > { %v7229_v25 = vpop.f32.mrf.mxu1 }
 0x848   : > { %7279 = vmatprep.mubr.msk.bf16.mxu1 %vm1106_vm0, %v5499_v37  ;;  %v5317_v36 = vadd.f32 %v7229_v25, %v9244_v55 }
 0x849   : > { %v5067_v3 = vpop.f32.mrf.mxu1  ;;  %7280 = vmatmul.mubr.msk.bf16.vlgmr.msra.gmra.mxu1 %vm1106_vm0, %v5500_v56 }
 0x84a   : > { %v5309_v29 = vadd.f32 %v9238_v28, %v5067_v3 }
 0x84b   : > { %v7230_v58 = vpop.f32.mrf.mxu1 }
 0x84c   : > { %v5320_v47 = vadd.f32 %v7230_v58, %v9247_v9 }
 0x84d   : > { %v5070_v7 = vpop.f32.mrf.mxu1 }
 0x84e   : > { %v5312_v4 = vadd.f32 %v9242_v32, %v5070_v7 }
 0x850   : > { %v7233_v1 = vpop.f32.mrf.mxu1 }
 0x851   : > { %v5333_v59 = vadd.f32 %v7233_v1, %v9253_v42 }
 0x852   : > { %v5083_v15 = vpop.f32.mrf.mxu1 }
 0x853   : > { %v5325_v28 = vadd.f32 %v9249_v43, %v5083_v15 }
 0x854   : > { %v7234_v19 = vpop.f32.mrf.mxu1 }
 0x855   : > { %v5336_v32 = vadd.f32 %v7234_v19, %v9255_v48 }
 0x856   : > { %v5086_v0 = vpop.f32.mrf.mxu1 }
 0x857   : > { %v5328_v13 = vadd.f32 %v9251_v22, %v5086_v0 }
 0x85f   : > { %v7237_v38 = vpop.f32.mrf.mxu1 }
 0x860   : > { %v5349_v21 = vadd.f32 %v7237_v38, %v9261_v41 }
 0x861   : > { %v5099_v44 = vpop.f32.mrf.mxu1 }
 0x862   : > { %v5341_v20 = vadd.f32 %v9257_v31, %v5099_v44 }
 0x863   : > { %v7238_v35 = vpop.f32.mrf.mxu1 }
 0x864   : > { %v5352_v8 = vadd.f32 %v7238_v35, %v9263_v46 }
 0x865   : > { %v5102_v24 = vpop.f32.mrf.mxu1 }
 0x866   : > { %v5344_v7 = vadd.f32 %v9259_v40, %v5102_v24 }
 0x867   : > { %v7261_v62 = vpop.f32.mrf.mxu1 }
 0x868   : > { %v5414_v30 = vadd.f32 %v7261_v62, %v5317_v36 }
 0x869   : > { %v5405_v27 = vpop.f32.mrf.mxu1 }
 0x86a   : > { %v5406_v34 = vadd.f32 %v5405_v27, %v5309_v29  ;;  %v5465_v45 = vadd.f32 %v9271_v63, %v5414_v30  ;;  %v6269_v30 = vld [vmem:[%s9402_s18] ss:$0 sm:$0xff] }
 0x86b   : > { %v7262_v39 = vpop.f32.mrf.mxu1 }
 0x86c   : > { %v5417_v57 = vadd.f32 %v7262_v39, %v5320_v47  ;;  %v5463_v60 = vadd.f32 %v9271_v63, %v5406_v34  ;;  %v5481_v6 = vmax.f32 %v5465_v45, 0.0 }
 0x86d   : > { %v5408_v33 = vpop.f32.mrf.mxu1 }
 0x86e   : > { %v5466_v55 = vadd.f32 %v9271_v63, %v5417_v57  ;;  %v5409_v54 = vadd.f32 %v5408_v33, %v5312_v4  ;;  %v5479_v5 = vmax.f32 %v5463_v60, 0.0 }
 0x86f   : > { %v7265_v61 = vpop.f32.mrf.mxu1 }
 0x870   : > { %v5482_v9 = vmax.f32 %v5466_v55, 0.0  ;;  %v5464_v2 = vadd.f32 %v9271_v63, %v5409_v54  ;;  %v5430_v49 = vadd.f32 %v7265_v61, %v5333_v59 }
 0x871   : > { %v5421_v23 = vpop.f32.mrf.mxu1 }
 0x872   : > { %v5502_v51 = vpack.c.bf16 %v5482_v9, %v5481_v6  ;;  %v5480_v10 = vmax.f32 %v5464_v2, 0.0  ;;  %v5422_v42 = vadd.f32 %v5421_v23, %v5325_v28  ;;  %v5469_v17 = vadd.f32 %v9271_v63, %v5430_v49 }
 0x873   : > { %v7266_v11 = vpop.f32.mrf.mxu1 }
 0x874   : > { %v5501_v53 = vpack.c.bf16 %v5480_v10, %v5479_v5  ;;  %v5433_v43 = vadd.f32 %v7266_v11, %v5336_v32  ;;  %v5467_v52 = vadd.f32 %v9271_v63, %v5422_v42  ;;  %v5485_v22 = vmax.f32 %v5469_v17, 0.0 }
 0x875   : > { %v5424_v18 = vpop.f32.mrf.mxu1 }
 0x876   : > { %v5470_v16 = vadd.f32 %v9271_v63, %v5433_v43  ;;  %v5425_v48 = vadd.f32 %v5424_v18, %v5328_v13  ;;  %7283 = vmatprep.mubr.msk.bf16.mxu1 %vm1106_vm0, %v5501_v53  ;;  %v5483_v37 = vmax.f32 %v5467_v52, 0.0 }
 0x877   : > { %v7269_v50 = vpop.f32.mrf.mxu1  ;;  %7284 = vmatmul.mubr.msk.bf16.gmra.mxu1 %vm1106_vm0, %v5502_v51 }
 0x878   : > { %v5486_v12 = vmax.f32 %v5470_v16, 0.0  ;;  %v5468_v14 = vadd.f32 %v9271_v63, %v5425_v48  ;;  %v5446_v26 = vadd.f32 %v7269_v50, %v5349_v21 }
 0x879   : > { %v5437_v41 = vpop.f32.mrf.mxu1 }
 0x87a   : > { %v5504_v56 = vpack.c.bf16 %v5486_v12, %v5485_v22  ;;  %v5484_v25 = vmax.f32 %v5468_v14, 0.0  ;;  %v5438_v3 = vadd.f32 %v5437_v41, %v5341_v20  ;;  %v5473_v31 = vadd.f32 %v9271_v63, %v5446_v26 }
 0x87b   : > { %v7270_v58 = vpop.f32.mrf.mxu1 }
 0x87c   : > { %v5503_v1 = vpack.c.bf16 %v5484_v25, %v5483_v37  ;;  %v5449_v15 = vadd.f32 %v7270_v58, %v5352_v8  ;;  %v5471_v0 = vadd.f32 %v9271_v63, %v5438_v3  ;;  %v5489_v44 = vmax.f32 %v5473_v31, 0.0 }
 0x87d   : > { %v5440_v19 = vpop.f32.mrf.mxu1 }
 0x87e   : > { %v5474_v38 = vadd.f32 %v9271_v63, %v5449_v15  ;;  %v5441_v46 = vadd.f32 %v5440_v19, %v5344_v7  ;;  %7287 = vmatprep.mubr.msk.bf16.mxu1 %vm1106_vm0, %v5503_v1  ;;  %v5487_v24 = vmax.f32 %v5471_v0, 0.0 }
 0x87f   : > { %7288 = vmatmul.mubr.msk.bf16.gmra.mxu1 %vm1106_vm0, %v5504_v56 }
 0x880   : > { %v5490_v35 = vmax.f32 %v5474_v38, 0.0  ;;  %v5472_v40 = vadd.f32 %v9271_v63, %v5441_v46 }
 0x882   : > { %v5506_v36 = vpack.c.bf16 %v5490_v35, %v5489_v44  ;;  %v5488_v62 = vmax.f32 %v5472_v40, 0.0 }
 0x884   : > { %v5505_v29 = vpack.c.bf16 %v5488_v62, %v5487_v24 }
 0x886   : > { %7291 = vmatprep.mubr.msk.bf16.mxu1 %vm1106_vm0, %v5505_v29 }
 0x887   : > { %7292 = vmatmul.mubr.msk.bf16.gmra.mxu1 %vm1106_vm0, %v5506_v36 }
 0x909   : > { %v7281_v27 = vpop.f32.mrf.mxu1 }
 0x90a   : > { %v5605_v47 = vadd.f32 %v7281_v27, %v6269_v30 }
 0x90b   : > { %v5596_v34 = vpop.f32.mrf.mxu1 }
 0x90c   : > { %5661 = vst [vmem:[%s9315_s23 + $0x10] sm:$0xff] %v5605_v47  ;;  %v5597_v63 = vadd.f32 %v6269_v30, %v5596_v34 }
 0x90d   : > { %v7282_v39 = vpop.f32.mrf.mxu1 }
 0x90e   : > { %5659 = vst [vmem:[%s9315_s23] sm:$0xff] %v5597_v63  ;;  %v5608_v4 = vadd.f32 %v7282_v39, %v6269_v30 }
 0x90f   : > { %v5599_v45 = vpop.f32.mrf.mxu1 }
 0x910   : > { %5662 = vst [vmem:[%s9315_s23 + $0x18] sm:$0xff] %v5608_v4  ;;  %v5600_v57 = vadd.f32 %v6269_v30, %v5599_v45 }
 0x912   : > { %5660 = vst [vmem:[%s9315_s23 + $0x8] sm:$0xff] %v5600_v57 }
 0x937   : > { %v7285_v33 = vpop.f32.mrf.mxu1 }
 0x938   : > { %v5621_v59 = vadd.f32 %v7285_v33, %v6269_v30 }
 0x939   : > { %v5612_v60 = vpop.f32.mrf.mxu1 }
 0x93a   : > { %5665 = vst [vmem:[%s9315_s23 + $0x30] sm:$0xff] %v5621_v59  ;;  %v5613_v55 = vadd.f32 %v6269_v30, %v5612_v60 }
 0x93b   : > { %v7286_v54 = vpop.f32.mrf.mxu1 }
 0x93c   : > { %5663 = vst [vmem:[%s9315_s23 + $0x20] sm:$0xff] %v5613_v55  ;;  %v5624_v28 = vadd.f32 %v7286_v54, %v6269_v30 }
 0x93d   : > { %v5615_v61 = vpop.f32.mrf.mxu1 }
 0x93e   : > { %5666 = vst [vmem:[%s9315_s23 + $0x38] sm:$0xff] %v5624_v28  ;;  %v5616_v6 = vadd.f32 %v6269_v30, %v5615_v61 }
 0x93f   : > { %v7289_v9 = vpop.f32.mrf.mxu1 }
 0x940   : > { %5664 = vst [vmem:[%s9315_s23 + $0x28] sm:$0xff] %v5616_v6  ;;  %v5637_v2 = vadd.f32 %v7289_v9, %v6269_v30 }
 0x941   : > { %v5628_v49 = vpop.f32.mrf.mxu1 }
 0x942   : > { %5669 = vst [vmem:[%s9315_s23 + $0x50] sm:$0xff] %v5637_v2  ;;  %v5629_v32 = vadd.f32 %v6269_v30, %v5628_v49 }
 0x943   : > { %v7290_v23 = vpop.f32.mrf.mxu1 }
 0x944   : > { %5667 = vst [vmem:[%s9315_s23 + $0x40] sm:$0xff] %v5629_v32  ;;  %v5640_v5 = vadd.f32 %v7290_v23, %v6269_v30 }
 0x945   : > { %v5631_v51 = vpop.f32.mrf.mxu1 }
 0x946   : > { %5670 = vst [vmem:[%s9315_s23 + $0x58] sm:$0xff] %v5640_v5  ;;  %v5632_v10 = vadd.f32 %v6269_v30, %v5631_v51 }
 0x947   : > { %v7293_v42 = vpop.f32.mrf.mxu1 }
 0x948   : > { %5668 = vst [vmem:[%s9315_s23 + $0x48] sm:$0xff] %v5632_v10  ;;  %v5653_v11 = vadd.f32 %v7293_v42, %v6269_v30 }
 0x949   : > { %v5644_v13 = vpop.f32.mrf.mxu1 }
 0x94a   : > { %5673 = vst [vmem:[%s9315_s23 + $0x70] sm:$0xff] %v5653_v11  ;;  %v5645_v53 = vadd.f32 %v6269_v30, %v5644_v13 }
 0x94b   : > { %v7294_v17 = vpop.f32.mrf.mxu1 }
 0x94c   : > { %5671 = vst [vmem:[%s9315_s23 + $0x60] sm:$0xff] %v5645_v53  ;;  %v5656_v43 = vadd.f32 %v7294_v17, %v6269_v30 }
 0x94d   : > { %v5647_v18 = vpop.f32.mrf.mxu1 }
 0x94e   : > { %5674 = vst [vmem:[%s9315_s23 + $0x78] sm:$0xff] %v5656_v43  ;;  %v5648_v21 = vadd.f32 %v6269_v30, %v5647_v18 }
 0x950   : > { %5672 = vst [vmem:[%s9315_s23 + $0x68] sm:$0xff] %v5648_v21 }
 0x951   : > { %7797 = shalt.err (!%p7794_p13)
}
 0x952   : > { %s7798_s25 = scalar_lea.hbm %s9336_s22, 2048  ;;  %s7802_s21 = scalar_lea.hbm %s9441_s29, 4096 }
 0x953   : > { %p7799_p8 = scmp.ne.s32.totalorder %s9336_s22, %s7798_s25  ;;  %p7803_p2 = scmp.lt.s32.totalorder %s9336_s22, %s9441_s29 }
 0x954   : > { %p7804_p12 = scmp.lt.s32.totalorder %s7802_s21, %s7798_s25 }
 0x955   : > { %p7800_p11 = pnand %p7799_p8, %p9442_p6 }
 0x956   : > { %p7805_p10 = por %p7804_p12, %p7803_p2 }
 0x957   : > { %p7801_p0 = pneg %p7800_p11 }
 0x959   : > { %p7806_p1 = pnand %p7805_p10, %p7801_p0 }
 0x95b   : > { %7809 = shalt.err (!%p7806_p1)
}
 0x95c   : > { %s7866_s20 = smov 128   ;;  %s7867_s2 = smov 8  }
 0x95d   : > { %7327 = dma.vmem_to_hbm [thread:$0]  (%p9442_p6), %s9338_s19, 2048, %s9336_s22, %s9344_s1, %s7866_s20, %s7866_s20, %s7867_s2  }
 0x95e PF: > { %s9443_s27 = sld [smem:[#allocation18_spill]] }
 0x95f   : > { %s9444_s23 = sld [smem:[#allocation16_spill]] }
 0x960   : > { %s9445_s26 = sld [smem:[#allocation21_spill]] }
 0x964   : > { %p7354_p5 = scmp.ge.s32.totalorder %s9443_s27, 2 }
 0x965   : > { %s5704_s4 = sand.u32 1, %s9444_s23  }
 0x966   : > { %p9446_p9 = scmp.ne.s32.totalorder %s9445_s26, 0  ;;  %s5705_s25 = scalar_lea.sflag [#allocation5], %s5704_s4 }
 0x968   : > { %p7343_p3 = pnand %p7354_p5, %p9446_p9 }
 0x96a   : > { %p7344_p4 = pneg %p7343_p3 }
 0x96c   : > { %7839 = dma.done.wait (%p7344_p4), %s5705_s25, 2048  }
 0x96d   : > { %7841 = vsyncadd (%p7344_p4), %s5705_s25, 4294965248  ;;  %s9447_s21 = sld [smem:[#allocation19_spill]]  ;;  %s9450_s0 = smov %s7848_s30 }
 0x96e   : > { %s9448_s24 = sld [smem:[#allocation17_spill]] }
 0x96f   : > { %s9449_s20 = sld [smem:[#allocation20_spill]] }
 0x973   : > { %p32_p7 = scmp.ge.s32.totalorder %s9447_s21, 4  }
 0x974   : > { %s9451_s30 = smov %s9448_s24 }
 0x975   :  { %34 = sbr.rel (!%p32_p7) target bundleno = 13 (0xd), region = 154 }
 0x97a   :  { %5710 = vsyncpa [#allocation4], 1 }
 0x97b   :  { %5712 = vsyncpa [#allocation4 + $0x1], 1 }
 0x97c   :  { %5713 = vsyncpa [#allocation7], 1 }
 0x97d   :  { %5714 = vsyncpa [#allocation10], 1 }
 0x97e   :  { %5715 = vsyncpa [#allocation5], 1 }
 0x97f   :  { %5717 = vsyncpa [#allocation5 + $0x1], 1 }

</bundles_post_ra>
